<compile_context>
chip_gen: v7x
topology: tpu7x:2x2x1
jax: 0.10.0
libtpu: 0.0.40
codegen_flags: <defaults>
</compile_context>

<pallas_src>
import functools

import jax
import jax.numpy as jnp
import numpy as np
from jax.experimental import pallas as pl
from jax.experimental.pallas import tpu as pltpu


# For output parity p in {0,1}: list of (spatial shift a, kernel index k) such that
# output row 2*r+p receives T[r+a, ..., k, ...].  The same table applies to columns.
_PHASE_TERMS = {
    0: ((0, 1), (-1, 3)),   # even output rows/cols
    1: ((0, 2), (1, 0)),    # odd  output rows/cols
}


def _decoder_block_kernel(x_ref, w_ref, *rest, upsample, eps, H, W, cout):
    # x_ref : (1, Hp*Wp, Cin)        zero-padded, channels-last input (compute_dtype)
    # w_ref : (Cin, 16*Cout)         all 16 kernel taps packed along lanes (compute_dtype)
    # [bias_ref : (1, Cout)] f32     only when upsample=False
    # o_ref : (1, 4, H, W, Cout)     per-phase output (written exactly once)
    # t_ref : (Hp, Wp, 16*Cout) f32  scratch: tap tensor
    # [y_ref : (4, H, W, Cout) f32]  scratch: pre-norm phase activations (upsample only)
    if upsample:
        o_ref, t_ref, y_ref = rest
        bias_ref = None
    else:
        bias_ref, o_ref, t_ref = rest
        y_ref = None

    Hp, Wp = t_ref.shape[0], t_ref.shape[1]

    # --- single lane-dense MXU matmul: all 16 tap partial products at once -----
    #   t[ihp, iwp, (4*kh+kw)*Cout + co] = sum_ci xpad[ihp, iwp, ci] * W[ci, co, kh, kw]
    # bf16 x bf16 -> f32 accumulation (preferred_element_type).
    t = jnp.dot(x_ref[0], w_ref[...], preferred_element_type=jnp.float32)
    t_ref[...] = t.reshape(Hp, Wp, 16 * cout)   # Wp % 8 == 0 -> layout-trivial split

    inv_cnt = 1.0 / float(4 * H * W)
    s = jnp.zeros((1, 1, cout), jnp.float32)
    s2 = jnp.zeros((1, 1, cout), jnp.float32)

    # --- pass 1: combine taps into the 4 output phases (shifted VPU adds) ------
    # The border of t_ref is exactly zero (input was spatially zero-padded), so
    # the conv-transpose padding falls out for free; no masking needed.
    for ph in range(2):              # output row parity
        for pw in range(2):          # output col parity
            acc = None
            for (a, kh) in _PHASE_TERMS[ph]:
                for (b, kw) in _PHASE_TERMS[pw]:
                    tap = 4 * kh + kw
                    term = t_ref[1 + a:1 + a + H,
                                 1 + b:1 + b + W,
                                 tap * cout:(tap + 1) * cout]
                    acc = term if acc is None else acc + term
            if upsample:
                # per-channel stats for InstanceNorm (per-channel bias omitted: it
                # cancels exactly under the mean subtraction that follows).
                s = s + jnp.sum(acc, axis=(0, 1), keepdims=True)
                s2 = s2 + jnp.sum(acc * acc, axis=(0, 1), keepdims=True)
                y_ref[2 * ph + pw] = acc        # f32 scratch; o_ref written once below
            else:
                acc = acc + bias_ref[...].reshape(1, 1, cout)
                o_ref[0, 2 * ph + pw] = acc.astype(o_ref.dtype)

    # --- pass 2 (upsample only): InstanceNorm (affine=False) + LeakyReLU(0.2) --
    if upsample:
        mean = s * inv_cnt
        var = jnp.maximum(s2 * inv_cnt - mean * mean, 0.0)   # clamp: one-pass formula
        scale = jax.lax.rsqrt(var + eps)
        for f in range(4):
            yv = (y_ref[f] - mean) * scale
            o_ref[0, f] = jnp.maximum(yv, 0.2 * yv).astype(o_ref.dtype)


def _padded_vmem_bytes(shape, dtype):
    """Approximate VMEM bytes of a buffer including (sublane, lane) tile padding."""
    itemsize = np.dtype(dtype).itemsize
    dims = list(shape)
    if len(dims) >= 1:
        dims[-1] = -(-dims[-1] // 128) * 128
    if len(dims) >= 2:
        sub = 8 * max(1, 4 // itemsize)          # 8 for f32, 16 for bf16, 32 for i8
        dims[-2] = -(-dims[-2] // sub) * sub
    n = 1
    for d in dims:
        n *= d
    return n * itemsize


def decoder_block(x, weight, bias, *, upsample: bool = True, eps: float = 1e-5,
                  compute_dtype=jnp.bfloat16, channels_last: bool = False):
    """DecoderBlock forward.

    x      : (N, Cin, H, W) NCHW (or (N, H, W, Cin) if channels_last=True)
    weight : (Cin, Cout, 4, 4)   (PyTorch ConvTranspose2d layout)
    bias   : (Cout,)
    Returns (N, Cout, 2H, 2W) NCHW (or (N, 2H, 2W, Cout) if channels_last=True),
    matching nn.ConvTranspose2d(Cin, Cout, 4, stride=2, padding=1)
    [+ InstanceNorm2d(affine=False) + LeakyReLU(0.2) when upsample=True].
    """
    if channels_last:
        N, H, W, Cin = x.shape
        x_nhwc = x.astype(compute_dtype)
    else:
        N, Cin, H, W = x.shape
        # cast before the transpose so the layout pass moves half the bytes
        x_nhwc = x.astype(compute_dtype).transpose(0, 2, 3, 1)
    Cout = weight.shape[1]
    out_dtype = x.dtype

    Hp = H + 2
    Wp = ((W + 2 + 7) // 8) * 8          # >= W+2 and a multiple of 8 (layout-friendly)
    pad_r = Wp - W - 1

    # channels-last, spatially zero-padded input (≈1.3x of x; no im2col)
    xp = jnp.pad(x_nhwc, ((0, 0), (1, 1), (1, pad_r), (0, 0)))
    xflat = xp.reshape(N, Hp * Wp, Cin)

    # all 16 kernel taps packed along the lane dim: (Cin, 16*Cout)
    wpak = weight.transpose(0, 2, 3, 1).reshape(Cin, 16 * Cout).astype(compute_dtype)

    kernel = functools.partial(_decoder_block_kernel, upsample=upsample,
                               eps=eps, H=H, W=W, cout=Cout)

    in_specs = [
        pl.BlockSpec((1, Hp * Wp, Cin), lambda n: (n, 0, 0)),
        # constant index_map -> Pallas keeps the weight block resident
        pl.BlockSpec((Cin, 16 * Cout), lambda n: (0, 0)),
    ]
    inputs = [xflat, wpak]
    if not upsample:
        # bias only matters without InstanceNorm (it cancels exactly otherwise)
        in_specs.append(pl.BlockSpec((1, Cout), lambda n: (0, 0)))
        inputs.append(bias.astype(jnp.float32).reshape(1, Cout))

    scratch_shapes = [pltpu.VMEM((Hp, Wp, 16 * Cout), jnp.float32)]
    if upsample:
        scratch_shapes.append(pltpu.VMEM((4, H, W, Cout), jnp.float32))

    # ---- explicit scoped-VMEM budget (padding-aware, double-buffered blocks) ----
    total = 0
    total += 2 * _padded_vmem_bytes((1, Hp * Wp, Cin), compute_dtype)       # x block
    total += 2 * _padded_vmem_bytes((Cin, 16 * Cout), compute_dtype)        # weights
    total += 2 * _padded_vmem_bytes((1, 4, H, W, Cout), out_dtype)          # out block
    if not upsample:
        total += 2 * _padded_vmem_bytes((1, Cout), jnp.float32)             # bias
    total += _padded_vmem_bytes((Hp, Wp, 16 * Cout), jnp.float32)           # t_ref
    if upsample:
        total += _padded_vmem_bytes((4, H, W, Cout), jnp.float32)           # y_ref
    try:
        vmem_cap = int(pltpu.get_tpu_info().vmem_capacity_bytes)
    except Exception:
        vmem_cap = 64 << 20                                                 # v7x-safe
    vmem_limit = int(min(max(2 * total + (4 << 20), 32 << 20),
                         int(0.9 * vmem_cap)))
    # TODO(synk): if `total` approaches the cap at production decoder shapes,
    # switch to an H-tiled grid axis with a haloed tap scratch and a two-pass
    # InstanceNorm (review item 2/10) instead of raising the limit further.

    out = pl.pallas_call(
        kernel,
        out_shape=jax.ShapeDtypeStruct((N, 4, H, W, Cout), out_dtype),
        grid_spec=pltpu.PrefetchScalarGridSpec(
            num_scalar_prefetch=0,
            grid=(N,),
            in_specs=in_specs,
            out_specs=pl.BlockSpec((1, 4, H, W, Cout),
                                   lambda n: (n, 0, 0, 0, 0)),
            scratch_shapes=scratch_shapes,
        ),
        compiler_params=pltpu.CompilerParams(
            dimension_semantics=("parallel",),
            vmem_limit_bytes=vmem_limit),
    )(*inputs)

    # interleave the 4 phases back into the requested layout
    out = out.reshape(N, 2, 2, H, W, Cout)               # (N, ph, pw, p, q, c)
    if channels_last:
        out = out.transpose(0, 3, 1, 4, 2, 5)             # (N, p, ph, q, pw, c)
        return out.reshape(N, 2 * H, 2 * W, Cout)
    out = out.transpose(0, 5, 3, 1, 4, 2)                 # (N, c, p, ph, q, pw)
    return out.reshape(N, Cout, 2 * H, 2 * W)


def _reference(x, weight, bias, upsample=True, eps=1e-5):
    """Pure-JAX/XLA f32 reference of the intended forward pass."""
    Cout = weight.shape[1]
    w_flip = jnp.flip(weight, axis=(2, 3)).transpose(1, 0, 2, 3)  # (Cout, Cin, 4, 4)
    y = jax.lax.conv_general_dilated(
        x, w_flip, window_strides=(1, 1), padding=((2, 2), (2, 2)),
        lhs_dilation=(2, 2),
        dimension_numbers=("NCHW", "OIHW", "NCHW"))
    y = y + bias.reshape(1, Cout, 1, 1)
    if upsample:
        mean = jnp.mean(y, axis=(2, 3), keepdims=True)
        var = jnp.mean((y - mean) ** 2, axis=(2, 3), keepdims=True)
        y = (y - mean) / jnp.sqrt(var + eps)
        y = jnp.where(y >= 0, y, 0.2 * y)
    return y


if __name__ == "__main__":
    key = jax.random.PRNGKey(0)
    k1, k2, k3 = jax.random.split(key, 3)

    # small shapes consistent with the module
    N, Cin, Cout, H, W = 2, 4, 8, 16, 16
    x = jax.random.normal(k1, (N, Cin, H, W), dtype=jnp.float32)
    weight = jax.random.normal(k2, (Cin, Cout, 4, 4), dtype=jnp.float32) * 0.1
    bias = jax.random.normal(k3, (Cout,), dtype=jnp.float32) * 0.1

    # 1) exactness of the kernel math: f32 compute path vs f32 XLA reference
    for ups in (True, False):
        out = jax.block_until_ready(
            decoder_block(x, weight, bias, upsample=ups, compute_dtype=jnp.float32))
        ref = jax.block_until_ready(_reference(x, weight, bias, upsample=ups))
        assert out.shape == (N, Cout, 2 * H, 2 * W), out.shape
        np.testing.assert_allclose(np.asarray(out), np.asarray(ref),
                                   rtol=1e-4, atol=1e-4)

    # 2) performance path: bf16 inputs (MXU-native), f32 accumulation.
    #    Looser tolerance vs the all-f32 reference purely due to bf16 input rounding.
    for ups in (True, False):
        out = jax.block_until_ready(decoder_block(x, weight, bias, upsample=ups))
        ref = jax.block_until_ready(_reference(x, weight, bias, upsample=ups))
        assert out.shape == (N, Cout, 2 * H, 2 * W), out.shape
        np.testing.assert_allclose(np.asarray(out), np.asarray(ref),
                                   rtol=3e-2, atol=3e-2)

    print("KERNEL_OK")
</pallas_src>

<mosaic_0001>
module attributes {stable_mosaic.version = 11 : i64} {
  func.func @_decoder_block_kernel(%arg0: i32, %arg1: memref<1x432x4xf32, #tpu.memory_space<vmem>>, %arg2: memref<4x128xf32, #tpu.memory_space<vmem>>, %arg3: memref<1x4x16x16x8xf32, #tpu.memory_space<vmem>>, %arg4: memref<18x24x128xf32, #tpu.memory_space<vmem>>, %arg5: memref<4x16x16x8xf32, #tpu.memory_space<vmem>>) attributes {dimension_semantics = [#tpu.dimension_semantics<parallel>], iteration_bounds = array<i64: 2>, scalar_prefetch = 0 : i64, scratch_operands = 2 : i64, tpu.core_type = #tpu.core_type<tc>, window_params = [{transform_indices = @transform_0, window_bounds = array<i64: 1, 432, 4>}, {pipeline_mode = #tpu.pipeline_mode<synchronous>, transform_indices = @transform_1, window_bounds = array<i64: 4, 128>}, {transform_indices = @transform_2, window_bounds = array<i64: 1, 4, 16, 16, 8>}]} {
    %c0 = arith.constant 0 : index
    %c0_0 = arith.constant 0 : index
    %c0_1 = arith.constant 0 : index
    %0 = vector.load %arg1[%c0, %c0_0, %c0_1] : memref<1x432x4xf32, #tpu.memory_space<vmem>>, vector<1x432x4xf32>
    %1 = vector.shape_cast %0 : vector<1x432x4xf32> to vector<432x4xf32>
    %c0_2 = arith.constant 0 : index
    %c0_3 = arith.constant 0 : index
    %2 = vector.load %arg2[%c0_2, %c0_3] : memref<4x128xf32, #tpu.memory_space<vmem>>, vector<4x128xf32>
    %cst = arith.constant dense<0.000000e+00> : vector<432x128xf32>
    %3 = tpu.matmul %1, %2, %cst {dimension_numbers = #tpu.dot_dimension_numbers<[1], [0], [0], [1], [0, 0, 1, 1], [], []>} : vector<432x4xf32>, vector<4x128xf32>, vector<432x128xf32> -> vector<432x128xf32>
    %4 = vector.shape_cast %3 : vector<432x128xf32> to vector<18x24x128xf32>
    %c0_4 = arith.constant 0 : index
    %c0_5 = arith.constant 0 : index
    %c0_6 = arith.constant 0 : index
    %5 = vector.load %arg4[%c0_4, %c0_5, %c0_6] : memref<18x24x128xf32, #tpu.memory_space<vmem>>, vector<18x24x128xf32>
    tpu.vector_store %arg4[%c0_4, %c0_5, %c0_6], %4 {strides = array<i32>} : memref<18x24x128xf32, #tpu.memory_space<vmem>>, vector<18x24x128xf32>,
    %cst_7 = arith.constant 0.000000e+00 : f32
    %6 = vector.broadcast %cst_7 : f32 to vector<1x1x8xf32>
    %cst_8 = arith.constant 0.000000e+00 : f32
    %7 = vector.broadcast %cst_8 : f32 to vector<1x1x8xf32>
    %c1 = arith.constant 1 : index
    %c1_9 = arith.constant 1 : index
    %c40 = arith.constant 40 : index
    %8 = vector.load %arg4[%c1, %c1_9, %c40] : memref<18x24x128xf32, #tpu.memory_space<vmem>>, vector<16x16x8xf32>
    %c1_10 = arith.constant 1 : index
    %c0_11 = arith.constant 0 : index
    %c56 = arith.constant 56 : index
    %9 = vector.load %arg4[%c1_10, %c0_11, %c56] : memref<18x24x128xf32, #tpu.memory_space<vmem>>, vector<16x16x8xf32>
    %10 = arith.addf %8, %9 : vector<16x16x8xf32>
    %c0_12 = arith.constant 0 : index
    %c1_13 = arith.constant 1 : index
    %c104 = arith.constant 104 : index
    %11 = vector.load %arg4[%c0_12, %c1_13, %c104] : memref<18x24x128xf32, #tpu.memory_space<vmem>>, vector<16x16x8xf32>
    %12 = arith.addf %10, %11 : vector<16x16x8xf32>
    %c0_14 = arith.constant 0 : index
    %c0_15 = arith.constant 0 : index
    %c120 = arith.constant 120 : index
    %13 = vector.load %arg4[%c0_14, %c0_15, %c120] : memref<18x24x128xf32, #tpu.memory_space<vmem>>, vector<16x16x8xf32>
    %14 = arith.addf %12, %13 : vector<16x16x8xf32>
    %cst_16 = arith.constant dense<0.000000e+00> : vector<8xf32>
    %15 = vector.multi_reduction <add>, %14, %cst_16 [0, 1] : vector<16x16x8xf32> to vector<8xf32>
    %16 = vector.shape_cast %15 : vector<8xf32> to vector<1x1x8xf32>
    %17 = arith.addf %6, %16 : vector<1x1x8xf32>
    %18 = arith.mulf %14, %14 : vector<16x16x8xf32>
    %cst_17 = arith.constant dense<0.000000e+00> : vector<8xf32>
    %19 = vector.multi_reduction <add>, %18, %cst_17 [0, 1] : vector<16x16x8xf32> to vector<8xf32>
    %20 = vector.shape_cast %19 : vector<8xf32> to vector<1x1x8xf32>
    %21 = arith.addf %7, %20 : vector<1x1x8xf32>
    %c0_18 = arith.constant 0 : index
    %c0_19 = arith.constant 0 : index
    %c0_20 = arith.constant 0 : index
    %c0_21 = arith.constant 0 : index
    %22 = vector.load %arg5[%c0_18, %c0_19, %c0_20, %c0_21] : memref<4x16x16x8xf32, #tpu.memory_space<vmem>>, vector<1x16x16x8xf32>
    %23 = vector.shape_cast %22 : vector<1x16x16x8xf32> to vector<16x16x8xf32>
    %24 = vector.shape_cast %14 : vector<16x16x8xf32> to vector<1x16x16x8xf32>
    tpu.vector_store %arg5[%c0_18, %c0_19, %c0_20, %c0_21], %24 {strides = array<i32>} : memref<4x16x16x8xf32, #tpu.memory_space<vmem>>, vector<1x16x16x8xf32>,
    %c1_22 = arith.constant 1 : index
    %c1_23 = arith.constant 1 : index
    %c48 = arith.constant 48 : index
    %25 = vector.load %arg4[%c1_22, %c1_23, %c48] : memref<18x24x128xf32, #tpu.memory_space<vmem>>, vector<16x16x8xf32>
    %c1_24 = arith.constant 1 : index
    %c2 = arith.constant 2 : index
    %c32 = arith.constant 32 : index
    %26 = vector.load %arg4[%c1_24, %c2, %c32] : memref<18x24x128xf32, #tpu.memory_space<vmem>>, vector<16x16x8xf32>
    %27 = arith.addf %25, %26 : vector<16x16x8xf32>
    %c0_25 = arith.constant 0 : index
    %c1_26 = arith.constant 1 : index
    %c112 = arith.constant 112 : index
    %28 = vector.load %arg4[%c0_25, %c1_26, %c112] : memref<18x24x128xf32, #tpu.memory_space<vmem>>, vector<16x16x8xf32>
    %29 = arith.addf %27, %28 : vector<16x16x8xf32>
    %c0_27 = arith.constant 0 : index
    %c2_28 = arith.constant 2 : index
    %c96 = arith.constant 96 : index
    %30 = vector.load %arg4[%c0_27, %c2_28, %c96] : memref<18x24x128xf32, #tpu.memory_space<vmem>>, vector<16x16x8xf32>
    %31 = arith.addf %29, %30 : vector<16x16x8xf32>
    %cst_29 = arith.constant dense<0.000000e+00> : vector<8xf32>
    %32 = vector.multi_reduction <add>, %31, %cst_29 [0, 1] : vector<16x16x8xf32> to vector<8xf32>
    %33 = vector.shape_cast %32 : vector<8xf32> to vector<1x1x8xf32>
    %34 = arith.addf %17, %33 : vector<1x1x8xf32>
    %35 = arith.mulf %31, %31 : vector<16x16x8xf32>
    %cst_30 = arith.constant dense<0.000000e+00> : vector<8xf32>
    %36 = vector.multi_reduction <add>, %35, %cst_30 [0, 1] : vector<16x16x8xf32> to vector<8xf32>
    %37 = vector.shape_cast %36 : vector<8xf32> to vector<1x1x8xf32>
    %38 = arith.addf %21, %37 : vector<1x1x8xf32>
    %c1_31 = arith.constant 1 : index
    %c0_32 = arith.constant 0 : index
    %c0_33 = arith.constant 0 : index
    %c0_34 = arith.constant 0 : index
    %39 = vector.load %arg5[%c1_31, %c0_32, %c0_33, %c0_34] : memref<4x16x16x8xf32, #tpu.memory_space<vmem>>, vector<1x16x16x8xf32>
    %40 = vector.shape_cast %39 : vector<1x16x16x8xf32> to vector<16x16x8xf32>
    %41 = vector.shape_cast %31 : vector<16x16x8xf32> to vector<1x16x16x8xf32>
    tpu.vector_store %arg5[%c1_31, %c0_32, %c0_33, %c0_34], %41 {strides = array<i32>} : memref<4x16x16x8xf32, #tpu.memory_space<vmem>>, vector<1x16x16x8xf32>,
    %c1_35 = arith.constant 1 : index
    %c1_36 = arith.constant 1 : index
    %c72 = arith.constant 72 : index
    %42 = vector.load %arg4[%c1_35, %c1_36, %c72] : memref<18x24x128xf32, #tpu.memory_space<vmem>>, vector<16x16x8xf32>
    %c1_37 = arith.constant 1 : index
    %c0_38 = arith.constant 0 : index
    %c88 = arith.constant 88 : index
    %43 = vector.load %arg4[%c1_37, %c0_38, %c88] : memref<18x24x128xf32, #tpu.memory_space<vmem>>, vector<16x16x8xf32>
    %44 = arith.addf %42, %43 : vector<16x16x8xf32>
    %c2_39 = arith.constant 2 : index
    %c1_40 = arith.constant 1 : index
    %c8 = arith.constant 8 : index
    %45 = vector.load %arg4[%c2_39, %c1_40, %c8] : memref<18x24x128xf32, #tpu.memory_space<vmem>>, vector<16x16x8xf32>
    %46 = arith.addf %44, %45 : vector<16x16x8xf32>
    %c2_41 = arith.constant 2 : index
    %c0_42 = arith.constant 0 : index
    %c24 = arith.constant 24 : index
    %47 = vector.load %arg4[%c2_41, %c0_42, %c24] : memref<18x24x128xf32, #tpu.memory_space<vmem>>, vector<16x16x8xf32>
    %48 = arith.addf %46, %47 : vector<16x16x8xf32>
    %cst_43 = arith.constant dense<0.000000e+00> : vector<8xf32>
    %49 = vector.multi_reduction <add>, %48, %cst_43 [0, 1] : vector<16x16x8xf32> to vector<8xf32>
    %50 = vector.shape_cast %49 : vector<8xf32> to vector<1x1x8xf32>
    %51 = arith.addf %34, %50 : vector<1x1x8xf32>
    %52 = arith.mulf %48, %48 : vector<16x16x8xf32>
    %cst_44 = arith.constant dense<0.000000e+00> : vector<8xf32>
    %53 = vector.multi_reduction <add>, %52, %cst_44 [0, 1] : vector<16x16x8xf32> to vector<8xf32>
    %54 = vector.shape_cast %53 : vector<8xf32> to vector<1x1x8xf32>
    %55 = arith.addf %38, %54 : vector<1x1x8xf32>
    %c2_45 = arith.constant 2 : index
    %c0_46 = arith.constant 0 : index
    %c0_47 = arith.constant 0 : index
    %c0_48 = arith.constant 0 : index
    %56 = vector.load %arg5[%c2_45, %c0_46, %c0_47, %c0_48] : memref<4x16x16x8xf32, #tpu.memory_space<vmem>>, vector<1x16x16x8xf32>
    %57 = vector.shape_cast %56 : vector<1x16x16x8xf32> to vector<16x16x8xf32>
    %58 = vector.shape_cast %48 : vector<16x16x8xf32> to vector<1x16x16x8xf32>
    tpu.vector_store %arg5[%c2_45, %c0_46, %c0_47, %c0_48], %58 {strides = array<i32>} : memref<4x16x16x8xf32, #tpu.memory_space<vmem>>, vector<1x16x16x8xf32>,
    %c1_49 = arith.constant 1 : index
    %c1_50 = arith.constant 1 : index
    %c80 = arith.constant 80 : index
    %59 = vector.load %arg4[%c1_49, %c1_50, %c80] : memref<18x24x128xf32, #tpu.memory_space<vmem>>, vector<16x16x8xf32>
    %c1_51 = arith.constant 1 : index
    %c2_52 = arith.constant 2 : index
    %c64 = arith.constant 64 : index
    %60 = vector.load %arg4[%c1_51, %c2_52, %c64] : memref<18x24x128xf32, #tpu.memory_space<vmem>>, vector<16x16x8xf32>
    %61 = arith.addf %59, %60 : vector<16x16x8xf32>
    %c2_53 = arith.constant 2 : index
    %c1_54 = arith.constant 1 : index
    %c16 = arith.constant 16 : index
    %62 = vector.load %arg4[%c2_53, %c1_54, %c16] : memref<18x24x128xf32, #tpu.memory_space<vmem>>, vector<16x16x8xf32>
    %63 = arith.addf %61, %62 : vector<16x16x8xf32>
    %c2_55 = arith.constant 2 : index
    %c2_56 = arith.constant 2 : index
    %c0_57 = arith.constant 0 : index
    %64 = vector.load %arg4[%c2_55, %c2_56, %c0_57] : memref<18x24x128xf32, #tpu.memory_space<vmem>>, vector<16x16x8xf32>
    %65 = arith.addf %63, %64 : vector<16x16x8xf32>
    %cst_58 = arith.constant dense<0.000000e+00> : vector<8xf32>
    %66 = vector.multi_reduction <add>, %65, %cst_58 [0, 1] : vector<16x16x8xf32> to vector<8xf32>
    %67 = vector.shape_cast %66 : vector<8xf32> to vector<1x1x8xf32>
    %68 = arith.addf %51, %67 : vector<1x1x8xf32>
    %69 = arith.mulf %65, %65 : vector<16x16x8xf32>
    %cst_59 = arith.constant dense<0.000000e+00> : vector<8xf32>
    %70 = vector.multi_reduction <add>, %69, %cst_59 [0, 1] : vector<16x16x8xf32> to vector<8xf32>
    %71 = vector.shape_cast %70 : vector<8xf32> to vector<1x1x8xf32>
    %72 = arith.addf %55, %71 : vector<1x1x8xf32>
    %c3 = arith.constant 3 : index
    %c0_60 = arith.constant 0 : index
    %c0_61 = arith.constant 0 : index
    %c0_62 = arith.constant 0 : index
    %73 = vector.load %arg5[%c3, %c0_60, %c0_61, %c0_62] : memref<4x16x16x8xf32, #tpu.memory_space<vmem>>, vector<1x16x16x8xf32>
    %74 = vector.shape_cast %73 : vector<1x16x16x8xf32> to vector<16x16x8xf32>
    %75 = vector.shape_cast %65 : vector<16x16x8xf32> to vector<1x16x16x8xf32>
    tpu.vector_store %arg5[%c3, %c0_60, %c0_61, %c0_62], %75 {strides = array<i32>} : memref<4x16x16x8xf32, #tpu.memory_space<vmem>>, vector<1x16x16x8xf32>,
    %cst_63 = arith.constant 9.765625E-4 : f32
    %76 = vector.broadcast %cst_63 : f32 to vector<1x1x8xf32>
    %77 = arith.mulf %68, %76 : vector<1x1x8xf32>
    %cst_64 = arith.constant 9.765625E-4 : f32
    %78 = vector.broadcast %cst_64 : f32 to vector<1x1x8xf32>
    %79 = arith.mulf %72, %78 : vector<1x1x8xf32>
    %80 = arith.mulf %77, %77 : vector<1x1x8xf32>
    %81 = arith.subf %79, %80 : vector<1x1x8xf32>
    %cst_65 = arith.constant 0.000000e+00 : f32
    %82 = vector.broadcast %cst_65 : f32 to vector<1x1x8xf32>
    %83 = arith.maximumf %81, %82 : vector<1x1x8xf32>
    %cst_66 = arith.constant 9.99999974E-6 : f32
    %84 = vector.broadcast %cst_66 : f32 to vector<1x1x8xf32>
    %85 = arith.addf %83, %84 : vector<1x1x8xf32>
    %86 = math.rsqrt %85 : vector<1x1x8xf32>
    %c0_67 = arith.constant 0 : index
    %c0_68 = arith.constant 0 : index
    %c0_69 = arith.constant 0 : index
    %c0_70 = arith.constant 0 : index
    %87 = vector.load %arg5[%c0_67, %c0_68, %c0_69, %c0_70] : memref<4x16x16x8xf32, #tpu.memory_space<vmem>>, vector<1x16x16x8xf32>
    %88 = vector.shape_cast %87 : vector<1x16x16x8xf32> to vector<16x16x8xf32>
    %89 = vector.broadcast %77 : vector<1x1x8xf32> to vector<16x16x8xf32>
    %90 = arith.subf %88, %89 : vector<16x16x8xf32>
    %91 = vector.broadcast %86 : vector<1x1x8xf32> to vector<16x16x8xf32>
    %92 = arith.mulf %90, %91 : vector<16x16x8xf32>
    %cst_71 = arith.constant 2.000000e-01 : f32
    %93 = vector.broadcast %cst_71 : f32 to vector<16x16x8xf32>
    %94 = arith.mulf %93, %92 : vector<16x16x8xf32>
    %95 = arith.maximumf %92, %94 : vector<16x16x8xf32>
    %c0_72 = arith.constant 0 : index
    %c0_73 = arith.constant 0 : index
    %c0_74 = arith.constant 0 : index
    %c0_75 = arith.constant 0 : index
    %c0_76 = arith.constant 0 : index
    %96 = vector.load %arg3[%c0_72, %c0_73, %c0_74, %c0_75, %c0_76] : memref<1x4x16x16x8xf32, #tpu.memory_space<vmem>>, vector<1x1x16x16x8xf32>
    %97 = vector.shape_cast %96 : vector<1x1x16x16x8xf32> to vector<16x16x8xf32>
    %98 = vector.shape_cast %95 : vector<16x16x8xf32> to vector<1x1x16x16x8xf32>
    tpu.vector_store %arg3[%c0_72, %c0_73, %c0_74, %c0_75, %c0_76], %98 {strides = array<i32>} : memref<1x4x16x16x8xf32, #tpu.memory_space<vmem>>, vector<1x1x16x16x8xf32>,
    %c1_77 = arith.constant 1 : index
    %c0_78 = arith.constant 0 : index
    %c0_79 = arith.constant 0 : index
    %c0_80 = arith.constant 0 : index
    %99 = vector.load %arg5[%c1_77, %c0_78, %c0_79, %c0_80] : memref<4x16x16x8xf32, #tpu.memory_space<vmem>>, vector<1x16x16x8xf32>
    %100 = vector.shape_cast %99 : vector<1x16x16x8xf32> to vector<16x16x8xf32>
    %101 = vector.broadcast %77 : vector<1x1x8xf32> to vector<16x16x8xf32>
    %102 = arith.subf %100, %101 : vector<16x16x8xf32>
    %103 = vector.broadcast %86 : vector<1x1x8xf32> to vector<16x16x8xf32>
    %104 = arith.mulf %102, %103 : vector<16x16x8xf32>
    %cst_81 = arith.constant 2.000000e-01 : f32
    %105 = vector.broadcast %cst_81 : f32 to vector<16x16x8xf32>
    %106 = arith.mulf %105, %104 : vector<16x16x8xf32>
    %107 = arith.maximumf %104, %106 : vector<16x16x8xf32>
    %c0_82 = arith.constant 0 : index
    %c1_83 = arith.constant 1 : index
    %c0_84 = arith.constant 0 : index
    %c0_85 = arith.constant 0 : index
    %c0_86 = arith.constant 0 : index
    %108 = vector.load %arg3[%c0_82, %c1_83, %c0_84, %c0_85, %c0_86] : memref<1x4x16x16x8xf32, #tpu.memory_space<vmem>>, vector<1x1x16x16x8xf32>
    %109 = vector.shape_cast %108 : vector<1x1x16x16x8xf32> to vector<16x16x8xf32>
    %110 = vector.shape_cast %107 : vector<16x16x8xf32> to vector<1x1x16x16x8xf32>
    tpu.vector_store %arg3[%c0_82, %c1_83, %c0_84, %c0_85, %c0_86], %110 {strides = array<i32>} : memref<1x4x16x16x8xf32, #tpu.memory_space<vmem>>, vector<1x1x16x16x8xf32>,
    %c2_87 = arith.constant 2 : index
    %c0_88 = arith.constant 0 : index
    %c0_89 = arith.constant 0 : index
    %c0_90 = arith.constant 0 : index
    %111 = vector.load %arg5[%c2_87, %c0_88, %c0_89, %c0_90] : memref<4x16x16x8xf32, #tpu.memory_space<vmem>>, vector<1x16x16x8xf32>
    %112 = vector.shape_cast %111 : vector<1x16x16x8xf32> to vector<16x16x8xf32>
    %113 = vector.broadcast %77 : vector<1x1x8xf32> to vector<16x16x8xf32>
    %114 = arith.subf %112, %113 : vector<16x16x8xf32>
    %115 = vector.broadcast %86 : vector<1x1x8xf32> to vector<16x16x8xf32>
    %116 = arith.mulf %114, %115 : vector<16x16x8xf32>
    %cst_91 = arith.constant 2.000000e-01 : f32
    %117 = vector.broadcast %cst_91 : f32 to vector<16x16x8xf32>
    %118 = arith.mulf %117, %116 : vector<16x16x8xf32>
    %119 = arith.maximumf %116, %118 : vector<16x16x8xf32>
    %c0_92 = arith.constant 0 : index
    %c2_93 = arith.constant 2 : index
    %c0_94 = arith.constant 0 : index
    %c0_95 = arith.constant 0 : index
    %c0_96 = arith.constant 0 : index
    %120 = vector.load %arg3[%c0_92, %c2_93, %c0_94, %c0_95, %c0_96] : memref<1x4x16x16x8xf32, #tpu.memory_space<vmem>>, vector<1x1x16x16x8xf32>
    %121 = vector.shape_cast %120 : vector<1x1x16x16x8xf32> to vector<16x16x8xf32>
    %122 = vector.shape_cast %119 : vector<16x16x8xf32> to vector<1x1x16x16x8xf32>
    tpu.vector_store %arg3[%c0_92, %c2_93, %c0_94, %c0_95, %c0_96], %122 {strides = array<i32>} : memref<1x4x16x16x8xf32, #tpu.memory_space<vmem>>, vector<1x1x16x16x8xf32>,
    %c3_97 = arith.constant 3 : index
    %c0_98 = arith.constant 0 : index
    %c0_99 = arith.constant 0 : index
    %c0_100 = arith.constant 0 : index
    %123 = vector.load %arg5[%c3_97, %c0_98, %c0_99, %c0_100] : memref<4x16x16x8xf32, #tpu.memory_space<vmem>>, vector<1x16x16x8xf32>
    %124 = vector.shape_cast %123 : vector<1x16x16x8xf32> to vector<16x16x8xf32>
    %125 = vector.broadcast %77 : vector<1x1x8xf32> to vector<16x16x8xf32>
    %126 = arith.subf %124, %125 : vector<16x16x8xf32>
    %127 = vector.broadcast %86 : vector<1x1x8xf32> to vector<16x16x8xf32>
    %128 = arith.mulf %126, %127 : vector<16x16x8xf32>
    %cst_101 = arith.constant 2.000000e-01 : f32
    %129 = vector.broadcast %cst_101 : f32 to vector<16x16x8xf32>
    %130 = arith.mulf %129, %128 : vector<16x16x8xf32>
    %131 = arith.maximumf %128, %130 : vector<16x16x8xf32>
    %c0_102 = arith.constant 0 : index
    %c3_103 = arith.constant 3 : index
    %c0_104 = arith.constant 0 : index
    %c0_105 = arith.constant 0 : index
    %c0_106 = arith.constant 0 : index
    %132 = vector.load %arg3[%c0_102, %c3_103, %c0_104, %c0_105, %c0_106] : memref<1x4x16x16x8xf32, #tpu.memory_space<vmem>>, vector<1x1x16x16x8xf32>
    %133 = vector.shape_cast %132 : vector<1x1x16x16x8xf32> to vector<16x16x8xf32>
    %134 = vector.shape_cast %131 : vector<16x16x8xf32> to vector<1x1x16x16x8xf32>
    tpu.vector_store %arg3[%c0_102, %c3_103, %c0_104, %c0_105, %c0_106], %134 {strides = array<i32>} : memref<1x4x16x16x8xf32, #tpu.memory_space<vmem>>, vector<1x1x16x16x8xf32>,
    return
  }
  func.func @transform_0(%arg0: i32) -> (i32, i32, i32) {
    %c0_i32 = arith.constant 0 : i32
    %c0_i32_0 = arith.constant 0 : i32
    %c0_i32_1 = arith.constant 0 : i32
    return %arg0, %c0_i32, %c0_i32_0 : i32, i32, i32
  }
  func.func @transform_1(%arg0: i32) -> (i32, i32) {
    %c0_i32 = arith.constant 0 : i32
    %c0_i32_0 = arith.constant 0 : i32
    %c0_i32_1 = arith.constant 0 : i32
    return %c0_i32, %c0_i32_0 : i32, i32
  }
  func.func @transform_2(%arg0: i32) -> (i32, i32, i32, i32, i32) {
    %c0_i32 = arith.constant 0 : i32
    %c0_i32_0 = arith.constant 0 : i32
    %c0_i32_1 = arith.constant 0 : i32
    %c0_i32_2 = arith.constant 0 : i32
    %c0_i32_3 = arith.constant 0 : i32
    return %arg0, %c0_i32, %c0_i32_0, %c0_i32_1, %c0_i32_2 : i32, i32, i32, i32, i32
  }
}

</mosaic_0001>

<bundles_post_ra>
// kernel: tpu_custom_call.1
= control target key start
LH: loop header
LB: loop body
LE: loop exit
PB: predicated region body
PF: predicated region fallthrough
CT: control target
= control target key end

     0   :  { %s5782_s9 = smov 0   ;;  %s10851_s0 = inlined_call_operand.vmem [shape: f32[2,432,4], index: 0, kind: input, shape index: {}]   ;;  %s10852_s1 = inlined_call_operand.vmem [shape: f32[4,128], index: 1, kind: input, shape index: {}]   ;;  %s10853_s2 = inlined_call_operand.vmem [shape: f32[2,4,16,16,8], index: 2, kind: output, shape index: {}]  }
   0x1 LB: > { %s5398_s10 = sadd.s32 4294967295, %s5756_s9   ;;  %p5402_p0 = scmp.ge.s32.totalorder %s5756_s9, 1  ;;  %s5756_s9 = sphi %s5782_s9, %s12_s9  }
   0x2   : > { %p112_p1 = scmp.lt.s32.totalorder %s5756_s9, 3 }
   0x4   : > { %p113_p2 = pnand %p5402_p0, %p112_p1 }
   0x6   : > { %116 = sbr.rel (%p113_p2) target bundleno = 1976 (0x7b8), region = 28 }
   0xd   : > { %v198_v0 = vld [vmem:[%s10852_s1] sm:$0xf]  ;;  %vm362_vm0 = vcmask 1043456   ;;  %p134_p3 = scmp.lt.s32.totalorder %s5398_s10, 1  ;;  %vm199_vm1 = vcmask 31744   ;;  %s5758_s17 = smov 48  }
   0xe   : > { %5615 = vmatprep.subr.msk.mxu0 %vm362_vm0, %v198_v0  ;;  %5698 = vmatprep.subr.msk.mxu1 %vm362_vm0, %v198_v0  ;;  %s5759_s18 = smov 112   ;;  %s5760_s19 = smov 64   ;;  %vm1364_vm2 = vcmask 392512   ;;  %vm1665_vm3 = vcmask 64512   ;;  %vm2306_vm4 = vcmask 458112   ;;  %vm3257_vm5 = vcmask 654912  }
   0xf   : > { %5616 = vmatpush3.msk.msra.mxu0 %vm362_vm0, %v198_v0  ;;  %s11652_s10 = smov (!%p134_p3, %s5398_s10), 1  ;;  %5699 = vmatpush3.msk.msra.mxu1 %vm362_vm0, %v198_v0  ;;  %s5761_s20 = smov 16   ;;  %vm4207_vm6 = vcmask 720512  }
  0x10   : > { %s5700_s13 = smul.u32 432, %s11652_s10  ;;  %s5762_s21 = smov 80  }
  0x11   : > { %s5763_s22 = smov 88   ;;  %s5764_s23 = smov 120  }
  0x12   : > { %s5799_s16 = scalar_lea.vmem %s10851_s0, %s5700_s13  ;;  %s5765_s24 = smov 96  }
  0x13   : > { %v144_v1 = vld [vmem:[%s5799_s16] sm:$0xff]  ;;  %v145_v2 = vld [vmem:[%s5799_s16 + $0x8] sm:$0xff]  ;;  %v146_v4 = vld [vmem:[%s5799_s16 + $0x10] sm:$0xff]  ;;  %s5766_s25 = smov 56   ;;  %s5559_s26 = sshll.u32 %s11652_s10, 10 }
  0x14   : > { %v172_v3 = vld [vmem:[%s5799_s16 + $0xe0] sm:$0xff]  ;;  %5617 = vmatprep.mubr.msk.f32.mxu0 %vm199_vm1, %v144_v1  ;;  %v173_v5 = vld [vmem:[%s5799_s16 + $0xe8] sm:$0xff]  ;;  %v147_v6 = vld [vmem:[%s5799_s16 + $0x18] sm:$0xff]  ;;  %s9794_s29 = scalar_lea.vmem %s10853_s2, %s5559_s26 }
  0x15   : > { %5659 = vmatprep.mubr.msk.f32.mxu1 %vm199_vm1, %v172_v3  ;;  %5618 = vmatmul.mubr.msk.f32.vlgmr.msra.gmra.mrb[0].mxu0 %vm199_vm1, %v145_v2  ;;  %v174_v7 = vld [vmem:[%s5799_s16 + $0xf0] sm:$0xff]  ;;  %v148_v8 = vld [vmem:[%s5799_s16 + $0x20] sm:$0xff]  ;;  %v175_v9 = vld [vmem:[%s5799_s16 + $0xf8] sm:$0xff] }
  0x16   : > { %5660 = vmatmul.mubr.msk.f32.vlgmr.msra.gmra.mrb[0].mxu1 %vm199_vm1, %v173_v5  ;;  %5620 = vmatprep.mubr.msk.f32.mxu0 %vm199_vm1, %v146_v4  ;;  %v176_v10 = vld [vmem:[%s5799_s16 + $0x100] sm:$0xff]  ;;  %v149_v11 = vld [vmem:[%s5799_s16 + $0x28] sm:$0xff]  ;;  %v150_v13 = vld [vmem:[%s5799_s16 + $0x30] sm:$0xff] }
  0x17   : > { %5662 = vmatprep.mubr.msk.f32.mxu1 %vm199_vm1, %v174_v7  ;;  %v177_v12 = vld [vmem:[%s5799_s16 + $0x108] sm:$0xff]  ;;  %v178_v14 = vld [vmem:[%s5799_s16 + $0x110] sm:$0xff]  ;;  %v151_v15 = vld [vmem:[%s5799_s16 + $0x38] sm:$0xff] }
  0x18   : > { %v179_v16 = vld [vmem:[%s5799_s16 + $0x118] sm:$0xff]  ;;  %v152_v17 = vld [vmem:[%s5799_s16 + $0x40] sm:$0xff]  ;;  %v153_v19 = vld [vmem:[%s5799_s16 + $0x48] sm:$0xff] }
  0x19   : > { %5621 = vmatmul.mubr.msk.f32.gmra.mrb[2].mxu0 %vm199_vm1, %v147_v6  ;;  %v180_v18 = vld [vmem:[%s5799_s16 + $0x120] sm:$0xff]  ;;  %v181_v20 = vld [vmem:[%s5799_s16 + $0x128] sm:$0xff]  ;;  %v154_v21 = vld [vmem:[%s5799_s16 + $0x50] sm:$0xff] }
  0x1a   : > { %5663 = vmatmul.mubr.msk.f32.gmra.mrb[2].mxu1 %vm199_vm1, %v175_v9  ;;  %5623 = vmatprep.mubr.msk.f32.mxu0 %vm199_vm1, %v148_v8  ;;  %v182_v22 = vld [vmem:[%s5799_s16 + $0x130] sm:$0xff]  ;;  %v155_v23 = vld [vmem:[%s5799_s16 + $0x58] sm:$0xff]  ;;  %v156_v25 = vld [vmem:[%s5799_s16 + $0x60] sm:$0xff] }
  0x1b   : > { %5665 = vmatprep.mubr.msk.f32.mxu1 %vm199_vm1, %v176_v10  ;;  %v183_v24 = vld [vmem:[%s5799_s16 + $0x138] sm:$0xff]  ;;  %v184_v26 = vld [vmem:[%s5799_s16 + $0x140] sm:$0xff]  ;;  %v157_v27 = vld [vmem:[%s5799_s16 + $0x68] sm:$0xff] }
  0x1c   : > { %v185_v28 = vld [vmem:[%s5799_s16 + $0x148] sm:$0xff]  ;;  %v158_v29 = vld [vmem:[%s5799_s16 + $0x70] sm:$0xff]  ;;  %v159_v31 = vld [vmem:[%s5799_s16 + $0x78] sm:$0xff] }
  0x1d   : > { %5624 = vmatmul.mubr.msk.f32.gmra.mrb[4].mxu0 %vm199_vm1, %v149_v11  ;;  %v186_v30 = vld [vmem:[%s5799_s16 + $0x150] sm:$0xff]  ;;  %v187_v32 = vld [vmem:[%s5799_s16 + $0x158] sm:$0xff]  ;;  %v160_v33 = vld [vmem:[%s5799_s16 + $0x80] sm:$0xff] }
  0x1e   : > { %5666 = vmatmul.mubr.msk.f32.gmra.mrb[4].mxu1 %vm199_vm1, %v177_v12  ;;  %5626 = vmatprep.mubr.msk.f32.mxu0 %vm199_vm1, %v150_v13  ;;  %v188_v34 = vld [vmem:[%s5799_s16 + $0x160] sm:$0xff]  ;;  %v161_v35 = vld [vmem:[%s5799_s16 + $0x88] sm:$0xff]  ;;  %v162_v37 = vld [vmem:[%s5799_s16 + $0x90] sm:$0xff] }
  0x1f   : > { %5668 = vmatprep.mubr.msk.f32.mxu1 %vm199_vm1, %v178_v14  ;;  %v189_v36 = vld [vmem:[%s5799_s16 + $0x168] sm:$0xff]  ;;  %v190_v38 = vld [vmem:[%s5799_s16 + $0x170] sm:$0xff]  ;;  %v163_v39 = vld [vmem:[%s5799_s16 + $0x98] sm:$0xff] }
  0x20   : > { %v191_v40 = vld [vmem:[%s5799_s16 + $0x178] sm:$0xff]  ;;  %v164_v41 = vld [vmem:[%s5799_s16 + $0xa0] sm:$0xff]  ;;  %v165_v42 = vld [vmem:[%s5799_s16 + $0xa8] sm:$0xff] }
  0x21   : > { %5627 = vmatmul.mubr.msk.f32.gmra.mrb[6].mxu0 %vm199_vm1, %v151_v15  ;;  %v166_v43 = vld [vmem:[%s5799_s16 + $0xb0] sm:$0xff]  ;;  %v167_v44 = vld [vmem:[%s5799_s16 + $0xb8] sm:$0xff]  ;;  %v168_v45 = vld [vmem:[%s5799_s16 + $0xc0] sm:$0xff] }
  0x22   : > { %5669 = vmatmul.mubr.msk.f32.gmra.mrb[6].mxu1 %vm199_vm1, %v179_v16  ;;  %5629 = vmatprep.mubr.msk.f32.mxu0 %vm199_vm1, %v152_v17  ;;  %v169_v46 = vld [vmem:[%s5799_s16 + $0xc8] sm:$0xff]  ;;  %v170_v47 = vld [vmem:[%s5799_s16 + $0xd0] sm:$0xff]  ;;  %v171_v48 = vld [vmem:[%s5799_s16 + $0xd8] sm:$0xff] }
  0x23   : > { %5671 = vmatprep.mubr.msk.f32.mxu1 %vm199_vm1, %v180_v18  ;;  %v192_v49 = vld [vmem:[%s5799_s16 + $0x180] sm:$0xff]  ;;  %v193_v50 = vld [vmem:[%s5799_s16 + $0x188] sm:$0xff]  ;;  %v194_v51 = vld [vmem:[%s5799_s16 + $0x190] sm:$0xff] }
  0x24   : > { %v195_v52 = vld [vmem:[%s5799_s16 + $0x198] sm:$0xff]  ;;  %v196_v53 = vld [vmem:[%s5799_s16 + $0x1a0] sm:$0xff]  ;;  %v197_v54 = vld [vmem:[%s5799_s16 + $0x1a8] sm:$0xff] }
  0x25   : > { %5630 = vmatmul.mubr.msk.f32.gmra.mrb[8].mxu0 %vm199_vm1, %v153_v19 }
  0x26   : > { %5672 = vmatmul.mubr.msk.f32.gmra.mrb[8].mxu1 %vm199_vm1, %v181_v20  ;;  %5632 = vmatprep.mubr.msk.f32.mxu0 %vm199_vm1, %v154_v21 }
  0x27   : > { %5674 = vmatprep.mubr.msk.f32.mxu1 %vm199_vm1, %v182_v22 }
  0x29   : > { %5633 = vmatmul.mubr.msk.f32.gmra.mrb[10].mxu0 %vm199_vm1, %v155_v23 }
  0x2a   : > { %5675 = vmatmul.mubr.msk.f32.gmra.mrb[10].mxu1 %vm199_vm1, %v183_v24  ;;  %5635 = vmatprep.mubr.msk.f32.mxu0 %vm199_vm1, %v156_v25 }
  0x2b   : > { %5677 = vmatprep.mubr.msk.f32.mxu1 %vm199_vm1, %v184_v26 }
  0x2d   : > { %5636 = vmatmul.mubr.msk.f32.gmra.mrb[12].mxu0 %vm199_vm1, %v157_v27 }
  0x2e   : > { %5678 = vmatmul.mubr.msk.f32.gmra.mrb[12].mxu1 %vm199_vm1, %v185_v28  ;;  %5638 = vmatprep.mubr.msk.f32.mxu0 %vm199_vm1, %v158_v29 }
  0x2f   : > { %5680 = vmatprep.mubr.msk.f32.mxu1 %vm199_vm1, %v186_v30 }
  0x31   : > { %5639 = vmatmul.mubr.msk.f32.gmra.mrb[14].mxu0 %vm199_vm1, %v159_v31 }
  0x32   : > { %5681 = vmatmul.mubr.msk.f32.gmra.mrb[14].mxu1 %vm199_vm1, %v187_v32  ;;  %5641 = vmatprep.mubr.msk.f32.mxu0 %vm199_vm1, %v160_v33 }
  0x33   : > { %5683 = vmatprep.mubr.msk.f32.mxu1 %vm199_vm1, %v188_v34 }
  0x35   : > { %5642 = vmatmul.mubr.msk.f32.gmra.mrb[16].mxu0 %vm199_vm1, %v161_v35 }
  0x36   : > { %5684 = vmatmul.mubr.msk.f32.gmra.mrb[16].mxu1 %vm199_vm1, %v189_v36  ;;  %5644 = vmatprep.mubr.msk.f32.mxu0 %vm199_vm1, %v162_v37 }
  0x37   : > { %5686 = vmatprep.mubr.msk.f32.mxu1 %vm199_vm1, %v190_v38 }
  0x39   : > { %5645 = vmatmul.mubr.msk.f32.gmra.mrb[18].mxu0 %vm199_vm1, %v163_v39 }
  0x3a   : > { %5687 = vmatmul.mubr.msk.f32.gmra.mrb[18].mxu1 %vm199_vm1, %v191_v40  ;;  %5647 = vmatprep.mubr.msk.f32.mxu0 %vm199_vm1, %v164_v41 }
  0x3b   : > { %5689 = vmatprep.mubr.msk.f32.mxu1 %vm199_vm1, %v192_v49 }
  0x3d   : > { %5648 = vmatmul.mubr.msk.f32.gmra.mrb[20].mxu0 %vm199_vm1, %v165_v42 }
  0x3e   : > { %5650 = vmatprep.mubr.msk.f32.mxu0 %vm199_vm1, %v166_v43  ;;  %5690 = vmatmul.mubr.msk.f32.gmra.mrb[20].mxu1 %vm199_vm1, %v193_v50 }
  0x3f   : > { %5692 = vmatprep.mubr.msk.f32.mxu1 %vm199_vm1, %v194_v51 }
  0x41   : > { %5651 = vmatmul.mubr.msk.f32.gmra.mrb[22].mxu0 %vm199_vm1, %v167_v44 }
  0x42   : > { %5653 = vmatprep.mubr.msk.f32.mxu0 %vm199_vm1, %v168_v45  ;;  %5693 = vmatmul.mubr.msk.f32.gmra.mrb[22].mxu1 %vm199_vm1, %v195_v52 }
  0x43   : > { %5695 = vmatprep.mubr.msk.f32.mxu1 %vm199_vm1, %v196_v53 }
  0x45   : > { %5654 = vmatmul.mubr.msk.f32.gmra.mrb[24].mxu0 %vm199_vm1, %v169_v46 }
  0x46   : > { %5656 = vmatprep.mubr.msk.f32.mxu0 %vm199_vm1, %v170_v47  ;;  %5696 = vmatmul.mubr.msk.f32.gmra.mrb[24].mxu1 %vm199_vm1, %v197_v54 }
  0x49   : > { %5657 = vmatmul.mubr.msk.f32.gmra.mrb[26].mxu0 %vm199_vm1, %v171_v48 }
  0xe8   : > { %v5619_v55 = vpop.f32.mrb[0].mxu0 }
  0xe9   : > { %v5661_v56 = vpop.f32.mrb[0].mxu1  ;;  %702 = vst [vmem:[#allocation2 + $0x8] sm:$0xff] %v5619_v55  ;;  %v432_v57 = vpop.f32.mrb[1].mxu0  ;;  %1238 = vrot.lane.b32.xlu1 %v5619_v55, %s5758_s17 }
  0xea   : > { %730 = vst [vmem:[#allocation2 + $0xe8] sm:$0xff] %v5661_v56  ;;  %v572_v58 = vpop.f32.mrb[1].mxu1  ;;  %701 = vst [vmem:[#allocation2] sm:$0xff] %v432_v57 }
  0xeb   : > { %729 = vst [vmem:[#allocation2 + $0xe0] sm:$0xff] %v572_v58 }
  0xec   : > { %v5622_v59 = vpop.f32.mrb[2].mxu0 }
  0xed   : > { %v5664_v60 = vpop.f32.mrb[2].mxu1  ;;  %704 = vst [vmem:[#allocation2 + $0x18] sm:$0xff] %v5622_v59  ;;  %v442_v61 = vpop.f32.mrb[3].mxu0  ;;  %886 = vrot.lane.b32.xlu1 %v572_v58, %s5759_s18 }
  0xee   : > { %732 = vst [vmem:[#allocation2 + $0xf8] sm:$0xff] %v5664_v60  ;;  %v5911_v62 = vpop.f32.mrb[3].mxu1  ;;  %703 = vst [vmem:[#allocation2 + $0x10] sm:$0xff] %v442_v61 }
  0xef   : > { %731 = vst [vmem:[#allocation2 + $0xf0] sm:$0xff] %v5911_v62 }
  0xf0   : > { %v5625_v63 = vpop.f32.mrb[4].mxu0 }
  0xf1   : > { %v5914_v0 = vpop.f32.mrb[4].mxu1  ;;  %v980_v1 = vld [vmem:[#allocation2 + $0x1] sm:$0xff]  ;;  %706 = vst [vmem:[#allocation2 + $0x28] sm:$0xff] %v5625_v63  ;;  %v5916_v2 = vpop.f32.mrb[5].mxu0 }
  0xf2   : > { %v999_v3 = vld [vmem:[#allocation2 + $0xe1] sm:$0xff]  ;;  %734 = vst [vmem:[#allocation2 + $0x108] sm:$0xff] %v5914_v0  ;;  %v592_v4 = vpop.f32.mrb[5].mxu1  ;;  %1044 = vrot.lane.b32.xlu0 %v980_v1, %s5760_s19  ;;  %705 = vst [vmem:[#allocation2 + $0x20] sm:$0xff] %v5916_v2 }
  0xf3   : > { %1082 = vrot.lane.b32.xlu1 %v999_v3, %s5760_s19  ;;  %733 = vst [vmem:[#allocation2 + $0x100] sm:$0xff] %v592_v4  ;;  %v1747_v9 = vld [vmem:[#allocation2 + $0xe2] sm:$0xff] }
  0xf4   : > { %v5922_v5 = vpop.f32.mrb[6].mxu0 }
  0xf5   : > { %v5670_v6 = vpop.f32.mrb[6].mxu1  ;;  %708 = vst [vmem:[#allocation2 + $0x38] sm:$0xff] %v5922_v5  ;;  %v5925_v7 = vpop.f32.mrb[7].mxu0  ;;  %v981_v23 = vld [vmem:[#allocation2 + $0x9] sm:$0xff] }
  0xf6   : > { %736 = vst [vmem:[#allocation2 + $0x118] sm:$0xff] %v5670_v6  ;;  %v5927_v8 = vpop.f32.mrb[7].mxu1  ;;  %1236 = vrot.lane.b32.xlu0 %v432_v57, %s5758_s17  ;;  %707 = vst [vmem:[#allocation2 + $0x30] sm:$0xff] %v5925_v7  ;;  %v1000_v26 = vld [vmem:[#allocation2 + $0xf1] sm:$0xff] }
  0xf7   : > { %1274 = vrot.lane.b32.xlu1 %v572_v58, %s5758_s17  ;;  %735 = vst [vmem:[#allocation2 + $0x110] sm:$0xff] %v5927_v8  ;;  %v1748_v36 = vld [vmem:[#allocation2 + $0xf2] sm:$0xff] }
  0xf8   : > { %v5933_v10 = vpop.f32.mrb[8].mxu0 }
  0xf9   : > { %v5935_v11 = vpop.f32.mrb[8].mxu1  ;;  %710 = vst [vmem:[#allocation2 + $0x48] sm:$0xff] %v5933_v10  ;;  %v472_v12 = vpop.f32.mrb[9].mxu0  ;;  %v5977_v29 = vld [vmem:[#allocation2 + $0x21] sm:$0xff]  ;;  %v6028_v48 = vld [vmem:[#allocation2 + $0x19] sm:$0xff] }
  0xfa   : > { %738 = vst [vmem:[#allocation2 + $0x128] sm:$0xff] %v5935_v11  ;;  %v5939_v13 = vpop.f32.mrb[9].mxu1  ;;  %1986 = vrot.lane.b32.xlu0 %v980_v1, %s5760_s19  ;;  %709 = vst [vmem:[#allocation2 + $0x40] sm:$0xff] %v472_v12  ;;  %v5998_v38 = vld [vmem:[#allocation2 + $0xf9] sm:$0xff]  ;;  %v1731_v43 = vld [vmem:[#allocation2 + $0x22] sm:$0xff] }
  0xfb   : > { %1828 = vrot.lane.b32.xlu1 %v1747_v9, %s5761_s20  ;;  %737 = vst [vmem:[#allocation2 + $0x120] sm:$0xff] %v5939_v13  ;;  %v1749_v47 = vld [vmem:[#allocation2 + $0xfa] sm:$0xff] }
  0xfc   : > { %v5634_v14 = vpop.f32.mrb[10].mxu0  ;;  %v1730_v49 = vld [vmem:[#allocation2 + $0x1a] sm:$0xff] }
  0xfd   : > { %v5944_v15 = vpop.f32.mrb[10].mxu1  ;;  %712 = vst [vmem:[#allocation2 + $0x58] sm:$0xff] %v5634_v14  ;;  %v5946_v16 = vpop.f32.mrb[11].mxu0  ;;  %v6041_v50 = vld [vmem:[#allocation2 + $0x31] sm:$0xff] }
  0xfe   : > { %740 = vst [vmem:[#allocation2 + $0x138] sm:$0xff] %v5944_v15  ;;  %v622_v17 = vpop.f32.mrb[11].mxu1  ;;  %852 = vrot.lane.b32.xlu0 %v5622_v59, %s5759_s18  ;;  %711 = vst [vmem:[#allocation2 + $0x50] sm:$0xff] %v5946_v16  ;;  %v6047_v51 = vld [vmem:[#allocation2 + $0x109] sm:$0xff]  ;;  %v6053_v52 = vld [vmem:[#allocation2 + $0x111] sm:$0xff] }
  0xff   : > { %890 = vrot.lane.b32.xlu1 %v5664_v60, %s5759_s18  ;;  %739 = vst [vmem:[#allocation2 + $0x130] sm:$0xff] %v622_v17  ;;  %11003 = vst [vmem:[#allocation4_spill] sm:$0xff] %v6047_v51  ;;  %v1732_v53 = vld [vmem:[#allocation2 + $0x32] sm:$0xff]  ;;  %v1750_v54 = vld [vmem:[#allocation2 + $0x10a] sm:$0xff] }
 0x100   : > { %v5952_v18 = vpop.f32.mrb[12].mxu0  ;;  %11004 = vst [vmem:[#allocation5_spill] sm:$0xff] %v6053_v52  ;;  %v1751_v55 = vld [vmem:[#allocation2 + $0x112] sm:$0xff] }
 0x101   : > { %v5679_v19 = vpop.f32.mrb[12].mxu1  ;;  %714 = vst [vmem:[#allocation2 + $0x68] sm:$0xff] %v5952_v18  ;;  %v5955_v20 = vpop.f32.mrb[13].mxu0  ;;  %v6072_v56 = vld [vmem:[#allocation2 + $0x39] sm:$0xff] }
 0x102   : > { %742 = vst [vmem:[#allocation2 + $0x148] sm:$0xff] %v5679_v19  ;;  %v5957_v21 = vpop.f32.mrb[13].mxu1  ;;  %1240 = vrot.lane.b32.xlu0 %v5622_v59, %s5758_s17  ;;  %713 = vst [vmem:[#allocation2 + $0x60] sm:$0xff] %v5955_v20  ;;  %v1733_v57 = vld [vmem:[#allocation2 + $0x3a] sm:$0xff] }
 0x103   : > { %1278 = vrot.lane.b32.xlu1 %v5664_v60, %s5758_s17  ;;  %741 = vst [vmem:[#allocation2 + $0x140] sm:$0xff] %v5957_v21  ;;  %v6081_v58 = vld [vmem:[#allocation2 + $0x121] sm:$0xff] }
 0x104   : > { %v5963_v22 = vpop.f32.mrb[14].mxu0  ;;  %11005 = vst [vmem:[#allocation6_spill] sm:$0xff] %v6081_v58 }
 0x105   : > { %716 = vst [vmem:[#allocation2 + $0x78] sm:$0xff] %v5963_v22  ;;  %v502_v24 = vpop.f32.mrb[15].mxu0  ;;  %v5969_v25 = vpop.f32.mrb[14].mxu1  ;;  %v6096_v61 = vld [vmem:[#allocation2 + $0x51] sm:$0xff]  ;;  %v6120_v6 = vld [vmem:[#allocation2 + $0x49] sm:$0xff] }
 0x106   : > { %888 = vrot.lane.b32.xlu0 %v5911_v62, %s5759_s18  ;;  %715 = vst [vmem:[#allocation2 + $0x70] sm:$0xff] %v502_v24  ;;  %744 = vst [vmem:[#allocation2 + $0x158] sm:$0xff] %v5969_v25  ;;  %v5989_v32 = vpop.f32.mrb[15].mxu1 }
 0x107   : > { %1046 = vrot.lane.b32.xlu1 %v981_v23, %s5760_s19  ;;  %743 = vst [vmem:[#allocation2 + $0x150] sm:$0xff] %v5989_v32 }
 0x108   : > { %v5643_v27 = vpop.f32.mrb[16].mxu0 }
 0x109   : > { %718 = vst [vmem:[#allocation2 + $0x88] sm:$0xff] %v5643_v27  ;;  %v5972_v28 = vpop.f32.mrb[17].mxu0  ;;  %v5992_v33 = vpop.f32.mrb[16].mxu1 }
 0x10a   : > { %1084 = vrot.lane.b32.xlu0 %v1000_v26, %s5760_s19  ;;  %717 = vst [vmem:[#allocation2 + $0x80] sm:$0xff] %v5972_v28  ;;  %746 = vst [vmem:[#allocation2 + $0x168] sm:$0xff] %v5992_v33  ;;  %v652_v35 = vpop.f32.mrb[17].mxu1 }
 0x10b   : > { %1988 = vrot.lane.b32.xlu1 %v981_v23, %s5760_s19  ;;  %745 = vst [vmem:[#allocation2 + $0x160] sm:$0xff] %v652_v35  ;;  %v6147_v23 = vld [vmem:[#allocation2 + $0x61] sm:$0xff] }
 0x10c   : > { %v5979_v30 = vpop.f32.mrb[18].mxu0 }
 0x10d   : > { %720 = vst [vmem:[#allocation2 + $0x98] sm:$0xff] %v5979_v30  ;;  %v5982_v31 = vpop.f32.mrb[19].mxu0  ;;  %v5688_v44 = vpop.f32.mrb[18].mxu1 }
 0x10e   : > { %1276 = vrot.lane.b32.xlu0 %v5911_v62, %s5758_s17  ;;  %719 = vst [vmem:[#allocation2 + $0x90] sm:$0xff] %v5982_v31  ;;  %748 = vst [vmem:[#allocation2 + $0x178] sm:$0xff] %v5688_v44  ;;  %v6021_v46 = vpop.f32.mrb[19].mxu1 }
 0x10f   : > { %1050 = vrot.lane.b32.xlu1 %v5977_v29, %s5760_s19  ;;  %747 = vst [vmem:[#allocation2 + $0x170] sm:$0xff] %v6021_v46 }
 0x110   : > { %v5994_v34 = vpop.f32.mrb[20].mxu0 }
 0x111   : > { %722 = vst [vmem:[#allocation2 + $0xa8] sm:$0xff] %v5994_v34  ;;  %v532_v37 = vpop.f32.mrb[21].mxu0  ;;  %v6083_v59 = vpop.f32.mrb[20].mxu1 }
 0x112   : > { %1830 = vrot.lane.b32.xlu0 %v1748_v36, %s5761_s20  ;;  %721 = vst [vmem:[#allocation2 + $0xa0] sm:$0xff] %v532_v37  ;;  %750 = vst [vmem:[#allocation2 + $0x188] sm:$0xff] %v6083_v59  ;;  %v6094_v60 = vpop.f32.mrb[21].mxu1  ;;  %v6161_v36 = vld [vmem:[#allocation2 + $0x139] sm:$0xff] }
 0x113   : > { %1086 = vrot.lane.b32.xlu1 %v5998_v38, %s5760_s19  ;;  %749 = vst [vmem:[#allocation2 + $0x180] sm:$0xff] %v6094_v60 }
 0x114   : > { %v5652_v39 = vpop.f32.mrb[22].mxu0 }
 0x115   : > { %724 = vst [vmem:[#allocation2 + $0xb8] sm:$0xff] %v5652_v39  ;;  %v6003_v40 = vpop.f32.mrb[23].mxu0  ;;  %v5694_v62 = vpop.f32.mrb[22].mxu1 }
 0x116   : > { %892 = vrot.lane.b32.xlu0 %v5914_v0, %s5759_s18  ;;  %723 = vst [vmem:[#allocation2 + $0xb0] sm:$0xff] %v6003_v40  ;;  %752 = vst [vmem:[#allocation2 + $0x198] sm:$0xff] %v5694_v62  ;;  %v682_v63 = vpop.f32.mrb[23].mxu1 }
 0x117   : > { %1242 = vrot.lane.b32.xlu1 %v5916_v2, %s5758_s17  ;;  %751 = vst [vmem:[#allocation2 + $0x190] sm:$0xff] %v682_v63 }
 0x118   : > { %v6010_v41 = vpop.f32.mrb[24].mxu0 }
 0x119   : > { %726 = vst [vmem:[#allocation2 + $0xc8] sm:$0xff] %v6010_v41  ;;  %v6013_v42 = vpop.f32.mrb[25].mxu0  ;;  %v5697_v17 = vpop.f32.mrb[24].mxu1 }
 0x11a   : > { %1280 = vrot.lane.b32.xlu0 %v5914_v0, %s5758_s17  ;;  %725 = vst [vmem:[#allocation2 + $0xc0] sm:$0xff] %v6013_v42  ;;  %v1752_v0 = vld [vmem:[#allocation2 + $0x122] sm:$0xff]  ;;  %754 = vst [vmem:[#allocation2 + $0x1a8] sm:$0xff] %v5697_v17  ;;  %v692_v19 = vpop.f32.mrb[25].mxu1 }
 0x11b   : > { %1796 = vrot.lane.b32.xlu1 %v1731_v43, %s5761_s20  ;;  %753 = vst [vmem:[#allocation2 + $0x1a0] sm:$0xff] %v692_v19  ;;  %v6171_v43 = vld [vmem:[#allocation2 + $0x141] sm:$0xff] }
 0x11c   : > { %v6019_v45 = vpop.f32.mrb[26].mxu0 }
 0x11d   : > { %728 = vst [vmem:[#allocation2 + $0xd8] sm:$0xff] %v6019_v45  ;;  %v562_v12 = vpop.f32.mrb[27].mxu0 }
 0x11e   : > { %854 = vrot.lane.b32.xlu0 %v5916_v2, %s5759_s18  ;;  %v6104_v2 = vld [vmem:[#allocation2 + $0x129] sm:$0xff]  ;;  %727 = vst [vmem:[#allocation2 + $0xd0] sm:$0xff] %v562_v12 }
 0x11f   : > { %1832 = vrot.lane.b32.xlu1 %v1749_v47, %s5761_s20  ;;  %v1736_v47 = vld [vmem:[#allocation2 + $0x62] sm:$0xff]  ;;  %v6220_v12 = vld [vmem:[#allocation2 + $0x6a] sm:$0xff] }
 0x122   : > { %1048 = vrot.lane.b32.xlu0 %v6028_v48, %s5760_s19 }
 0x123   : > { %1992 = vrot.lane.b32.xlu1 %v5977_v29, %s5760_s19 }
 0x126   : > { %1794 = vrot.lane.b32.xlu0 %v1730_v49, %s5761_s20 }
 0x127   : > { %858 = vrot.lane.b32.xlu1 %v5922_v5, %s5759_s18 }
 0x12a   : > { %1990 = vrot.lane.b32.xlu0 %v6028_v48, %s5760_s19 }
 0x12b   : > { %1246 = vrot.lane.b32.xlu1 %v5922_v5, %s5758_s17 }
 0x12e   : > { %1052 = vrot.lane.b32.xlu0 %v6041_v50, %s5760_s19 }
 0x12f   : > { %856 = vrot.lane.b32.xlu1 %v5925_v7, %s5759_s18 }
 0x132   : > { %1088 = vrot.lane.b32.xlu0 %v6047_v51, %s5760_s19  ;;  %v1761_v51 = vld [vmem:[#allocation2 + $0x18a] sm:$0xff] }
 0x133   : > { %894 = vrot.lane.b32.xlu1 %v5927_v8, %s5759_s18 }
 0x136   : > { %1244 = vrot.lane.b32.xlu0 %v5925_v7, %s5758_s17  ;;  %v1735_v7 = vld [vmem:[#allocation2 + $0x52] sm:$0xff] }
 0x137   : > { %1090 = vrot.lane.b32.xlu1 %v6053_v52, %s5760_s19  ;;  %v6420_v52 = vld [vmem:[#allocation2 + $0xc1] sm:$0xff] }
 0x13a   : > { %1798 = vrot.lane.b32.xlu0 %v1732_v53, %s5761_s20 }
 0x13b   : > { %1282 = vrot.lane.b32.xlu1 %v5927_v8, %s5758_s17 }
 0x13e   : > { %1834 = vrot.lane.b32.xlu0 %v1750_v54, %s5761_s20  ;;  %v1754_v54 = vld [vmem:[#allocation2 + $0x13a] sm:$0xff] }
 0x13f   : > { %1836 = vrot.lane.b32.xlu1 %v1751_v55, %s5761_s20  ;;  %v1755_v55 = vld [vmem:[#allocation2 + $0x142] sm:$0xff] }
 0x142   : > { %1994 = vrot.lane.b32.xlu0 %v6041_v50, %s5760_s19 }
 0x143   : > { %898 = vrot.lane.b32.xlu1 %v5935_v11, %s5759_s18 }
 0x146   : > { %860 = vrot.lane.b32.xlu0 %v5933_v10, %s5759_s18 }
 0x147   : > { %1286 = vrot.lane.b32.xlu1 %v5935_v11, %s5758_s17  ;;  %v1753_v11 = vld [vmem:[#allocation2 + $0x12a] sm:$0xff] }
 0x14a   : > { %1248 = vrot.lane.b32.xlu0 %v5933_v10, %s5758_s17  ;;  %v1734_v10 = vld [vmem:[#allocation2 + $0x4a] sm:$0xff] }
 0x14b   : > { %1054 = vrot.lane.b32.xlu1 %v6072_v56, %s5760_s19 }
 0x14e   : > { %896 = vrot.lane.b32.xlu0 %v5939_v13, %s5759_s18 }
 0x14f   : > { %1800 = vrot.lane.b32.xlu1 %v1733_v57, %s5761_s20 }
 0x152   : > { %1092 = vrot.lane.b32.xlu0 %v6081_v58, %s5760_s19 }
 0x153   : > { %1996 = vrot.lane.b32.xlu1 %v6072_v56, %s5760_s19 }
 0x156   : > { %1284 = vrot.lane.b32.xlu0 %v5939_v13, %s5758_s17 }
 0x157   : > { %862 = vrot.lane.b32.xlu1 %v5946_v16, %s5759_s18 }
 0x15a   : > { %1838 = vrot.lane.b32.xlu0 %v1752_v0, %s5761_s20 }
 0x15b   : > { %1058 = vrot.lane.b32.xlu1 %v6096_v61, %s5760_s19  ;;  %v6102_v1 = vpop.permute.xlu1 %1238 }
 0x15e   : > { %900 = vrot.lane.b32.xlu0 %v5944_v15, %s5759_s18 }
 0x15f   : > { %1094 = vrot.lane.b32.xlu1 %v6104_v2, %s5760_s19  ;;  %v6110_v3 = vpop.permute.xlu1 %886 }
 0x160   : > { %11006 = vst [vmem:[#allocation7_spill] sm:$0xff] %v6110_v3 }
 0x162   : > { %1288 = vrot.lane.b32.xlu0 %v5944_v15, %s5758_s17 }
 0x163   : > { %1250 = vrot.lane.b32.xlu1 %v5946_v16, %s5758_s17 }
 0x164   : > { %v6116_v4 = vpop.permute.xlu0 %1044 }
 0x165   : > { %v6118_v5 = vpop.permute.xlu1 %1082 }
 0x166   : > { %1056 = vrot.lane.b32.xlu0 %v6120_v6, %s5760_s19 }
 0x167   : > { %1804 = vrot.lane.b32.xlu1 %v1735_v7, %s5761_s20  ;;  %v6210_v7 = vld [vmem:[#allocation2 + $0x69] sm:$0xff] }
 0x168   : > { %v6125_v8 = vpop.permute.xlu0 %1236 }
 0x169   : > { %v6127_v9 = vpop.permute.xlu1 %1274 }
 0x16a   : > { %11007 = vst [vmem:[#allocation8_spill] sm:$0xff] %v6127_v9  ;;  %1802 = vrot.lane.b32.xlu0 %v1734_v10, %s5761_s20 }
 0x16b   : > { %1840 = vrot.lane.b32.xlu1 %v1753_v11, %s5761_s20 }
 0x16c   : > { %v6131_v13 = vpop.permute.xlu0 %1986 }
 0x16d   : > { %11008 = vst [vmem:[#allocation9_spill] sm:$0xff] %v6131_v13  ;;  %v6133_v14 = vpop.permute.xlu1 %1828 }
 0x16e   : > { %11009 = vst [vmem:[#allocation10_spill] sm:$0xff] %v6133_v14  ;;  %1998 = vrot.lane.b32.xlu0 %v6120_v6, %s5760_s19 }
 0x16f   : > { %2000 = vrot.lane.b32.xlu1 %v6096_v61, %s5760_s19 }
 0x170   : > { %v6139_v15 = vpop.permute.xlu0 %852 }
 0x171   : > { %v6141_v16 = vpop.permute.xlu1 %890 }
 0x172   : > { %864 = vrot.lane.b32.xlu0 %v5955_v20, %s5759_s18 }
 0x173   : > { %866 = vrot.lane.b32.xlu1 %v5952_v18, %s5759_s18 }
 0x174   : > { %v6149_v24 = vpop.permute.xlu0 %1240 }
 0x175   : > { %v6151_v26 = vpop.permute.xlu1 %1278 }
 0x176   : > { %11010 = vst [vmem:[#allocation11_spill] sm:$0xff] %v6151_v26  ;;  %1060 = vrot.lane.b32.xlu0 %v6147_v23, %s5760_s19  ;;  %v1758_v26 = vld [vmem:[#allocation2 + $0x16a] sm:$0xff] }
 0x177   : > { %1254 = vrot.lane.b32.xlu1 %v5952_v18, %s5758_s17 }
 0x178   : > { %v6157_v27 = vpop.permute.xlu0 %888 }
 0x179   : > { %11011 = vst [vmem:[#allocation12_spill] sm:$0xff] %v6157_v27  ;;  %v6159_v35 = vpop.permute.xlu1 %1046 }
 0x17a   : > { %1096 = vrot.lane.b32.xlu0 %v6161_v36, %s5760_s19 }
 0x17b   : > { %902 = vrot.lane.b32.xlu1 %v5957_v21, %s5759_s18 }
 0x17c   : > { %v6167_v37 = vpop.permute.xlu0 %1084 }
 0x17d   : > { %11012 = vst [vmem:[#allocation13_spill] sm:$0xff] %v6167_v37  ;;  %v6169_v39 = vpop.permute.xlu1 %1988  ;;  %v6414_v37 = vld [vmem:[#allocation2 + $0xb2] sm:$0xff] }
 0x17e   : > { %11013 = vst [vmem:[#allocation14_spill] sm:$0xff] %v6169_v39  ;;  %1252 = vrot.lane.b32.xlu0 %v5955_v20, %s5758_s17  ;;  %v6275_v39 = vld [vmem:[#allocation2 + $0x79] sm:$0xff]  ;;  %11053 = vst [vmem:[#allocation54_spill] sm:$0xff] %v6414_v37 }
 0x17f   : > { %1098 = vrot.lane.b32.xlu1 %v6171_v43, %s5760_s19 }
 0x180   : > { %v6177_v18 = vpop.permute.xlu0 %1276 }
 0x181   : > { %11014 = vst [vmem:[#allocation15_spill] sm:$0xff] %v6177_v18  ;;  %v6179_v44 = vpop.permute.xlu1 %1050  ;;  %v1759_v18 = vld [vmem:[#allocation2 + $0x172] sm:$0xff] }
 0x182   : > { %1806 = vrot.lane.b32.xlu0 %v1736_v47, %s5761_s20 }
 0x183   : > { %1290 = vrot.lane.b32.xlu1 %v5957_v21, %s5758_s17 }
 0x184   : > { %v6184_v49 = vpop.permute.xlu0 %1830 }
 0x185   : > { %11015 = vst [vmem:[#allocation16_spill] sm:$0xff] %v6184_v49  ;;  %v6186_v53 = vpop.permute.xlu1 %1086 }
 0x186   : > { %11016 = vst [vmem:[#allocation17_spill] sm:$0xff] %v6186_v53  ;;  %1842 = vrot.lane.b32.xlu0 %v1754_v54, %s5761_s20  ;;  %v6244_v54 = vld [vmem:[#allocation2 + $0x81] sm:$0xff] }
 0x187   : > { %1844 = vrot.lane.b32.xlu1 %v1755_v55, %s5761_s20 }
 0x188   : > { %v6190_v20 = vpop.permute.xlu0 %892 }
 0x189   : > { %11017 = vst [vmem:[#allocation18_spill] sm:$0xff] %v6190_v20  ;;  %v6192_v57 = vpop.permute.xlu1 %1242  ;;  %v1189_v20 = vld [vmem:[#allocation2 + $0xc8] sm:$0xff] }
 0x18a   : > { %2002 = vrot.lane.b32.xlu0 %v6147_v23, %s5760_s19 }
 0x18b   : > { %906 = vrot.lane.b32.xlu1 %v5969_v25, %s5759_s18 }
 0x18c   : > { %v6198_v21 = vpop.permute.xlu0 %1280 }
 0x18d   : > { %11018 = vst [vmem:[#allocation19_spill] sm:$0xff] %v6198_v21  ;;  %v6200_v62 = vpop.permute.xlu1 %1796  ;;  %v1757_v21 = vld [vmem:[#allocation2 + $0x15a] sm:$0xff] }
 0x18e   : > { %11019 = vst [vmem:[#allocation20_spill] sm:$0xff] %v6200_v62  ;;  %868 = vrot.lane.b32.xlu0 %v5963_v22, %s5759_s18  ;;  %v1739_v62 = vld [vmem:[#allocation2 + $0x82] sm:$0xff] }
 0x18f   : > { %1294 = vrot.lane.b32.xlu1 %v5969_v25, %s5758_s17  ;;  %v6226_v25 = vld [vmem:[#allocation2 + $0x151] sm:$0xff] }
 0x190   : > { %v6206_v63 = vpop.permute.xlu0 %854 }
 0x191   : > { %v6208_v0 = vpop.permute.xlu1 %1832 }
 0x192   : > { %11020 = vst [vmem:[#allocation21_spill] sm:$0xff] %v6208_v0  ;;  %1256 = vrot.lane.b32.xlu0 %v5963_v22, %s5758_s17  ;;  %v1756_v0 = vld [vmem:[#allocation2 + $0x152] sm:$0xff] }
 0x193   : > { %1062 = vrot.lane.b32.xlu1 %v6210_v7, %s5760_s19 }
 0x194   : > { %v6216_v10 = vpop.permute.xlu0 %1048 }
 0x195   : > { %v6218_v11 = vpop.permute.xlu1 %1992 }
 0x196   : > { %11021 = vst [vmem:[#allocation22_spill] sm:$0xff] %v6218_v11  ;;  %904 = vrot.lane.b32.xlu0 %v5989_v32, %s5759_s18 }
 0x197   : > { %1808 = vrot.lane.b32.xlu1 %v6220_v12, %s5761_s20 }
 0x198   : > { %v6228_v17 = vpop.permute.xlu0 %1794 }
 0x199   : > { %11022 = vst [vmem:[#allocation23_spill] sm:$0xff] %v6228_v17  ;;  %v6230_v22 = vpop.permute.xlu1 %858 }
 0x19a   : > { %1100 = vrot.lane.b32.xlu0 %v6226_v25, %s5760_s19 }
 0x19b   : > { %2004 = vrot.lane.b32.xlu1 %v6210_v7, %s5760_s19 }
 0x19c   : > { %v6236_v19 = vpop.permute.xlu0 %1990 }
 0x19d   : > { %11023 = vst [vmem:[#allocation24_spill] sm:$0xff] %v6236_v19  ;;  %v6238_v47 = vpop.permute.xlu1 %1246 }
 0x19e   : > { %1292 = vrot.lane.b32.xlu0 %v5989_v32, %s5758_s17  ;;  %v6257_v32 = vld [vmem:[#allocation2 + $0x159] sm:$0xff] }
 0x19f   : > { %870 = vrot.lane.b32.xlu1 %v5972_v28, %s5759_s18 }
 0x1a0   : > { %v6246_v55 = vpop.permute.xlu0 %1052 }
 0x1a1   : > { %v6248_v49 = vpop.permute.xlu1 %856 }
 0x1a2   : > { %1846 = vrot.lane.b32.xlu0 %v1756_v0, %s5761_s20 }
 0x1a3   : > { %1066 = vrot.lane.b32.xlu1 %v6244_v54, %s5760_s19 }
 0x1a4   : > { %v6253_v14 = vpop.permute.xlu0 %1088 }
 0x1a5   : > { %11024 = vst [vmem:[#allocation25_spill] sm:$0xff] %v6253_v14  ;;  %v6255_v11 = vpop.permute.xlu1 %894  ;;  %v6316_v14 = vld [vmem:[#allocation2 + $0x169] sm:$0xff] }
 0x1a6   : > { %11025 = vst [vmem:[#allocation26_spill] sm:$0xff] %v6255_v11  ;;  %908 = vrot.lane.b32.xlu0 %v5992_v33, %s5759_s18 }
 0x1a7   : > { %1102 = vrot.lane.b32.xlu1 %v6257_v32, %s5760_s19 }
 0x1a8   : > { %v6263_v19 = vpop.permute.xlu0 %1244 }
 0x1a9   : > { %v6265_v13 = vpop.permute.xlu1 %1090 }
 0x1aa   : > { %11026 = vst [vmem:[#allocation27_spill] sm:$0xff] %v6265_v13  ;;  %1296 = vrot.lane.b32.xlu0 %v5992_v33, %s5758_s17  ;;  %v1738_v33 = vld [vmem:[#allocation2 + $0x7a] sm:$0xff]  ;;  %v6326_v13 = vld [vmem:[#allocation2 + $0x171] sm:$0xff] }
 0x1ab   : > { %1258 = vrot.lane.b32.xlu1 %v5972_v28, %s5758_s17 }
 0x1ac   : > { %v6271_v0 = vpop.permute.xlu0 %1798 }
 0x1ad   : > { %11027 = vst [vmem:[#allocation28_spill] sm:$0xff] %v6271_v0  ;;  %v6273_v17 = vpop.permute.xlu1 %1282 }
 0x1ae   : > { %11028 = vst [vmem:[#allocation29_spill] sm:$0xff] %v6273_v17  ;;  %1064 = vrot.lane.b32.xlu0 %v6275_v39, %s5760_s19 }
 0x1af   : > { %1812 = vrot.lane.b32.xlu1 %v1739_v62, %s5761_s20 }
 0x1b0   : > { %v6280_v27 = vpop.permute.xlu0 %1834 }
 0x1b1   : > { %11029 = vst [vmem:[#allocation30_spill] sm:$0xff] %v6280_v27  ;;  %v6282_v3 = vpop.permute.xlu1 %1836 }
 0x1b2   : > { %11030 = vst [vmem:[#allocation31_spill] sm:$0xff] %v6282_v3  ;;  %1810 = vrot.lane.b32.xlu0 %v1738_v33, %s5761_s20 }
 0x1b3   : > { %1848 = vrot.lane.b32.xlu1 %v1757_v21, %s5761_s20  ;;  %v6302_v21 = vld [vmem:[#allocation2 + $0x91] sm:$0xff] }
 0x1b4   : > { %v6286_v28 = vpop.permute.xlu0 %1994 }
 0x1b5   : > { %11031 = vst [vmem:[#allocation32_spill] sm:$0xff] %v6286_v28  ;;  %v6288_v0 = vpop.permute.xlu1 %898 }
 0x1b6   : > { %11032 = vst [vmem:[#allocation33_spill] sm:$0xff] %v6288_v0  ;;  %2006 = vrot.lane.b32.xlu0 %v6275_v39, %s5760_s19 }
 0x1b7   : > { %2008 = vrot.lane.b32.xlu1 %v6244_v54, %s5760_s19 }
 0x1b8   : > { %v6294_v62 = vpop.permute.xlu0 %860 }
 0x1b9   : > { %v6296_v27 = vpop.permute.xlu1 %1286 }
 0x1ba   : > { %11033 = vst [vmem:[#allocation34_spill] sm:$0xff] %v6296_v27  ;;  %872 = vrot.lane.b32.xlu0 %v5982_v31, %s5759_s18 }
 0x1bb   : > { %874 = vrot.lane.b32.xlu1 %v5979_v30, %s5759_s18 }
 0x1bc   : > { %v6304_v33 = vpop.permute.xlu0 %1248 }
 0x1bd   : > { %v6306_v3 = vpop.permute.xlu1 %1054 }
 0x1be   : > { %1068 = vrot.lane.b32.xlu0 %v6302_v21, %s5760_s19 }
 0x1bf   : > { %1262 = vrot.lane.b32.xlu1 %v5979_v30, %s5758_s17 }
 0x1c0   : > { %v6312_v28 = vpop.permute.xlu0 %896 }
 0x1c1   : > { %11034 = vst [vmem:[#allocation35_spill] sm:$0xff] %v6312_v28  ;;  %v6314_v27 = vpop.permute.xlu1 %1800  ;;  %v1740_v28 = vld [vmem:[#allocation2 + $0x92] sm:$0xff] }
 0x1c2   : > { %11035 = vst [vmem:[#allocation36_spill] sm:$0xff] %v6314_v27  ;;  %1104 = vrot.lane.b32.xlu0 %v6316_v14, %s5760_s19 }
 0x1c3   : > { %910 = vrot.lane.b32.xlu1 %v6021_v46, %s5759_s18 }
 0x1c4   : > { %v6322_v58 = vpop.permute.xlu0 %1092 }
 0x1c5   : > { %11036 = vst [vmem:[#allocation37_spill] sm:$0xff] %v6322_v58  ;;  %v6324_v17 = vpop.permute.xlu1 %1996 }
 0x1c6   : > { %11037 = vst [vmem:[#allocation38_spill] sm:$0xff] %v6324_v17  ;;  %1260 = vrot.lane.b32.xlu0 %v5982_v31, %s5758_s17 }
 0x1c7   : > { %1106 = vrot.lane.b32.xlu1 %v6326_v13, %s5760_s19 }
 0x1c8   : > { %v6332_v30 = vpop.permute.xlu0 %1284 }
 0x1c9   : > { %11038 = vst [vmem:[#allocation39_spill] sm:$0xff] %v6332_v30  ;;  %v6334_v27 = vpop.permute.xlu1 %862 }
 0x1ca   : > { %1814 = vrot.lane.b32.xlu0 %v1740_v28, %s5761_s20 }
 0x1cb   : > { %1298 = vrot.lane.b32.xlu1 %v6021_v46, %s5758_s17 }
 0x1cc   : > { %v6339_v58 = vpop.permute.xlu0 %1838 }
 0x1cd   : > { %11039 = vst [vmem:[#allocation40_spill] sm:$0xff] %v6339_v58  ;;  %v6341_v17 = vpop.permute.xlu1 %1058  ;;  %v6357_v58 = vld [vmem:[#allocation2 + $0x99] sm:$0xff] }
 0x1ce   : > { %1850 = vrot.lane.b32.xlu0 %v1758_v26, %s5761_s20 }
 0x1cf   : > { %1852 = vrot.lane.b32.xlu1 %v1759_v18, %s5761_s20 }
 0x1d0   : > { %v6345_v31 = vpop.permute.xlu0 %900 }
 0x1d1   : > { %11040 = vst [vmem:[#allocation41_spill] sm:$0xff] %v6345_v31  ;;  %v6347_v30 = vpop.permute.xlu1 %1094  ;;  %v1760_v31 = vld [vmem:[#allocation2 + $0x182] sm:$0xff] }
 0x1d2   : > { %11041 = vst [vmem:[#allocation42_spill] sm:$0xff] %v6347_v30  ;;  %2010 = vrot.lane.b32.xlu0 %v6302_v21, %s5760_s19  ;;  %v6367_v30 = vld [vmem:[#allocation2 + $0x9a] sm:$0xff] }
 0x1d3   : > { %914 = vrot.lane.b32.xlu1 %v6083_v59, %s5759_s18  ;;  %11044 = vst [vmem:[#allocation45_spill] sm:$0xff] %v6367_v30 }
 0x1d4   : > { %v6353_v46 = vpop.permute.xlu0 %1288 }
 0x1d5   : > { %11042 = vst [vmem:[#allocation43_spill] sm:$0xff] %v6353_v46  ;;  %v6355_v28 = vpop.permute.xlu1 %1250 }
 0x1d6   : > { %876 = vrot.lane.b32.xlu0 %v5994_v34, %s5759_s18 }
 0x1d7   : > { %1070 = vrot.lane.b32.xlu1 %v6357_v58, %s5760_s19 }
 0x1d8   : > { %v6363_v26 = vpop.permute.xlu0 %1056 }
 0x1d9   : > { %v6365_v18 = vpop.permute.xlu1 %1804 }
 0x1da   : > { %11043 = vst [vmem:[#allocation44_spill] sm:$0xff] %v6365_v18  ;;  %1264 = vrot.lane.b32.xlu0 %v5994_v34, %s5758_s17  ;;  %v6388_v34 = vld [vmem:[#allocation2 + $0xb1] sm:$0xff] }
 0x1db   : > { %1816 = vrot.lane.b32.xlu1 %v6367_v30, %s5761_s20  ;;  %11049 = vst [vmem:[#allocation50_spill] sm:$0xff] %v6388_v34 }
 0x1dc   : > { %v6373_v59 = vpop.permute.xlu0 %1802 }
 0x1dd   : > { %11045 = vst [vmem:[#allocation46_spill] sm:$0xff] %v6373_v59  ;;  %v6375_v46 = vpop.permute.xlu1 %1840 }
 0x1de   : > { %11046 = vst [vmem:[#allocation47_spill] sm:$0xff] %v6375_v46  ;;  %912 = vrot.lane.b32.xlu0 %v6094_v60, %s5759_s18  ;;  %v6394_v60 = vld [vmem:[#allocation2 + $0xa9] sm:$0xff] }
 0x1df   : > { %2012 = vrot.lane.b32.xlu1 %v6357_v58, %s5760_s19 }
 0x1e0   : > { %v6381_v18 = vpop.permute.xlu0 %1998 }
 0x1e1   : > { %11047 = vst [vmem:[#allocation48_spill] sm:$0xff] %v6381_v18  ;;  %v6383_v0 = vpop.permute.xlu1 %2000  ;;  %v6404_v18 = vld [vmem:[#allocation2 + $0xaa] sm:$0xff] }
 0x1e2   : > { %11048 = vst [vmem:[#allocation49_spill] sm:$0xff] %v6383_v0  ;;  %1854 = vrot.lane.b32.xlu0 %v1760_v31, %s5761_s20  ;;  %11050 = vst [vmem:[#allocation51_spill] sm:$0xff] %v6404_v18 }
 0x1e3   : > { %878 = vrot.lane.b32.xlu1 %v6003_v40, %s5759_s18 }
 0x1e4   : > { %v6390_v59 = vpop.permute.xlu0 %864 }
 0x1e5   : > { %v6392_v46 = vpop.permute.xlu1 %866 }
 0x1e6   : > { %1072 = vrot.lane.b32.xlu0 %v6394_v60, %s5760_s19 }
 0x1e7   : > { %1074 = vrot.lane.b32.xlu1 %v6388_v34, %s5760_s19 }
 0x1e8   : > { %v6400_v0 = vpop.permute.xlu0 %1060 }
 0x1e9   : > { %v6402_v31 = vpop.permute.xlu1 %1254 }
 0x1ea   : > { %1818 = vrot.lane.b32.xlu0 %v6404_v18, %s5761_s20 }
 0x1eb   : > { %1266 = vrot.lane.b32.xlu1 %v6003_v40, %s5758_s17 }
 0x1ec   : > { %v6410_v30 = vpop.permute.xlu0 %1096 }
 0x1ed   : > { %11051 = vst [vmem:[#allocation52_spill] sm:$0xff] %v6410_v30  ;;  %v6412_v53 = vpop.permute.xlu1 %902 }
 0x1ee   : > { %11052 = vst [vmem:[#allocation53_spill] sm:$0xff] %v6412_v53  ;;  %880 = vrot.lane.b32.xlu0 %v6013_v42, %s5759_s18 }
 0x1ef   : > { %1820 = vrot.lane.b32.xlu1 %v6414_v37, %s5761_s20 }
 0x1f0   : > { %v6422_v11 = vpop.permute.xlu0 %1252 }
 0x1f1   : > { %v6424_v18 = vpop.permute.xlu1 %1098 }
 0x1f2   : > { %11054 = vst [vmem:[#allocation55_spill] sm:$0xff] %v6424_v18  ;;  %1076 = vrot.lane.b32.xlu0 %v6420_v52, %s5760_s19  ;;  %v6441_v18 = vld [vmem:[#allocation2 + $0xc2] sm:$0xff] }
 0x1f3   : > { %1856 = vrot.lane.b32.xlu1 %v1761_v51, %s5761_s20  ;;  %11059 = vst [vmem:[#allocation60_spill] sm:$0xff] %v6441_v18 }
 0x1f4   : > { %v6429_v40 = vpop.permute.xlu0 %1806 }
 0x1f5   : > { %11055 = vst [vmem:[#allocation56_spill] sm:$0xff] %v6429_v40  ;;  %v6431_v30 = vpop.permute.xlu1 %1290 }
 0x1f6   : > { %11056 = vst [vmem:[#allocation57_spill] sm:$0xff] %v6431_v30  ;;  %1268 = vrot.lane.b32.xlu0 %v6013_v42, %s5758_s17  ;;  %v6450_v42 = vld [vmem:[#allocation2 + $0xc9] sm:$0xff] }
 0x1f7   : > { %882 = vrot.lane.b32.xlu1 %v6010_v41, %s5759_s18  ;;  %11062 = vst [vmem:[#allocation63_spill] sm:$0xff] %v6450_v42 }
 0x1f8   : > { %v6437_v37 = vpop.permute.xlu0 %1842 }
 0x1f9   : > { %11057 = vst [vmem:[#allocation58_spill] sm:$0xff] %v6437_v37  ;;  %v6439_v53 = vpop.permute.xlu1 %1844 }
 0x1fa   : > { %11058 = vst [vmem:[#allocation59_spill] sm:$0xff] %v6439_v53  ;;  %1822 = vrot.lane.b32.xlu0 %v6441_v18, %s5761_s20  ;;  %v6460_v53 = vld [vmem:[#allocation2 + $0xd9] sm:$0xff]  ;;  %v6462_v18 = vld [vmem:[#allocation2 + $0xca] sm:$0xff] }
 0x1fb   : > { %1270 = vrot.lane.b32.xlu1 %v1189_v20, %s5758_s17  ;;  %11064 = vst [vmem:[#allocation65_spill] sm:$0xff] %v6462_v18 }
 0x1fc   : > { %v6446_v51 = vpop.permute.xlu0 %2002 }
 0x1fd   : > { %11060 = vst [vmem:[#allocation61_spill] sm:$0xff] %v6446_v51  ;;  %v6448_v40 = vpop.permute.xlu1 %906  ;;  %v1190_v51 = vld [vmem:[#allocation2 + $0xd8] sm:$0xff] }
 0x1fe   : > { %11061 = vst [vmem:[#allocation62_spill] sm:$0xff] %v6448_v40  ;;  %884 = vrot.lane.b32.xlu0 %v6019_v45, %s5759_s18  ;;  %v6479_v40 = vld [vmem:[#allocation2 + $0xda] sm:$0xff] }
 0x1ff   : > { %1078 = vrot.lane.b32.xlu1 %v6450_v42, %s5760_s19  ;;  %11067 = vst [vmem:[#allocation68_spill] sm:$0xff] %v6479_v40 }
 0x200   : > { %v6456_v41 = vpop.permute.xlu0 %868 }
 0x201   : > { %v6458_v37 = vpop.permute.xlu1 %1294 }
 0x202   : > { %11063 = vst [vmem:[#allocation64_spill] sm:$0xff] %v6458_v37  ;;  %1080 = vrot.lane.b32.xlu0 %v6460_v53, %s5760_s19 }
 0x203   : > { %1824 = vrot.lane.b32.xlu1 %v6462_v18, %s5761_s20 }
 0x204   : > { %v6468_v20 = vpop.permute.xlu0 %1256 }
 0x205   : > { %v6470_v45 = vpop.permute.xlu1 %1062 }
 0x206   : > { %1272 = vrot.lane.b32.xlu0 %v1190_v51, %s5758_s17  ;;  %v949_v51 = vadd.f32 %v5977_v29, %v6206_v63 }
 0x207   : > { %2016 = vrot.lane.b32.xlu1 %v6388_v34, %s5760_s19  ;;  %v1941_v34 = vld [vmem:[#allocation2 + $0xe1] sm:$0xff] }
 0x208   : > { %v6475_v37 = vpop.permute.xlu0 %904 }
 0x209   : > { %11065 = vst [vmem:[#allocation66_spill] sm:$0xff] %v6475_v37  ;;  %v6477_v30 = vpop.permute.xlu1 %1808  ;;  %v1943_v37 = vld [vmem:[#allocation2 + $0xf9] sm:$0xff] }
 0x20a   : > { %11066 = vst [vmem:[#allocation67_spill] sm:$0xff] %v6477_v30  ;;  %1826 = vrot.lane.b32.xlu0 %v6479_v40, %s5761_s20  ;;  %v948_v30 = vadd.f32 %v6028_v48, %v6139_v15  ;;  %v950_v40 = vadd.f32 %v6041_v50, %v6248_v49  ;;  %v951_v48 = vadd.f32 %v6072_v56, %v6230_v22 }
 0x20b   : > { %2020 = vrot.lane.b32.xlu1 %v6450_v42, %s5760_s19 }
 0x20c   : > { %v6485_v18 = vpop.permute.xlu0 %1100  ;;  %v1140_v29 = vadd.f32 %v6116_v4, %v948_v30  ;;  %v1142_v63 = vadd.f32 %v6216_v10, %v950_v40 }
 0x20d   : > { %11068 = vst [vmem:[#allocation69_spill] sm:$0xff] %v6485_v18  ;;  %v6487_v9 = vpop.permute.xlu1 %2004 }
 0x20e   : > { %11069 = vst [vmem:[#allocation70_spill] sm:$0xff] %v6487_v9  ;;  %2014 = vrot.lane.b32.xlu0 %v6394_v60, %s5760_s19  ;;  %v1141_v9 = vadd.f32 %v6159_v35, %v949_v51  ;;  %v952_v35 = vadd.f32 %v6120_v6, %v6294_v62  ;;  %v6521_v4 = vadd.f32 %v6125_v8, %v1140_v29 }
 0x20f   : > { %2024 = vrot.lane.b32.xlu1 %v1941_v34, %s5760_s19  ;;  %v1945_v34 = vld [vmem:[#allocation2 + $0x111] sm:$0xff]  ;;  %v6524_v56 = vadd.f32 %v6149_v24, %v1142_v63  ;;  %v954_v8 = vadd.f32 %v6147_v23, %v6390_v59  ;;  %v1944_v63 = vld [vmem:[#allocation2 + $0x109] sm:$0xff] }
 0x210   : > { %v6498_v42 = vpop.permute.xlu0 %1292  ;;  %v6513_v49 = vadd.f32 %v6102_v1, %v1141_v9  ;;  %v1143_v1 = vadd.f32 %v6179_v44, %v951_v48  ;;  %v1144_v22 = vadd.f32 %v6246_v55, %v952_v35  ;;  %v1942_v24 = vld [vmem:[#allocation2 + $0xf1] sm:$0xff]  ;;  %v1365_v23 = vsel %vm1364_vm2, %v6521_v4, 0.0 }
 0x211   : > { %v871_v18 = vpop.permute.xlu1 %870  ;;  %v1437_v44 = vmul.f32 %v6524_v56, %v6524_v56  ;;  %v1368_v51 = vsel %vm1364_vm2, %v6524_v56, 0.0 }
 0x212   : > { %2018 = vrot.lane.b32.xlu0 %v6420_v52, %s5760_s19  ;;  %v1436_v10 = vmul.f32 %v6513_v49, %v6513_v49  ;;  %v6551_v62 = vadd.f32 %v6192_v57, %v1143_v1  ;;  %v6561_v29 = vadd.f32 %v6263_v19, %v1144_v22  ;;  %v955_v57 = vadd.f32 %v6210_v7, %v6392_v46 }
 0x213   : > { %2028 = vrot.lane.b32.xlu1 %v1943_v37, %s5760_s19  ;;  %v953_v37 = vadd.f32 %v6096_v61, %v6334_v27  ;;  %v1435_v61 = vmul.f32 %v6521_v4, %v6521_v4  ;;  %v1366_v27 = vsel %vm1364_vm2, %v6513_v49, 0.0  ;;  %v956_v19 = vadd.f32 %v6275_v39, %v6456_v41 }
 0x214   : > { %v6508_v15 = vpop.permute.xlu0 %1846  ;;  %v1468_v40 = vsel %vm1364_vm2, %v1436_v10, 0.0  ;;  %v1367_v48 = vadd.f32 %v1366_v27, %v1365_v23  ;;  %v1438_v1 = vmul.f32 %v6551_v62, %v6551_v62  ;;  %v1439_v22 = vmul.f32 %v6561_v29, %v6561_v29 }
 0x215   : > { %v6510_v50 = vpop.permute.xlu1 %1066  ;;  %v1145_v55 = vadd.f32 %v6306_v3, %v953_v37  ;;  %v1146_v3 = vadd.f32 %v6363_v26, %v954_v8  ;;  %v1467_v35 = vsel %vm1364_vm2, %v1435_v61, 0.0  ;;  %v1147_v39 = vadd.f32 %v6341_v17, %v955_v57 }
 0x216   : > { %2022 = vrot.lane.b32.xlu0 %v6460_v53, %s5760_s19  ;;  %v1469_v26 = vadd.f32 %v1468_v40, %v1467_v35  ;;  %v1369_v7 = vadd.f32 %v1368_v51, %v1367_v48  ;;  %v1370_v41 = vsel %vm1364_vm2, %v6551_v62, 0.0  ;;  %v1372_v27 = vsel %vm1364_vm2, %v6561_v29, 0.0 }
 0x217   : > { %2032 = vrot.lane.b32.xlu1 %v1945_v34, %s5760_s19  ;;  %v1470_v34 = vsel %vm1364_vm2, %v1437_v44, 0.0  ;;  %v6572_v37 = vadd.f32 %v6238_v47, %v1145_v55  ;;  %v6583_v8 = vadd.f32 %v6304_v33, %v1146_v3  ;;  %v957_v47 = vadd.f32 %v6244_v54, %v871_v18 }
 0x218   : > { %v6529_v9 = vpop.permute.xlu0 %908  ;;  %v1471_v61 = vadd.f32 %v1470_v34, %v1469_v26  ;;  %v1148_v54 = vadd.f32 %v6400_v0, %v956_v19  ;;  %v1472_v18 = vsel %vm1364_vm2, %v1438_v1, 0.0  ;;  %v1371_v44 = vadd.f32 %v1370_v41, %v1369_v7 }
 0x219   : > { %v6531_v6 = vpop.permute.xlu1 %1102  ;;  %v1440_v33 = vmul.f32 %v6572_v37, %v6572_v37  ;;  %v1474_v23 = vsel %vm1364_vm2, %v1439_v22, 0.0  ;;  %v1374_v40 = vsel %vm1364_vm2, %v6572_v37, 0.0  ;;  %v1441_v51 = vmul.f32 %v6583_v8, %v6583_v8  ;;  %v2115_v22 = vld [vmem:[#allocation2 + $0xa] sm:$0xff] }
 0x21a   : > { %2026 = vrot.lane.b32.xlu0 %v1942_v24, %s5760_s19  ;;  %v1946_v24 = vld [vmem:[#allocation2 + $0x121] sm:$0xff]  ;;  %v1149_v3 = vadd.f32 %v6470_v45, %v957_v47  ;;  %v1473_v48 = vadd.f32 %v1472_v18, %v1471_v61  ;;  %v6609_v0 = vadd.f32 %v6355_v28, %v1147_v39  ;;  %v1376_v35 = vsel %vm1364_vm2, %v6583_v8, 0.0 }
 0x21b   : > { %2036 = vrot.lane.b32.xlu1 %v6104_v2, %s5760_s19  ;;  %v1476_v57 = vsel %vm1364_vm2, %v1440_v33, 0.0  ;;  %v6619_v34 = vadd.f32 %v6422_v11, %v1148_v54  ;;  %v1478_v1 = vsel %vm1364_vm2, %v1441_v51, 0.0 }
 0x21c   : > { %v6553_v30 = vpop.permute.xlu0 %1296  ;;  %v1475_v45 = vadd.f32 %v1474_v23, %v1473_v48  ;;  %v6627_v7 = vadd.f32 %v6402_v31, %v1149_v3  ;;  %v1442_v61 = vmul.f32 %v6609_v0, %v6609_v0  ;;  %v1378_v31 = vsel %vm1364_vm2, %v6609_v0, 0.0  ;;  %v2117_v23 = vld [vmem:[#allocation2 + $0x22] sm:$0xff] }
 0x21d   : > { %v6555_v59 = vpop.permute.xlu1 %1258  ;;  %v1443_v11 = vmul.f32 %v6619_v34, %v6619_v34  ;;  %v1380_v33 = vsel %vm1364_vm2, %v6619_v34, 0.0 }
 0x21e   : > { %2030 = vrot.lane.b32.xlu0 %v1944_v63, %s5760_s19  ;;  %v1373_v63 = vadd.f32 %v1372_v27, %v1371_v44  ;;  %v1477_v47 = vadd.f32 %v1476_v57, %v1475_v45  ;;  %v1444_v54 = vmul.f32 %v6627_v7, %v6627_v7  ;;  %v1480_v51 = vsel %vm1364_vm2, %v1442_v61, 0.0 }
 0x21f   : > { %2040 = vrot.lane.b32.xlu1 %v6171_v43, %s5760_s19  ;;  %v1482_v3 = vsel %vm1364_vm2, %v1443_v11, 0.0 }
 0x220   : > { %v1065_v46 = vpop.permute.xlu0 %1064  ;;  %v1375_v19 = vadd.f32 %v1374_v40, %v1373_v63  ;;  %v1479_v39 = vadd.f32 %v1478_v1, %v1477_v47  ;;  %v1382_v63 = vsel %vm1364_vm2, %v6627_v7, 0.0 }
 0x221   : > { %v6578_v10 = vpop.permute.xlu1 %1812 }
 0x222   : > { %2034 = vrot.lane.b32.xlu0 %v1946_v24, %s5760_s19  ;;  %v1377_v24 = vadd.f32 %v1376_v35, %v1375_v19  ;;  %v1484_v19 = vsel %vm1364_vm2, %v1444_v54, 0.0 }
 0x223   : > { %2044 = vrot.lane.b32.xlu1 %v6257_v32, %s5760_s19 }
 0x224   : > { %v6598_v17 = vpop.permute.xlu0 %1810  ;;  %v1379_v40 = vadd.f32 %v1378_v31, %v1377_v24  ;;  %v2119_v24 = vld [vmem:[#allocation2 + $0x3a] sm:$0xff] }
 0x225   : > { %v6600_v55 = vpop.permute.xlu1 %1848 }
 0x226   : > { %2038 = vrot.lane.b32.xlu0 %v6161_v36, %s5760_s19  ;;  %v1381_v35 = vadd.f32 %v1380_v33, %v1379_v40 }
 0x227   : > { %2048 = vrot.lane.b32.xlu1 %v6326_v13, %s5760_s19 }
 0x228   : > { %v6621_v26 = vpop.permute.xlu0 %2006 }
 0x229   : > { %v6623_v28 = vpop.permute.xlu1 %2008 }
 0x22a   : > { %2042 = vrot.lane.b32.xlu0 %v6226_v25, %s5760_s19 }
 0x22b   : > { %2180 = vrot.lane.b32.xlu1 %v2115_v22, %s5762_s21  ;;  %v2114_v22 = vld [vmem:[#allocation2 + $0x2] sm:$0xff] }
 0x22c   : > { %v873_v41 = vpop.permute.xlu0 %872 }
 0x22d   : > { %v875_v27 = vpop.permute.xlu1 %874  ;;  %v958_v18 = vadd.f32 %v6302_v21, %v873_v41  ;;  %v1481_v21 = vadd.f32 %v1480_v51, %v1479_v39 }
 0x22e   : > { %v959_v44 = vadd.f32 %v6357_v58, %v875_v27  ;;  %2046 = vrot.lane.b32.xlu0 %v6316_v14, %s5760_s19 }
 0x22f   : > { %2184 = vrot.lane.b32.xlu1 %v2117_v23, %s5762_s21  ;;  %v1150_v48 = vadd.f32 %v1065_v46, %v958_v18  ;;  %v1483_v61 = vadd.f32 %v1482_v3, %v1481_v21  ;;  %v1383_v46 = vadd.f32 %v1382_v63, %v1381_v35  ;;  %v2116_v18 = vld [vmem:[#allocation2 + $0x1a] sm:$0xff] }
 0x230   : > { %v1151_v57 = vadd.f32 %v6510_v50, %v959_v44  ;;  %v6652_v58 = vpop.permute.xlu0 %1068  ;;  %v2121_v44 = vld [vmem:[#allocation2 + $0x52] sm:$0xff] }
 0x231   : > { %v6654_v45 = vpop.permute.xlu1 %1262  ;;  %v6658_v1 = vadd.f32 %v6468_v20, %v1150_v48  ;;  %v1485_v39 = vadd.f32 %v1484_v19, %v1483_v61  ;;  %v2118_v48 = vld [vmem:[#allocation2 + $0x32] sm:$0xff] }
 0x232   : > { %v6661_v47 = vadd.f32 %v6555_v59, %v1151_v57  ;;  %2178 = vrot.lane.b32.xlu0 %v2114_v22, %s5762_s21  ;;  %v967_v59 = vadd.f32 %v5998_v38, %v6141_v16  ;;  %v11070_v57 = vld [vmem:[#allocation8_spill] sm:$0xff] }
 0x233   : > { %2188 = vrot.lane.b32.xlu1 %v2119_v24, %s5762_s21  ;;  %v1384_v50 = vsel %vm1364_vm2, %v6658_v1, 0.0  ;;  %v1445_v11 = vmul.f32 %v6658_v1, %v6658_v1  ;;  %v2120_v22 = vld [vmem:[#allocation2 + $0x4a] sm:$0xff] }
 0x234   : > { %v1446_v20 = vmul.f32 %v6661_v47, %v6661_v47  ;;  %v1385_v31 = vadd.f32 %v1384_v50, %v1383_v46  ;;  %v6673_v41 = vpop.permute.xlu0 %1104  ;;  %v1386_v54 = vsel %vm1364_vm2, %v6661_v47, 0.0  ;;  %v1159_v16 = vadd.f32 %v6118_v5, %v967_v59  ;;  %v11071_v5 = vld [vmem:[#allocation18_spill] sm:$0xff]  ;;  %v11072_v24 = vld [vmem:[#allocation4_spill] sm:$0xff]  ;;  %v11074_v50 = vld [vmem:[#allocation5_spill] sm:$0xff] }
 0x235   : > { %v6675_v27 = vpop.permute.xlu1 %910  ;;  %v1486_v33 = vsel %vm1364_vm2, %v1445_v11, 0.0  ;;  %v968_v61 = vadd.f32 %v11072_v24, %v11071_v5  ;;  %v11073_v46 = vld [vmem:[#allocation26_spill] sm:$0xff] }
 0x236   : > { %v1487_v23 = vadd.f32 %v1486_v33, %v1485_v39  ;;  %v1387_v40 = vadd.f32 %v1386_v54, %v1385_v31  ;;  %2182 = vrot.lane.b32.xlu0 %v2116_v18, %s5762_s21  ;;  %v1488_v38 = vsel %vm1364_vm2, %v1446_v20, 0.0  ;;  %v6690_v21 = vadd.f32 %v11070_v57, %v1159_v16  ;;  %v2122_v59 = vld [vmem:[#allocation2 + $0x62] sm:$0xff]  ;;  %v11075_v39 = vld [vmem:[#allocation13_spill] sm:$0xff] }
 0x237   : > { %2192 = vrot.lane.b32.xlu1 %v2121_v44, %s5762_s21  ;;  %v1160_v31 = vadd.f32 %v11075_v39, %v968_v61  ;;  %v11076_v33 = vld [vmem:[#allocation17_spill] sm:$0xff]  ;;  %v11078_v16 = vld [vmem:[#allocation15_spill] sm:$0xff] }
 0x238   : > { %v1489_v51 = vadd.f32 %v1488_v38, %v1487_v23  ;;  %v1261_v3 = vpop.permute.xlu0 %1260  ;;  %v11077_v18 = vld [vmem:[#allocation33_spill] sm:$0xff] }
 0x239   : > { %v6684_v63 = vpop.permute.xlu1 %1106  ;;  %v971_v44 = vadd.f32 %v6104_v2, %v11077_v18 }
 0x23a   : > { %2186 = vrot.lane.b32.xlu0 %v2118_v48, %s5762_s21  ;;  %v6723_v48 = vadd.f32 %v11078_v16, %v1160_v31 }
 0x23b   : > { %2196 = vrot.lane.b32.xlu1 %v6220_v12, %s5762_s21  ;;  %v969_v12 = vadd.f32 %v11074_v50, %v11073_v46  ;;  %v11082_v50 = vld [vmem:[#allocation35_spill] sm:$0xff] }
 0x23c   : > { %v6692_v35 = vpop.permute.xlu0 %1814 }
 0x23d   : > { %v6694_v19 = vpop.permute.xlu1 %1298  ;;  %v1161_v54 = vadd.f32 %v11076_v33, %v969_v12  ;;  %v11083_v12 = vld [vmem:[#allocation6_spill] sm:$0xff] }
 0x23e   : > { %2190 = vrot.lane.b32.xlu0 %v2120_v22, %s5762_s21  ;;  %v11080_v22 = vld [vmem:[#allocation27_spill] sm:$0xff] }
 0x23f   : > { %1607 = vrot.lane.b32.xlu1 %v6690_v21, %s5763_s22  ;;  %v1163_v5 = vadd.f32 %v11080_v22, %v971_v44  ;;  %v11085_v44 = vld [vmem:[#allocation41_spill] sm:$0xff] }
 0x240   : > { %v6703_v11 = vpop.permute.xlu0 %1850  ;;  %v972_v16 = vadd.f32 %v6161_v36, %v11085_v44  ;;  %v11088_v36 = vld [vmem:[#allocation37_spill] sm:$0xff]  ;;  %v11094_v44 = vld [vmem:[#allocation34_spill] sm:$0xff] }
 0x241   : > { %v6705_v20 = vpop.permute.xlu1 %1852 }
 0x242   : > { %2194 = vrot.lane.b32.xlu0 %v2122_v59, %s5762_s21  ;;  %v970_v59 = vadd.f32 %v11083_v12, %v11082_v50  ;;  %v1164_v50 = vadd.f32 %v11088_v36, %v972_v16  ;;  %v11090_v12 = vld [vmem:[#allocation62_spill] sm:$0xff]  ;;  %v11096_v36 = vld [vmem:[#allocation57_spill] sm:$0xff] }
 0x243   : > { %1571 = vrot.lane.b32.xlu1 %v6513_v49, %s5763_s22  ;;  %v11079_v49 = vld [vmem:[#allocation11_spill] sm:$0xff] }
 0x244   : > { %v6714_v23 = vpop.permute.xlu0 %2010  ;;  %v6726_v57 = vadd.f32 %v11079_v49, %v1161_v54  ;;  %v11084_v54 = vld [vmem:[#allocation25_spill] sm:$0xff] }
 0x245   : > { %v6716_v38 = vpop.permute.xlu1 %914  ;;  %v1162_v18 = vadd.f32 %v11084_v54, %v970_v59  ;;  %v11086_v49 = vld [vmem:[#allocation53_spill] sm:$0xff]  ;;  %v975_v59 = vadd.f32 %v6257_v32, %v11090_v12 }
 0x246   : > { %1569 = vrot.lane.b32.xlu0 %v6521_v4, %s5763_s22 }
 0x247   : > { %1575 = vrot.lane.b32.xlu1 %v6551_v62, %s5763_s22  ;;  %v11081_v62 = vld [vmem:[#allocation29_spill] sm:$0xff] }
 0x248   : > { %v877_v24 = vpop.permute.xlu0 %876  ;;  %v6736_v46 = vadd.f32 %v11081_v62, %v1163_v5 }
 0x249   : > { %v1071_v2 = vpop.permute.xlu1 %1070  ;;  %v960_v61 = vadd.f32 %v6394_v60, %v877_v24 }
 0x24a   : > { %1609 = vrot.lane.b32.xlu0 %v6723_v48, %s5763_s22 }
 0x24b   : > { %1611 = vrot.lane.b32.xlu1 %v6726_v57, %s5763_s22  ;;  %v1152_v4 = vadd.f32 %v6652_v58, %v960_v61 }
 0x24c   : > { %v1265_v39 = vpop.permute.xlu0 %1264 }
 0x24d   : > { %v6740_v31 = vpop.permute.xlu1 %1816  ;;  %v6742_v33 = vadd.f32 %v1261_v3, %v1152_v4  ;;  %v973_v3 = vadd.f32 %v6171_v43, %v11086_v49  ;;  %v11087_v4 = vld [vmem:[#allocation19_spill] sm:$0xff]  ;;  %v11089_v43 = vld [vmem:[#allocation42_spill] sm:$0xff] }
 0x24e   : > { %1573 = vrot.lane.b32.xlu0 %v6524_v56, %s5763_s22  ;;  %v6767_v62 = vadd.f32 %v11087_v4, %v1162_v18  ;;  %v11095_v49 = vld [vmem:[#allocation55_spill] sm:$0xff] }
 0x24f   : > { %1615 = vrot.lane.b32.xlu1 %v6736_v46, %s5763_s22  ;;  %v1388_v60 = vsel %vm1364_vm2, %v6742_v33, 0.0  ;;  %v1447_v58 = vmul.f32 %v6742_v33, %v6742_v33  ;;  %v1167_v32 = vadd.f32 %v11095_v49, %v975_v59 }
 0x250   : > { %v1389_v22 = vadd.f32 %v1388_v60, %v1387_v40  ;;  %v6757_v5 = vpop.permute.xlu0 %912  ;;  %v1165_v40 = vadd.f32 %v11089_v43, %v973_v3  ;;  %v11097_v43 = vld [vmem:[#allocation66_spill] sm:$0xff] }
 0x251   : > { %v6759_v56 = vpop.permute.xlu1 %2012  ;;  %v1490_v24 = vsel %vm1364_vm2, %v1447_v58, 0.0 }
 0x252   : > { %v1491_v61 = vadd.f32 %v1490_v24, %v1489_v51  ;;  %1577 = vrot.lane.b32.xlu0 %v6561_v29, %s5763_s22  ;;  %v11092_v51 = vld [vmem:[#allocation50_spill] sm:$0xff]  ;;  %v6784_v16 = vadd.f32 %v11094_v44, %v1165_v40  ;;  %v974_v40 = vadd.f32 %v6226_v25, %v11097_v43  ;;  %v977_v25 = vadd.f32 %v6326_v13, %v6675_v27 }
 0x253   : > { %1579 = vrot.lane.b32.xlu1 %v6572_v37, %s5763_s22  ;;  %v11093_v37 = vld [vmem:[#allocation39_spill] sm:$0xff] }
 0x254   : > { %v6773_v60 = vpop.permute.xlu0 %1854  ;;  %v6781_v18 = vadd.f32 %v11093_v37, %v1164_v50  ;;  %v6799_v50 = vadd.f32 %v11096_v36, %v1167_v32  ;;  %v976_v37 = vadd.f32 %v6316_v14, %v6529_v9  ;;  %v11099_v32 = vld [vmem:[#allocation43_spill] sm:$0xff]  ;;  %v11100_v14 = vld [vmem:[#allocation69_spill] sm:$0xff]  ;;  %v1169_v13 = vadd.f32 %v6531_v6, %v977_v25  ;;  %v11101_v6 = vld [vmem:[#allocation64_spill] sm:$0xff] }
 0x255   : > { %11091 = vst [vmem:[#allocation8_spill] sm:$0xff] %v6773_v60  ;;  %v879_v58 = vpop.permute.xlu1 %878  ;;  %v11124_v60 = vld [vmem:[#allocation36_spill] sm:$0xff] }
 0x256   : > { %v961_v54 = vadd.f32 %v11092_v51, %v879_v58  ;;  %1613 = vrot.lane.b32.xlu0 %v6767_v62, %s5763_s22  ;;  %v1168_v9 = vadd.f32 %v11100_v14, %v976_v37  ;;  %v6842_v43 = vadd.f32 %v11101_v6, %v1169_v13 }
 0x257   : > { %1583 = vrot.lane.b32.xlu1 %v6609_v0, %s5763_s22 }
 0x258   : > { %v1153_v29 = vadd.f32 %v1071_v2, %v961_v54  ;;  %v1073_v3 = vpop.permute.xlu0 %1072  ;;  %v11098_v54 = vld [vmem:[#allocation52_spill] sm:$0xff]  ;;  %v6839_v36 = vadd.f32 %v6498_v42, %v1168_v9  ;;  %v6851_v42 = vld [vmem:[#allocation2 + $0x181] sm:$0xff] }
 0x259   : > { %v1075_v24 = vpop.permute.xlu1 %1074  ;;  %11103 = vst [vmem:[#allocation18_spill] sm:$0xff] %v6851_v42 }
 0x25a   : > { %v6788_v4 = vadd.f32 %v6654_v45, %v1153_v29  ;;  %1617 = vrot.lane.b32.xlu0 %v6781_v18, %s5763_s22  ;;  %v1166_v29 = vadd.f32 %v11098_v54, %v974_v40 }
 0x25b   : > { %1619 = vrot.lane.b32.xlu1 %v6784_v16, %s5763_s22 }
 0x25c   : > { %v1390_v0 = vsel %vm1364_vm2, %v6788_v4, 0.0  ;;  %v1448_v2 = vmul.f32 %v6788_v4, %v6788_v4  ;;  %v6803_v12 = vpop.permute.xlu0 %1818 }
 0x25d   : > { %v1391_v45 = vadd.f32 %v1390_v0, %v1389_v22  ;;  %v1267_v59 = vpop.permute.xlu1 %1266  ;;  %v6825_v0 = vadd.f32 %v11099_v32, %v1166_v29  ;;  %v11102_v29 = vld [vmem:[#allocation63_spill] sm:$0xff] }
 0x25e   : > { %v1492_v58 = vsel %vm1364_vm2, %v1448_v2, 0.0  ;;  %1581 = vrot.lane.b32.xlu0 %v6583_v8, %s5763_s22  ;;  %v6822_v8 = vld [vmem:[#allocation2 + $0x189] sm:$0xff] }
 0x25f   : > { %v1493_v51 = vadd.f32 %v1492_v58, %v1491_v61  ;;  %1623 = vrot.lane.b32.xlu1 %v6799_v50, %s5763_s22  ;;  %v979_v27 = vadd.f32 %v6716_v38, %v6822_v8  ;;  %v11104_v32 = vld [vmem:[#allocation7_spill] sm:$0xff] }
 0x260   : > { %v881_v22 = vpop.permute.xlu0 %880 }
 0x261   : > { %v6815_v44 = vpop.permute.xlu1 %1820  ;;  %v962_v49 = vadd.f32 %v6420_v52, %v881_v22  ;;  %v1171_v38 = vadd.f32 %v6684_v63, %v979_v27  ;;  %v978_v63 = vadd.f32 %v6757_v5, %v6851_v42 }
 0x262   : > { %1585 = vrot.lane.b32.xlu0 %v6619_v34, %s5763_s22 }
 0x263   : > { %1587 = vrot.lane.b32.xlu1 %v6627_v7, %s5763_s22  ;;  %v1154_v61 = vadd.f32 %v1073_v3, %v962_v49  ;;  %v6854_v22 = vadd.f32 %v6694_v19, %v1171_v38  ;;  %v1170_v5 = vadd.f32 %v6673_v41, %v978_v63 }
 0x264   : > { %v1077_v52 = vpop.permute.xlu0 %1076 }
 0x265   : > { %v6831_v2 = vpop.permute.xlu1 %1856  ;;  %v1346_v34 = vadd.f32 %v1265_v39, %v1154_v61 }
 0x266   : > { %1621 = vrot.lane.b32.xlu0 %v6825_v0, %s5763_s22 }
 0x267   : > { %1591 = vrot.lane.b32.xlu1 %v6661_v47, %s5763_s22  ;;  %v1392_v7 = vsel %vm1364_vm2, %v1346_v34, 0.0  ;;  %v1449_v3 = vmul.f32 %v1346_v34, %v1346_v34 }
 0x268   : > { %v1393_v40 = vadd.f32 %v1392_v7, %v1391_v45  ;;  %v1269_v58 = vpop.permute.xlu0 %1268 }
 0x269   : > { %v883_v39 = vpop.permute.xlu1 %882  ;;  %v1494_v54 = vsel %vm1364_vm2, %v1449_v3, 0.0 }
 0x26a   : > { %v963_v37 = vadd.f32 %v11102_v29, %v883_v39  ;;  %v1495_v25 = vadd.f32 %v1494_v54, %v1493_v51  ;;  %1625 = vrot.lane.b32.xlu0 %v6839_v36, %s5763_s22  ;;  %v6864_v51 = vld [vmem:[#allocation2 + $0xe1] sm:$0xff]  ;;  %v6877_v39 = vadd.f32 %v6553_v30, %v1170_v5  ;;  %v6881_v54 = vld [vmem:[#allocation2 + $0xf1] sm:$0xff] }
 0x26b   : > { %1627 = vrot.lane.b32.xlu1 %v6842_v43, %s5763_s22  ;;  %v11105_v29 = vld [vmem:[#allocation12_spill] sm:$0xff] }
 0x26c   : > { %v1155_v47 = vadd.f32 %v1075_v24, %v963_v37  ;;  %v6858_v45 = vpop.permute.xlu0 %1822  ;;  %v965_v24 = vadd.f32 %v6864_v51, %v11104_v32 }
 0x26d   : > { %v1271_v49 = vpop.permute.xlu1 %1270 }
 0x26e   : > { %v1347_v61 = vadd.f32 %v1267_v59, %v1155_v47  ;;  %1589 = vrot.lane.b32.xlu0 %v6658_v1, %s5763_s22 }
 0x26f   : > { %1631 = vrot.lane.b32.xlu1 %v6854_v22, %s5763_s22 }
 0x270   : > { %v1394_v19 = vsel %vm1364_vm2, %v1347_v61, 0.0  ;;  %v1450_v14 = vmul.f32 %v1347_v61, %v1347_v61  ;;  %v885_v13 = vpop.permute.xlu0 %884 }
 0x271   : > { %v1395_v9 = vadd.f32 %v1394_v19, %v1393_v40  ;;  %v1079_v27 = vpop.permute.xlu1 %1078  ;;  %v964_v1 = vadd.f32 %v6460_v53, %v885_v13  ;;  %v966_v53 = vadd.f32 %v6881_v54, %v11105_v29  ;;  %v1404_v29 = vsel %vm1364_vm2, %v6723_v48, 0.0 }
 0x272   : > { %v1496_v59 = vsel %vm1364_vm2, %v1450_v14, 0.0  ;;  %v1157_v7 = vadd.f32 %v1079_v27, %v965_v24  ;;  %1593 = vrot.lane.b32.xlu0 %v6742_v33, %s5763_s22 }
 0x273   : > { %v1497_v3 = vadd.f32 %v1496_v59, %v1495_v25  ;;  %1595 = vrot.lane.b32.xlu1 %v6788_v4, %s5763_s22  ;;  %v1156_v6 = vadd.f32 %v1077_v52, %v964_v1 }
 0x274   : > { %v1349_v38 = vadd.f32 %v1271_v49, %v1157_v7  ;;  %v1081_v41 = vpop.permute.xlu0 %1080  ;;  %v1455_v7 = vmul.f32 %v6723_v48, %v6723_v48 }
 0x275   : > { %v6879_v40 = vpop.permute.xlu1 %1824  ;;  %v1348_v37 = vadd.f32 %v1269_v58, %v1156_v6  ;;  %v1158_v52 = vadd.f32 %v1081_v41, %v966_v53  ;;  %v2125_v6 = vld [vmem:[#allocation2 + $0x82] sm:$0xff]  ;;  %v1456_v53 = vmul.f32 %v6726_v57, %v6726_v57 }
 0x276   : > { %1629 = vrot.lane.b32.xlu0 %v6877_v39, %s5763_s22  ;;  %v1452_v30 = vmul.f32 %v1349_v38, %v1349_v38  ;;  %v1398_v32 = vsel %vm1364_vm2, %v1349_v38, 0.0 }
 0x277   : > { %1599 = vrot.lane.b32.xlu1 %v1347_v61, %s5763_s22  ;;  %v1396_v33 = vsel %vm1364_vm2, %v1348_v37, 0.0  ;;  %v1451_v4 = vmul.f32 %v1348_v37, %v1348_v37  ;;  %v1454_v61 = vmul.f32 %v6690_v21, %v6690_v21 }
 0x278   : > { %v1273_v25 = vpop.permute.xlu0 %1272  ;;  %v1397_v47 = vadd.f32 %v1396_v33, %v1395_v9  ;;  %v1500_v14 = vsel %vm1364_vm2, %v1452_v30, 0.0 }
 0x279   : > { %v6889_v63 = vpop.permute.xlu1 %2016  ;;  %v1498_v49 = vsel %vm1364_vm2, %v1451_v4, 0.0  ;;  %v1350_v24 = vadd.f32 %v1273_v25, %v1158_v52  ;;  %v1504_v33 = vsel %vm1364_vm2, %v1454_v61, 0.0  ;;  %v1506_v25 = vsel %vm1364_vm2, %v1455_v7, 0.0  ;;  %v2124_v7 = vld [vmem:[#allocation2 + $0x7a] sm:$0xff] }
 0x27a   : > { %v1399_v58 = vadd.f32 %v1398_v32, %v1397_v47  ;;  %v1499_v19 = vadd.f32 %v1498_v49, %v1497_v3  ;;  %1597 = vrot.lane.b32.xlu0 %v1346_v34, %s5763_s22  ;;  %v1402_v34 = vsel %vm1364_vm2, %v6690_v21, 0.0  ;;  %v1406_v47 = vsel %vm1364_vm2, %v6726_v57, 0.0 }
 0x27b   : > { %1603 = vrot.lane.b32.xlu1 %v1349_v38, %s5763_s22  ;;  %v1400_v5 = vsel %vm1364_vm2, %v1350_v24, 0.0  ;;  %v1453_v9 = vmul.f32 %v1350_v24, %v1350_v24  ;;  %v1457_v49 = vmul.f32 %v6767_v62, %v6767_v62  ;;  %v1408_v61 = vsel %vm1364_vm2, %v6767_v62, 0.0  ;;  %v11107_v62 = vld [vmem:[#allocation54_spill] sm:$0xff] }
 0x27c   : > { %v1401_v13 = vadd.f32 %v1400_v5, %v1399_v58  ;;  %v1501_v27 = vadd.f32 %v1500_v14, %v1499_v19  ;;  %v6899_v59 = vpop.permute.xlu0 %1826  ;;  %v1508_v58 = vsel %vm1364_vm2, %v1456_v53, 0.0  ;;  %v1458_v19 = vmul.f32 %v6736_v46, %v6736_v46 }
 0x27d   : > { %v6901_v1 = vpop.permute.xlu1 %2020  ;;  %v1502_v3 = vsel %vm1364_vm2, %v1453_v9, 0.0 }
 0x27e   : > { %v1403_v38 = vadd.f32 %v1402_v34, %v1401_v13  ;;  %v1503_v41 = vadd.f32 %v1502_v3, %v1501_v27  ;;  %1605 = vrot.lane.b32.xlu0 %v1350_v24, %s5763_s22  ;;  %v11106_v24 = vld [vmem:[#allocation45_spill] sm:$0xff]  ;;  %v1510_v13 = vsel %vm1364_vm2, %v1457_v49, 0.0  ;;  %v1459_v27 = vmul.f32 %v6781_v18, %v6781_v18 }
 0x27f   : > { %2200 = vrot.lane.b32.xlu1 %v2125_v6, %s5762_s21  ;;  %v1512_v6 = vsel %vm1364_vm2, %v1458_v19, 0.0 }
 0x280   : > { %v1405_v4 = vadd.f32 %v1404_v29, %v1403_v38  ;;  %v1505_v52 = vadd.f32 %v1504_v33, %v1503_v41  ;;  %v6915_v21 = vpop.permute.xlu0 %2014  ;;  %v1412_v38 = vsel %vm1364_vm2, %v6781_v18, 0.0 }
 0x281   : > { %v6917_v30 = vpop.permute.xlu1 %2024 }
 0x282   : > { %v1407_v48 = vadd.f32 %v1406_v47, %v1405_v4  ;;  %v1507_v32 = vadd.f32 %v1506_v25, %v1505_v52  ;;  %1601 = vrot.lane.b32.xlu0 %v1348_v37, %s5763_s22  ;;  %v1410_v37 = vsel %vm1364_vm2, %v6736_v46, 0.0  ;;  %v1460_v46 = vmul.f32 %v6784_v16, %v6784_v16  ;;  %v2126_v47 = vld [vmem:[#allocation2 + $0x92] sm:$0xff] }
 0x283   : > { %2204 = vrot.lane.b32.xlu1 %v11106_v24, %s5762_s21  ;;  %v1514_v4 = vsel %vm1364_vm2, %v1459_v27, 0.0  ;;  %v1414_v52 = vsel %vm1364_vm2, %v6784_v16, 0.0  ;;  %v1461_v25 = vmul.f32 %v6825_v0, %v6825_v0  ;;  %v1462_v24 = vmul.f32 %v6799_v50, %v6799_v50  ;;  %v2133_v27 = vld [vmem:[#allocation2 + $0xe2] sm:$0xff] }
 0x284   : > { %v1409_v14 = vadd.f32 %v1408_v61, %v1407_v48  ;;  %v1509_v57 = vadd.f32 %v1508_v58, %v1507_v32  ;;  %v6932_v5 = vpop.permute.xlu0 %2018  ;;  %v11108_v48 = vld [vmem:[#allocation65_spill] sm:$0xff]  ;;  %v1516_v32 = vsel %vm1364_vm2, %v1460_v46, 0.0  ;;  %v1416_v58 = vsel %vm1364_vm2, %v6825_v0, 0.0 }
 0x285   : > { %v6934_v9 = vpop.permute.xlu1 %2028 }
 0x286   : > { %v1411_v34 = vadd.f32 %v1410_v37, %v1409_v14  ;;  %v1511_v3 = vadd.f32 %v1510_v13, %v1509_v57  ;;  %2198 = vrot.lane.b32.xlu0 %v2124_v7, %s5762_s21  ;;  %v1418_v57 = vsel %vm1364_vm2, %v6799_v50, 0.0  ;;  %v1518_v37 = vsel %vm1364_vm2, %v1461_v25, 0.0  ;;  %v11109_v7 = vld [vmem:[#allocation51_spill] sm:$0xff]  ;;  %v2135_v25 = vld [vmem:[#allocation2 + $0xfa] sm:$0xff] }
 0x287   : > { %2208 = vrot.lane.b32.xlu1 %v11107_v62, %s5762_s21  ;;  %v1463_v13 = vmul.f32 %v6839_v36, %v6839_v36  ;;  %v1420_v62 = vsel %vm1364_vm2, %v6839_v36, 0.0  ;;  %v1464_v50 = vmul.f32 %v6842_v43, %v6842_v43  ;;  %v11110_v36 = vld [vmem:[#allocation60_spill] sm:$0xff] }
 0x288   : > { %v1413_v41 = vadd.f32 %v1412_v38, %v1411_v34  ;;  %v1513_v29 = vadd.f32 %v1512_v6, %v1511_v3  ;;  %v6949_v53 = vpop.permute.xlu0 %2022  ;;  %v1520_v3 = vsel %vm1364_vm2, %v1462_v24, 0.0 }
 0x289   : > { %v6951_v33 = vpop.permute.xlu1 %2032 }
 0x28a   : > { %v1415_v49 = vadd.f32 %v1414_v52, %v1413_v41  ;;  %v1515_v18 = vadd.f32 %v1514_v4, %v1513_v29  ;;  %2202 = vrot.lane.b32.xlu0 %v2126_v47, %s5762_s21  ;;  %v1522_v29 = vsel %vm1364_vm2, %v1463_v13, 0.0  ;;  %v1422_v4 = vsel %vm1364_vm2, %v6842_v43, 0.0  ;;  %v11111_v13 = vld [vmem:[#allocation68_spill] sm:$0xff] }
 0x28b   : > { %2212 = vrot.lane.b32.xlu1 %v11108_v48, %s5762_s21  ;;  %v1465_v52 = vmul.f32 %v6877_v39, %v6877_v39  ;;  %v1466_v48 = vmul.f32 %v6854_v22, %v6854_v22 }
 0x28c   : > { %v6966_v16 = vpop.permute.xlu0 %2026  ;;  %v1417_v61 = vadd.f32 %v1416_v58, %v1415_v49  ;;  %v1517_v14 = vadd.f32 %v1516_v32, %v1515_v18  ;;  %v1524_v18 = vsel %vm1364_vm2, %v1464_v50, 0.0  ;;  %v1424_v32 = vsel %vm1364_vm2, %v6877_v39, 0.0 }
 0x28d   : > { %v6968_v19 = vpop.permute.xlu1 %2036 }
 0x28e   : > { %2206 = vrot.lane.b32.xlu0 %v11109_v7, %s5762_s21  ;;  %v1419_v0 = vadd.f32 %v1418_v57, %v1417_v61  ;;  %v1519_v34 = vadd.f32 %v1518_v37, %v1517_v14  ;;  %v1426_v14 = vsel %vm1364_vm2, %v6854_v22, 0.0  ;;  %v1526_v57 = vsel %vm1364_vm2, %v1465_v52, 0.0  ;;  %v2137_v37 = vld [vmem:[#allocation2 + $0x112] sm:$0xff] }
 0x28f   : > { %2216 = vrot.lane.b32.xlu1 %v2133_v27, %s5762_s21  ;;  %v1528_v7 = vsel %vm1364_vm2, %v1466_v48, 0.0  ;;  %v2134_v22 = vld [vmem:[#allocation2 + $0xf2] sm:$0xff] }
 0x290   : > { %v6983_v6 = vpop.permute.xlu0 %2030  ;;  %v1421_v46 = vadd.f32 %v1420_v62, %v1419_v0  ;;  %v1521_v41 = vadd.f32 %v1520_v3, %v1519_v34  ;;  %v2139_v62 = vld [vmem:[#allocation2 + $0x12a] sm:$0xff] }
 0x291   : > { %v6985_v38 = vpop.permute.xlu1 %2040 }
 0x292   : > { %2210 = vrot.lane.b32.xlu0 %v11110_v36, %s5762_s21  ;;  %v1423_v47 = vadd.f32 %v1422_v4, %v1421_v46  ;;  %v1523_v49 = vadd.f32 %v1522_v29, %v1521_v41  ;;  %v2136_v41 = vld [vmem:[#allocation2 + $0x10a] sm:$0xff]  ;;  %v2141_v29 = vld [vmem:[#allocation2 + $0x142] sm:$0xff]  ;;  %v2143_v36 = vld [vmem:[#allocation2 + $0x15a] sm:$0xff] }
 0x293   : > { %2220 = vrot.lane.b32.xlu1 %v2135_v25, %s5762_s21  ;;  %v2138_v25 = vld [vmem:[#allocation2 + $0x122] sm:$0xff] }
 0x294   : > { %v7000_v43 = vpop.permute.xlu0 %2034  ;;  %v1425_v58 = vadd.f32 %v1424_v32, %v1423_v47  ;;  %v1525_v61 = vadd.f32 %v1524_v18, %v1523_v49  ;;  %v5722_v47 = vld [vmem:[#allocation2 + $0x21] sm:$0xff]  ;;  %v11117_v49 = vld [vmem:[#allocation20_spill] sm:$0xff] }
 0x295   : > { %v7002_v24 = vpop.permute.xlu1 %2044  ;;  %v1891_v18 = vadd.f32 %v5722_v47, %v11117_v49 }
 0x296   : > { %2214 = vrot.lane.b32.xlu0 %v11111_v13, %s5762_s21  ;;  %v7010_v27 = vadd.f32 %v1426_v14, %v1425_v58  ;;  %v1527_v39 = vadd.f32 %v1526_v57, %v1525_v61  ;;  %v2140_v58 = vld [vmem:[#allocation2 + $0x13a] sm:$0xff]  ;;  %v2145_v61 = vld [vmem:[#allocation2 + $0x172] sm:$0xff] }
 0x297   : > { %2224 = vrot.lane.b32.xlu1 %v2137_v37, %s5762_s21  ;;  %v11118_v14 = vld [vmem:[#allocation14_spill] sm:$0xff] }
 0x298   : > { %11112 = vst [vmem:[#allocation4_spill] sm:$0xff] %v7010_v27  ;;  %v7013_v0 = vpop.permute.xlu0 %2038  ;;  %v7017_v3 = vadd.f32 %v1528_v7, %v1527_v39  ;;  %v2083_v57 = vadd.f32 %v11118_v14, %v1891_v18  ;;  %v2142_v7 = vld [vmem:[#allocation2 + $0x152] sm:$0xff] }
 0x299   : > { %v7015_v34 = vpop.permute.xlu1 %2048  ;;  %v11121_v27 = vld [vmem:[#allocation9_spill] sm:$0xff] }
 0x29a   : > { %11113 = vst [vmem:[#allocation26_spill] sm:$0xff] %v7015_v34  ;;  %11114 = vst [vmem:[#allocation5_spill] sm:$0xff] %v7017_v3  ;;  %2218 = vrot.lane.b32.xlu0 %v2134_v22, %s5762_s21 }
 0x29b   : > { %2228 = vrot.lane.b32.xlu1 %v2139_v62, %s5762_s21 }
 0x29c   : > { %v7021_v50 = vpop.permute.xlu0 %2042 }
 0x29d   : > { %11115 = vst [vmem:[#allocation13_spill] sm:$0xff] %v7021_v50  ;;  %v2181_v46 = vpop.permute.xlu1 %2180 }
 0x29e   : > { %2222 = vrot.lane.b32.xlu0 %v2136_v41, %s5762_s21  ;;  %v7037_v37 = vadd.f32 %v2181_v46, %v2083_v57  ;;  %v2144_v41 = vld [vmem:[#allocation2 + $0x16a] sm:$0xff] }
 0x29f   : > { %2232 = vrot.lane.b32.xlu1 %v2141_v29, %s5762_s21 }
 0x2a0   : > { %v7025_v4 = vpop.permute.xlu0 %2046 }
 0x2a1   : > { %11116 = vst [vmem:[#allocation17_spill] sm:$0xff] %v7025_v4  ;;  %v7027_v52 = vpop.permute.xlu1 %2184 }
 0x2a2   : > { %2226 = vrot.lane.b32.xlu0 %v2138_v25, %s5762_s21 }
 0x2a3   : > { %2236 = vrot.lane.b32.xlu1 %v2143_v36, %s5762_s21 }
 0x2a4   : > { %v2179_v48 = vpop.permute.xlu0 %2178 }
 0x2a5   : > { %v7032_v32 = vpop.permute.xlu1 %2188 }
 0x2a6   : > { %2230 = vrot.lane.b32.xlu0 %v2140_v58, %s5762_s21 }
 0x2a7   : > { %2240 = vrot.lane.b32.xlu1 %v2145_v61, %s5762_s21 }
 0x2a8   : > { %v2183_v13 = vpop.permute.xlu0 %2182 }
 0x2a9   : > { %v7039_v39 = vpop.permute.xlu1 %2192 }
 0x2aa   : > { %2234 = vrot.lane.b32.xlu0 %v2142_v7, %s5762_s21 }
 0x2ab   : > { %2521 = vrot.lane.b32.xlu1 %v7037_v37, %s5762_s21 }
 0x2ac   : > { %v7044_v22 = vpop.permute.xlu0 %2186 }
 0x2ad   : > { %v7046_v62 = vpop.permute.xlu1 %2196 }
 0x2ae   : > { %2238 = vrot.lane.b32.xlu0 %v2144_v41, %s5762_s21 }
 0x2b0   : > { %v7049_v29 = vpop.permute.xlu0 %2190 }
 0x2b1   : > { %v1608_v46 = vpop.permute.xlu1 %1607 }
 0x2b2   : > { %1685 = vst.msk [vmem:[#allocation3 + $0x98] sm:$0xff] %vm1665_vm3, %v1608_v46 }
 0x2b4   : > { %v7052_v25 = vpop.permute.xlu0 %2194 }
 0x2b5   : > { %v1572_v36 = vpop.permute.xlu1 %1571 }
 0x2b6   : > { %1667 = vst.msk [vmem:[#allocation3 + $0x8] sm:$0xff] %vm1665_vm3, %v1572_v36 }
 0x2b8   : > { %v1570_v47 = vpop.permute.xlu0 %1569 }
 0x2b9   : > { %v1576_v49 = vpop.permute.xlu1 %1575  ;;  %1666 = vst.msk [vmem:[#allocation3] sm:$0xff] %vm1665_vm3, %v1570_v47 }
 0x2ba   : > { %1669 = vst.msk [vmem:[#allocation3 + $0x18] sm:$0xff] %vm1665_vm3, %v1576_v49  ;;  %v5723_v49 = vld [vmem:[#allocation2 + $0x19] sm:$0xff] }
 0x2bc   : > { %v1610_v18 = vpop.permute.xlu0 %1609 }
 0x2bd   : > { %v1612_v58 = vpop.permute.xlu1 %1611  ;;  %1686 = vst.msk [vmem:[#allocation3 + $0xa0] sm:$0xff] %vm1665_vm3, %v1610_v18  ;;  %v11119_v18 = vld [vmem:[#allocation23_spill] sm:$0xff] }
 0x2be   : > { %1687 = vst.msk [vmem:[#allocation3 + $0xa8] sm:$0xff] %vm1665_vm3, %v1612_v58  ;;  %v1890_v58 = vadd.f32 %v5723_v49, %v11119_v18 }
 0x2c0   : > { %v1574_v61 = vpop.permute.xlu0 %1573  ;;  %v2082_v4 = vadd.f32 %v11121_v27, %v1890_v58  ;;  %v5726_v27 = vld [vmem:[#allocation2 + $0x49] sm:$0xff]  ;;  %v11126_v58 = vld [vmem:[#allocation46_spill] sm:$0xff] }
 0x2c1   : > { %v1616_v14 = vpop.permute.xlu1 %1615  ;;  %1668 = vst.msk [vmem:[#allocation3 + $0x10] sm:$0xff] %vm1665_vm3, %v1574_v61  ;;  %v5724_v61 = vld [vmem:[#allocation2 + $0x31] sm:$0xff] }
 0x2c2   : > { %1689 = vst.msk [vmem:[#allocation3 + $0xb8] sm:$0xff] %vm1665_vm3, %v1616_v14  ;;  %v11120_v14 = vld [vmem:[#allocation28_spill] sm:$0xff] }
 0x2c4   : > { %v1578_v57 = vpop.permute.xlu0 %1577 }
 0x2c5   : > { %v1580_v7 = vpop.permute.xlu1 %1579  ;;  %1670 = vst.msk [vmem:[#allocation3 + $0x20] sm:$0xff] %vm1665_vm3, %v1578_v57  ;;  %v1892_v57 = vadd.f32 %v5724_v61, %v11120_v14  ;;  %v2382_v14 = vmul.f32 %v7037_v37, %v7037_v37 }
 0x2c6   : > { %1671 = vst.msk [vmem:[#allocation3 + $0x28] sm:$0xff] %vm1665_vm3, %v1580_v7 }
 0x2c8   : > { %v1614_v41 = vpop.permute.xlu0 %1613 }
 0x2c9   : > { %v1584_v46 = vpop.permute.xlu1 %1583  ;;  %1688 = vst.msk [vmem:[#allocation3 + $0xb0] sm:$0xff] %vm1665_vm3, %v1614_v41  ;;  %v7072_v41 = vadd.f32 %v2179_v48, %v2082_v4 }
 0x2ca   : > { %1673 = vst.msk [vmem:[#allocation3 + $0x38] sm:$0xff] %vm1665_vm3, %v1584_v46  ;;  %v11123_v46 = vld [vmem:[#allocation24_spill] sm:$0xff] }
 0x2cb   : > { %11122 = vst [vmem:[#allocation33_spill] sm:$0xff] %v7072_v41  ;;  %v2084_v34 = vadd.f32 %v11123_v46, %v1892_v57  ;;  %v2381_v4 = vmul.f32 %v7072_v41, %v7072_v41 }
 0x2cc   : > { %v1618_v36 = vpop.permute.xlu0 %1617 }
 0x2cd   : > { %v1620_v47 = vpop.permute.xlu1 %1619  ;;  %1690 = vst.msk [vmem:[#allocation3 + $0xc0] sm:$0xff] %vm1665_vm3, %v1618_v36  ;;  %v5725_v36 = vld [vmem:[#allocation2 + $0x39] sm:$0xff]  ;;  %v7076_v42 = vadd.f32 %v2183_v13, %v2084_v34 }
 0x2ce   : > { %1691 = vst.msk [vmem:[#allocation3 + $0xc8] sm:$0xff] %vm1665_vm3, %v1620_v47  ;;  %v1893_v47 = vadd.f32 %v5725_v36, %v11124_v60  ;;  %v2307_v60 = vsel %vm2306_vm4, %v7072_v41, 0.0  ;;  %v11127_v34 = vld [vmem:[#allocation22_spill] sm:$0xff]  ;;  %v5727_v41 = vld [vmem:[#allocation2 + $0x51] sm:$0xff] }
 0x2cf   : > { %11125 = vst [vmem:[#allocation15_spill] sm:$0xff] %v7076_v42  ;;  %v2383_v57 = vmul.f32 %v7076_v42, %v7076_v42 }
 0x2d0   : > { %v1582_v3 = vpop.permute.xlu0 %1581  ;;  %v2085_v13 = vadd.f32 %v11127_v34, %v1893_v47  ;;  %v2310_v47 = vsel %vm2306_vm4, %v7076_v42, 0.0 }
 0x2d1   : > { %v1624_v7 = vpop.permute.xlu1 %1623  ;;  %1672 = vst.msk [vmem:[#allocation3 + $0x30] sm:$0xff] %vm1665_vm3, %v1582_v3  ;;  %v1894_v3 = vadd.f32 %v5726_v27, %v11126_v58 }
 0x2d2   : > { %1693 = vst.msk [vmem:[#allocation3 + $0xd8] sm:$0xff] %vm1665_vm3, %v1624_v7  ;;  %v11128_v7 = vld [vmem:[#allocation32_spill] sm:$0xff]  ;;  %v7097_v36 = vadd.f32 %v7027_v52, %v2085_v13  ;;  %v5728_v13 = vld [vmem:[#allocation2 + $0x61] sm:$0xff] }
 0x2d3   : > { %v2086_v46 = vadd.f32 %v11128_v7, %v1894_v3  ;;  %v2416_v3 = vsel %vm2306_vm4, %v2383_v57, 0.0 }
 0x2d4   : > { %v1586_v49 = vpop.permute.xlu0 %1585  ;;  %v2312_v57 = vsel %vm2306_vm4, %v7097_v36, 0.0 }
 0x2d5   : > { %v1588_v18 = vpop.permute.xlu1 %1587  ;;  %1674 = vst.msk [vmem:[#allocation3 + $0x40] sm:$0xff] %vm1665_vm3, %v1586_v49  ;;  %v2308_v49 = vsel %vm2306_vm4, %v7037_v37, 0.0  ;;  %v7105_v37 = vadd.f32 %v7044_v22, %v2086_v46  ;;  %v11131_v22 = vld [vmem:[#allocation38_spill] sm:$0xff] }
 0x2d6   : > { %1675 = vst.msk [vmem:[#allocation3 + $0x48] sm:$0xff] %vm1665_vm3, %v1588_v18  ;;  %v2413_v18 = vsel %vm2306_vm4, %v2381_v4, 0.0  ;;  %v2309_v27 = vadd.f32 %v2308_v49, %v2307_v60  ;;  %v11130_v60 = vld [vmem:[#allocation56_spill] sm:$0xff]  ;;  %v2384_v49 = vmul.f32 %v7097_v36, %v7097_v36 }
 0x2d7   : > { %v1896_v7 = vadd.f32 %v5728_v13, %v11130_v60  ;;  %v5729_v60 = vld [vmem:[#allocation2 + $0x69] sm:$0xff] }
 0x2d8   : > { %v1622_v48 = vpop.permute.xlu0 %1621  ;;  %v2311_v4 = vadd.f32 %v2310_v47, %v2309_v27  ;;  %v2418_v47 = vsel %vm2306_vm4, %v2384_v49, 0.0  ;;  %v5730_v49 = vld [vmem:[#allocation2 + $0x79] sm:$0xff] }
 0x2d9   : > { %v1592_v61 = vpop.permute.xlu1 %1591  ;;  %1692 = vst.msk [vmem:[#allocation3 + $0xd0] sm:$0xff] %vm1665_vm3, %v1622_v48  ;;  %v11129_v48 = vld [vmem:[#allocation44_spill] sm:$0xff] }
 0x2da   : > { %1677 = vst.msk [vmem:[#allocation3 + $0x58] sm:$0xff] %vm1665_vm3, %v1592_v61  ;;  %v1895_v50 = vadd.f32 %v5727_v41, %v11129_v48  ;;  %v2414_v61 = vsel %vm2306_vm4, %v2382_v14, 0.0 }
 0x2db   : > { %v2415_v52 = vadd.f32 %v2414_v61, %v2413_v18  ;;  %v2313_v18 = vadd.f32 %v2312_v57, %v2311_v4  ;;  %v11132_v61 = vld [vmem:[#allocation48_spill] sm:$0xff] }
 0x2dc   : > { %v1626_v58 = vpop.permute.xlu0 %1625  ;;  %v2087_v46 = vadd.f32 %v11131_v22, %v1895_v50  ;;  %v11133_v22 = vld [vmem:[#allocation67_spill] sm:$0xff] }
 0x2dd   : > { %v1628_v34 = vpop.permute.xlu1 %1627  ;;  %1694 = vst.msk [vmem:[#allocation3 + $0xe0] sm:$0xff] %vm1665_vm3, %v1626_v58  ;;  %v2417_v41 = vadd.f32 %v2416_v3, %v2415_v52  ;;  %v2385_v58 = vmul.f32 %v7105_v37, %v7105_v37  ;;  %v2088_v3 = vadd.f32 %v11132_v61, %v1896_v7  ;;  %v1897_v42 = vadd.f32 %v5729_v60, %v11133_v22 }
 0x2de   : > { %1695 = vst.msk [vmem:[#allocation3 + $0xe8] sm:$0xff] %vm1665_vm3, %v1628_v34  ;;  %v7121_v27 = vadd.f32 %v7032_v32, %v2087_v46  ;;  %v2314_v34 = vsel %vm2306_vm4, %v7105_v37, 0.0 }
 0x2df   : > { %v2419_v52 = vadd.f32 %v2418_v47, %v2417_v41  ;;  %v7129_v4 = vadd.f32 %v7049_v29, %v2088_v3  ;;  %v2315_v32 = vadd.f32 %v2314_v34, %v2313_v18  ;;  %v11134_v47 = vld [vmem:[#allocation49_spill] sm:$0xff] }
 0x2e0   : > { %v1590_v48 = vpop.permute.xlu0 %1589  ;;  %v2386_v7 = vmul.f32 %v7121_v27, %v7121_v27  ;;  %v2089_v29 = vadd.f32 %v11134_v47, %v1897_v42 }
 0x2e1   : > { %v1632_v14 = vpop.permute.xlu1 %1631  ;;  %1676 = vst.msk [vmem:[#allocation3 + $0x50] sm:$0xff] %vm1665_vm3, %v1590_v48  ;;  %v2420_v48 = vsel %vm2306_vm4, %v2385_v58, 0.0  ;;  %v2316_v58 = vsel %vm2306_vm4, %v7121_v27, 0.0  ;;  %v2387_v61 = vmul.f32 %v7129_v4, %v7129_v4  ;;  %v2318_v3 = vsel %vm2306_vm4, %v7129_v4, 0.0 }
 0x2e2   : > { %1697 = vst.msk [vmem:[#allocation3 + $0xf8] sm:$0xff] %vm1665_vm3, %v1632_v14  ;;  %v1898_v14 = vadd.f32 %v5730_v49, %v6598_v17  ;;  %v2421_v41 = vadd.f32 %v2420_v48, %v2419_v52  ;;  %v2317_v18 = vadd.f32 %v2316_v58, %v2315_v32  ;;  %v2422_v17 = vsel %vm2306_vm4, %v2386_v7, 0.0  ;;  %v11135_v52 = vld [vmem:[#allocation61_spill] sm:$0xff] }
 0x2e3   : > { %v7145_v34 = vadd.f32 %v7039_v39, %v2089_v29  ;;  %v2424_v49 = vsel %vm2306_vm4, %v2387_v61, 0.0  ;;  %v5732_v58 = vld [vmem:[#allocation2 + $0x99] sm:$0xff] }
 0x2e4   : > { %v1594_v50 = vpop.permute.xlu0 %1593  ;;  %v2423_v60 = vadd.f32 %v2422_v17, %v2421_v41  ;;  %v2319_v39 = vadd.f32 %v2318_v3, %v2317_v18  ;;  %v1901_v47 = vadd.f32 %v5732_v58, %v6740_v31  ;;  %v5733_v17 = vld [vmem:[#allocation2 + $0x91] sm:$0xff] }
 0x2e5   : > { %v1596_v13 = vpop.permute.xlu1 %1595  ;;  %1678 = vst.msk [vmem:[#allocation3 + $0x60] sm:$0xff] %vm1665_vm3, %v1594_v50  ;;  %v2090_v50 = vadd.f32 %v11135_v52, %v1898_v14  ;;  %v2388_v7 = vmul.f32 %v7145_v34, %v7145_v34  ;;  %v1900_v3 = vadd.f32 %v5733_v17, %v6692_v35 }
 0x2e6   : > { %1679 = vst.msk [vmem:[#allocation3 + $0x68] sm:$0xff] %vm1665_vm3, %v1596_v13  ;;  %v5731_v13 = vld [vmem:[#allocation2 + $0x81] sm:$0xff]  ;;  %v2425_v14 = vadd.f32 %v2424_v49, %v2423_v60  ;;  %v5734_v60 = vld [vmem:[#allocation2 + $0xb1] sm:$0xff]  ;;  %v5735_v49 = vld [vmem:[#allocation2 + $0xa9] sm:$0xff] }
 0x2e7   : > { %v1899_v42 = vadd.f32 %v5731_v13, %v6578_v10  ;;  %v7153_v32 = vadd.f32 %v7052_v25, %v2090_v50  ;;  %v2320_v25 = vsel %vm2306_vm4, %v7145_v34, 0.0  ;;  %v2426_v52 = vsel %vm2306_vm4, %v2388_v7, 0.0 }
 0x2e8   : > { %v1630_v57 = vpop.permute.xlu0 %1629  ;;  %v2321_v18 = vadd.f32 %v2320_v25, %v2319_v39  ;;  %v2427_v50 = vadd.f32 %v2426_v52, %v2425_v14  ;;  %v1902_v35 = vadd.f32 %v5735_v49, %v6803_v12  ;;  %v2092_v14 = vadd.f32 %v6621_v26, %v1900_v3 }
 0x2e9   : > { %v1600_v46 = vpop.permute.xlu1 %1599  ;;  %1696 = vst.msk [vmem:[#allocation3 + $0xf0] sm:$0xff] %vm1665_vm3, %v1630_v57  ;;  %v11136_v57 = vld [vmem:[#allocation70_spill] sm:$0xff]  ;;  %v2389_v29 = vmul.f32 %v7153_v32, %v7153_v32  ;;  %v2322_v31 = vsel %vm2306_vm4, %v7153_v32, 0.0 }
 0x2ea   : > { %1681 = vst.msk [vmem:[#allocation3 + $0x78] sm:$0xff] %vm1665_vm3, %v1600_v46  ;;  %v2091_v46 = vadd.f32 %v11136_v57, %v1899_v42  ;;  %v2323_v7 = vadd.f32 %v2322_v31, %v2321_v18 }
 0x2ec   : > { %v1598_v22 = vpop.permute.xlu0 %1597  ;;  %v7167_v61 = vadd.f32 %v7046_v62, %v2091_v46  ;;  %v2093_v62 = vadd.f32 %v6623_v28, %v1901_v47  ;;  %v5736_v47 = vld [vmem:[#allocation2 + $0xc9] sm:$0xff] }
 0x2ed   : > { %v1604_v48 = vpop.permute.xlu1 %1603  ;;  %1680 = vst.msk [vmem:[#allocation3 + $0x70] sm:$0xff] %vm1665_vm3, %v1598_v22  ;;  %v1903_v22 = vadd.f32 %v5734_v60, %v6815_v44  ;;  %v1905_v12 = vadd.f32 %v5736_v47, %v6879_v40  ;;  %v5739_v47 = vld [vmem:[#allocation2 + $0xd9] sm:$0xff] }
 0x2ee   : > { %1683 = vst.msk [vmem:[#allocation3 + $0x88] sm:$0xff] %vm1665_vm3, %v1604_v48  ;;  %v2428_v48 = vsel %vm2306_vm4, %v2389_v29, 0.0  ;;  %v2390_v39 = vmul.f32 %v7167_v61, %v7167_v61  ;;  %v2324_v58 = vsel %vm2306_vm4, %v7167_v61, 0.0 }
 0x2ef   : > { %v2429_v46 = vadd.f32 %v2428_v48, %v2427_v50  ;;  %v2095_v28 = vadd.f32 %v6759_v56, %v1903_v22  ;;  %v2325_v18 = vadd.f32 %v2324_v58, %v2323_v7  ;;  %v5737_v56 = vld [vmem:[#allocation2 + $0xc1] sm:$0xff]  ;;  %v2097_v40 = vadd.f32 %v6889_v63, %v1905_v12  ;;  %v11138_v58 = vld [vmem:[#allocation21_spill] sm:$0xff] }
 0x2f0   : > { %v1606_v10 = vpop.permute.xlu0 %1605  ;;  %v2430_v29 = vsel %vm2306_vm4, %v2390_v39, 0.0  ;;  %v1904_v31 = vadd.f32 %v5737_v56, %v6858_v45  ;;  %v11137_v22 = vld [vmem:[#allocation10_spill] sm:$0xff] }
 0x2f1   : > { %v2201_v41 = vpop.permute.xlu1 %2200  ;;  %1684 = vst.msk [vmem:[#allocation3 + $0x90] sm:$0xff] %vm1665_vm3, %v1606_v10  ;;  %v1907_v48 = vadd.f32 %v6864_v51, %v11137_v22  ;;  %v11139_v22 = vld [vmem:[#allocation16_spill] sm:$0xff] }
 0x2f2   : > { %v7180_v57 = vadd.f32 %v2201_v41, %v2093_v62  ;;  %v2094_v41 = vadd.f32 %v6714_v23, %v1902_v35 }
 0x2f4   : > { %v1602_v13 = vpop.permute.xlu0 %1601  ;;  %v2392_v26 = vmul.f32 %v7180_v57, %v7180_v57  ;;  %v2328_v62 = vsel %vm2306_vm4, %v7180_v57, 0.0 }
 0x2f5   : > { %v2205_v42 = vpop.permute.xlu1 %2204  ;;  %1682 = vst.msk [vmem:[#allocation3 + $0x80] sm:$0xff] %vm1665_vm3, %v1602_v13  ;;  %v2431_v13 = vadd.f32 %v2430_v29, %v2429_v46 }
 0x2f6   : > { %v7197_v52 = vadd.f32 %v2205_v42, %v2095_v28  ;;  %v2096_v42 = vadd.f32 %v6915_v21, %v1904_v31  ;;  %v2434_v63 = vsel %vm2306_vm4, %v2392_v26, 0.0  ;;  %v1906_v21 = vadd.f32 %v5739_v47, %v6899_v59 }
 0x2f8   : > { %v2199_v10 = vpop.permute.xlu0 %2198  ;;  %v2332_v26 = vsel %vm2306_vm4, %v7197_v52, 0.0  ;;  %v2098_v56 = vadd.f32 %v6932_v5, %v1906_v21  ;;  %v11140_v5 = vld [vmem:[#allocation31_spill] sm:$0xff] }
 0x2f9   : > { %v2209_v44 = vpop.permute.xlu1 %2208  ;;  %v7185_v25 = vadd.f32 %v2199_v10, %v2092_v14  ;;  %v2394_v14 = vmul.f32 %v7197_v52, %v7197_v52  ;;  %v5738_v10 = vld [vmem:[#allocation2 + $0xf9] sm:$0xff] }
 0x2fa   : > { %v7209_v7 = vadd.f32 %v2209_v44, %v2097_v40  ;;  %v1909_v28 = vadd.f32 %v5738_v10, %v11138_v58 }
 0x2fb   : > { %v2326_v17 = vsel %vm2306_vm4, %v7185_v25, 0.0  ;;  %v2391_v3 = vmul.f32 %v7185_v25, %v7185_v25 }
 0x2fc   : > { %v2327_v50 = vadd.f32 %v2326_v17, %v2325_v18  ;;  %v2203_v60 = vpop.permute.xlu0 %2202  ;;  %v2396_v40 = vmul.f32 %v7209_v7, %v7209_v7 }
 0x2fd   : > { %v2213_v23 = vpop.permute.xlu1 %2212  ;;  %v2432_v49 = vsel %vm2306_vm4, %v2391_v3, 0.0  ;;  %v7206_v35 = vadd.f32 %v2203_v60, %v2094_v41  ;;  %v2099_v41 = vadd.f32 %v6901_v1, %v1907_v48  ;;  %v1908_v48 = vadd.f32 %v6881_v54, %v11139_v22 }
 0x2fe   : > { %v2433_v39 = vadd.f32 %v2432_v49, %v2431_v13  ;;  %v2329_v45 = vadd.f32 %v2328_v62, %v2327_v50  ;;  %v2438_v50 = vsel %vm2306_vm4, %v2394_v14, 0.0  ;;  %v5740_v62 = vld [vmem:[#allocation2 + $0x111] sm:$0xff]  ;;  %v2101_v14 = vadd.f32 %v6917_v30, %v1909_v28 }
 0x2ff   : > { %v2330_v51 = vsel %vm2306_vm4, %v7206_v35, 0.0  ;;  %v2393_v46 = vmul.f32 %v7206_v35, %v7206_v35  ;;  %v7234_v60 = vadd.f32 %v2213_v23, %v2099_v41  ;;  %v1911_v49 = vadd.f32 %v5740_v62, %v11140_v5 }
 0x300   : > { %v2331_v12 = vadd.f32 %v2330_v51, %v2329_v45  ;;  %v2435_v44 = vadd.f32 %v2434_v63, %v2433_v39  ;;  %v2207_v29 = vpop.permute.xlu0 %2206  ;;  %v2336_v51 = vsel %vm2306_vm4, %v7209_v7, 0.0  ;;  %v2100_v23 = vadd.f32 %v6949_v53, %v1908_v48 }
 0x301   : > { %v2217_v18 = vpop.permute.xlu1 %2216  ;;  %v2436_v17 = vsel %vm2306_vm4, %v2393_v46, 0.0  ;;  %v7224_v3 = vadd.f32 %v2207_v29, %v2096_v42  ;;  %v2442_v54 = vsel %vm2306_vm4, %v2396_v40, 0.0  ;;  %v2398_v21 = vmul.f32 %v7234_v60, %v7234_v60  ;;  %v11141_v29 = vld [vmem:[#allocation30_spill] sm:$0xff]  ;;  %v5742_v40 = vld [vmem:[#allocation2 + $0x129] sm:$0xff] }
 0x302   : > { %v2437_v31 = vadd.f32 %v2436_v17, %v2435_v44  ;;  %v2333_v59 = vadd.f32 %v2332_v26, %v2331_v12  ;;  %v7253_v28 = vadd.f32 %v2217_v18, %v2101_v14  ;;  %v5741_v44 = vld [vmem:[#allocation2 + $0x109] sm:$0xff]  ;;  %v2103_v53 = vadd.f32 %v6934_v9, %v1911_v49 }
 0x303   : > { %v2334_v13 = vsel %vm2306_vm4, %v7224_v3, 0.0  ;;  %v2395_v1 = vmul.f32 %v7224_v3, %v7224_v3  ;;  %v1910_v41 = vadd.f32 %v5741_v44, %v11141_v29  ;;  %v2446_v9 = vsel %vm2306_vm4, %v2398_v21, 0.0  ;;  %v11143_v14 = vld [vmem:[#allocation40_spill] sm:$0xff] }
 0x304   : > { %v2335_v42 = vadd.f32 %v2334_v13, %v2333_v59  ;;  %v2439_v39 = vadd.f32 %v2438_v50, %v2437_v31  ;;  %v2211_v45 = vpop.permute.xlu0 %2210  ;;  %v11142_v59 = vld [vmem:[#allocation47_spill] sm:$0xff]  ;;  %v2340_v13 = vsel %vm2306_vm4, %v7234_v60, 0.0  ;;  %v2400_v49 = vmul.f32 %v7253_v28, %v7253_v28 }
 0x305   : > { %v2221_v63 = vpop.permute.xlu1 %2220  ;;  %v2440_v46 = vsel %vm2306_vm4, %v2395_v1, 0.0  ;;  %v7243_v10 = vadd.f32 %v2211_v45, %v2098_v56  ;;  %v1913_v50 = vadd.f32 %v5742_v40, %v11142_v59  ;;  %v2102_v18 = vadd.f32 %v6966_v16, %v1910_v41  ;;  %v5743_v45 = vld [vmem:[#allocation2 + $0x121] sm:$0xff]  ;;  %v5745_v59 = vld [vmem:[#allocation2 + $0x139] sm:$0xff] }
 0x306   : > { %v2441_v58 = vadd.f32 %v2440_v46, %v2439_v39  ;;  %v2337_v47 = vadd.f32 %v2336_v51, %v2335_v42  ;;  %v7264_v5 = vadd.f32 %v2221_v63, %v2103_v53  ;;  %v1912_v51 = vadd.f32 %v5743_v45, %v11143_v14  ;;  %v5744_v46 = vld [vmem:[#allocation2 + $0x141] sm:$0xff] }
 0x307   : > { %v2338_v12 = vsel %vm2306_vm4, %v7243_v10, 0.0  ;;  %v2397_v30 = vmul.f32 %v7243_v10, %v7243_v10  ;;  %v11144_v16 = vld [vmem:[#allocation59_spill] sm:$0xff]  ;;  %v2105_v21 = vadd.f32 %v6951_v33, %v1913_v50  ;;  %v11145_v50 = vld [vmem:[#allocation58_spill] sm:$0xff] }
 0x308   : > { %v2339_v26 = vadd.f32 %v2338_v12, %v2337_v47  ;;  %v2443_v17 = vadd.f32 %v2442_v54, %v2441_v58  ;;  %v2215_v56 = vpop.permute.xlu0 %2214  ;;  %v2344_v12 = vsel %vm2306_vm4, %v7253_v28, 0.0  ;;  %v2104_v29 = vadd.f32 %v6983_v6, %v1912_v51 }
 0x309   : > { %v2225_v31 = vpop.permute.xlu1 %2224  ;;  %v2444_v1 = vsel %vm2306_vm4, %v2397_v30, 0.0  ;;  %v7261_v22 = vadd.f32 %v2215_v56, %v2100_v23  ;;  %v1915_v23 = vadd.f32 %v5744_v46, %v11144_v16  ;;  %v2402_v53 = vmul.f32 %v7264_v5, %v7264_v5 }
 0x30a   : > { %v2445_v48 = vadd.f32 %v2444_v1, %v2443_v17  ;;  %v2341_v62 = vadd.f32 %v2340_v13, %v2339_v26  ;;  %v2450_v17 = vsel %vm2306_vm4, %v2400_v49, 0.0  ;;  %v7289_v40 = vadd.f32 %v2225_v31, %v2105_v21  ;;  %v5746_v1 = vld [vmem:[#allocation2 + $0x159] sm:$0xff] }
 0x30b   : > { %v2342_v42 = vsel %vm2306_vm4, %v7261_v22, 0.0  ;;  %v2399_v39 = vmul.f32 %v7261_v22, %v7261_v22  ;;  %v1914_v13 = vadd.f32 %v5745_v59, %v11145_v50  ;;  %v1917_v6 = vadd.f32 %v5746_v1, %v6600_v55 }
 0x30c   : > { %v2343_v54 = vadd.f32 %v2342_v42, %v2341_v62  ;;  %v2447_v63 = vadd.f32 %v2446_v9, %v2445_v48  ;;  %v2219_v58 = vpop.permute.xlu0 %2218  ;;  %v2107_v49 = vadd.f32 %v6968_v19, %v1915_v23  ;;  %v2348_v42 = vsel %vm2306_vm4, %v7264_v5, 0.0 }
 0x30d   : > { %v2229_v47 = vpop.permute.xlu1 %2228  ;;  %v2448_v30 = vsel %vm2306_vm4, %v2399_v39, 0.0  ;;  %v7279_v44 = vadd.f32 %v2219_v58, %v2102_v18  ;;  %v2106_v31 = vadd.f32 %v7000_v43, %v1914_v13  ;;  %v2454_v14 = vsel %vm2306_vm4, %v2402_v53, 0.0  ;;  %v5749_v13 = vld [vmem:[#allocation2 + $0x169] sm:$0xff] }
 0x30e   : > { %v2449_v41 = vadd.f32 %v2448_v30, %v2447_v63  ;;  %v2345_v26 = vadd.f32 %v2344_v12, %v2343_v54  ;;  %v2404_v55 = vmul.f32 %v7289_v40, %v7289_v40  ;;  %v7307_v23 = vadd.f32 %v2229_v47, %v2107_v49  ;;  %v5747_v54 = vld [vmem:[#allocation2 + $0x151] sm:$0xff] }
 0x30f   : > { %v2346_v56 = vsel %vm2306_vm4, %v7279_v44, 0.0  ;;  %v2401_v33 = vmul.f32 %v7279_v44, %v7279_v44  ;;  %v1916_v63 = vadd.f32 %v5747_v54, %v6508_v15  ;;  %v2109_v43 = vadd.f32 %v6985_v38, %v1917_v6 }
 0x310   : > { %v2347_v18 = vadd.f32 %v2346_v56, %v2345_v26  ;;  %v2451_v48 = vadd.f32 %v2450_v17, %v2449_v41  ;;  %v2223_v62 = vpop.permute.xlu0 %2222  ;;  %v2352_v53 = vsel %vm2306_vm4, %v7289_v40, 0.0  ;;  %v2458_v38 = vsel %vm2306_vm4, %v2404_v55, 0.0 }
 0x311   : > { %v2233_v9 = vpop.permute.xlu1 %2232  ;;  %v2452_v39 = vsel %vm2306_vm4, %v2401_v33, 0.0  ;;  %v7297_v45 = vadd.f32 %v2223_v62, %v2104_v29  ;;  %v5748_v29 = vld [vmem:[#allocation2 + $0x171] sm:$0xff]  ;;  %v2108_v47 = vadd.f32 %v7013_v0, %v1916_v63  ;;  %v2406_v59 = vmul.f32 %v7307_v23, %v7307_v23 }
 0x312   : > { %v2453_v51 = vadd.f32 %v2452_v39, %v2451_v48  ;;  %v2349_v46 = vadd.f32 %v2348_v42, %v2347_v18  ;;  %v1919_v41 = vadd.f32 %v5748_v29, %v6705_v20  ;;  %v7318_v33 = vadd.f32 %v2233_v9, %v2109_v43 }
 0x313   : > { %v2350_v16 = vsel %vm2306_vm4, %v7297_v45, 0.0  ;;  %v2403_v19 = vmul.f32 %v7297_v45, %v7297_v45  ;;  %v1918_v1 = vadd.f32 %v5749_v13, %v6703_v11  ;;  %v1921_v0 = vadd.f32 %v6831_v2, %v6822_v8 }
 0x314   : > { %v2351_v58 = vadd.f32 %v2350_v16, %v2349_v46  ;;  %v2455_v21 = vadd.f32 %v2454_v14, %v2453_v51  ;;  %v2227_v12 = vpop.permute.xlu0 %2226  ;;  %v2111_v9 = vadd.f32 %v7002_v24, %v1919_v41  ;;  %v2356_v49 = vsel %vm2306_vm4, %v7307_v23, 0.0  ;;  %v11147_v16 = vld [vmem:[#allocation18_spill] sm:$0xff] }
 0x315   : > { %v2237_v30 = vpop.permute.xlu1 %2236  ;;  %v2456_v26 = vsel %vm2306_vm4, %v2403_v19, 0.0  ;;  %v7315_v17 = vadd.f32 %v2227_v12, %v2106_v31  ;;  %v11146_v31 = vld [vmem:[#allocation13_spill] sm:$0xff]  ;;  %v2408_v11 = vmul.f32 %v7318_v33, %v7318_v33  ;;  %v2462_v2 = vsel %vm2306_vm4, %v2406_v59, 0.0  ;;  %v11148_v19 = vld [vmem:[#allocation8_spill] sm:$0xff]  ;;  %v11149_v12 = vld [vmem:[#allocation26_spill] sm:$0xff] }
 0x316   : > { %v2457_v56 = vadd.f32 %v2456_v26, %v2455_v21  ;;  %v2353_v15 = vadd.f32 %v2352_v53, %v2351_v58  ;;  %v2110_v14 = vadd.f32 %v11146_v31, %v1918_v1  ;;  %v7344_v55 = vadd.f32 %v2237_v30, %v2111_v9  ;;  %v11150_v30 = vld [vmem:[#allocation17_spill] sm:$0xff] }
 0x317   : > { %v2354_v20 = vsel %vm2306_vm4, %v7315_v17, 0.0  ;;  %v2405_v50 = vmul.f32 %v7315_v17, %v7315_v17  ;;  %v1920_v54 = vadd.f32 %v11148_v19, %v11147_v16  ;;  %v2113_v29 = vadd.f32 %v11149_v12, %v1921_v0 }
 0x318   : > { %v2355_v6 = vadd.f32 %v2354_v20, %v2353_v15  ;;  %v2459_v18 = vadd.f32 %v2458_v38, %v2457_v56  ;;  %v2231_v48 = vpop.permute.xlu0 %2230  ;;  %v2360_v41 = vsel %vm2306_vm4, %v7318_v33, 0.0  ;;  %v2466_v56 = vsel %vm2306_vm4, %v2408_v11, 0.0 }
 0x319   : > { %v2241_v62 = vpop.permute.xlu1 %2240  ;;  %v2460_v42 = vsel %vm2306_vm4, %v2405_v50, 0.0  ;;  %v7334_v39 = vadd.f32 %v2231_v48, %v2108_v47  ;;  %v2112_v47 = vadd.f32 %v11150_v30, %v1920_v54  ;;  %v2410_v59 = vmul.f32 %v7344_v55, %v7344_v55 }
 0x31a   : > { %v2461_v51 = vadd.f32 %v2460_v42, %v2459_v18  ;;  %v2357_v8 = vadd.f32 %v2356_v49, %v2355_v6  ;;  %v7363_v13 = vadd.f32 %v2241_v62, %v2113_v29  ;;  %v2364_v18 = vsel %vm2306_vm4, %v7344_v55, 0.0 }
 0x31b   : > { %v2358_v46 = vsel %vm2306_vm4, %v7334_v39, 0.0  ;;  %v2407_v24 = vmul.f32 %v7334_v39, %v7334_v39  ;;  %v2470_v31 = vsel %vm2306_vm4, %v2410_v59, 0.0  ;;  %v11152_v59 = vld [vmem:[#allocation15_spill] sm:$0xff] }
 0x31c   : > { %v2359_v63 = vadd.f32 %v2358_v46, %v2357_v8  ;;  %v2463_v43 = vadd.f32 %v2462_v2, %v2461_v51  ;;  %v2235_v58 = vpop.permute.xlu0 %2234  ;;  %v2368_v2 = vsel %vm2306_vm4, %v7363_v13, 0.0 }
 0x31d   : > { %v2522_v21 = vpop.permute.xlu1 %2521  ;;  %v2464_v53 = vsel %vm2306_vm4, %v2407_v24, 0.0  ;;  %v7352_v26 = vadd.f32 %v2235_v58, %v2110_v14  ;;  %v2412_v14 = vmul.f32 %v7363_v13, %v7363_v13 }
 0x31e   : > { %2617 = vst.msk [vmem:[#allocation3 + $0x108] sm:$0xff] %vm1665_vm3, %v2522_v21  ;;  %v2465_v15 = vadd.f32 %v2464_v53, %v2463_v43  ;;  %v2361_v38 = vadd.f32 %v2360_v41, %v2359_v63 }
 0x31f   : > { %v2362_v20 = vsel %vm2306_vm4, %v7352_v26, 0.0  ;;  %v2409_v50 = vmul.f32 %v7352_v26, %v7352_v26  ;;  %v2474_v19 = vsel %vm2306_vm4, %v2412_v14, 0.0 }
 0x320   : > { %v2363_v1 = vadd.f32 %v2362_v20, %v2361_v38  ;;  %v2467_v0 = vadd.f32 %v2466_v56, %v2465_v15  ;;  %v2239_v6 = vpop.permute.xlu0 %2238  ;;  %v11151_v38 = vld [vmem:[#allocation33_spill] sm:$0xff] }
 0x321   : > { %v2468_v48 = vsel %vm2306_vm4, %v2409_v50, 0.0  ;;  %v2304_v9 = vadd.f32 %v2239_v6, %v2112_v47  ;;  %v7539_v50 = vld [vmem:[#allocation2 + $0x158] sm:$0xff]  ;;  %v7549_v6 = vld [vmem:[#allocation2 + $0x170] sm:$0xff] }
 0x322   : > { %v2469_v49 = vadd.f32 %v2468_v48, %v2467_v0  ;;  %v2365_v42 = vadd.f32 %v2364_v18, %v2363_v1  ;;  %v7544_v1 = vld [vmem:[#allocation2 + $0x150] sm:$0xff]  ;;  %v7554_v48 = vld [vmem:[#allocation2 + $0x168] sm:$0xff] }
 0x323   : > { %v2366_v51 = vsel %vm2306_vm4, %v2304_v9, 0.0  ;;  %v2411_v62 = vmul.f32 %v2304_v9, %v2304_v9 }
 0x324   : > { %v2367_v11 = vadd.f32 %v2366_v51, %v2365_v42  ;;  %v2471_v8 = vadd.f32 %v2470_v31, %v2469_v49  ;;  %v7559_v49 = vld [vmem:[#allocation2 + $0x188] sm:$0xff]  ;;  %v7564_v31 = vld [vmem:[#allocation2 + $0x180] sm:$0xff] }
 0x325   : > { %v2472_v46 = vsel %vm2306_vm4, %v2411_v62, 0.0  ;;  %v7569_v51 = vld [vmem:[#allocation2 + $0x39] sm:$0xff] }
 0x326   : > { %v2369_v24 = vadd.f32 %v2368_v2, %v2367_v11  ;;  %v2473_v16 = vadd.f32 %v2472_v46, %v2471_v8  ;;  %v7574_v11 = vld [vmem:[#allocation2 + $0x31] sm:$0xff] }
 0x327   : > { %v7579_v2 = vld [vmem:[#allocation2 + $0x51] sm:$0xff] }
 0x328   : > { %v2370_v54 = vrot.slane %v2369_v24, 4  ;;  %v2475_v63 = vadd.f32 %v2474_v19, %v2473_v16  ;;  %v7589_v19 = vld [vmem:[#allocation2 + $0x69] sm:$0xff] }
 0x32a   : > { %v2371_v43 = vadd.f32 %v2370_v54, %v2369_v24  ;;  %v2476_v58 = vrot.slane %v2475_v63, 4  ;;  %v7584_v24 = vld [vmem:[#allocation2 + $0x49] sm:$0xff] }
 0x32c   : > { %v2372_v21 = vrot.slane %v2371_v43, 2  ;;  %v2477_v12 = vadd.f32 %v2476_v58, %v2475_v63  ;;  %v7594_v63 = vld [vmem:[#allocation2 + $0x61] sm:$0xff] }
 0x32d   : > { %v7599_v58 = vld [vmem:[#allocation2 + $0x81] sm:$0xff] }
 0x32e   : > { %v2373_v29 = vadd.f32 %v2372_v21, %v2371_v43  ;;  %v2478_v41 = vrot.slane %v2477_v12, 2 }
 0x330   : > { %v2374_v53 = vrot.slane %v2373_v29, 1  ;;  %v2479_v30 = vadd.f32 %v2478_v41, %v2477_v12  ;;  %v7604_v12 = vld [vmem:[#allocation2 + $0x79] sm:$0xff] }
 0x331   : > { %v7609_v41 = vld [vmem:[#allocation2 + $0x99] sm:$0xff] }
 0x332   : > { %v2375_v47 = vadd.f32 %v2374_v53, %v2373_v29  ;;  %v2480_v56 = vrot.slane %v2479_v30, 1 }
 0x334   : > { %2377 = vrot.lane.b32.xlu0 %v2375_v47, %s5764_s23  ;;  %v2481_v15 = vadd.f32 %v2480_v56, %v2479_v30  ;;  %v7614_v30 = vld [vmem:[#allocation2 + $0x91] sm:$0xff] }
 0x335   : > { %v7619_v56 = vld [vmem:[#allocation2 + $0xb1] sm:$0xff] }
 0x336   : > { %2483 = vrot.lane.b32.xlu1 %v2481_v15, %s5764_s23 }
 0x338   : > { %2519 = vrot.lane.b32.xlu0 %v11151_v38, %s5762_s21  ;;  %v7624_v38 = vld [vmem:[#allocation2 + $0xa9] sm:$0xff] }
 0x33a   : > { %2525 = vrot.lane.b32.xlu1 %v7097_v36, %s5762_s21  ;;  %v2681_v36 = vld [vmem:[#allocation2 + $0x20] sm:$0xff] }
 0x33c   : > { %2523 = vrot.lane.b32.xlu0 %v11152_v59, %s5762_s21 }
 0x33e   : > { %2529 = vrot.lane.b32.xlu1 %v7121_v27, %s5762_s21  ;;  %v7439_v27 = vld [vmem:[#allocation2 + $0x38] sm:$0xff] }
 0x340   : > { %2527 = vrot.lane.b32.xlu0 %v7105_v37, %s5762_s21  ;;  %v2680_v37 = vld [vmem:[#allocation2 + $0x18] sm:$0xff] }
 0x342   : > { %2533 = vrot.lane.b32.xlu1 %v7145_v34, %s5762_s21  ;;  %v7447_v34 = vld [vmem:[#allocation2 + $0x50] sm:$0xff] }
 0x344   : > { %2531 = vrot.lane.b32.xlu0 %v7129_v4, %s5762_s21  ;;  %v7443_v4 = vld [vmem:[#allocation2 + $0x30] sm:$0xff] }
 0x346   : > { %2537 = vrot.lane.b32.xlu1 %v7167_v61, %s5762_s21  ;;  %v7455_v61 = vld [vmem:[#allocation2 + $0x68] sm:$0xff] }
 0x348   : > { %2535 = vrot.lane.b32.xlu0 %v7153_v32, %s5762_s21  ;;  %v7451_v32 = vld [vmem:[#allocation2 + $0x48] sm:$0xff] }
 0x34a   : > { %2541 = vrot.lane.b32.xlu1 %v7180_v57, %s5762_s21  ;;  %v7459_v57 = vld [vmem:[#allocation2 + $0x60] sm:$0xff] }
 0x34c   : > { %2539 = vrot.lane.b32.xlu0 %v7185_v25, %s5762_s21  ;;  %v7463_v25 = vld [vmem:[#allocation2 + $0x80] sm:$0xff] }
 0x34e   : > { %2545 = vrot.lane.b32.xlu1 %v7197_v52, %s5762_s21  ;;  %v7467_v52 = vld [vmem:[#allocation2 + $0x78] sm:$0xff] }
 0x350   : > { %2543 = vrot.lane.b32.xlu0 %v7206_v35, %s5762_s21  ;;  %v7471_v35 = vld [vmem:[#allocation2 + $0x98] sm:$0xff] }
 0x352   : > { %2549 = vrot.lane.b32.xlu1 %v7209_v7, %s5762_s21  ;;  %v7475_v7 = vld [vmem:[#allocation2 + $0x90] sm:$0xff] }
 0x354   : > { %2547 = vrot.lane.b32.xlu0 %v7224_v3, %s5762_s21  ;;  %v7479_v3 = vld [vmem:[#allocation2 + $0xb0] sm:$0xff] }
 0x356   : > { %2553 = vrot.lane.b32.xlu1 %v7234_v60, %s5762_s21  ;;  %v7483_v60 = vld [vmem:[#allocation2 + $0xa8] sm:$0xff] }
 0x358   : > { %2551 = vrot.lane.b32.xlu0 %v7243_v10, %s5762_s21  ;;  %v7487_v10 = vld [vmem:[#allocation2 + $0xc8] sm:$0xff] }
 0x35a   : > { %2557 = vrot.lane.b32.xlu1 %v7253_v28, %s5762_s21  ;;  %v7491_v28 = vld [vmem:[#allocation2 + $0xc0] sm:$0xff] }
 0x35c   : > { %2555 = vrot.lane.b32.xlu0 %v7261_v22, %s5762_s21  ;;  %v7495_v22 = vld [vmem:[#allocation2 + $0xe0] sm:$0xff] }
 0x35e   : > { %2561 = vrot.lane.b32.xlu1 %v7264_v5, %s5762_s21  ;;  %v7499_v5 = vld [vmem:[#allocation2 + $0xd8] sm:$0xff] }
 0x360   : > { %2559 = vrot.lane.b32.xlu0 %v7279_v44, %s5762_s21  ;;  %v7503_v44 = vld [vmem:[#allocation2 + $0xf8] sm:$0xff] }
 0x362   : > { %2565 = vrot.lane.b32.xlu1 %v7289_v40, %s5762_s21  ;;  %v7507_v40 = vld [vmem:[#allocation2 + $0xf0] sm:$0xff] }
 0x364   : > { %2563 = vrot.lane.b32.xlu0 %v7297_v45, %s5762_s21  ;;  %v7511_v45 = vld [vmem:[#allocation2 + $0x110] sm:$0xff] }
 0x366   : > { %2569 = vrot.lane.b32.xlu1 %v7307_v23, %s5762_s21  ;;  %v7515_v23 = vld [vmem:[#allocation2 + $0x108] sm:$0xff] }
 0x368   : > { %2567 = vrot.lane.b32.xlu0 %v7315_v17, %s5762_s21  ;;  %v7519_v17 = vld [vmem:[#allocation2 + $0x128] sm:$0xff] }
 0x36a   : > { %2573 = vrot.lane.b32.xlu1 %v7318_v33, %s5762_s21  ;;  %v7523_v33 = vld [vmem:[#allocation2 + $0x120] sm:$0xff] }
 0x36c   : > { %2571 = vrot.lane.b32.xlu0 %v7334_v39, %s5762_s21  ;;  %v7527_v39 = vld [vmem:[#allocation2 + $0x140] sm:$0xff] }
 0x36e   : > { %2577 = vrot.lane.b32.xlu1 %v7344_v55, %s5762_s21 }
 0x370   : > { %2575 = vrot.lane.b32.xlu0 %v7352_v26, %s5762_s21  ;;  %v7533_v26 = vld [vmem:[#allocation2 + $0x138] sm:$0xff] }
 0x372   : > { %2581 = vrot.lane.b32.xlu1 %v7363_v13, %s5762_s21 }
 0x374   : > { %2579 = vrot.lane.b32.xlu0 %v2304_v9, %s5762_s21 }
 0x376   : > { %2746 = vrot.lane.b32.xlu1 %v2681_v36, %s5759_s18  ;;  %v7629_v36 = vld [vmem:[#allocation2 + $0xc9] sm:$0xff] }
 0x378   : > { %2744 = vrot.lane.b32.xlu0 %v2680_v37, %s5759_s18 }
 0x37a   : > { %2750 = vrot.lane.b32.xlu1 %v7439_v27, %s5759_s18 }
 0x37c   : > { %2748 = vrot.lane.b32.xlu0 %v7443_v4, %s5759_s18 }
 0x37e   : > { %2754 = vrot.lane.b32.xlu1 %v7447_v34, %s5759_s18 }
 0x380   : > { %2752 = vrot.lane.b32.xlu0 %v7451_v32, %s5759_s18 }
 0x382   : > { %2758 = vrot.lane.b32.xlu1 %v7455_v61, %s5759_s18 }
 0x384   : > { %2756 = vrot.lane.b32.xlu0 %v7459_v57, %s5759_s18 }
 0x386   : > { %2762 = vrot.lane.b32.xlu1 %v7463_v25, %s5759_s18 }
 0x388   : > { %2760 = vrot.lane.b32.xlu0 %v7467_v52, %s5759_s18 }
 0x38a   : > { %2766 = vrot.lane.b32.xlu1 %v7471_v35, %s5759_s18 }
 0x38c   : > { %2764 = vrot.lane.b32.xlu0 %v7475_v7, %s5759_s18 }
 0x38e   : > { %2770 = vrot.lane.b32.xlu1 %v7479_v3, %s5759_s18 }
 0x390   : > { %2768 = vrot.lane.b32.xlu0 %v7483_v60, %s5759_s18 }
 0x392   : > { %2774 = vrot.lane.b32.xlu1 %v7487_v10, %s5759_s18 }
 0x394   : > { %2772 = vrot.lane.b32.xlu0 %v7491_v28, %s5759_s18 }
 0x396   : > { %2778 = vrot.lane.b32.xlu1 %v7495_v22, %s5759_s18 }
 0x398   : > { %2776 = vrot.lane.b32.xlu0 %v7499_v5, %s5759_s18 }
 0x39a   : > { %2782 = vrot.lane.b32.xlu1 %v7503_v44, %s5759_s18 }
 0x39c   : > { %2780 = vrot.lane.b32.xlu0 %v7507_v40, %s5759_s18 }
 0x39e   : > { %2786 = vrot.lane.b32.xlu1 %v7511_v45, %s5759_s18 }
 0x3a0   : > { %2784 = vrot.lane.b32.xlu0 %v7515_v23, %s5759_s18 }
 0x3a2   : > { %2790 = vrot.lane.b32.xlu1 %v7519_v17, %s5759_s18 }
 0x3a4   : > { %2788 = vrot.lane.b32.xlu0 %v7523_v33, %s5759_s18 }
 0x3a6   : > { %2794 = vrot.lane.b32.xlu1 %v7527_v39, %s5759_s18  ;;  %v7531_v55 = vpop.permute.xlu0 %2377 }
 0x3a7   : > { %11153 = vst [vmem:[#allocation11_spill] sm:$0xff] %v7531_v55  ;;  %v7718_v55 = vld [vmem:[#allocation2 + $0x181] sm:$0xff] }
 0x3a8   : > { %2792 = vrot.lane.b32.xlu0 %v7533_v26, %s5759_s18  ;;  %v7537_v20 = vpop.permute.xlu1 %2483  ;;  %11168 = vst [vmem:[#allocation55_spill] sm:$0xff] %v7718_v55 }
 0x3a9   : > { %11154 = vst [vmem:[#allocation27_spill] sm:$0xff] %v7537_v20 }
 0x3aa   : > { %2798 = vrot.lane.b32.xlu1 %v7539_v50, %s5759_s18  ;;  %v2520_v13 = vpop.permute.xlu0 %2519 }
 0x3ab   : > { %2616 = vst.msk [vmem:[#allocation3 + $0x100] sm:$0xff] %vm1665_vm3, %v2520_v13  ;;  %v7634_v13 = vld [vmem:[#allocation2 + $0xc1] sm:$0xff] }
 0x3ac   : > { %2796 = vrot.lane.b32.xlu0 %v7544_v1, %s5759_s18  ;;  %v2526_v0 = vpop.permute.xlu1 %2525 }
 0x3ad   : > { %2619 = vst.msk [vmem:[#allocation3 + $0x118] sm:$0xff] %vm1665_vm3, %v2526_v0 }
 0x3ae   : > { %2802 = vrot.lane.b32.xlu1 %v7549_v6, %s5759_s18  ;;  %v2524_v18 = vpop.permute.xlu0 %2523 }
 0x3af   : > { %2618 = vst.msk [vmem:[#allocation3 + $0x110] sm:$0xff] %vm1665_vm3, %v2524_v18  ;;  %v7639_v18 = vld [vmem:[#allocation2 + $0xe1] sm:$0xff] }
 0x3b0   : > { %2800 = vrot.lane.b32.xlu0 %v7554_v48, %s5759_s18  ;;  %v2530_v9 = vpop.permute.xlu1 %2529 }
 0x3b1   : > { %2621 = vst.msk [vmem:[#allocation3 + $0x128] sm:$0xff] %vm1665_vm3, %v2530_v9 }
 0x3b2   : > { %2806 = vrot.lane.b32.xlu1 %v7559_v49, %s5759_s18  ;;  %v2528_v42 = vpop.permute.xlu0 %2527 }
 0x3b3   : > { %2620 = vst.msk [vmem:[#allocation3 + $0x120] sm:$0xff] %vm1665_vm3, %v2528_v42  ;;  %v7644_v42 = vld [vmem:[#allocation2 + $0xd9] sm:$0xff] }
 0x3b4   : > { %2804 = vrot.lane.b32.xlu0 %v7564_v31, %s5759_s18  ;;  %v2534_v14 = vpop.permute.xlu1 %2533 }
 0x3b5   : > { %2623 = vst.msk [vmem:[#allocation3 + $0x138] sm:$0xff] %vm1665_vm3, %v2534_v14 }
 0x3b6   : > { %2939 = vrot.lane.b32.xlu1 %v7569_v51, %s5760_s19  ;;  %v2532_v62 = vpop.permute.xlu0 %2531 }
 0x3b7   : > { %2622 = vst.msk [vmem:[#allocation3 + $0x130] sm:$0xff] %vm1665_vm3, %v2532_v62  ;;  %v7649_v62 = vld [vmem:[#allocation2 + $0xf9] sm:$0xff] }
 0x3b8   : > { %2937 = vrot.lane.b32.xlu0 %v7574_v11, %s5760_s19  ;;  %v2538_v8 = vpop.permute.xlu1 %2537  ;;  %11155 = vst [vmem:[#allocation29_spill] sm:$0xff] %v7649_v62 }
 0x3b9   : > { %2625 = vst.msk [vmem:[#allocation3 + $0x148] sm:$0xff] %vm1665_vm3, %v2538_v8 }
 0x3ba   : > { %2943 = vrot.lane.b32.xlu1 %v7579_v2, %s5760_s19  ;;  %v2536_v46 = vpop.permute.xlu0 %2535 }
 0x3bb   : > { %2624 = vst.msk [vmem:[#allocation3 + $0x140] sm:$0xff] %vm1665_vm3, %v2536_v46  ;;  %v7654_v46 = vld [vmem:[#allocation2 + $0xf1] sm:$0xff] }
 0x3bc   : > { %2941 = vrot.lane.b32.xlu0 %v7584_v24, %s5760_s19  ;;  %v2542_v16 = vpop.permute.xlu1 %2541  ;;  %11156 = vst [vmem:[#allocation35_spill] sm:$0xff] %v7654_v46 }
 0x3bd   : > { %2627 = vst.msk [vmem:[#allocation3 + $0x158] sm:$0xff] %vm1665_vm3, %v2542_v16 }
 0x3be   : > { %2947 = vrot.lane.b32.xlu1 %v7589_v19, %s5760_s19  ;;  %v2540_v54 = vpop.permute.xlu0 %2539 }
 0x3bf   : > { %2626 = vst.msk [vmem:[#allocation3 + $0x150] sm:$0xff] %vm1665_vm3, %v2540_v54  ;;  %v7659_v54 = vld [vmem:[#allocation2 + $0x111] sm:$0xff] }
 0x3c0   : > { %2945 = vrot.lane.b32.xlu0 %v7594_v63, %s5760_s19  ;;  %v2546_v43 = vpop.permute.xlu1 %2545  ;;  %11157 = vst [vmem:[#allocation6_spill] sm:$0xff] %v7659_v54 }
 0x3c1   : > { %2629 = vst.msk [vmem:[#allocation3 + $0x168] sm:$0xff] %vm1665_vm3, %v2546_v43 }
 0x3c2   : > { %2951 = vrot.lane.b32.xlu1 %v7599_v58, %s5760_s19  ;;  %v2544_v21 = vpop.permute.xlu0 %2543 }
 0x3c3   : > { %2628 = vst.msk [vmem:[#allocation3 + $0x160] sm:$0xff] %vm1665_vm3, %v2544_v21  ;;  %v7664_v21 = vld [vmem:[#allocation2 + $0x109] sm:$0xff] }
 0x3c4   : > { %2949 = vrot.lane.b32.xlu0 %v7604_v12, %s5760_s19  ;;  %v2550_v29 = vpop.permute.xlu1 %2549  ;;  %11158 = vst [vmem:[#allocation25_spill] sm:$0xff] %v7664_v21 }
 0x3c5   : > { %2631 = vst.msk [vmem:[#allocation3 + $0x178] sm:$0xff] %vm1665_vm3, %v2550_v29 }
 0x3c6   : > { %2955 = vrot.lane.b32.xlu1 %v7609_v41, %s5760_s19  ;;  %v2548_v53 = vpop.permute.xlu0 %2547 }
 0x3c7   : > { %2630 = vst.msk [vmem:[#allocation3 + $0x170] sm:$0xff] %vm1665_vm3, %v2548_v53  ;;  %v7669_v53 = vld [vmem:[#allocation2 + $0x129] sm:$0xff] }
 0x3c8   : > { %2953 = vrot.lane.b32.xlu0 %v7614_v30, %s5760_s19  ;;  %v2554_v47 = vpop.permute.xlu1 %2553  ;;  %11159 = vst [vmem:[#allocation41_spill] sm:$0xff] %v7669_v53 }
 0x3c9   : > { %2633 = vst.msk [vmem:[#allocation3 + $0x188] sm:$0xff] %vm1665_vm3, %v2554_v47 }
 0x3ca   : > { %2959 = vrot.lane.b32.xlu1 %v7619_v56, %s5760_s19  ;;  %v2552_v15 = vpop.permute.xlu0 %2551 }
 0x3cb   : > { %2632 = vst.msk [vmem:[#allocation3 + $0x180] sm:$0xff] %vm1665_vm3, %v2552_v15  ;;  %v7674_v15 = vld [vmem:[#allocation2 + $0x121] sm:$0xff] }
 0x3cc   : > { %2957 = vrot.lane.b32.xlu0 %v7624_v38, %s5760_s19  ;;  %v2558_v59 = vpop.permute.xlu1 %2557  ;;  %11160 = vst [vmem:[#allocation53_spill] sm:$0xff] %v7674_v15 }
 0x3cd   : > { %2635 = vst.msk [vmem:[#allocation3 + $0x198] sm:$0xff] %vm1665_vm3, %v2558_v59 }
 0x3ce   : > { %2963 = vrot.lane.b32.xlu1 %v7629_v36, %s5760_s19  ;;  %v2556_v37 = vpop.permute.xlu0 %2555 }
 0x3cf   : > { %2634 = vst.msk [vmem:[#allocation3 + $0x190] sm:$0xff] %vm1665_vm3, %v2556_v37  ;;  %v7679_v37 = vld [vmem:[#allocation2 + $0x141] sm:$0xff] }
 0x3d0   : > { %2961 = vrot.lane.b32.xlu0 %v7634_v13, %s5760_s19  ;;  %v2562_v0 = vpop.permute.xlu1 %2561  ;;  %11161 = vst [vmem:[#allocation19_spill] sm:$0xff] %v7679_v37 }
 0x3d1   : > { %2637 = vst.msk [vmem:[#allocation3 + $0x1a8] sm:$0xff] %vm1665_vm3, %v2562_v0 }
 0x3d2   : > { %2967 = vrot.lane.b32.xlu1 %v7639_v18, %s5760_s19  ;;  %v2560_v9 = vpop.permute.xlu0 %2559 }
 0x3d3   : > { %2636 = vst.msk [vmem:[#allocation3 + $0x1a0] sm:$0xff] %vm1665_vm3, %v2560_v9  ;;  %v7684_v9 = vld [vmem:[#allocation2 + $0x139] sm:$0xff] }
 0x3d4   : > { %2965 = vrot.lane.b32.xlu0 %v7644_v42, %s5760_s19  ;;  %v2566_v14 = vpop.permute.xlu1 %2565  ;;  %11162 = vst [vmem:[#allocation37_spill] sm:$0xff] %v7684_v9 }
 0x3d5   : > { %2639 = vst.msk [vmem:[#allocation3 + $0x1b8] sm:$0xff] %vm1665_vm3, %v2566_v14 }
 0x3d6   : > { %2971 = vrot.lane.b32.xlu1 %v7649_v62, %s5760_s19  ;;  %v2564_v8 = vpop.permute.xlu0 %2563 }
 0x3d7   : > { %2638 = vst.msk [vmem:[#allocation3 + $0x1b0] sm:$0xff] %vm1665_vm3, %v2564_v8  ;;  %v7689_v8 = vld [vmem:[#allocation2 + $0x159] sm:$0xff] }
 0x3d8   : > { %2969 = vrot.lane.b32.xlu0 %v7654_v46, %s5760_s19  ;;  %v2570_v16 = vpop.permute.xlu1 %2569  ;;  %11163 = vst [vmem:[#allocation42_spill] sm:$0xff] %v7689_v8 }
 0x3d9   : > { %2641 = vst.msk [vmem:[#allocation3 + $0x1c8] sm:$0xff] %vm1665_vm3, %v2570_v16 }
 0x3da   : > { %2975 = vrot.lane.b32.xlu1 %v7659_v54, %s5760_s19  ;;  %v2568_v43 = vpop.permute.xlu0 %2567 }
 0x3db   : > { %2640 = vst.msk [vmem:[#allocation3 + $0x1c0] sm:$0xff] %vm1665_vm3, %v2568_v43  ;;  %v7694_v43 = vld [vmem:[#allocation2 + $0x151] sm:$0xff] }
 0x3dc   : > { %2973 = vrot.lane.b32.xlu0 %v7664_v21, %s5760_s19  ;;  %v2574_v29 = vpop.permute.xlu1 %2573  ;;  %11164 = vst [vmem:[#allocation62_spill] sm:$0xff] %v7694_v43 }
 0x3dd   : > { %2643 = vst.msk [vmem:[#allocation3 + $0x1d8] sm:$0xff] %vm1665_vm3, %v2574_v29 }
 0x3de   : > { %2979 = vrot.lane.b32.xlu1 %v7669_v53, %s5760_s19  ;;  %v2572_v47 = vpop.permute.xlu0 %2571 }
 0x3df   : > { %2642 = vst.msk [vmem:[#allocation3 + $0x1d0] sm:$0xff] %vm1665_vm3, %v2572_v47  ;;  %v7700_v47 = vld [vmem:[#allocation2 + $0x171] sm:$0xff] }
 0x3e0   : > { %2977 = vrot.lane.b32.xlu0 %v7674_v15, %s5760_s19  ;;  %v2578_v59 = vpop.permute.xlu1 %2577  ;;  %11165 = vst [vmem:[#allocation50_spill] sm:$0xff] %v7700_v47 }
 0x3e1   : > { %2645 = vst.msk [vmem:[#allocation3 + $0x1e8] sm:$0xff] %vm1665_vm3, %v2578_v59 }
 0x3e2   : > { %2983 = vrot.lane.b32.xlu1 %v7679_v37, %s5760_s19  ;;  %v2576_v0 = vpop.permute.xlu0 %2575 }
 0x3e3   : > { %2644 = vst.msk [vmem:[#allocation3 + $0x1e0] sm:$0xff] %vm1665_vm3, %v2576_v0  ;;  %v7706_v0 = vld [vmem:[#allocation2 + $0x169] sm:$0xff] }
 0x3e4   : > { %2981 = vrot.lane.b32.xlu0 %v7684_v9, %s5760_s19  ;;  %v2582_v14 = vpop.permute.xlu1 %2581  ;;  %11166 = vst [vmem:[#allocation39_spill] sm:$0xff] %v7706_v0 }
 0x3e5   : > { %2647 = vst.msk [vmem:[#allocation3 + $0x1f8] sm:$0xff] %vm1665_vm3, %v2582_v14 }
 0x3e6   : > { %2987 = vrot.lane.b32.xlu1 %v7689_v8, %s5760_s19  ;;  %v2580_v16 = vpop.permute.xlu0 %2579  ;;  %v2903_v8 = vld [vmem:[#allocation2 + $0x199] sm:$0xff] }
 0x3e7   : > { %2646 = vst.msk [vmem:[#allocation3 + $0x1f0] sm:$0xff] %vm1665_vm3, %v2580_v16  ;;  %v7712_v16 = vld [vmem:[#allocation2 + $0x189] sm:$0xff] }
 0x3e8   : > { %2985 = vrot.lane.b32.xlu0 %v7694_v43, %s5760_s19  ;;  %v7698_v29 = vpop.permute.xlu1 %2746  ;;  %11167 = vst [vmem:[#allocation34_spill] sm:$0xff] %v7712_v16  ;;  %v2904_v43 = vld [vmem:[#allocation2 + $0x1a1] sm:$0xff] }
 0x3ea   : > { %2991 = vrot.lane.b32.xlu1 %v7700_v47, %s5760_s19  ;;  %v7704_v59 = vpop.permute.xlu0 %2744 }
 0x3ec   : > { %2989 = vrot.lane.b32.xlu0 %v7706_v0, %s5760_s19  ;;  %v7710_v14 = vpop.permute.xlu1 %2750 }
 0x3ee   : > { %2995 = vrot.lane.b32.xlu1 %v7712_v16, %s5760_s19  ;;  %v7716_v20 = vpop.permute.xlu0 %2748 }
 0x3f0   : > { %2993 = vrot.lane.b32.xlu0 %v7718_v55, %s5760_s19  ;;  %v7722_v47 = vpop.permute.xlu1 %2754 }
 0x3f2   : > { %2999 = vrot.lane.b32.xlu1 %v2904_v43, %s5760_s19  ;;  %v7725_v0 = vpop.permute.xlu0 %2752 }
 0x3f4   : > { %2997 = vrot.lane.b32.xlu0 %v2903_v8, %s5760_s19  ;;  %v7728_v9 = vpop.permute.xlu1 %2758 }
 0x3f6   : > { %v7730_v16 = vpop.permute.xlu0 %2756  ;;  %3131 = vrot.lane.b32.xlu1 %v7439_v27, %s5758_s17 }
 0x3f8   : > { %3129 = vrot.lane.b32.xlu0 %v7443_v4, %s5758_s17  ;;  %v7736_v55 = vpop.permute.xlu1 %2762 }
 0x3fa   : > { %v7738_v37 = vpop.permute.xlu0 %2760  ;;  %3135 = vrot.lane.b32.xlu1 %v7447_v34, %s5758_s17 }
 0x3fc   : > { %3133 = vrot.lane.b32.xlu0 %v7451_v32, %s5758_s17  ;;  %v7744_v8 = vpop.permute.xlu1 %2766 }
 0x3fe   : > { %v7746_v43 = vpop.permute.xlu0 %2764  ;;  %3139 = vrot.lane.b32.xlu1 %v7455_v61, %s5758_s17 }
 0x400   : > { %3137 = vrot.lane.b32.xlu0 %v7459_v57, %s5758_s17  ;;  %v7752_v27 = vpop.permute.xlu1 %2770 }
 0x402   : > { %v7754_v4 = vpop.permute.xlu0 %2768  ;;  %3143 = vrot.lane.b32.xlu1 %v7463_v25, %s5758_s17 }
 0x404   : > { %3141 = vrot.lane.b32.xlu0 %v7467_v52, %s5758_s17  ;;  %v7760_v34 = vpop.permute.xlu1 %2774 }
 0x406   : > { %v7762_v32 = vpop.permute.xlu0 %2772  ;;  %3147 = vrot.lane.b32.xlu1 %v7471_v35, %s5758_s17 }
 0x408   : > { %3145 = vrot.lane.b32.xlu0 %v7475_v7, %s5758_s17  ;;  %v7768_v61 = vpop.permute.xlu1 %2778 }
 0x40a   : > { %v7770_v57 = vpop.permute.xlu0 %2776  ;;  %3151 = vrot.lane.b32.xlu1 %v7479_v3, %s5758_s17 }
 0x40c   : > { %3149 = vrot.lane.b32.xlu0 %v7483_v60, %s5758_s17  ;;  %v7776_v25 = vpop.permute.xlu1 %2782 }
 0x40d   : > { %11169 = vst [vmem:[#allocation57_spill] sm:$0xff] %v7776_v25 }
 0x40e   : > { %v7778_v52 = vpop.permute.xlu0 %2780  ;;  %3155 = vrot.lane.b32.xlu1 %v7487_v10, %s5758_s17 }
 0x40f   : > { %11170 = vst [vmem:[#allocation66_spill] sm:$0xff] %v7778_v52 }
 0x410   : > { %3153 = vrot.lane.b32.xlu0 %v7491_v28, %s5758_s17  ;;  %v7784_v35 = vpop.permute.xlu1 %2786 }
 0x411   : > { %11171 = vst [vmem:[#allocation52_spill] sm:$0xff] %v7784_v35 }
 0x412   : > { %v7786_v7 = vpop.permute.xlu0 %2784  ;;  %3159 = vrot.lane.b32.xlu1 %v7495_v22, %s5758_s17 }
 0x413   : > { %11172 = vst [vmem:[#allocation43_spill] sm:$0xff] %v7786_v7 }
 0x414   : > { %3157 = vrot.lane.b32.xlu0 %v7499_v5, %s5758_s17  ;;  %v7792_v3 = vpop.permute.xlu1 %2790 }
 0x415   : > { %11173 = vst [vmem:[#allocation69_spill] sm:$0xff] %v7792_v3 }
 0x416   : > { %v7794_v60 = vpop.permute.xlu0 %2788  ;;  %3163 = vrot.lane.b32.xlu1 %v7503_v44, %s5758_s17 }
 0x417   : > { %11174 = vst [vmem:[#allocation64_spill] sm:$0xff] %v7794_v60 }
 0x418   : > { %3161 = vrot.lane.b32.xlu0 %v7507_v40, %s5758_s17  ;;  %v7800_v10 = vpop.permute.xlu1 %2794 }
 0x419   : > { %11175 = vst [vmem:[#allocation63_spill] sm:$0xff] %v7800_v10 }
 0x41a   : > { %v7802_v28 = vpop.permute.xlu0 %2792  ;;  %3167 = vrot.lane.b32.xlu1 %v7511_v45, %s5758_s17 }
 0x41b   : > { %11176 = vst [vmem:[#allocation7_spill] sm:$0xff] %v7802_v28 }
 0x41c   : > { %3165 = vrot.lane.b32.xlu0 %v7515_v23, %s5758_s17  ;;  %v7808_v22 = vpop.permute.xlu1 %2798 }
 0x41d   : > { %11177 = vst [vmem:[#allocation12_spill] sm:$0xff] %v7808_v22 }
 0x41e   : > { %v7810_v5 = vpop.permute.xlu0 %2796  ;;  %3171 = vrot.lane.b32.xlu1 %v7519_v17, %s5758_s17 }
 0x41f   : > { %11178 = vst [vmem:[#allocation45_spill] sm:$0xff] %v7810_v5 }
 0x420   : > { %3169 = vrot.lane.b32.xlu0 %v7523_v33, %s5758_s17  ;;  %v7816_v44 = vpop.permute.xlu1 %2802 }
 0x421   : > { %11179 = vst [vmem:[#allocation54_spill] sm:$0xff] %v7816_v44 }
 0x422   : > { %v7818_v40 = vpop.permute.xlu0 %2800  ;;  %3175 = vrot.lane.b32.xlu1 %v7527_v39, %s5758_s17 }
 0x423   : > { %11180 = vst [vmem:[#allocation65_spill] sm:$0xff] %v7818_v40 }
 0x424   : > { %3173 = vrot.lane.b32.xlu0 %v7533_v26, %s5758_s17  ;;  %v7824_v45 = vpop.permute.xlu1 %2806 }
 0x425   : > { %11181 = vst [vmem:[#allocation51_spill] sm:$0xff] %v7824_v45 }
 0x426   : > { %v7826_v23 = vpop.permute.xlu0 %2804  ;;  %3179 = vrot.lane.b32.xlu1 %v7539_v50, %s5758_s17 }
 0x427   : > { %11182 = vst [vmem:[#allocation60_spill] sm:$0xff] %v7826_v23  ;;  %v3096_v23 = vld [vmem:[#allocation2 + $0x1a0] sm:$0xff] }
 0x428   : > { %3177 = vrot.lane.b32.xlu0 %v7544_v1, %s5758_s17  ;;  %v2940_v17 = vpop.permute.xlu1 %2939  ;;  %v3095_v1 = vld [vmem:[#allocation2 + $0x198] sm:$0xff] }
 0x42a   : > { %v2938_v33 = vpop.permute.xlu0 %2937  ;;  %3183 = vrot.lane.b32.xlu1 %v7549_v6, %s5758_s17 }
 0x42c   : > { %3181 = vrot.lane.b32.xlu0 %v7554_v48, %s5758_s17  ;;  %v2944_v39 = vpop.permute.xlu1 %2943 }
 0x42e   : > { %v2942_v26 = vpop.permute.xlu0 %2941  ;;  %3187 = vrot.lane.b32.xlu1 %v7559_v49, %s5758_s17 }
 0x430   : > { %3185 = vrot.lane.b32.xlu0 %v7564_v31, %s5758_s17  ;;  %v2948_v50 = vpop.permute.xlu1 %2947 }
 0x432   : > { %v2946_v45 = vpop.permute.xlu0 %2945  ;;  %3191 = vrot.lane.b32.xlu1 %v3096_v23, %s5758_s17 }
 0x434   : > { %3189 = vrot.lane.b32.xlu0 %v3095_v1, %s5758_s17  ;;  %v7842_v6 = vpop.permute.xlu1 %2951 }
 0x436   : > { %v7844_v40 = vpop.permute.xlu0 %2949 }
 0x438   : > { %v7846_v48 = vpop.permute.xlu1 %2955 }
 0x43a   : > { %v7848_v44 = vpop.permute.xlu0 %2953 }
 0x43c   : > { %v7850_v49 = vpop.permute.xlu1 %2959 }
 0x43e   : > { %v7852_v5 = vpop.permute.xlu0 %2957 }
 0x440   : > { %v7854_v31 = vpop.permute.xlu1 %2963 }
 0x442   : > { %v7856_v22 = vpop.permute.xlu0 %2961 }
 0x444   : > { %v7858_v23 = vpop.permute.xlu1 %2967 }
 0x446   : > { %v7860_v28 = vpop.permute.xlu0 %2965 }
 0x448   : > { %v7862_v1 = vpop.permute.xlu1 %2971 }
 0x449   : > { %11183 = vst [vmem:[#allocation68_spill] sm:$0xff] %v7862_v1 }
 0x44a   : > { %v7864_v10 = vpop.permute.xlu0 %2969 }
 0x44b   : > { %11184 = vst [vmem:[#allocation20_spill] sm:$0xff] %v7864_v10 }
 0x44c   : > { %v7866_v15 = vpop.permute.xlu1 %2975 }
 0x44d   : > { %11185 = vst [vmem:[#allocation14_spill] sm:$0xff] %v7866_v15 }
 0x44e   : > { %v7868_v60 = vpop.permute.xlu0 %2973 }
 0x44f   : > { %11186 = vst [vmem:[#allocation23_spill] sm:$0xff] %v7868_v60  ;;  %v2649_v60 = vld [vmem:[#allocation2 + $0x21] sm:$0xff] }
 0x450   : > { %v7870_v53 = vpop.permute.xlu1 %2979 }
 0x451   : > { %11187 = vst [vmem:[#allocation28_spill] sm:$0xff] %v7870_v53 }
 0x452   : > { %v7872_v3 = vpop.permute.xlu0 %2977 }
 0x453   : > { %11188 = vst [vmem:[#allocation9_spill] sm:$0xff] %v7872_v3  ;;  %v2841_v3 = vadd.f32 %v7698_v29, %v2649_v60  ;;  %v2845_v29 = vadd.f32 %v7579_v2, %v7722_v47 }
 0x454   : > { %v7874_v21 = vpop.permute.xlu1 %2983 }
 0x455   : > { %11189 = vst [vmem:[#allocation24_spill] sm:$0xff] %v7874_v21  ;;  %v2648_v21 = vld [vmem:[#allocation2 + $0x19] sm:$0xff] }
 0x456   : > { %v7876_v7 = vpop.permute.xlu0 %2981 }
 0x457   : > { %11190 = vst [vmem:[#allocation36_spill] sm:$0xff] %v7876_v7  ;;  %v3034_v7 = vadd.f32 %v2940_v17, %v2841_v3 }
 0x458   : > { %v7878_v54 = vpop.permute.xlu1 %2987 }
 0x459   : > { %11191 = vst [vmem:[#allocation46_spill] sm:$0xff] %v7878_v54  ;;  %v2840_v54 = vadd.f32 %v7704_v59, %v2648_v21 }
 0x45a   : > { %v7880_v35 = vpop.permute.xlu0 %2985 }
 0x45b   : > { %11192 = vst [vmem:[#allocation22_spill] sm:$0xff] %v7880_v35 }
 0x45c   : > { %v7882_v46 = vpop.permute.xlu1 %2991 }
 0x45d   : > { %11193 = vst [vmem:[#allocation32_spill] sm:$0xff] %v7882_v46  ;;  %v2843_v46 = vadd.f32 %v7569_v51, %v7710_v14  ;;  %v3038_v14 = vadd.f32 %v2948_v50, %v2845_v29 }
 0x45e   : > { %v7884_v52 = vpop.permute.xlu0 %2989 }
 0x45f   : > { %11194 = vst [vmem:[#allocation44_spill] sm:$0xff] %v7884_v52  ;;  %v3033_v52 = vadd.f32 %v2938_v33, %v2840_v54  ;;  %v2846_v33 = vadd.f32 %v7594_v63, %v7730_v16 }
 0x460   : > { %v7886_v10 = vpop.permute.xlu1 %2995 }
 0x461   : > { %11195 = vst [vmem:[#allocation56_spill] sm:$0xff] %v7886_v10 }
 0x462   : > { %v7888_v15 = vpop.permute.xlu0 %2993 }
 0x463   : > { %11196 = vst [vmem:[#allocation38_spill] sm:$0xff] %v7888_v15  ;;  %v2842_v15 = vadd.f32 %v7574_v11, %v7716_v20  ;;  %v2844_v11 = vadd.f32 %v7584_v24, %v7725_v0 }
 0x464   : > { %v7890_v53 = vpop.permute.xlu1 %2999 }
 0x465   : > { %11197 = vst [vmem:[#allocation48_spill] sm:$0xff] %v7890_v53  ;;  %v3036_v53 = vadd.f32 %v2944_v39, %v2843_v46  ;;  %v3035_v60 = vadd.f32 %v2942_v26, %v2842_v15 }
 0x466   : > { %v7893_v1 = vpop.permute.xlu0 %2997 }
 0x468   : > { %v3132_v35 = vpop.permute.xlu1 %3131 }
 0x469   : > { %v7898_v62 = vadd.f32 %v3132_v35, %v3034_v7  ;;  %v3037_v35 = vadd.f32 %v2946_v45, %v2844_v11  ;;  %v2848_v11 = vadd.f32 %v7604_v12, %v7738_v37 }
 0x46a   : > { %v3130_v10 = vpop.permute.xlu0 %3129 }
 0x46b   : > { %v7902_v25 = vadd.f32 %v3130_v10, %v3033_v52  ;;  %v3333_v59 = vmul.f32 %v7898_v62, %v7898_v62  ;;  %v3259_v2 = vsel %vm3257_vm5, %v7898_v62, 0.0  ;;  %v2847_v52 = vadd.f32 %v7589_v19, %v7728_v9 }
 0x46c   : > { %v3136_v21 = vpop.permute.xlu1 %3135  ;;  %v2849_v19 = vadd.f32 %v7599_v58, %v7736_v55 }
 0x46d   : > { %v3258_v51 = vsel %vm3257_vm5, %v7902_v25, 0.0  ;;  %v3332_v54 = vmul.f32 %v7902_v25, %v7902_v25  ;;  %v7912_v20 = vadd.f32 %v3136_v21, %v3036_v53  ;;  %v3365_v24 = vsel %vm3257_vm5, %v3333_v59, 0.0 }
 0x46e   : > { %v3134_v46 = vpop.permute.xlu0 %3133  ;;  %v3260_v7 = vadd.f32 %v3259_v2, %v3258_v51  ;;  %v3040_v26 = vadd.f32 %v7842_v6, %v2847_v52  ;;  %v3039_v21 = vadd.f32 %v7844_v40, %v2846_v33  ;;  %v2851_v40 = vadd.f32 %v7609_v41, %v7744_v8 }
 0x46f   : > { %v3364_v15 = vsel %vm3257_vm5, %v3332_v54, 0.0  ;;  %v7919_v47 = vadd.f32 %v3134_v46, %v3035_v60  ;;  %v3335_v53 = vmul.f32 %v7912_v20, %v7912_v20  ;;  %v3263_v50 = vsel %vm3257_vm5, %v7912_v20, 0.0 }
 0x470   : > { %v3140_v3 = vpop.permute.xlu1 %3139  ;;  %v3366_v9 = vadd.f32 %v3365_v24, %v3364_v15  ;;  %v3042_v15 = vadd.f32 %v7846_v48, %v2849_v19 }
 0x471   : > { %v3261_v0 = vsel %vm3257_vm5, %v7919_v47, 0.0  ;;  %v3334_v10 = vmul.f32 %v7919_v47, %v7919_v47  ;;  %v7930_v17 = vadd.f32 %v3140_v3, %v3038_v14  ;;  %v3369_v59 = vsel %vm3257_vm5, %v3335_v53, 0.0 }
 0x472   : > { %v3262_v45 = vadd.f32 %v3261_v0, %v3260_v7  ;;  %v3138_v39 = vpop.permute.xlu0 %3137  ;;  %v3041_v53 = vadd.f32 %v7848_v44, %v2848_v11  ;;  %v2853_v44 = vadd.f32 %v7619_v56, %v7752_v27 }
 0x473   : > { %v3367_v29 = vsel %vm3257_vm5, %v3334_v10, 0.0  ;;  %v7940_v60 = vadd.f32 %v3138_v39, %v3037_v35  ;;  %v3337_v55 = vmul.f32 %v7930_v17, %v7930_v17  ;;  %v3267_v52 = vsel %vm3257_vm5, %v7930_v17, 0.0 }
 0x474   : > { %v3368_v63 = vadd.f32 %v3367_v29, %v3366_v9  ;;  %v3264_v16 = vadd.f32 %v3263_v50, %v3262_v45  ;;  %v3144_v51 = vpop.permute.xlu1 %3143  ;;  %v2850_v10 = vadd.f32 %v7614_v30, %v7746_v43  ;;  %v3044_v45 = vadd.f32 %v7850_v49, %v2851_v40 }
 0x475   : > { %v3265_v58 = vsel %vm3257_vm5, %v7940_v60, 0.0  ;;  %v3336_v6 = vmul.f32 %v7940_v60, %v7940_v60  ;;  %v7950_v54 = vadd.f32 %v3144_v51, %v3040_v26  ;;  %v3373_v8 = vsel %vm3257_vm5, %v3337_v55, 0.0 }
 0x476   : > { %v3266_v46 = vadd.f32 %v3265_v58, %v3264_v16  ;;  %v3370_v14 = vadd.f32 %v3369_v59, %v3368_v63  ;;  %v3142_v2 = vpop.permute.xlu0 %3141  ;;  %v3043_v29 = vadd.f32 %v7852_v5, %v2850_v10  ;;  %v2852_v16 = vadd.f32 %v7624_v38, %v7754_v4 }
 0x477   : > { %v3371_v35 = vsel %vm3257_vm5, %v3336_v6, 0.0  ;;  %v7960_v7 = vadd.f32 %v3142_v2, %v3039_v21  ;;  %v3339_v12 = vmul.f32 %v7950_v54, %v7950_v54  ;;  %v3271_v39 = vsel %vm3257_vm5, %v7950_v54, 0.0 }
 0x478   : > { %v3372_v3 = vadd.f32 %v3371_v35, %v3370_v14  ;;  %v3268_v37 = vadd.f32 %v3267_v52, %v3266_v46  ;;  %v3148_v41 = vpop.permute.xlu1 %3147  ;;  %v2855_v5 = vadd.f32 %v7629_v36, %v7760_v34  ;;  %v3046_v6 = vadd.f32 %v7854_v31, %v2853_v44 }
 0x479   : > { %v3269_v48 = vsel %vm3257_vm5, %v7960_v7, 0.0  ;;  %v3338_v24 = vmul.f32 %v7960_v7, %v7960_v7  ;;  %v7970_v0 = vadd.f32 %v3148_v41, %v3042_v15  ;;  %v3377_v21 = vsel %vm3257_vm5, %v3339_v12, 0.0 }
 0x47a   : > { %v3270_v33 = vadd.f32 %v3269_v48, %v3268_v37  ;;  %v3374_v19 = vadd.f32 %v3373_v8, %v3372_v3  ;;  %v3146_v9 = vpop.permute.xlu0 %3145  ;;  %v3045_v14 = vadd.f32 %v7856_v22, %v2852_v16  ;;  %v2854_v35 = vadd.f32 %v7634_v13, %v7762_v32 }
 0x47b   : > { %v3375_v26 = vsel %vm3257_vm5, %v3338_v24, 0.0  ;;  %v7980_v50 = vadd.f32 %v3146_v9, %v3041_v53  ;;  %v3341_v56 = vmul.f32 %v7970_v0, %v7970_v0  ;;  %v3275_v11 = vsel %vm3257_vm5, %v7970_v0, 0.0  ;;  %v11199_v9 = vld [vmem:[#allocation29_spill] sm:$0xff] }
 0x47c   : > { %v3376_v30 = vadd.f32 %v3375_v26, %v3374_v19  ;;  %v3272_v43 = vadd.f32 %v3271_v39, %v3270_v33  ;;  %v3152_v59 = vpop.permute.xlu1 %3151  ;;  %v2857_v22 = vadd.f32 %v7639_v18, %v7768_v61  ;;  %v3048_v37 = vadd.f32 %v7858_v23, %v2855_v5 }
 0x47d   : > { %v3273_v27 = vsel %vm3257_vm5, %v7980_v50, 0.0  ;;  %v3340_v49 = vmul.f32 %v7980_v50, %v7980_v50  ;;  %v7990_v63 = vadd.f32 %v3152_v59, %v3044_v45  ;;  %v3381_v34 = vsel %vm3257_vm5, %v3341_v56, 0.0 }
 0x47e   : > { %v3274_v51 = vadd.f32 %v3273_v27, %v3272_v43  ;;  %v3378_v55 = vadd.f32 %v3377_v21, %v3376_v30  ;;  %v3150_v58 = vpop.permute.xlu0 %3149  ;;  %v3047_v24 = vadd.f32 %v7860_v28, %v2854_v35  ;;  %v2856_v19 = vadd.f32 %v7644_v42, %v7770_v57  ;;  %v11198_v28 = vld [vmem:[#allocation57_spill] sm:$0xff]  ;;  %v11200_v21 = vld [vmem:[#allocation68_spill] sm:$0xff] }
 0x47f   : > { %v3379_v40 = vsel %vm3257_vm5, %v3340_v49, 0.0  ;;  %v8000_v46 = vadd.f32 %v3150_v58, %v3043_v29  ;;  %v3343_v38 = vmul.f32 %v7990_v63, %v7990_v63  ;;  %v3279_v41 = vsel %vm3257_vm5, %v7990_v63, 0.0  ;;  %v11201_v27 = vld [vmem:[#allocation20_spill] sm:$0xff] }
 0x480   : > { %v3380_v2 = vadd.f32 %v3379_v40, %v3378_v55  ;;  %v3276_v4 = vadd.f32 %v3275_v11, %v3274_v51  ;;  %v3156_v36 = vpop.permute.xlu1 %3155  ;;  %v2859_v45 = vadd.f32 %v11199_v9, %v11198_v28  ;;  %v3050_v30 = vadd.f32 %v11200_v21, %v2857_v22  ;;  %v11202_v11 = vld [vmem:[#allocation66_spill] sm:$0xff]  ;;  %v11203_v40 = vld [vmem:[#allocation35_spill] sm:$0xff]  ;;  %v11210_v28 = vld [vmem:[#allocation69_spill] sm:$0xff] }
 0x481   : > { %v3277_v31 = vsel %vm3257_vm5, %v8000_v46, 0.0  ;;  %v3342_v15 = vmul.f32 %v8000_v46, %v8000_v46  ;;  %v8010_v52 = vadd.f32 %v3156_v36, %v3046_v6  ;;  %v3385_v10 = vsel %vm3257_vm5, %v3343_v38, 0.0  ;;  %v11205_v38 = vld [vmem:[#allocation6_spill] sm:$0xff]  ;;  %v11211_v9 = vld [vmem:[#allocation41_spill] sm:$0xff]  ;;  %v11212_v21 = vld [vmem:[#allocation28_spill] sm:$0xff] }
 0x482   : > { %v3278_v53 = vadd.f32 %v3277_v31, %v3276_v4  ;;  %v3382_v3 = vadd.f32 %v3381_v34, %v3380_v2  ;;  %v3154_v12 = vpop.permute.xlu0 %3153  ;;  %v3049_v49 = vadd.f32 %v11201_v27, %v2856_v19  ;;  %v11204_v2 = vld [vmem:[#allocation52_spill] sm:$0xff] }
 0x483   : > { %v3383_v8 = vsel %vm3257_vm5, %v3342_v15, 0.0  ;;  %v8020_v48 = vadd.f32 %v3154_v12, %v3045_v14  ;;  %v3345_v18 = vmul.f32 %v8010_v52, %v8010_v52  ;;  %v3283_v43 = vsel %vm3257_vm5, %v8010_v52, 0.0  ;;  %v11206_v15 = vld [vmem:[#allocation14_spill] sm:$0xff]  ;;  %v11207_v12 = vld [vmem:[#allocation23_spill] sm:$0xff] }
 0x484   : > { %v3384_v13 = vadd.f32 %v3383_v8, %v3382_v3  ;;  %v3280_v32 = vadd.f32 %v3279_v41, %v3278_v53  ;;  %v3160_v44 = vpop.permute.xlu1 %3159  ;;  %v2858_v14 = vadd.f32 %v11203_v40, %v11202_v11  ;;  %v2861_v4 = vadd.f32 %v11205_v38, %v11204_v2  ;;  %v11216_v2 = vld [vmem:[#allocation53_spill] sm:$0xff] }
 0x485   : > { %v3281_v61 = vsel %vm3257_vm5, %v8020_v48, 0.0  ;;  %v3344_v23 = vmul.f32 %v8020_v48, %v8020_v48  ;;  %v8030_v33 = vadd.f32 %v3160_v44, %v3048_v37  ;;  %v3389_v51 = vsel %vm3257_vm5, %v3345_v18, 0.0 }
 0x486   : > { %v3282_v39 = vadd.f32 %v3281_v61, %v3280_v32  ;;  %v3386_v26 = vadd.f32 %v3385_v10, %v3384_v13  ;;  %v3158_v29 = vpop.permute.xlu0 %3157  ;;  %v3052_v35 = vadd.f32 %v11206_v15, %v2859_v45  ;;  %v3051_v37 = vadd.f32 %v11207_v12, %v2858_v14  ;;  %v11208_v61 = vld [vmem:[#allocation43_spill] sm:$0xff]  ;;  %v11215_v14 = vld [vmem:[#allocation64_spill] sm:$0xff] }
 0x487   : > { %v3387_v59 = vsel %vm3257_vm5, %v3344_v23, 0.0  ;;  %v8040_v56 = vadd.f32 %v3158_v29, %v3047_v24  ;;  %v3347_v42 = vmul.f32 %v8030_v33, %v8030_v33  ;;  %v3287_v22 = vsel %vm3257_vm5, %v8030_v33, 0.0  ;;  %v11209_v23 = vld [vmem:[#allocation25_spill] sm:$0xff] }
 0x488   : > { %v3388_v16 = vadd.f32 %v3387_v59, %v3386_v26  ;;  %v3284_v57 = vadd.f32 %v3283_v43, %v3282_v39  ;;  %v3164_v5 = vpop.permute.xlu1 %3163  ;;  %v2860_v19 = vadd.f32 %v11209_v23, %v11208_v61  ;;  %v2863_v45 = vadd.f32 %v11211_v9, %v11210_v28  ;;  %v11222_v9 = vld [vmem:[#allocation7_spill] sm:$0xff] }
 0x489   : > { %v3285_v55 = vsel %vm3257_vm5, %v8040_v56, 0.0  ;;  %v3346_v58 = vmul.f32 %v8040_v56, %v8040_v56  ;;  %v8050_v6 = vadd.f32 %v3164_v5, %v3050_v30  ;;  %v3393_v41 = vsel %vm3257_vm5, %v3347_v42, 0.0 }
 0x48a   : > { %v3286_v36 = vadd.f32 %v3285_v55, %v3284_v57  ;;  %v3390_v34 = vadd.f32 %v3389_v51, %v3388_v16  ;;  %v3162_v31 = vpop.permute.xlu0 %3161  ;;  %v3054_v30 = vadd.f32 %v11212_v21, %v2861_v4  ;;  %v2862_v38 = vadd.f32 %v11216_v2, %v11215_v14  ;;  %v11217_v4 = vld [vmem:[#allocation63_spill] sm:$0xff] }
 0x48b   : > { %v3391_v53 = vsel %vm3257_vm5, %v3346_v58, 0.0  ;;  %v8060_v3 = vadd.f32 %v3162_v31, %v3049_v49  ;;  %v3349_v13 = vmul.f32 %v8050_v6, %v8050_v6  ;;  %v3291_v43 = vsel %vm3257_vm5, %v8050_v6, 0.0  ;;  %v11213_v49 = vld [vmem:[#allocation9_spill] sm:$0xff] }
 0x48c   : > { %v3392_v8 = vadd.f32 %v3391_v53, %v3390_v34  ;;  %v3288_v24 = vadd.f32 %v3287_v22, %v3286_v36  ;;  %v3168_v10 = vpop.permute.xlu1 %3167  ;;  %v3053_v16 = vadd.f32 %v11213_v49, %v2860_v19  ;;  %v11218_v36 = vld [vmem:[#allocation19_spill] sm:$0xff]  ;;  %v11219_v22 = vld [vmem:[#allocation24_spill] sm:$0xff]  ;;  %v11226_v49 = vld [vmem:[#allocation46_spill] sm:$0xff] }
 0x48d   : > { %v3289_v32 = vsel %vm3257_vm5, %v8060_v3, 0.0  ;;  %v3348_v44 = vmul.f32 %v8060_v3, %v8060_v3  ;;  %v8070_v18 = vadd.f32 %v3168_v10, %v3052_v35  ;;  %v3397_v55 = vsel %vm3257_vm5, %v3349_v13, 0.0 }
 0x48e   : > { %v3290_v39 = vadd.f32 %v3289_v32, %v3288_v24  ;;  %v3394_v26 = vadd.f32 %v3393_v41, %v3392_v8  ;;  %v3166_v29 = vpop.permute.xlu0 %3165  ;;  %v2865_v34 = vadd.f32 %v11218_v36, %v11217_v4  ;;  %v3056_v53 = vadd.f32 %v11219_v22, %v2863_v45  ;;  %v11220_v8 = vld [vmem:[#allocation36_spill] sm:$0xff]  ;;  %v11223_v45 = vld [vmem:[#allocation37_spill] sm:$0xff]  ;;  %v11232_v22 = vld [vmem:[#allocation54_spill] sm:$0xff] }
 0x48f   : > { %v3395_v59 = vsel %vm3257_vm5, %v3348_v44, 0.0  ;;  %v8080_v27 = vadd.f32 %v3166_v29, %v3051_v37  ;;  %v3351_v57 = vmul.f32 %v8070_v18, %v8070_v18  ;;  %v3295_v12 = vsel %vm3257_vm5, %v8070_v18, 0.0  ;;  %v11225_v29 = vld [vmem:[#allocation42_spill] sm:$0xff] }
 0x490   : > { %v3396_v42 = vadd.f32 %v3395_v59, %v3394_v26  ;;  %v3292_v5 = vadd.f32 %v3291_v43, %v3290_v39  ;;  %v3172_v51 = vpop.permute.xlu1 %3171  ;;  %v3055_v24 = vadd.f32 %v11220_v8, %v2862_v38  ;;  %v2864_v39 = vadd.f32 %v11223_v45, %v11222_v9  ;;  %v11224_v26 = vld [vmem:[#allocation12_spill] sm:$0xff] }
 0x491   : > { %v3293_v58 = vsel %vm3257_vm5, %v8080_v27, 0.0  ;;  %v3350_v11 = vmul.f32 %v8080_v27, %v8080_v27  ;;  %v8090_v40 = vadd.f32 %v3172_v51, %v3054_v30  ;;  %v3401_v10 = vsel %vm3257_vm5, %v3351_v57, 0.0  ;;  %v11228_v51 = vld [vmem:[#allocation22_spill] sm:$0xff] }
 0x492   : > { %v3294_v31 = vadd.f32 %v3293_v58, %v3292_v5  ;;  %v3398_v15 = vadd.f32 %v3397_v55, %v3396_v42  ;;  %v3170_v35 = vpop.permute.xlu0 %3169  ;;  %v2867_v21 = vadd.f32 %v11225_v29, %v11224_v26  ;;  %v3057_v55 = vadd.f32 %v11228_v51, %v2864_v39 }
 0x493   : > { %11214 = vst [vmem:[#allocation67_spill] sm:$0xff] %v8090_v40  ;;  %v3399_v37 = vsel %vm3257_vm5, %v3350_v11, 0.0  ;;  %v8100_v41 = vadd.f32 %v3170_v35, %v3053_v16  ;;  %v3353_v61 = vmul.f32 %v8090_v40, %v8090_v40  ;;  %v3058_v16 = vadd.f32 %v11226_v49, %v2865_v34  ;;  %v11239_v49 = vld [vmem:[#allocation39_spill] sm:$0xff] }
 0x494   : > { %v3400_v13 = vadd.f32 %v3399_v37, %v3398_v15  ;;  %v3296_v32 = vadd.f32 %v3295_v12, %v3294_v31  ;;  %v3176_v44 = vpop.permute.xlu1 %3175  ;;  %v3299_v42 = vsel %vm3257_vm5, %v8090_v40, 0.0  ;;  %v11230_v31 = vld [vmem:[#allocation45_spill] sm:$0xff]  ;;  %v11231_v15 = vld [vmem:[#allocation62_spill] sm:$0xff] }
 0x495   : > { %v3297_v23 = vsel %vm3257_vm5, %v8100_v41, 0.0  ;;  %v3352_v19 = vmul.f32 %v8100_v41, %v8100_v41  ;;  %v8110_v28 = vadd.f32 %v3176_v44, %v3056_v53  ;;  %v3405_v38 = vsel %vm3257_vm5, %v3353_v61, 0.0  ;;  %v11233_v53 = vld [vmem:[#allocation50_spill] sm:$0xff] }
 0x496   : > { %v3298_v30 = vadd.f32 %v3297_v23, %v3296_v32  ;;  %v3402_v43 = vadd.f32 %v3401_v10, %v3400_v13  ;;  %v3174_v59 = vpop.permute.xlu0 %3173  ;;  %v2866_v35 = vadd.f32 %v11231_v15, %v11230_v31  ;;  %v2869_v12 = vadd.f32 %v11233_v53, %v11232_v22  ;;  %v11234_v10 = vld [vmem:[#allocation32_spill] sm:$0xff]  ;;  %v11244_v31 = vld [vmem:[#allocation38_spill] sm:$0xff] }
 0x497   : > { %11221 = vst [vmem:[#allocation49_spill] sm:$0xff] %v8110_v28  ;;  %v3403_v57 = vsel %vm3257_vm5, %v3352_v19, 0.0  ;;  %v8120_v5 = vadd.f32 %v3174_v59, %v3055_v24  ;;  %v3355_v11 = vmul.f32 %v8110_v28, %v8110_v28  ;;  %v3060_v13 = vadd.f32 %v11234_v10, %v2867_v21  ;;  %v11236_v23 = vld [vmem:[#allocation44_spill] sm:$0xff]  ;;  %v11238_v59 = vld [vmem:[#allocation65_spill] sm:$0xff] }
 0x498   : > { %v3404_v58 = vadd.f32 %v3403_v57, %v3402_v43  ;;  %v3300_v14 = vadd.f32 %v3299_v42, %v3298_v30  ;;  %v3180_v2 = vpop.permute.xlu1 %3179  ;;  %v3303_v32 = vsel %vm3257_vm5, %v8110_v28, 0.0  ;;  %v3059_v19 = vadd.f32 %v11236_v23, %v2866_v35  ;;  %v11240_v42 = vld [vmem:[#allocation51_spill] sm:$0xff]  ;;  %v11241_v57 = vld [vmem:[#allocation34_spill] sm:$0xff] }
 0x499   : > { %11227 = vst [vmem:[#allocation61_spill] sm:$0xff] %v8120_v5  ;;  %v3301_v4 = vsel %vm3257_vm5, %v8120_v5, 0.0  ;;  %v3354_v36 = vmul.f32 %v8120_v5, %v8120_v5  ;;  %v8130_v34 = vadd.f32 %v3180_v2, %v3058_v16  ;;  %v3409_v9 = vsel %vm3257_vm5, %v3355_v11, 0.0  ;;  %v3661_v28 = vld [vmem:[#allocation2 + $0x182] sm:$0xff] }
 0x49a   : > { %v3302_v37 = vadd.f32 %v3301_v4, %v3300_v14  ;;  %v3406_v8 = vadd.f32 %v3405_v38, %v3404_v58  ;;  %v3178_v24 = vpop.permute.xlu0 %3177  ;;  %v2868_v16 = vadd.f32 %v11239_v49, %v11238_v59  ;;  %v2871_v51 = vadd.f32 %v11241_v57, %v11240_v42  ;;  %v11242_v14 = vld [vmem:[#allocation56_spill] sm:$0xff] }
 0x49b   : > { %11229 = vst [vmem:[#allocation70_spill] sm:$0xff] %v8130_v34  ;;  %v3407_v44 = vsel %vm3257_vm5, %v3354_v36, 0.0  ;;  %v8140_v61 = vadd.f32 %v3178_v24, %v3057_v55  ;;  %v3357_v29 = vmul.f32 %v8130_v34, %v8130_v34  ;;  %v3062_v2 = vadd.f32 %v11242_v14, %v2869_v12 }
 0x49c   : > { %v3408_v45 = vadd.f32 %v3407_v44, %v3406_v8  ;;  %v3304_v39 = vadd.f32 %v3303_v32, %v3302_v37  ;;  %v3184_v26 = vpop.permute.xlu1 %3183  ;;  %v3307_v38 = vsel %vm3257_vm5, %v8130_v34, 0.0  ;;  %v3061_v15 = vadd.f32 %v11244_v31, %v2868_v16  ;;  %v11247_v32 = vld [vmem:[#allocation55_spill] sm:$0xff] }
 0x49d   : > { %11235 = vst [vmem:[#allocation10_spill] sm:$0xff] %v8140_v61  ;;  %v3305_v21 = vsel %vm3257_vm5, %v8140_v61, 0.0  ;;  %v3356_v30 = vmul.f32 %v8140_v61, %v8140_v61  ;;  %v8150_v43 = vadd.f32 %v3184_v26, %v3060_v13  ;;  %v3413_v8 = vsel %vm3257_vm5, %v3357_v29, 0.0  ;;  %v11246_v13 = vld [vmem:[#allocation60_spill] sm:$0xff] }
 0x49e   : > { %v3306_v55 = vadd.f32 %v3305_v21, %v3304_v39  ;;  %v3410_v58 = vadd.f32 %v3409_v9, %v3408_v45  ;;  %v3182_v11 = vpop.permute.xlu0 %3181  ;;  %v2870_v44 = vadd.f32 %v11247_v32, %v11246_v13  ;;  %v11248_v45 = vld [vmem:[#allocation48_spill] sm:$0xff] }
 0x49f   : > { %11237 = vst [vmem:[#allocation21_spill] sm:$0xff] %v8150_v43  ;;  %v3411_v4 = vsel %vm3257_vm5, %v3356_v30, 0.0  ;;  %v8160_v36 = vadd.f32 %v3182_v11, %v3059_v19  ;;  %v3359_v22 = vmul.f32 %v8150_v43, %v8150_v43  ;;  %v3064_v39 = vadd.f32 %v11248_v45, %v2871_v51 }
 0x4a0   : > { %v3412_v35 = vadd.f32 %v3411_v4, %v3410_v58  ;;  %v3308_v53 = vadd.f32 %v3307_v38, %v3306_v55  ;;  %v3188_v37 = vpop.permute.xlu1 %3187  ;;  %v3311_v26 = vsel %vm3257_vm5, %v8150_v43, 0.0  ;;  %v3063_v30 = vadd.f32 %v7893_v1, %v2870_v44  ;;  %v3660_v43 = vld [vmem:[#allocation2 + $0x172] sm:$0xff] }
 0x4a1   : > { %11243 = vst [vmem:[#allocation16_spill] sm:$0xff] %v8160_v36  ;;  %v3309_v12 = vsel %vm3257_vm5, %v8160_v36, 0.0  ;;  %v3358_v24 = vmul.f32 %v8160_v36, %v8160_v36  ;;  %v8170_v10 = vadd.f32 %v3188_v37, %v3062_v2  ;;  %v3417_v59 = vsel %vm3257_vm5, %v3359_v22, 0.0  ;;  %v8498_v36 = vld [vmem:[#allocation2 + $0x181] sm:$0xff] }
 0x4a2   : > { %v3310_v23 = vadd.f32 %v3309_v12, %v3308_v53  ;;  %v3414_v19 = vadd.f32 %v3413_v8, %v3412_v35  ;;  %v3186_v9 = vpop.permute.xlu0 %3185  ;;  %11270 = vst [vmem:[#allocation23_spill] sm:$0xff] %v8498_v36 }
 0x4a3   : > { %11245 = vst [vmem:[#allocation31_spill] sm:$0xff] %v8170_v10  ;;  %v3415_v29 = vsel %vm3257_vm5, %v3358_v24, 0.0  ;;  %v8178_v21 = vadd.f32 %v3186_v9, %v3061_v15  ;;  %v3361_v57 = vmul.f32 %v8170_v10, %v8170_v10  ;;  %v3315_v1 = vsel %vm3257_vm5, %v8170_v10, 0.0 }
 0x4a4   : > { %v3416_v49 = vadd.f32 %v3415_v29, %v3414_v19  ;;  %v3312_v16 = vadd.f32 %v3311_v26, %v3310_v23  ;;  %v3192_v42 = vpop.permute.xlu1 %3191 }
 0x4a5   : > { %11249 = vst [vmem:[#allocation30_spill] sm:$0xff] %v8178_v21  ;;  %v3313_v51 = vsel %vm3257_vm5, %v8178_v21, 0.0  ;;  %v3360_v55 = vmul.f32 %v8178_v21, %v8178_v21  ;;  %v8188_v58 = vadd.f32 %v3192_v42, %v3064_v39  ;;  %v3421_v35 = vsel %vm3257_vm5, %v3361_v57, 0.0 }
 0x4a6   : > { %v3314_v11 = vadd.f32 %v3313_v51, %v3312_v16  ;;  %v3418_v14 = vadd.f32 %v3417_v59, %v3416_v49  ;;  %v3190_v2 = vpop.permute.xlu0 %3189 }
 0x4a7   : > { %11250 = vst [vmem:[#allocation47_spill] sm:$0xff] %v8188_v58  ;;  %v3419_v38 = vsel %vm3257_vm5, %v3360_v55, 0.0  ;;  %v8193_v4 = vadd.f32 %v3190_v2, %v3063_v30  ;;  %v3363_v22 = vmul.f32 %v8188_v58, %v8188_v58  ;;  %v3319_v24 = vsel %vm3257_vm5, %v8188_v58, 0.0  ;;  %v3642_v55 = vld [vmem:[#allocation2 + $0x9a] sm:$0xff]  ;;  %v8315_v2 = vld [vmem:[#allocation2 + $0xb1] sm:$0xff] }
 0x4a8   : > { %v3420_v31 = vadd.f32 %v3419_v38, %v3418_v14  ;;  %v3316_v15 = vadd.f32 %v3315_v1, %v3314_v11  ;;  %v8309_v11 = vld [vmem:[#allocation2 + $0xa9] sm:$0xff] }
 0x4a9   : > { %11251 = vst [vmem:[#allocation40_spill] sm:$0xff] %v8193_v4  ;;  %v3317_v53 = vsel %vm3257_vm5, %v8193_v4, 0.0  ;;  %v3362_v37 = vmul.f32 %v8193_v4, %v8193_v4  ;;  %v3425_v23 = vsel %vm3257_vm5, %v3363_v22, 0.0  ;;  %v3643_v14 = vld [vmem:[#allocation2 + $0xaa] sm:$0xff] }
 0x4aa   : > { %v3318_v8 = vadd.f32 %v3317_v53, %v3316_v15  ;;  %v3422_v12 = vadd.f32 %v3421_v35, %v3420_v31  ;;  %v3644_v31 = vld [vmem:[#allocation2 + $0xb2] sm:$0xff]  ;;  %v8326_v35 = vld [vmem:[#allocation2 + $0xc1] sm:$0xff]  ;;  %v3659_v58 = vld [vmem:[#allocation2 + $0x16a] sm:$0xff] }
 0x4ab   : > { %v3423_v13 = vsel %vm3257_vm5, %v3362_v37, 0.0  ;;  %11254 = vst [vmem:[#allocation13_spill] sm:$0xff] %v8326_v35  ;;  %v3645_v37 = vld [vmem:[#allocation2 + $0xc2] sm:$0xff] }
 0x4ac   : > { %v3320_v32 = vadd.f32 %v3319_v24, %v3318_v8  ;;  %v3424_v44 = vadd.f32 %v3423_v13, %v3422_v12  ;;  %v8335_v12 = vld [vmem:[#allocation2 + $0xc9] sm:$0xff] }
 0x4ad   : > { %11255 = vst [vmem:[#allocation18_spill] sm:$0xff] %v8335_v12 }
 0x4ae   : > { %v3321_v19 = vrot.slane %v3320_v32, 4  ;;  %v3426_v9 = vadd.f32 %v3425_v23, %v3424_v44  ;;  %v8344_v23 = vld [vmem:[#allocation2 + $0xd9] sm:$0xff] }
 0x4af   : > { %11256 = vst [vmem:[#allocation8_spill] sm:$0xff] %v8344_v23 }
 0x4b0   : > { %v3322_v45 = vadd.f32 %v3321_v19, %v3320_v32  ;;  %v3427_v39 = vrot.slane %v3426_v9, 4  ;;  %v3646_v32 = vld [vmem:[#allocation2 + $0xca] sm:$0xff] }
 0x4b2   : > { %v3323_v26 = vrot.slane %v3322_v45, 2  ;;  %v3428_v29 = vadd.f32 %v3427_v39, %v3426_v9 }
 0x4b4   : > { %v3324_v30 = vadd.f32 %v3323_v26, %v3322_v45  ;;  %v3429_v59 = vrot.slane %v3428_v29, 2  ;;  %v3647_v45 = vld [vmem:[#allocation2 + $0xda] sm:$0xff] }
 0x4b5   : > { %v8353_v26 = vld [vmem:[#allocation2 + $0xe1] sm:$0xff] }
 0x4b6   : > { %v3325_v49 = vrot.slane %v3324_v30, 1  ;;  %v3430_v16 = vadd.f32 %v3429_v59, %v3428_v29  ;;  %11257 = vst [vmem:[#allocation26_spill] sm:$0xff] %v8353_v26  ;;  %v3648_v59 = vld [vmem:[#allocation2 + $0xe2] sm:$0xff] }
 0x4b8   : > { %v3326_v42 = vadd.f32 %v3325_v49, %v3324_v30  ;;  %v3431_v57 = vrot.slane %v3430_v16, 1 }
 0x4ba   : > { %3328 = vrot.lane.b32.xlu0 %v3326_v42, %s5765_s24  ;;  %v3432_v51 = vadd.f32 %v3431_v57, %v3430_v16  ;;  %v8362_v16 = vld [vmem:[#allocation2 + $0xf1] sm:$0xff] }
 0x4bb   : > { %11258 = vst [vmem:[#allocation17_spill] sm:$0xff] %v8362_v16 }
 0x4bc   : > { %3434 = vrot.lane.b32.xlu1 %v3432_v51, %s5765_s24  ;;  %v3649_v51 = vld [vmem:[#allocation2 + $0xf2] sm:$0xff] }
 0x4be   : > { %3470 = vrot.lane.b32.xlu0 %v7902_v25, %s5766_s25  ;;  %v3632_v25 = vld [vmem:[#allocation2 + $0x22] sm:$0xff] }
 0x4c0   : > { %3472 = vrot.lane.b32.xlu1 %v7898_v62, %s5766_s25  ;;  %v3631_v62 = vld [vmem:[#allocation2 + $0x1a] sm:$0xff] }
 0x4c2   : > { %3474 = vrot.lane.b32.xlu0 %v7919_v47, %s5766_s25  ;;  %v8251_v47 = vld [vmem:[#allocation2 + $0x31] sm:$0xff] }
 0x4c4   : > { %3476 = vrot.lane.b32.xlu1 %v7912_v20, %s5766_s25  ;;  %v3633_v20 = vld [vmem:[#allocation2 + $0x32] sm:$0xff] }
 0x4c6   : > { %3478 = vrot.lane.b32.xlu0 %v7940_v60, %s5766_s25  ;;  %v3634_v60 = vld [vmem:[#allocation2 + $0x3a] sm:$0xff] }
 0x4c8   : > { %3480 = vrot.lane.b32.xlu1 %v7930_v17, %s5766_s25  ;;  %v8255_v17 = vld [vmem:[#allocation2 + $0x39] sm:$0xff] }
 0x4ca   : > { %3482 = vrot.lane.b32.xlu0 %v7960_v7, %s5766_s25  ;;  %v3635_v7 = vld [vmem:[#allocation2 + $0x4a] sm:$0xff] }
 0x4cc   : > { %3484 = vrot.lane.b32.xlu1 %v7950_v54, %s5766_s25  ;;  %v8260_v54 = vld [vmem:[#allocation2 + $0x49] sm:$0xff] }
 0x4ce   : > { %3486 = vrot.lane.b32.xlu0 %v7980_v50, %s5766_s25  ;;  %v3636_v50 = vld [vmem:[#allocation2 + $0x52] sm:$0xff] }
 0x4d0   : > { %3488 = vrot.lane.b32.xlu1 %v7970_v0, %s5766_s25  ;;  %v8267_v0 = vld [vmem:[#allocation2 + $0x51] sm:$0xff] }
 0x4d2   : > { %3490 = vrot.lane.b32.xlu0 %v8000_v46, %s5766_s25  ;;  %v3637_v46 = vld [vmem:[#allocation2 + $0x62] sm:$0xff] }
 0x4d4   : > { %3492 = vrot.lane.b32.xlu1 %v7990_v63, %s5766_s25  ;;  %v8273_v63 = vld [vmem:[#allocation2 + $0x61] sm:$0xff] }
 0x4d6   : > { %3494 = vrot.lane.b32.xlu0 %v8020_v48, %s5766_s25  ;;  %v3638_v48 = vld [vmem:[#allocation2 + $0x6a] sm:$0xff] }
 0x4d8   : > { %3496 = vrot.lane.b32.xlu1 %v8010_v52, %s5766_s25  ;;  %v8279_v52 = vld [vmem:[#allocation2 + $0x69] sm:$0xff] }
 0x4da   : > { %3498 = vrot.lane.b32.xlu0 %v8040_v56, %s5766_s25  ;;  %v3639_v56 = vld [vmem:[#allocation2 + $0x7a] sm:$0xff] }
 0x4dc   : > { %3500 = vrot.lane.b32.xlu1 %v8030_v33, %s5766_s25  ;;  %v8285_v33 = vld [vmem:[#allocation2 + $0x79] sm:$0xff] }
 0x4de   : > { %3502 = vrot.lane.b32.xlu0 %v8060_v3, %s5766_s25  ;;  %v3640_v3 = vld [vmem:[#allocation2 + $0x82] sm:$0xff] }
 0x4e0   : > { %3504 = vrot.lane.b32.xlu1 %v8050_v6, %s5766_s25  ;;  %v8291_v6 = vld [vmem:[#allocation2 + $0x81] sm:$0xff] }
 0x4e2   : > { %3506 = vrot.lane.b32.xlu0 %v8080_v27, %s5766_s25  ;;  %v3641_v27 = vld [vmem:[#allocation2 + $0x92] sm:$0xff] }
 0x4e4   : > { %3508 = vrot.lane.b32.xlu1 %v8070_v18, %s5766_s25  ;;  %v8297_v18 = vld [vmem:[#allocation2 + $0x91] sm:$0xff] }
 0x4e6   : > { %3510 = vrot.lane.b32.xlu0 %v8100_v41, %s5766_s25  ;;  %v8303_v41 = vld [vmem:[#allocation2 + $0x99] sm:$0xff] }
 0x4e8   : > { %3695 = vrot.lane.b32.xlu1 %v3631_v62, %s5761_s20 }
 0x4ea   : > { %3697 = vrot.lane.b32.xlu0 %v3632_v25, %s5761_s20  ;;  %v8371_v25 = vld [vmem:[#allocation2 + $0xf9] sm:$0xff] }
 0x4eb   : > { %11259 = vst [vmem:[#allocation33_spill] sm:$0xff] %v8371_v25 }
 0x4ec   : > { %3699 = vrot.lane.b32.xlu1 %v3633_v20, %s5761_s20 }
 0x4ee   : > { %3887 = vrot.lane.b32.xlu0 %v8251_v47, %s5760_s19 }
 0x4f0   : > { %3889 = vrot.lane.b32.xlu1 %v8255_v17, %s5760_s19 }
 0x4f2   : > { %3701 = vrot.lane.b32.xlu0 %v3634_v60, %s5761_s20 }
 0x4f4   : > { %3891 = vrot.lane.b32.xlu1 %v8260_v54, %s5760_s19 }
 0x4f6   : > { %4079 = vrot.lane.b32.xlu0 %v3633_v20, %s5762_s21 }
 0x4f8   : > { %4081 = vrot.lane.b32.xlu1 %v3634_v60, %s5762_s21 }
 0x4fa   : > { %3703 = vrot.lane.b32.xlu0 %v3635_v7, %s5761_s20 }
 0x4fc   : > { %3893 = vrot.lane.b32.xlu1 %v8267_v0, %s5760_s19 }
 0x4fe   : > { %4083 = vrot.lane.b32.xlu0 %v3635_v7, %s5762_s21  ;;  %v3650_v7 = vld [vmem:[#allocation2 + $0xfa] sm:$0xff] }
 0x500   : > { %3705 = vrot.lane.b32.xlu1 %v3636_v50, %s5761_s20 }
 0x502   : > { %3895 = vrot.lane.b32.xlu0 %v8273_v63, %s5760_s19 }
 0x504   : > { %4085 = vrot.lane.b32.xlu1 %v3636_v50, %s5762_s21 }
 0x506   : > { %3707 = vrot.lane.b32.xlu0 %v3637_v46, %s5761_s20 }
 0x508   : > { %3897 = vrot.lane.b32.xlu1 %v8279_v52, %s5760_s19 }
 0x50a   : > { %4087 = vrot.lane.b32.xlu0 %v3637_v46, %s5762_s21  ;;  %v8380_v46 = vld [vmem:[#allocation2 + $0x109] sm:$0xff] }
 0x50b   : > { %11260 = vst [vmem:[#allocation15_spill] sm:$0xff] %v8380_v46 }
 0x50c   : > { %3709 = vrot.lane.b32.xlu1 %v3638_v48, %s5761_s20 }
 0x50e   : > { %3899 = vrot.lane.b32.xlu0 %v8285_v33, %s5760_s19 }
 0x510   : > { %4089 = vrot.lane.b32.xlu1 %v3638_v48, %s5762_s21 }
 0x512   : > { %3711 = vrot.lane.b32.xlu0 %v3639_v56, %s5761_s20 }
 0x514   : > { %3901 = vrot.lane.b32.xlu1 %v8291_v6, %s5760_s19 }
 0x516   : > { %4091 = vrot.lane.b32.xlu0 %v3639_v56, %s5762_s21 }
 0x518   : > { %3713 = vrot.lane.b32.xlu1 %v3640_v3, %s5761_s20 }
 0x51a   : > { %3903 = vrot.lane.b32.xlu0 %v8297_v18, %s5760_s19 }
 0x51c   : > { %4093 = vrot.lane.b32.xlu1 %v3640_v3, %s5762_s21  ;;  %v3651_v3 = vld [vmem:[#allocation2 + $0x10a] sm:$0xff] }
 0x51e   : > { %3715 = vrot.lane.b32.xlu0 %v3641_v27, %s5761_s20 }
 0x520   : > { %3905 = vrot.lane.b32.xlu1 %v8303_v41, %s5760_s19 }
 0x522   : > { %4095 = vrot.lane.b32.xlu0 %v3641_v27, %s5762_s21 }
 0x524   : > { %3717 = vrot.lane.b32.xlu1 %v3642_v55, %s5761_s20 }
 0x526   : > { %3907 = vrot.lane.b32.xlu0 %v8309_v11, %s5760_s19 }
 0x528   : > { %4097 = vrot.lane.b32.xlu1 %v3642_v55, %s5762_s21  ;;  %v8390_v55 = vld [vmem:[#allocation2 + $0x111] sm:$0xff] }
 0x529   : > { %11261 = vst [vmem:[#allocation57_spill] sm:$0xff] %v8390_v55 }
 0x52a   : > { %3719 = vrot.lane.b32.xlu0 %v3643_v14, %s5761_s20 }
 0x52c   : > { %3909 = vrot.lane.b32.xlu1 %v8315_v2, %s5760_s19  ;;  %v8319_v1 = vpop.permute.xlu0 %3328 }
 0x52d   : > { %11252 = vst [vmem:[#allocation59_spill] sm:$0xff] %v8319_v1 }
 0x52e   : > { %v8321_v38 = vpop.permute.xlu1 %3434  ;;  %4099 = vrot.lane.b32.xlu0 %v3643_v14, %s5762_s21 }
 0x52f   : > { %11253 = vst [vmem:[#allocation58_spill] sm:$0xff] %v8321_v38 }
 0x530   : > { %3721 = vrot.lane.b32.xlu1 %v3644_v31, %s5761_s20  ;;  %v3471_v15 = vpop.permute.xlu0 %3470 }
 0x531   : > { %3567 = vst.msk [vmem:[#allocation3 + $0x200] sm:$0xff] %vm1665_vm3, %v3471_v15  ;;  %v3652_v15 = vld [vmem:[#allocation2 + $0x112] sm:$0xff] }
 0x532   : > { %v3473_v22 = vpop.permute.xlu1 %3472  ;;  %3911 = vrot.lane.b32.xlu0 %v8326_v35, %s5760_s19 }
 0x533   : > { %3568 = vst.msk [vmem:[#allocation3 + $0x208] sm:$0xff] %vm1665_vm3, %v3473_v22 }
 0x534   : > { %4101 = vrot.lane.b32.xlu1 %v3644_v31, %s5762_s21  ;;  %v3475_v53 = vpop.permute.xlu0 %3474 }
 0x535   : > { %3569 = vst.msk [vmem:[#allocation3 + $0x210] sm:$0xff] %vm1665_vm3, %v3475_v53  ;;  %v8402_v53 = vld [vmem:[#allocation2 + $0x121] sm:$0xff] }
 0x536   : > { %v3477_v8 = vpop.permute.xlu1 %3476  ;;  %3723 = vrot.lane.b32.xlu0 %v3645_v37, %s5761_s20  ;;  %11262 = vst [vmem:[#allocation29_spill] sm:$0xff] %v8402_v53 }
 0x537   : > { %3570 = vst.msk [vmem:[#allocation3 + $0x218] sm:$0xff] %vm1665_vm3, %v3477_v8 }
 0x538   : > { %3913 = vrot.lane.b32.xlu1 %v8335_v12, %s5760_s19  ;;  %v3479_v24 = vpop.permute.xlu0 %3478 }
 0x539   : > { %3571 = vst.msk [vmem:[#allocation3 + $0x220] sm:$0xff] %vm1665_vm3, %v3479_v24  ;;  %v3653_v24 = vld [vmem:[#allocation2 + $0x122] sm:$0xff] }
 0x53a   : > { %v3481_v13 = vpop.permute.xlu1 %3480  ;;  %4103 = vrot.lane.b32.xlu0 %v3645_v37, %s5762_s21 }
 0x53b   : > { %3572 = vst.msk [vmem:[#allocation3 + $0x228] sm:$0xff] %vm1665_vm3, %v3481_v13 }
 0x53c   : > { %3725 = vrot.lane.b32.xlu1 %v3646_v32, %s5761_s20  ;;  %v3483_v44 = vpop.permute.xlu0 %3482 }
 0x53d   : > { %3573 = vst.msk [vmem:[#allocation3 + $0x230] sm:$0xff] %vm1665_vm3, %v3483_v44 }
 0x53e   : > { %v3485_v19 = vpop.permute.xlu1 %3484  ;;  %3915 = vrot.lane.b32.xlu0 %v8344_v23, %s5760_s19 }
 0x53f   : > { %3574 = vst.msk [vmem:[#allocation3 + $0x238] sm:$0xff] %vm1665_vm3, %v3485_v19 }
 0x540   : > { %4105 = vrot.lane.b32.xlu1 %v3646_v32, %s5762_s21  ;;  %v3487_v9 = vpop.permute.xlu0 %3486  ;;  %v8414_v32 = vld [vmem:[#allocation2 + $0x129] sm:$0xff] }
 0x541   : > { %3575 = vst.msk [vmem:[#allocation3 + $0x240] sm:$0xff] %vm1665_vm3, %v3487_v9  ;;  %11263 = vst [vmem:[#allocation68_spill] sm:$0xff] %v8414_v32  ;;  %v3654_v9 = vld [vmem:[#allocation2 + $0x12a] sm:$0xff] }
 0x542   : > { %v3489_v39 = vpop.permute.xlu1 %3488  ;;  %3727 = vrot.lane.b32.xlu0 %v3647_v45, %s5761_s20 }
 0x543   : > { %3576 = vst.msk [vmem:[#allocation3 + $0x248] sm:$0xff] %vm1665_vm3, %v3489_v39  ;;  %v8426_v39 = vld [vmem:[#allocation2 + $0x139] sm:$0xff] }
 0x544   : > { %3917 = vrot.lane.b32.xlu1 %v8353_v26, %s5760_s19  ;;  %v3491_v29 = vpop.permute.xlu0 %3490  ;;  %11264 = vst [vmem:[#allocation20_spill] sm:$0xff] %v8426_v39 }
 0x545   : > { %3577 = vst.msk [vmem:[#allocation3 + $0x250] sm:$0xff] %vm1665_vm3, %v3491_v29 }
 0x546   : > { %v3493_v30 = vpop.permute.xlu1 %3492  ;;  %4107 = vrot.lane.b32.xlu0 %v3647_v45, %s5762_s21 }
 0x547   : > { %3578 = vst.msk [vmem:[#allocation3 + $0x258] sm:$0xff] %vm1665_vm3, %v3493_v30 }
 0x548   : > { %3729 = vrot.lane.b32.xlu1 %v3648_v59, %s5761_s20  ;;  %v3495_v49 = vpop.permute.xlu0 %3494 }
 0x549   : > { %3579 = vst.msk [vmem:[#allocation3 + $0x260] sm:$0xff] %vm1665_vm3, %v3495_v49 }
 0x54a   : > { %v3497_v42 = vpop.permute.xlu1 %3496  ;;  %3919 = vrot.lane.b32.xlu0 %v8362_v16, %s5760_s19 }
 0x54b   : > { %3580 = vst.msk [vmem:[#allocation3 + $0x268] sm:$0xff] %vm1665_vm3, %v3497_v42  ;;  %v8438_v42 = vld [vmem:[#allocation2 + $0x141] sm:$0xff] }
 0x54c   : > { %4109 = vrot.lane.b32.xlu1 %v3648_v59, %s5762_s21  ;;  %v3499_v57 = vpop.permute.xlu0 %3498  ;;  %v3655_v59 = vld [vmem:[#allocation2 + $0x13a] sm:$0xff]  ;;  %11265 = vst [vmem:[#allocation66_spill] sm:$0xff] %v8438_v42 }
 0x54d   : > { %3581 = vst.msk [vmem:[#allocation3 + $0x270] sm:$0xff] %vm1665_vm3, %v3499_v57 }
 0x54e   : > { %v3501_v62 = vpop.permute.xlu1 %3500  ;;  %3731 = vrot.lane.b32.xlu0 %v3649_v51, %s5761_s20 }
 0x54f   : > { %3582 = vst.msk [vmem:[#allocation3 + $0x278] sm:$0xff] %vm1665_vm3, %v3501_v62  ;;  %v3656_v62 = vld [vmem:[#allocation2 + $0x142] sm:$0xff] }
 0x550   : > { %3921 = vrot.lane.b32.xlu1 %v8371_v25, %s5760_s19  ;;  %v3503_v20 = vpop.permute.xlu0 %3502 }
 0x551   : > { %3583 = vst.msk [vmem:[#allocation3 + $0x280] sm:$0xff] %vm1665_vm3, %v3503_v20 }
 0x552   : > { %v3505_v60 = vpop.permute.xlu1 %3504  ;;  %4111 = vrot.lane.b32.xlu0 %v3649_v51, %s5762_s21 }
 0x553   : > { %3584 = vst.msk [vmem:[#allocation3 + $0x288] sm:$0xff] %vm1665_vm3, %v3505_v60  ;;  %v8450_v60 = vld [vmem:[#allocation2 + $0x151] sm:$0xff] }
 0x554   : > { %3733 = vrot.lane.b32.xlu1 %v3650_v7, %s5761_s20  ;;  %v3507_v50 = vpop.permute.xlu0 %3506  ;;  %11266 = vst [vmem:[#allocation35_spill] sm:$0xff] %v8450_v60 }
 0x555   : > { %3585 = vst.msk [vmem:[#allocation3 + $0x290] sm:$0xff] %vm1665_vm3, %v3507_v50 }
 0x556   : > { %v3509_v48 = vpop.permute.xlu1 %3508  ;;  %3923 = vrot.lane.b32.xlu0 %v8380_v46, %s5760_s19 }
 0x557   : > { %3586 = vst.msk [vmem:[#allocation3 + $0x298] sm:$0xff] %vm1665_vm3, %v3509_v48  ;;  %v3657_v48 = vld [vmem:[#allocation2 + $0x152] sm:$0xff] }
 0x558   : > { %4113 = vrot.lane.b32.xlu1 %v3650_v7, %s5762_s21  ;;  %v3511_v56 = vpop.permute.xlu0 %3510 }
 0x559   : > { %3587 = vst.msk [vmem:[#allocation3 + $0x2a0] sm:$0xff] %vm1665_vm3, %v3511_v56 }
 0x55a   : > { %v8387_v27 = vpop.permute.xlu1 %3695  ;;  %3735 = vrot.lane.b32.xlu0 %v3651_v3, %s5761_s20 }
 0x55c   : > { %3925 = vrot.lane.b32.xlu1 %v8390_v55, %s5760_s19  ;;  %v8394_v14 = vpop.permute.xlu0 %3697 }
 0x55e   : > { %v8396_v31 = vpop.permute.xlu1 %3699  ;;  %4115 = vrot.lane.b32.xlu0 %v3651_v3, %s5762_s21  ;;  %v8462_v3 = vld [vmem:[#allocation2 + $0x159] sm:$0xff] }
 0x55f   : > { %11267 = vst [vmem:[#allocation52_spill] sm:$0xff] %v8462_v3 }
 0x560   : > { %3737 = vrot.lane.b32.xlu1 %v3652_v15, %s5761_s20  ;;  %v8400_v22 = vpop.permute.xlu0 %3887 }
 0x562   : > { %v8404_v37 = vpop.permute.xlu1 %3889  ;;  %3927 = vrot.lane.b32.xlu0 %v8402_v53, %s5760_s19 }
 0x564   : > { %4117 = vrot.lane.b32.xlu1 %v3652_v15, %s5762_s21  ;;  %v8409_v8 = vpop.permute.xlu0 %3701 }
 0x566   : > { %v8411_v13 = vpop.permute.xlu1 %3891  ;;  %3739 = vrot.lane.b32.xlu0 %v3653_v24, %s5761_s20 }
 0x568   : > { %3929 = vrot.lane.b32.xlu1 %v8414_v32, %s5760_s19  ;;  %v8418_v44 = vpop.permute.xlu0 %4079  ;;  %v4046_v32 = vld [vmem:[#allocation2 + $0x1a2] sm:$0xff] }
 0x56a   : > { %v8420_v19 = vpop.permute.xlu1 %4081  ;;  %4119 = vrot.lane.b32.xlu0 %v3653_v24, %s5762_s21 }
 0x56c   : > { %3741 = vrot.lane.b32.xlu1 %v3654_v9, %s5761_s20  ;;  %v8424_v45 = vpop.permute.xlu0 %3703 }
 0x56e   : > { %v8428_v29 = vpop.permute.xlu1 %3893  ;;  %3931 = vrot.lane.b32.xlu0 %v8426_v39, %s5760_s19 }
 0x570   : > { %4121 = vrot.lane.b32.xlu1 %v3654_v9, %s5762_s21  ;;  %v8433_v30 = vpop.permute.xlu0 %4083  ;;  %v3658_v9 = vld [vmem:[#allocation2 + $0x15a] sm:$0xff] }
 0x572   : > { %v8435_v49 = vpop.permute.xlu1 %3705  ;;  %3743 = vrot.lane.b32.xlu0 %v3655_v59, %s5761_s20 }
 0x574   : > { %3933 = vrot.lane.b32.xlu1 %v8438_v42, %s5760_s19  ;;  %v8442_v57 = vpop.permute.xlu0 %3895 }
 0x576   : > { %v8444_v51 = vpop.permute.xlu1 %4085  ;;  %4123 = vrot.lane.b32.xlu0 %v3655_v59, %s5762_s21 }
 0x578   : > { %3745 = vrot.lane.b32.xlu1 %v3656_v62, %s5761_s20  ;;  %v8448_v20 = vpop.permute.xlu0 %3707 }
 0x57a   : > { %v8452_v7 = vpop.permute.xlu1 %3897  ;;  %3935 = vrot.lane.b32.xlu0 %v8450_v60, %s5760_s19 }
 0x57c   : > { %4125 = vrot.lane.b32.xlu1 %v3656_v62, %s5762_s21  ;;  %v8457_v50 = vpop.permute.xlu0 %4087  ;;  %v8474_v62 = vld [vmem:[#allocation2 + $0x169] sm:$0xff] }
 0x57d   : > { %11268 = vst [vmem:[#allocation6_spill] sm:$0xff] %v8474_v62 }
 0x57e   : > { %v8459_v56 = vpop.permute.xlu1 %3709  ;;  %3747 = vrot.lane.b32.xlu0 %v3657_v48, %s5761_s20 }
 0x580   : > { %3937 = vrot.lane.b32.xlu1 %v8462_v3, %s5760_s19  ;;  %v8466_v15 = vpop.permute.xlu0 %3899 }
 0x582   : > { %v8468_v24 = vpop.permute.xlu1 %4089  ;;  %4127 = vrot.lane.b32.xlu0 %v3657_v48, %s5762_s21  ;;  %v8486_v48 = vld [vmem:[#allocation2 + $0x171] sm:$0xff] }
 0x583   : > { %11269 = vst [vmem:[#allocation14_spill] sm:$0xff] %v8486_v48 }
 0x584   : > { %3749 = vrot.lane.b32.xlu1 %v3658_v9, %s5761_s20  ;;  %v8472_v59 = vpop.permute.xlu0 %3711 }
 0x586   : > { %v8476_v38 = vpop.permute.xlu1 %3901  ;;  %3939 = vrot.lane.b32.xlu0 %v8474_v62, %s5760_s19  ;;  %v3853_v62 = vld [vmem:[#allocation2 + $0x199] sm:$0xff] }
 0x588   : > { %4129 = vrot.lane.b32.xlu1 %v3658_v9, %s5762_s21  ;;  %v8481_v1 = vpop.permute.xlu0 %4091 }
 0x58a   : > { %v8483_v4 = vpop.permute.xlu1 %3713  ;;  %3751 = vrot.lane.b32.xlu0 %v3659_v58, %s5761_s20 }
 0x58c   : > { %3941 = vrot.lane.b32.xlu1 %v8486_v48, %s5760_s19  ;;  %v8490_v10 = vpop.permute.xlu0 %3903 }
 0x58e   : > { %v8492_v21 = vpop.permute.xlu1 %4093  ;;  %4131 = vrot.lane.b32.xlu0 %v3659_v58, %s5762_s21  ;;  %v8510_v58 = vld [vmem:[#allocation2 + $0x189] sm:$0xff] }
 0x58f   : > { %11271 = vst [vmem:[#allocation43_spill] sm:$0xff] %v8510_v58 }
 0x590   : > { %3753 = vrot.lane.b32.xlu1 %v3660_v43, %s5761_s20  ;;  %v8496_v9 = vpop.permute.xlu0 %3715 }
 0x592   : > { %v8500_v34 = vpop.permute.xlu1 %3905  ;;  %3943 = vrot.lane.b32.xlu0 %v8498_v36, %s5760_s19  ;;  %v3662_v36 = vld [vmem:[#allocation2 + $0x18a] sm:$0xff] }
 0x594   : > { %4133 = vrot.lane.b32.xlu1 %v3660_v43, %s5762_s21  ;;  %v8505_v61 = vpop.permute.xlu0 %4095 }
 0x596   : > { %v8507_v5 = vpop.permute.xlu1 %3717  ;;  %3755 = vrot.lane.b32.xlu0 %v3661_v28, %s5761_s20 }
 0x598   : > { %3945 = vrot.lane.b32.xlu1 %v8510_v58, %s5760_s19  ;;  %v8514_v40 = vpop.permute.xlu0 %3907  ;;  %v3854_v58 = vld [vmem:[#allocation2 + $0x1a1] sm:$0xff] }
 0x59a   : > { %v8516_v48 = vpop.permute.xlu1 %4097  ;;  %4135 = vrot.lane.b32.xlu0 %v3661_v28, %s5762_s21  ;;  %v4045_v28 = vld [vmem:[#allocation2 + $0x19a] sm:$0xff] }
 0x59c   : > { %3757 = vrot.lane.b32.xlu1 %v3662_v36, %s5761_s20  ;;  %v8520_v43 = vpop.permute.xlu0 %3719 }
 0x59e   : > { %v8522_v3 = vpop.permute.xlu1 %3909  ;;  %3947 = vrot.lane.b32.xlu0 %v3853_v62, %s5760_s19 }
 0x5a0   : > { %4137 = vrot.lane.b32.xlu1 %v3662_v36, %s5762_s21  ;;  %v8526_v60 = vpop.permute.xlu0 %4099 }
 0x5a2   : > { %v8528_v42 = vpop.permute.xlu1 %3721  ;;  %3949 = vrot.lane.b32.xlu0 %v3854_v58, %s5760_s19 }
 0x5a4   : > { %4139 = vrot.lane.b32.xlu1 %v4045_v28, %s5762_s21  ;;  %v8532_v39 = vpop.permute.xlu0 %3911 }
 0x5a6   : > { %v8534_v53 = vpop.permute.xlu1 %4101  ;;  %4141 = vrot.lane.b32.xlu0 %v4046_v32, %s5762_s21 }
 0x5a8   : > { %v8537_v62 = vpop.permute.xlu0 %3723 }
 0x5aa   : > { %v8539_v36 = vpop.permute.xlu1 %3913 }
 0x5ab   : > { %11272 = vst [vmem:[#allocation25_spill] sm:$0xff] %v8539_v36 }
 0x5ac   : > { %v8541_v55 = vpop.permute.xlu0 %4103 }
 0x5ad   : > { %11273 = vst [vmem:[#allocation69_spill] sm:$0xff] %v8541_v55 }
 0x5ae   : > { %v8543_v46 = vpop.permute.xlu1 %3725 }
 0x5af   : > { %11274 = vst [vmem:[#allocation41_spill] sm:$0xff] %v8543_v46 }
 0x5b0   : > { %v8545_v25 = vpop.permute.xlu0 %3915 }
 0x5b1   : > { %11275 = vst [vmem:[#allocation28_spill] sm:$0xff] %v8545_v25 }
 0x5b2   : > { %v8547_v58 = vpop.permute.xlu1 %4105 }
 0x5b3   : > { %11276 = vst [vmem:[#allocation9_spill] sm:$0xff] %v8547_v58 }
 0x5b4   : > { %v8549_v28 = vpop.permute.xlu0 %3727 }
 0x5b5   : > { %11277 = vst [vmem:[#allocation64_spill] sm:$0xff] %v8549_v28 }
 0x5b6   : > { %v8551_v16 = vpop.permute.xlu1 %3917 }
 0x5b7   : > { %11278 = vst [vmem:[#allocation53_spill] sm:$0xff] %v8551_v16 }
 0x5b8   : > { %v8553_v26 = vpop.permute.xlu0 %4107 }
 0x5b9   : > { %11279 = vst [vmem:[#allocation63_spill] sm:$0xff] %v8553_v26 }
 0x5ba   : > { %v8555_v23 = vpop.permute.xlu1 %3729 }
 0x5bb   : > { %11280 = vst [vmem:[#allocation19_spill] sm:$0xff] %v8555_v23  ;;  %v3599_v23 = vld [vmem:[#allocation2 + $0x19] sm:$0xff] }
 0x5bc   : > { %v8557_v32 = vpop.permute.xlu0 %3919 }
 0x5bd   : > { %11281 = vst [vmem:[#allocation24_spill] sm:$0xff] %v8557_v32  ;;  %v3600_v32 = vld [vmem:[#allocation2 + $0x21] sm:$0xff] }
 0x5be   : > { %v8559_v12 = vpop.permute.xlu1 %4109 }
 0x5bf   : > { %11282 = vst [vmem:[#allocation36_spill] sm:$0xff] %v8559_v12  ;;  %v3791_v12 = vadd.f32 %v8387_v27, %v3599_v23 }
 0x5c0   : > { %v8561_v36 = vpop.permute.xlu0 %3731 }
 0x5c1   : > { %11283 = vst [vmem:[#allocation7_spill] sm:$0xff] %v8561_v36  ;;  %v3792_v36 = vadd.f32 %v8394_v14, %v3600_v32  ;;  %v3794_v14 = vadd.f32 %v8255_v17, %v8409_v8  ;;  %v3796_v17 = vadd.f32 %v8267_v0, %v8435_v49  ;;  %v3799_v32 = vadd.f32 %v8285_v33, %v8472_v59 }
 0x5c2   : > { %v8563_v55 = vpop.permute.xlu1 %3921 }
 0x5c3   : > { %11284 = vst [vmem:[#allocation37_spill] sm:$0xff] %v8563_v55  ;;  %v3793_v55 = vadd.f32 %v8251_v47, %v8396_v31  ;;  %v3795_v31 = vadd.f32 %v8260_v54, %v8424_v45  ;;  %v3988_v0 = vadd.f32 %v8452_v7, %v3796_v17  ;;  %v3991_v33 = vadd.f32 %v8490_v10, %v3799_v32 }
 0x5c4   : > { %v8565_v46 = vpop.permute.xlu0 %4111 }
 0x5c6   : > { %v8567_v25 = vpop.permute.xlu1 %3733 }
 0x5c7   : > { %11285 = vst [vmem:[#allocation12_spill] sm:$0xff] %v8567_v25  ;;  %v3983_v25 = vadd.f32 %v8400_v22, %v3791_v12 }
 0x5c8   : > { %v8569_v58 = vpop.permute.xlu0 %3923 }
 0x5c9   : > { %11286 = vst [vmem:[#allocation42_spill] sm:$0xff] %v8569_v58  ;;  %v3984_v58 = vadd.f32 %v8404_v37, %v3792_v36 }
 0x5ca   : > { %v8571_v28 = vpop.permute.xlu1 %4113 }
 0x5cb   : > { %11287 = vst [vmem:[#allocation46_spill] sm:$0xff] %v8571_v28  ;;  %v8592_v23 = vadd.f32 %v8420_v19, %v3984_v58 }
 0x5cc   : > { %v8573_v16 = vpop.permute.xlu0 %3735 }
 0x5cd   : > { %11288 = vst [vmem:[#allocation22_spill] sm:$0xff] %v8573_v16  ;;  %v3985_v16 = vadd.f32 %v8411_v13, %v3793_v55  ;;  %v3986_v55 = vadd.f32 %v8428_v29, %v3794_v14  ;;  %v4283_v22 = vmul.f32 %v8592_v23, %v8592_v23  ;;  %v4209_v54 = vsel %vm4207_vm6, %v8592_v23, 0.0 }
 0x5ce   : > { %v8575_v26 = vpop.permute.xlu1 %3925 }
 0x5cf   : > { %11289 = vst [vmem:[#allocation45_spill] sm:$0xff] %v8575_v26  ;;  %v8589_v26 = vadd.f32 %v8418_v44, %v3983_v25  ;;  %v8599_v47 = vadd.f32 %v8433_v30, %v3985_v16  ;;  %v3987_v16 = vadd.f32 %v8442_v57, %v3795_v31  ;;  %v8616_v8 = vadd.f32 %v8444_v51, %v3986_v55 }
 0x5d0   : > { %v8579_v35 = vpop.permute.xlu0 %4115  ;;  %v3797_v44 = vadd.f32 %v8273_v63, %v8448_v20  ;;  %v4315_v49 = vsel %vm4207_vm6, %v4283_v22, 0.0  ;;  %v3798_v57 = vadd.f32 %v8279_v52, %v8459_v56 }
 0x5d1   : > { %v4282_v25 = vmul.f32 %v8589_v26, %v8589_v26  ;;  %v4284_v13 = vmul.f32 %v8599_v47, %v8599_v47  ;;  %v4208_v45 = vsel %vm4207_vm6, %v8589_v26, 0.0  ;;  %v8630_v29 = vadd.f32 %v8457_v50, %v3987_v16 }
 0x5d2   : > { %v8585_v28 = vpop.permute.xlu1 %3737  ;;  %v3989_v51 = vadd.f32 %v8466_v15, %v3797_v44  ;;  %v4210_v20 = vadd.f32 %v4209_v54, %v4208_v45  ;;  %v4211_v36 = vsel %vm4207_vm6, %v8599_v47, 0.0  ;;  %v4285_v7 = vmul.f32 %v8616_v8, %v8616_v8 }
 0x5d3   : > { %v4314_v30 = vsel %vm4207_vm6, %v4282_v25, 0.0  ;;  %v8644_v50 = vadd.f32 %v8468_v24, %v3988_v0  ;;  %v4317_v58 = vsel %vm4207_vm6, %v4284_v13, 0.0  ;;  %v3990_v52 = vadd.f32 %v8476_v38, %v3798_v57 }
 0x5d4   : > { %v8594_v27 = vpop.permute.xlu0 %3927  ;;  %v8651_v56 = vadd.f32 %v8481_v1, %v3989_v51  ;;  %v4316_v14 = vadd.f32 %v4315_v49, %v4314_v30  ;;  %v4213_v31 = vsel %vm4207_vm6, %v8616_v8, 0.0  ;;  %v4286_v24 = vmul.f32 %v8630_v29, %v8630_v29 }
 0x5d5   : > { %v4212_v55 = vadd.f32 %v4211_v36, %v4210_v20  ;;  %v3800_v25 = vadd.f32 %v8291_v6, %v8483_v4  ;;  %v8663_v38 = vadd.f32 %v8492_v21, %v3990_v52  ;;  %v4319_v22 = vsel %vm4207_vm6, %v4285_v7, 0.0 }
 0x5d6   : > { %v8601_v12 = vpop.permute.xlu1 %4117  ;;  %v4318_v59 = vadd.f32 %v4317_v58, %v4316_v14  ;;  %v4215_v17 = vsel %vm4207_vm6, %v8630_v29, 0.0  ;;  %v4287_v16 = vmul.f32 %v8644_v50, %v8644_v50  ;;  %v4288_v4 = vmul.f32 %v8651_v56, %v8651_v56 }
 0x5d7   : > { %v4214_v54 = vadd.f32 %v4213_v31, %v4212_v55  ;;  %v3992_v10 = vadd.f32 %v8500_v34, %v3800_v25  ;;  %v8676_v21 = vadd.f32 %v8505_v61, %v3991_v33  ;;  %v4321_v13 = vsel %vm4207_vm6, %v4286_v24, 0.0 }
 0x5d8   : > { %v8610_v37 = vpop.permute.xlu0 %3739  ;;  %v4217_v44 = vsel %vm4207_vm6, %v8644_v50, 0.0  ;;  %v3801_v45 = vadd.f32 %v8297_v18, %v8496_v9  ;;  %v4320_v0 = vadd.f32 %v4319_v22, %v4318_v59  ;;  %v4289_v49 = vmul.f32 %v8663_v38, %v8663_v38 }
 0x5d9   : > { %v4216_v30 = vadd.f32 %v4215_v17, %v4214_v54  ;;  %v8688_v34 = vadd.f32 %v8516_v48, %v3992_v10  ;;  %v4323_v57 = vsel %vm4207_vm6, %v4287_v16, 0.0  ;;  %v4219_v51 = vsel %vm4207_vm6, %v8651_v56, 0.0  ;;  %v11290_v54 = vld [vmem:[#allocation13_spill] sm:$0xff] }
 0x5da   : > { %v8624_v19 = vpop.permute.xlu1 %3929  ;;  %v3802_v20 = vadd.f32 %v8303_v41, %v8507_v5  ;;  %v3993_v18 = vadd.f32 %v8514_v40, %v3801_v45  ;;  %v4322_v9 = vadd.f32 %v4321_v13, %v4320_v0  ;;  %v4325_v7 = vsel %vm4207_vm6, %v4288_v4, 0.0  ;;  %v11292_v4 = vld [vmem:[#allocation69_spill] sm:$0xff] }
 0x5db   : > { %v4218_v36 = vadd.f32 %v4217_v44, %v4216_v30  ;;  %v4290_v48 = vmul.f32 %v8676_v21, %v8676_v21  ;;  %v4221_v32 = vsel %vm4207_vm6, %v8663_v38, 0.0  ;;  %v3803_v52 = vadd.f32 %v8309_v11, %v8520_v43 }
 0x5dc   : > { %v8637_v63 = vpop.permute.xlu0 %4119  ;;  %v3994_v14 = vadd.f32 %v8522_v3, %v3802_v20  ;;  %v8709_v5 = vadd.f32 %v8526_v60, %v3993_v18  ;;  %v4324_v40 = vadd.f32 %v4323_v57, %v4322_v9  ;;  %v4327_v31 = vsel %vm4207_vm6, %v4289_v49, 0.0  ;;  %v11293_v49 = vld [vmem:[#allocation28_spill] sm:$0xff]  ;;  %v11295_v9 = vld [vmem:[#allocation41_spill] sm:$0xff] }
 0x5dd   : > { %v4220_v41 = vadd.f32 %v4219_v51, %v4218_v36  ;;  %v4291_v24 = vmul.f32 %v8688_v34, %v8688_v34  ;;  %v4223_v25 = vsel %vm4207_vm6, %v8676_v21, 0.0  ;;  %v3804_v11 = vadd.f32 %v8315_v2, %v8528_v42  ;;  %v11291_v42 = vld [vmem:[#allocation25_spill] sm:$0xff]  ;;  %v11296_v36 = vld [vmem:[#allocation18_spill] sm:$0xff] }
 0x5de   : > { %v8653_v15 = vpop.permute.xlu1 %3741  ;;  %v3995_v3 = vadd.f32 %v8532_v39, %v3803_v52  ;;  %v8722_v60 = vadd.f32 %v8534_v53, %v3994_v14  ;;  %v4326_v43 = vadd.f32 %v4325_v7, %v4324_v40  ;;  %v4329_v59 = vsel %vm4207_vm6, %v4290_v48, 0.0  ;;  %v11297_v40 = vld [vmem:[#allocation63_spill] sm:$0xff] }
 0x5df   : > { %v4222_v33 = vadd.f32 %v4221_v32, %v4220_v41  ;;  %v4225_v22 = vsel %vm4207_vm6, %v8688_v34, 0.0  ;;  %v4292_v16 = vmul.f32 %v8709_v5, %v8709_v5  ;;  %v3805_v2 = vadd.f32 %v11290_v54, %v8537_v62  ;;  %v11294_v62 = vld [vmem:[#allocation9_spill] sm:$0xff] }
 0x5e0   : > { %v8665_v1 = vpop.permute.xlu0 %3931  ;;  %v3996_v39 = vadd.f32 %v11291_v42, %v3804_v11  ;;  %v8735_v53 = vadd.f32 %v11292_v4, %v3995_v3  ;;  %v4328_v10 = vadd.f32 %v4327_v31, %v4326_v43  ;;  %v4331_v44 = vsel %vm4207_vm6, %v4291_v24, 0.0  ;;  %v11299_v11 = vld [vmem:[#allocation8_spill] sm:$0xff]  ;;  %v11300_v43 = vld [vmem:[#allocation53_spill] sm:$0xff] }
 0x5e1   : > { %v4224_v13 = vadd.f32 %v4223_v25, %v4222_v33  ;;  %v4227_v0 = vsel %vm4207_vm6, %v8709_v5, 0.0  ;;  %v4293_v30 = vmul.f32 %v8722_v60, %v8722_v60  ;;  %v3997_v57 = vadd.f32 %v11293_v49, %v3805_v2  ;;  %v11298_v25 = vld [vmem:[#allocation64_spill] sm:$0xff] }
 0x5e2   : > { %v8678_v6 = vpop.permute.xlu1 %4121  ;;  %v8746_v51 = vadd.f32 %v11294_v62, %v3996_v39  ;;  %v4330_v20 = vadd.f32 %v4329_v59, %v4328_v10  ;;  %v3806_v7 = vadd.f32 %v11296_v36, %v11295_v9  ;;  %v4333_v32 = vsel %vm4207_vm6, %v4292_v16, 0.0  ;;  %v11301_v39 = vld [vmem:[#allocation24_spill] sm:$0xff]  ;;  %v11304_v62 = vld [vmem:[#allocation26_spill] sm:$0xff] }
 0x5e3   : > { %v4226_v18 = vadd.f32 %v4225_v22, %v4224_v13  ;;  %v4229_v52 = vsel %vm4207_vm6, %v8722_v60, 0.0  ;;  %v4294_v14 = vmul.f32 %v8735_v53, %v8735_v53  ;;  %v8758_v41 = vadd.f32 %v11297_v40, %v3997_v57  ;;  %v11302_v10 = vld [vmem:[#allocation36_spill] sm:$0xff]  ;;  %v11303_v57 = vld [vmem:[#allocation19_spill] sm:$0xff] }
 0x5e4   : > { %v8690_v61 = vpop.permute.xlu0 %3743  ;;  %v4332_v31 = vadd.f32 %v4331_v44, %v4330_v20  ;;  %v3807_v3 = vadd.f32 %v11299_v11, %v11298_v25  ;;  %v3998_v33 = vadd.f32 %v11300_v43, %v3806_v7  ;;  %v4335_v22 = vsel %vm4207_vm6, %v4293_v30, 0.0 }
 0x5e5   : > { %v4228_v24 = vadd.f32 %v4227_v0, %v4226_v18  ;;  %v4231_v16 = vsel %vm4207_vm6, %v8735_v53, 0.0  ;;  %v4295_v54 = vmul.f32 %v8746_v51, %v8746_v51  ;;  %v4337_v0 = vsel %vm4207_vm6, %v4294_v14, 0.0  ;;  %v11306_v14 = vld [vmem:[#allocation17_spill] sm:$0xff] }
 0x5e6   : > { %v8701_v58 = vpop.permute.xlu1 %3933  ;;  %v4334_v2 = vadd.f32 %v4333_v32, %v4332_v31  ;;  %v3999_v4 = vadd.f32 %v11301_v39, %v3807_v3  ;;  %v8772_v13 = vadd.f32 %v11302_v10, %v3998_v33  ;;  %v4233_v30 = vsel %vm4207_vm6, %v8746_v51, 0.0  ;;  %v11307_v31 = vld [vmem:[#allocation37_spill] sm:$0xff]  ;;  %v11311_v39 = vld [vmem:[#allocation46_spill] sm:$0xff] }
 0x5e7   : > { %v4230_v42 = vadd.f32 %v4229_v52, %v4228_v24  ;;  %v4296_v49 = vmul.f32 %v8758_v41, %v8758_v41  ;;  %v3808_v20 = vadd.f32 %v11304_v62, %v11303_v57  ;;  %v4339_v32 = vsel %vm4207_vm6, %v4295_v54, 0.0  ;;  %v11305_v52 = vld [vmem:[#allocation7_spill] sm:$0xff]  ;;  %v11312_v57 = vld [vmem:[#allocation22_spill] sm:$0xff] }
 0x5e8   : > { %v8714_v55 = vpop.permute.xlu0 %4123  ;;  %v4336_v18 = vadd.f32 %v4335_v22, %v4334_v2  ;;  %v8784_v36 = vadd.f32 %v8565_v46, %v3999_v4  ;;  %v3809_v40 = vadd.f32 %v11306_v14, %v11305_v52  ;;  %v4235_v3 = vsel %vm4207_vm6, %v8758_v41, 0.0  ;;  %v11308_v22 = vld [vmem:[#allocation12_spill] sm:$0xff]  ;;  %v11310_v2 = vld [vmem:[#allocation42_spill] sm:$0xff]  ;;  %v11313_v62 = vld [vmem:[#allocation15_spill] sm:$0xff] }
 0x5e9   : > { %v4232_v9 = vadd.f32 %v4231_v16, %v4230_v42  ;;  %v4000_v24 = vadd.f32 %v11307_v31, %v3808_v20  ;;  %v4297_v43 = vmul.f32 %v8772_v13, %v8772_v13  ;;  %v4341_v46 = vsel %vm4207_vm6, %v4296_v49, 0.0  ;;  %v11309_v16 = vld [vmem:[#allocation33_spill] sm:$0xff] }
 0x5ea   : > { %v8727_v17 = vpop.permute.xlu1 %3745  ;;  %v4338_v25 = vadd.f32 %v4337_v0, %v4336_v18  ;;  %v3810_v54 = vadd.f32 %v11309_v16, %v11308_v22  ;;  %v4001_v42 = vadd.f32 %v11310_v2, %v3809_v40  ;;  %v4237_v0 = vsel %vm4207_vm6, %v8772_v13, 0.0  ;;  %v11315_v31 = vld [vmem:[#allocation57_spill] sm:$0xff] }
 0x5eb   : > { %v4234_v11 = vadd.f32 %v4233_v30, %v4232_v9  ;;  %v8803_v4 = vadd.f32 %v11311_v39, %v4000_v24  ;;  %v4298_v30 = vmul.f32 %v8784_v36, %v8784_v36  ;;  %v3811_v20 = vadd.f32 %v11313_v62, %v11312_v57  ;;  %v11314_v9 = vld [vmem:[#allocation45_spill] sm:$0xff] }
 0x5ec   : > { %v8738_v45 = vpop.permute.xlu0 %3935  ;;  %v4340_v10 = vadd.f32 %v4339_v32, %v4338_v25  ;;  %v4002_v52 = vadd.f32 %v11314_v9, %v3810_v54  ;;  %v8815_v14 = vadd.f32 %v8579_v35, %v4001_v42  ;;  %v4343_v32 = vsel %vm4207_vm6, %v4297_v43, 0.0  ;;  %v11316_v43 = vld [vmem:[#allocation29_spill] sm:$0xff] }
 0x5ed   : > { %v4236_v49 = vadd.f32 %v4235_v3, %v4234_v11  ;;  %v3812_v24 = vadd.f32 %v11315_v31, %v8585_v28  ;;  %v4003_v25 = vadd.f32 %v8594_v27, %v3811_v20  ;;  %v4239_v2 = vsel %vm4207_vm6, %v8784_v36, 0.0  ;;  %v11318_v31 = vld [vmem:[#allocation20_spill] sm:$0xff] }
 0x5ee   : > { %v8750_v48 = vpop.permute.xlu1 %4125  ;;  %v4342_v40 = vadd.f32 %v4341_v46, %v4340_v10  ;;  %v4299_v11 = vmul.f32 %v8803_v4, %v8803_v4  ;;  %v8826_v3 = vadd.f32 %v8601_v12, %v4002_v52  ;;  %v4345_v35 = vsel %vm4207_vm6, %v4298_v30, 0.0 }
 0x5ef   : > { %v4238_v16 = vadd.f32 %v4237_v0, %v4236_v49  ;;  %v3813_v46 = vadd.f32 %v11316_v43, %v8610_v37  ;;  %v4004_v28 = vadd.f32 %v8624_v19, %v3812_v24  ;;  %v8833_v27 = vadd.f32 %v8637_v63, %v4003_v25  ;;  %v11317_v0 = vld [vmem:[#allocation68_spill] sm:$0xff]  ;;  %v11319_v43 = vld [vmem:[#allocation66_spill] sm:$0xff] }
 0x5f0   : > { %v8763_v59 = vpop.permute.xlu0 %3747  ;;  %v4344_v42 = vadd.f32 %v4343_v32, %v4342_v40  ;;  %v4241_v39 = vsel %vm4207_vm6, %v8803_v4, 0.0  ;;  %v4300_v10 = vmul.f32 %v8815_v14, %v8815_v14  ;;  %v3814_v30 = vadd.f32 %v11317_v0, %v8653_v15  ;;  %v11320_v0 = vld [vmem:[#allocation35_spill] sm:$0xff] }
 0x5f1   : > { %v4240_v12 = vadd.f32 %v4239_v2, %v4238_v16  ;;  %v4005_v57 = vadd.f32 %v8665_v1, %v3813_v46  ;;  %v8843_v37 = vadd.f32 %v8678_v6, %v4004_v28  ;;  %v4347_v62 = vsel %vm4207_vm6, %v4299_v11, 0.0 }
 0x5f2   : > { %v8774_v44 = vpop.permute.xlu1 %3937  ;;  %v4346_v63 = vadd.f32 %v4345_v35, %v4344_v42  ;;  %v4243_v20 = vsel %vm4207_vm6, %v8815_v14, 0.0  ;;  %v4301_v49 = vmul.f32 %v8826_v3, %v8826_v3  ;;  %v4302_v52 = vmul.f32 %v8833_v27, %v8833_v27 }
 0x5f3   : > { %v4242_v9 = vadd.f32 %v4241_v39, %v4240_v12  ;;  %v4006_v15 = vadd.f32 %v8701_v58, %v3814_v30  ;;  %v8854_v1 = vadd.f32 %v8714_v55, %v4005_v57  ;;  %v4349_v40 = vsel %vm4207_vm6, %v4300_v10, 0.0 }
 0x5f4   : > { %v8786_v7 = vpop.permute.xlu0 %4127  ;;  %v4245_v32 = vsel %vm4207_vm6, %v8826_v3, 0.0  ;;  %v3815_v24 = vadd.f32 %v11318_v31, %v8690_v61  ;;  %v4348_v25 = vadd.f32 %v4347_v62, %v4346_v63  ;;  %v4303_v2 = vmul.f32 %v8843_v37, %v8843_v37 }
 0x5f5   : > { %v4244_v16 = vadd.f32 %v4243_v20, %v4242_v9  ;;  %v8864_v11 = vadd.f32 %v8750_v48, %v4006_v15  ;;  %v4351_v55 = vsel %vm4207_vm6, %v4301_v49, 0.0  ;;  %v4247_v35 = vsel %vm4207_vm6, %v8833_v27, 0.0 }
 0x5f6   : > { %v8796_v33 = vpop.permute.xlu1 %3749  ;;  %v3816_v46 = vadd.f32 %v11319_v43, %v8727_v17  ;;  %v4007_v28 = vadd.f32 %v8738_v45, %v3815_v24  ;;  %v4350_v61 = vadd.f32 %v4349_v40, %v4348_v25  ;;  %v4353_v39 = vsel %vm4207_vm6, %v4302_v52, 0.0  ;;  %v11321_v52 = vld [vmem:[#allocation52_spill] sm:$0xff] }
 0x5f7   : > { %v4246_v42 = vadd.f32 %v4245_v32, %v4244_v16  ;;  %v4304_v10 = vmul.f32 %v8854_v1, %v8854_v1  ;;  %v4249_v12 = vsel %vm4207_vm6, %v8843_v37, 0.0  ;;  %v3817_v30 = vadd.f32 %v11320_v0, %v8763_v59  ;;  %v11322_v16 = vld [vmem:[#allocation6_spill] sm:$0xff] }
 0x5f8   : > { %v8811_v18 = vpop.permute.xlu0 %3939  ;;  %v4008_v57 = vadd.f32 %v8774_v44, %v3816_v46  ;;  %v8881_v17 = vadd.f32 %v8786_v7, %v4007_v28  ;;  %v4352_v45 = vadd.f32 %v4351_v55, %v4350_v61  ;;  %v4355_v62 = vsel %vm4207_vm6, %v4303_v2, 0.0 }
 0x5f9   : > { %v4248_v63 = vadd.f32 %v4247_v35, %v4246_v42  ;;  %v4305_v20 = vmul.f32 %v8864_v11, %v8864_v11  ;;  %v4251_v9 = vsel %vm4207_vm6, %v8854_v1, 0.0  ;;  %v3818_v15 = vadd.f32 %v11321_v52, %v8796_v33 }
 0x5fa   : > { %v4130_v22 = vpop.permute.xlu1 %4129  ;;  %v4009_v59 = vadd.f32 %v8811_v18, %v3817_v30  ;;  %v4354_v7 = vadd.f32 %v4353_v39, %v4352_v45  ;;  %v4357_v32 = vsel %vm4207_vm6, %v4304_v10, 0.0  ;;  %v4253_v31 = vsel %vm4207_vm6, %v8864_v11, 0.0 }
 0x5fb   : > { %v8891_v44 = vadd.f32 %v4130_v22, %v4008_v57  ;;  %v4250_v40 = vadd.f32 %v4249_v12, %v4248_v63  ;;  %v4306_v25 = vmul.f32 %v8881_v17, %v8881_v17  ;;  %v4359_v22 = vsel %vm4207_vm6, %v4305_v20, 0.0 }
 0x5fc   : > { %v3752_v54 = vpop.permute.xlu0 %3751  ;;  %v4356_v33 = vadd.f32 %v4355_v62, %v4354_v7  ;;  %v4255_v46 = vsel %vm4207_vm6, %v8881_v17, 0.0  ;;  %v11323_v62 = vld [vmem:[#allocation14_spill] sm:$0xff] }
 0x5fd   : > { %v3819_v2 = vadd.f32 %v11322_v16, %v3752_v54  ;;  %v4252_v18 = vadd.f32 %v4251_v9, %v4250_v40  ;;  %v4307_v28 = vmul.f32 %v8891_v44, %v8891_v44 }
 0x5fe   : > { %v3942_v19 = vpop.permute.xlu1 %3941  ;;  %v4358_v39 = vadd.f32 %v4357_v32, %v4356_v33 }
 0x5ff   : > { %v4010_v55 = vadd.f32 %v3942_v19, %v3818_v15  ;;  %v4254_v10 = vadd.f32 %v4253_v31, %v4252_v18  ;;  %v4361_v19 = vsel %vm4207_vm6, %v4306_v25, 0.0 }
 0x600   : > { %v4132_v6 = vpop.permute.xlu0 %4131  ;;  %v4360_v30 = vadd.f32 %v4359_v22, %v4358_v39 }
 0x601   : > { %v8899_v35 = vadd.f32 %v4132_v6, %v4009_v59  ;;  %v4257_v6 = vsel %vm4207_vm6, %v8891_v44, 0.0  ;;  %v4256_v57 = vadd.f32 %v4255_v46, %v4254_v10 }
 0x602   : > { %v3754_v58 = vpop.permute.xlu1 %3753  ;;  %v4362_v9 = vadd.f32 %v4361_v19, %v4360_v30 }
 0x603   : > { %v4308_v12 = vmul.f32 %v8899_v35, %v8899_v35  ;;  %v4259_v63 = vsel %vm4207_vm6, %v8899_v35, 0.0  ;;  %v3820_v20 = vadd.f32 %v11323_v62, %v3754_v58  ;;  %v4258_v52 = vadd.f32 %v4257_v6, %v4256_v57 }
 0x604   : > { %v3944_v48 = vpop.permute.xlu0 %3943 }
 0x605   : > { %v4011_v61 = vadd.f32 %v3944_v48, %v3819_v2  ;;  %v4363_v48 = vsel %vm4207_vm6, %v4307_v28, 0.0  ;;  %v4365_v59 = vsel %vm4207_vm6, %v4308_v12, 0.0  ;;  %v4260_v25 = vadd.f32 %v4259_v63, %v4258_v52  ;;  %v11324_v2 = vld [vmem:[#allocation23_spill] sm:$0xff] }
 0x606   : > { %v4134_v49 = vpop.permute.xlu1 %4133  ;;  %v4364_v31 = vadd.f32 %v4363_v48, %v4362_v9  ;;  %v11325_v28 = vld [vmem:[#allocation43_spill] sm:$0xff] }
 0x607   : > { %v8906_v42 = vadd.f32 %v4134_v49, %v4010_v55 }
 0x608   : > { %v3756_v24 = vpop.permute.xlu0 %3755  ;;  %v4366_v22 = vadd.f32 %v4365_v59, %v4364_v31 }
 0x609   : > { %v4309_v49 = vmul.f32 %v8906_v42, %v8906_v42  ;;  %v4261_v7 = vsel %vm4207_vm6, %v8906_v42, 0.0  ;;  %v3821_v55 = vadd.f32 %v11324_v2, %v3756_v24 }
 0x60a   : > { %v3946_v43 = vpop.permute.xlu1 %3945  ;;  %v4262_v46 = vadd.f32 %v4261_v7, %v4260_v25 }
 0x60b   : > { %v4012_v40 = vadd.f32 %v3946_v43, %v3820_v20  ;;  %v4367_v58 = vsel %vm4207_vm6, %v4309_v49, 0.0 }
 0x60c   : > { %v4136_v54 = vpop.permute.xlu0 %4135  ;;  %v4368_v24 = vadd.f32 %v4367_v58, %v4366_v22 }
 0x60d   : > { %v8913_v0 = vadd.f32 %v4136_v54, %v4011_v61 }
 0x60e   : > { %v3758_v45 = vpop.permute.xlu1 %3757 }
 0x60f   : > { %v4310_v32 = vmul.f32 %v8913_v0, %v8913_v0  ;;  %v4263_v33 = vsel %vm4207_vm6, %v8913_v0, 0.0  ;;  %v3822_v61 = vadd.f32 %v11325_v28, %v3758_v45 }
 0x610   : > { %v3948_v15 = vpop.permute.xlu0 %3947  ;;  %v4264_v6 = vadd.f32 %v4263_v33, %v4262_v46 }
 0x611   : > { %v4369_v39 = vsel %vm4207_vm6, %v4310_v32, 0.0  ;;  %v4013_v10 = vadd.f32 %v3948_v15, %v3821_v55 }
 0x612   : > { %v4138_v16 = vpop.permute.xlu1 %4137  ;;  %v4370_v63 = vadd.f32 %v4369_v39, %v4368_v24  ;;  %v11327_v24 = vld [vmem:[#allocation61_spill] sm:$0xff] }
 0x613   : > { %v8930_v18 = vadd.f32 %v4138_v16, %v4012_v40 }
 0x614   : > { %v3950_v43 = vpop.permute.xlu0 %3949 }
 0x615   : > { %v4265_v54 = vsel %vm4207_vm6, %v8930_v18, 0.0  ;;  %v4311_v19 = vmul.f32 %v8930_v18, %v8930_v18  ;;  %v4014_v57 = vadd.f32 %v3950_v43, %v3822_v61 }
 0x616   : > { %v4140_v12 = vpop.permute.xlu1 %4139  ;;  %v4266_v45 = vadd.f32 %v4265_v54, %v4264_v6  ;;  %v11328_v6 = vld [vmem:[#allocation49_spill] sm:$0xff] }
 0x617   : > { %v4371_v30 = vsel %vm4207_vm6, %v4311_v19, 0.0  ;;  %v8939_v48 = vadd.f32 %v4140_v12, %v4013_v10  ;;  %v11326_v19 = vld [vmem:[#allocation67_spill] sm:$0xff]  ;;  %v11329_v12 = vld [vmem:[#allocation10_spill] sm:$0xff] }
 0x618   : > { %v4142_v62 = vpop.permute.xlu0 %4141  ;;  %v4372_v52 = vadd.f32 %v4371_v30, %v4370_v63  ;;  %v11330_v30 = vld [vmem:[#allocation70_spill] sm:$0xff]  ;;  %v11332_v63 = vld [vmem:[#allocation21_spill] sm:$0xff] }
 0x619   : > { %v4267_v20 = vsel %vm4207_vm6, %v8939_v48, 0.0  ;;  %v4312_v49 = vmul.f32 %v8939_v48, %v8939_v48  ;;  %v8945_v9 = vadd.f32 %v4142_v62, %v4014_v57  ;;  %v11331_v57 = vld [vmem:[#allocation16_spill] sm:$0xff]  ;;  %v11334_v62 = vld [vmem:[#allocation31_spill] sm:$0xff] }
 0x61a   : > { %v4268_v15 = vadd.f32 %v4267_v20, %v4266_v45  ;;  %v11333_v45 = vld [vmem:[#allocation30_spill] sm:$0xff]  ;;  %v11335_v20 = vld [vmem:[#allocation40_spill] sm:$0xff] }
 0x61b   : > { %v4373_v59 = vsel %vm4207_vm6, %v4312_v49, 0.0  ;;  %v4269_v7 = vsel %vm4207_vm6, %v8945_v9, 0.0  ;;  %v4313_v40 = vmul.f32 %v8945_v9, %v8945_v9  ;;  %v11336_v49 = vld [vmem:[#allocation47_spill] sm:$0xff] }
 0x61c   : > { %v4374_v32 = vadd.f32 %v4373_v59, %v4372_v52  ;;  %v4270_v31 = vadd.f32 %v4269_v7, %v4268_v15 }
 0x61d   : > { %v4375_v25 = vsel %vm4207_vm6, %v4313_v40, 0.0 }
 0x61e   : > { %v4271_v16 = vrot.slane %v4270_v31, 4  ;;  %v4376_v58 = vadd.f32 %v4375_v25, %v4374_v32 }
 0x620   : > { %v4272_v2 = vadd.f32 %v4271_v16, %v4270_v31  ;;  %v4377_v55 = vrot.slane %v4376_v58, 4 }
 0x622   : > { %v4273_v33 = vrot.slane %v4272_v2, 2  ;;  %v4378_v22 = vadd.f32 %v4377_v55, %v4376_v58 }
 0x624   : > { %v4274_v46 = vadd.f32 %v4273_v33, %v4272_v2  ;;  %v4379_v28 = vrot.slane %v4378_v22, 2 }
 0x626   : > { %v4275_v61 = vrot.slane %v4274_v46, 1  ;;  %v4380_v43 = vadd.f32 %v4379_v28, %v4378_v22 }
 0x628   : > { %v4276_v39 = vadd.f32 %v4275_v61, %v4274_v46  ;;  %v4381_v10 = vrot.slane %v4380_v43, 1 }
 0x62a   : > { %4278 = vrot.lane.b32.xlu1 %v4276_v39, %s5763_s22  ;;  %v4382_v54 = vadd.f32 %v4381_v10, %v4380_v43 }
 0x62c   : > { %4384 = vrot.lane.b32.xlu0 %v4382_v54, %s5763_s22 }
 0x62e   : > { %3512 = vrot.lane.b32.xlu1 %v11326_v19, %s5766_s25 }
 0x630   : > { %3514 = vrot.lane.b32.xlu0 %v11327_v24, %s5766_s25 }
 0x632   : > { %3516 = vrot.lane.b32.xlu1 %v11328_v6, %s5766_s25 }
 0x634   : > { %3518 = vrot.lane.b32.xlu0 %v11329_v12, %s5766_s25 }
 0x636   : > { %3520 = vrot.lane.b32.xlu1 %v11330_v30, %s5766_s25 }
 0x638   : > { %3522 = vrot.lane.b32.xlu0 %v11331_v57, %s5766_s25 }
 0x63a   : > { %3524 = vrot.lane.b32.xlu1 %v11332_v63, %s5766_s25 }
 0x63c   : > { %3526 = vrot.lane.b32.xlu0 %v11333_v45, %s5766_s25 }
 0x63e   : > { %3528 = vrot.lane.b32.xlu1 %v11334_v62, %s5766_s25 }
 0x640   : > { %3530 = vrot.lane.b32.xlu0 %v11335_v20, %s5766_s25 }
 0x642   : > { %3532 = vrot.lane.b32.xlu1 %v11336_v49, %s5766_s25 }
 0x644   : > { %4420 = vrot.lane.b32.xlu0 %v8589_v26, %s5758_s17  ;;  %v11337_v26 = vld [vmem:[#allocation4_spill] sm:$0xff] }
 0x646   : > { %4422 = vrot.lane.b32.xlu1 %v8592_v23, %s5758_s17  ;;  %v1428_v23 = vrot.slane %v11337_v26, 4 }
 0x648   : > { %4424 = vrot.lane.b32.xlu0 %v8599_v47, %s5758_s17  ;;  %v11338_v47 = vld [vmem:[#allocation5_spill] sm:$0xff] }
 0x64a   : > { %4426 = vrot.lane.b32.xlu1 %v8616_v8, %s5758_s17  ;;  %v1530_v8 = vrot.slane %v11338_v47, 4 }
 0x64c   : > { %4428 = vrot.lane.b32.xlu0 %v8630_v29, %s5758_s17  ;;  %v1429_v29 = vadd.f32 %v1428_v23, %v11337_v26 }
 0x64e   : > { %4430 = vrot.lane.b32.xlu1 %v8644_v50, %s5758_s17  ;;  %v1531_v50 = vadd.f32 %v1530_v8, %v11338_v47 }
 0x650   : > { %4432 = vrot.lane.b32.xlu0 %v8651_v56, %s5758_s17  ;;  %v1430_v56 = vrot.slane %v1429_v29, 2 }
 0x652   : > { %4434 = vrot.lane.b32.xlu1 %v8663_v38, %s5758_s17  ;;  %v1532_v38 = vrot.slane %v1531_v50, 2 }
 0x654   : > { %4436 = vrot.lane.b32.xlu0 %v8676_v21, %s5758_s17  ;;  %v1431_v21 = vadd.f32 %v1430_v56, %v1429_v29 }
 0x656   : > { %4438 = vrot.lane.b32.xlu1 %v8688_v34, %s5758_s17  ;;  %v1533_v34 = vadd.f32 %v1532_v38, %v1531_v50 }
 0x658   : > { %4440 = vrot.lane.b32.xlu0 %v8709_v5, %s5758_s17  ;;  %v1432_v5 = vrot.slane %v1431_v21, 1 }
 0x65a   : > { %4442 = vrot.lane.b32.xlu1 %v8722_v60, %s5758_s17  ;;  %v1534_v60 = vrot.slane %v1533_v34, 1 }
 0x65c   : > { %4444 = vrot.lane.b32.xlu0 %v8735_v53, %s5758_s17  ;;  %v4588_v53 = vlaneseq }
 0x65e   : > { %4446 = vrot.lane.b32.xlu1 %v8746_v51, %s5758_s17  ;;  %v1433_v51 = vadd.f32 %v1432_v5, %v1431_v21 }
 0x660   : > { %4448 = vrot.lane.b32.xlu0 %v8758_v41, %s5758_s17  ;;  %v11339_v41 = vld [vmem:[#allocation11_spill] sm:$0xff] }
 0x662   : > { %4450 = vrot.lane.b32.xlu1 %v8772_v13, %s5758_s17  ;;  %v2380_v13 = vadd.f32 %v11339_v41, %v1433_v51 }
 0x664   : > { %4452 = vrot.lane.b32.xlu0 %v8784_v36, %s5758_s17  ;;  %v1535_v36 = vadd.f32 %v1534_v60, %v1533_v34 }
 0x666   : > { %4454 = vrot.lane.b32.xlu1 %v8803_v4, %s5758_s17  ;;  %v4589_v4 = vshrl.u32 %v4588_v53, 7 }
 0x668   : > { %4456 = vrot.lane.b32.xlu0 %v8815_v14, %s5758_s17  ;;  %v11340_v14 = vld [vmem:[#allocation27_spill] sm:$0xff] }
 0x66a   : > { %4458 = vrot.lane.b32.xlu1 %v8826_v3, %s5758_s17  ;;  %v2486_v3 = vadd.f32 %v11340_v14, %v1535_v36  ;;  %v9096_v14 = vld [vmem:[#allocation3 + $0x8] sm:$0xff] }
 0x66c   : > { %4460 = vrot.lane.b32.xlu0 %v8833_v27, %s5758_s17  ;;  %v11341_v27 = vld [vmem:[#allocation59_spill] sm:$0xff] }
 0x66e   : > { %4462 = vrot.lane.b32.xlu1 %v8843_v37, %s5758_s17  ;;  %v3331_v37 = vadd.f32 %v11341_v27, %v2380_v13  ;;  %v9100_v27 = vld [vmem:[#allocation3 + $0x10] sm:$0xff] }
 0x670   : > { %4464 = vrot.lane.b32.xlu0 %v8854_v1, %s5758_s17 }
 0x672   : > { %4466 = vrot.lane.b32.xlu1 %v8864_v11, %s5758_s17  ;;  %v11342_v11 = vld [vmem:[#allocation58_spill] sm:$0xff] }
 0x674   : > { %4468 = vrot.lane.b32.xlu0 %v8881_v17, %s5758_s17  ;;  %v3437_v17 = vadd.f32 %v11342_v11, %v2486_v3  ;;  %v9098_v3 = vld [vmem:[#allocation3 + $0x18] sm:$0xff] }
 0x676   : > { %4470 = vrot.lane.b32.xlu1 %v8891_v44, %s5758_s17  ;;  %v4590_v44 = vsub.s32 0, %v4589_v4  ;;  %v9094_v4 = vld [vmem:[#allocation3] sm:$0xff] }
 0x678   : > { %4472 = vrot.lane.b32.xlu0 %v8899_v35, %s5758_s17 }
 0x67a   : > { %4474 = vrot.lane.b32.xlu1 %v8906_v42, %s5758_s17 }
 0x67c   : > { %4476 = vrot.lane.b32.xlu0 %v8913_v0, %s5758_s17 }
 0x67e   : > { %4478 = vrot.lane.b32.xlu1 %v8930_v18, %s5758_s17 }
 0x680   : > { %4480 = vrot.lane.b32.xlu0 %v8939_v48, %s5758_s17 }
 0x682   : > { %4482 = vrot.lane.b32.xlu1 %v8945_v9, %s5758_s17 }
 0x69c   : > { %v4279_v1 = vpop.permute.xlu1 %4278 }
 0x69d   : > { %v4281_v35 = vadd.f32 %v4279_v1, %v3331_v37  ;;  %v9102_v37 = vld [vmem:[#allocation3 + $0x20] sm:$0xff]  ;;  %v9104_v1 = vld [vmem:[#allocation3 + $0x28] sm:$0xff] }
 0x69e   : > { %v4385_v42 = vpop.permute.xlu0 %4384 }
 0x69f   : > { %v4549_v0 = vmul.f32 0.0009765625, %v4281_v35  ;;  %v4387_v18 = vadd.f32 %v4385_v42, %v3437_v17  ;;  %v9108_v17 = vld [vmem:[#allocation3 + $0x38] sm:$0xff]  ;;  %v9112_v35 = vld [vmem:[#allocation3 + $0x40] sm:$0xff] }
 0x6a0   : > { %v3513_v48 = vpop.permute.xlu1 %3512  ;;  %v9304_v42 = vld [vmem:[#allocation3 + $0x1d8] sm:$0xff] }
 0x6a1   : > { %v4551_v9 = vmul.f32 %v4549_v0, %v4549_v0  ;;  %v4591_v52 = vrot.slane %v4549_v0, %v4590_v44  ;;  %v4550_v15 = vmul.f32 0.0009765625, %v4387_v18  ;;  %3588 = vst.msk [vmem:[#allocation3 + $0x2a8] sm:$0xff] %vm1665_vm3, %v3513_v48  ;;  %v9118_v18 = vld [vmem:[#allocation3 + $0x48] sm:$0xff]  ;;  %v9120_v48 = vld [vmem:[#allocation3 + $0x58] sm:$0xff]  ;;  %v9294_v0 = vld [vmem:[#allocation3 + $0x1c0] sm:$0xff] }
 0x6a2   : > { %v3515_v59 = vpop.permute.xlu0 %3514  ;;  %11362 = vst [vmem:[#allocation41_spill] sm:$0xff] %v9294_v0  ;;  %11363 = vst [vmem:[#allocation18_spill] sm:$0xff] %v9304_v42  ;;  %v9370_v0 = vld [vmem:[#allocation3 + $0x258] sm:$0xff]  ;;  %v9388_v42 = vld [vmem:[#allocation3 + $0x280] sm:$0xff] }
 0x6a3   : > { %v4552_v7 = vsub.f32 %v4550_v15, %v4551_v9  ;;  %3589 = vst.msk [vmem:[#allocation3 + $0x2b0] sm:$0xff] %vm1665_vm3, %v3515_v59  ;;  %4593 = vrot.lane.b32.xlu0 %v4591_v52, %s5763_s22  ;;  %v9122_v9 = vld [vmem:[#allocation3 + $0x50] sm:$0xff]  ;;  %v9288_v59 = vld [vmem:[#allocation3 + $0x1b8] sm:$0xff]  ;;  %v9292_v52 = vld [vmem:[#allocation3 + $0x1c8] sm:$0xff] }
 0x6a4   : > { %v3517_v40 = vpop.permute.xlu1 %3516  ;;  %11359 = vst [vmem:[#allocation69_spill] sm:$0xff] %v9288_v59  ;;  %v9290_v15 = vld [vmem:[#allocation3 + $0x1b0] sm:$0xff]  ;;  %11361 = vst [vmem:[#allocation9_spill] sm:$0xff] %v9292_v52  ;;  %v9372_v59 = vld [vmem:[#allocation3 + $0x260] sm:$0xff] }
 0x6a5   : > { %v4553_v32 = vmax.f32 %v4552_v7, 0.0  ;;  %3590 = vst.msk [vmem:[#allocation3 + $0x2b8] sm:$0xff] %vm1665_vm3, %v3517_v40  ;;  %v9132_v40 = vld [vmem:[#allocation3 + $0x98] sm:$0xff]  ;;  %v9278_v7 = vld [vmem:[#allocation3 + $0x1a0] sm:$0xff]  ;;  %11360 = vst [vmem:[#allocation28_spill] sm:$0xff] %v9290_v15 }
 0x6a6   : > { %v3519_v31 = vpop.permute.xlu0 %3518  ;;  %11358 = vst [vmem:[#allocation25_spill] sm:$0xff] %v9278_v7  ;;  %v9354_v7 = vld [vmem:[#allocation3 + $0x238] sm:$0xff]  ;;  %v9368_v52 = vld [vmem:[#allocation3 + $0x250] sm:$0xff]  ;;  %11380 = vst [vmem:[#allocation15_spill] sm:$0xff] %v9370_v0 }
 0x6a7   : > { %v4554_v25 = vadd.f32 1e-05, %v4553_v32  ;;  %3591 = vst.msk [vmem:[#allocation3 + $0x2c0] sm:$0xff] %vm1665_vm3, %v3519_v31  ;;  %v9134_v32 = vld [vmem:[#allocation3 + $0xa0] sm:$0xff]  ;;  %v9136_v31 = vld [vmem:[#allocation3 + $0xa8] sm:$0xff]  ;;  %11376 = vst [vmem:[#allocation33_spill] sm:$0xff] %v9354_v7 }
 0x6a8   : > { %v3521_v16 = vpop.permute.xlu1 %3520  ;;  %11379 = vst [vmem:[#allocation22_spill] sm:$0xff] %v9368_v52  ;;  %11381 = vst [vmem:[#allocation45_spill] sm:$0xff] %v9372_v59  ;;  %v9374_v15 = vld [vmem:[#allocation3 + $0x268] sm:$0xff] }
 0x6a9   : > { %5718 = vrsqrt.f32 %v4554_v25  ;;  %3592 = vst.msk [vmem:[#allocation3 + $0x2c8] sm:$0xff] %vm1665_vm3, %v3521_v16  ;;  %v9138_v25 = vld [vmem:[#allocation3 + $0x60] sm:$0xff]  ;;  %v9140_v16 = vld [vmem:[#allocation3 + $0x68] sm:$0xff]  ;;  %11382 = vst [vmem:[#allocation57_spill] sm:$0xff] %v9374_v15 }
 0x6aa   : > { %v3523_v58 = vpop.permute.xlu0 %3522  ;;  %11385 = vst [vmem:[#allocation20_spill] sm:$0xff] %v9388_v42 }
 0x6ab   : > { %3593 = vst.msk [vmem:[#allocation3 + $0x2d0] sm:$0xff] %vm1665_vm3, %v3523_v58  ;;  %v9142_v58 = vld [vmem:[#allocation3 + $0x78] sm:$0xff] }
 0x6ac   : > { %v3525_v2 = vpop.permute.xlu1 %3524 }
 0x6ad   : > { %3594 = vst.msk [vmem:[#allocation3 + $0x2d8] sm:$0xff] %vm1665_vm3, %v3525_v2  ;;  %v9276_v2 = vld [vmem:[#allocation3 + $0x1a8] sm:$0xff] }
 0x6ae   : > { %v3527_v55 = vpop.permute.xlu0 %3526  ;;  %11357 = vst [vmem:[#allocation13_spill] sm:$0xff] %v9276_v2  ;;  %v9352_v2 = vld [vmem:[#allocation3 + $0x230] sm:$0xff] }
 0x6af   : > { %3595 = vst.msk [vmem:[#allocation3 + $0x2e0] sm:$0xff] %vm1665_vm3, %v3527_v55  ;;  %v9274_v55 = vld [vmem:[#allocation3 + $0x190] sm:$0xff]  ;;  %11375 = vst [vmem:[#allocation12_spill] sm:$0xff] %v9352_v2 }
 0x6b0   : > { %v3529_v33 = vpop.permute.xlu1 %3528  ;;  %11356 = vst [vmem:[#allocation48_spill] sm:$0xff] %v9274_v55  ;;  %v9358_v55 = vld [vmem:[#allocation3 + $0x248] sm:$0xff] }
 0x6b1   : > { %3596 = vst.msk [vmem:[#allocation3 + $0x2e8] sm:$0xff] %vm1665_vm3, %v3529_v33  ;;  %v9272_v33 = vld [vmem:[#allocation3 + $0x198] sm:$0xff]  ;;  %11378 = vst [vmem:[#allocation46_spill] sm:$0xff] %v9358_v55 }
 0x6b2   : > { %v3531_v22 = vpop.permute.xlu0 %3530  ;;  %11355 = vst [vmem:[#allocation55_spill] sm:$0xff] %v9272_v33  ;;  %v9356_v33 = vld [vmem:[#allocation3 + $0x240] sm:$0xff]  ;;  %v9432_v55 = vld [vmem:[#allocation3 + $0x2d0] sm:$0xff] }
 0x6b3   : > { %v5719_v46 = vpop.eup %5718  ;;  %3597 = vst.msk [vmem:[#allocation3 + $0x2f0] sm:$0xff] %vm1665_vm3, %v3531_v22  ;;  %v9262_v22 = vld [vmem:[#allocation3 + $0x180] sm:$0xff]  ;;  %11377 = vst [vmem:[#allocation42_spill] sm:$0xff] %v9356_v33 }
 0x6b4   : > { %v3533_v28 = vpop.permute.xlu1 %3532  ;;  %v4631_v61 = vrot.slane %v5719_v46, %v4590_v44  ;;  %v9110_v44 = vld [vmem:[#allocation3 + $0x30] sm:$0xff]  ;;  %v9152_v46 = vld [vmem:[#allocation3 + $0xb8] sm:$0xff]  ;;  %11354 = vst [vmem:[#allocation60_spill] sm:$0xff] %v9262_v22  ;;  %11395 = vst [vmem:[#allocation49_spill] sm:$0xff] %v9432_v55 }
 0x6b5   : > { %3598 = vst.msk [vmem:[#allocation3 + $0x2f8] sm:$0xff] %vm1665_vm3, %v3533_v28  ;;  %v9154_v28 = vld [vmem:[#allocation3 + $0xb0] sm:$0xff]  ;;  %v9338_v22 = vld [vmem:[#allocation3 + $0x218] sm:$0xff] }
 0x6b6   : > { %v4421_v43 = vpop.permute.xlu0 %4420  ;;  %4633 = vrot.lane.b32.xlu1 %v4631_v61, %s5763_s22  ;;  %v9156_v61 = vld [vmem:[#allocation3 + $0xc0] sm:$0xff]  ;;  %11372 = vst [vmem:[#allocation7_spill] sm:$0xff] %v9338_v22  ;;  %v9434_v33 = vld [vmem:[#allocation3 + $0x2d8] sm:$0xff] }
 0x6b7   : > { %4517 = vst.msk [vmem:[#allocation3 + $0x300] sm:$0xff] %vm1665_vm3, %v4421_v43  ;;  %v9158_v43 = vld [vmem:[#allocation3 + $0xc8] sm:$0xff]  ;;  %v9420_v22 = vld [vmem:[#allocation3 + $0x2c0] sm:$0xff]  ;;  %11396 = vst [vmem:[#allocation10_spill] sm:$0xff] %v9434_v33 }
 0x6b8   : > { %v4423_v39 = vpop.permute.xlu1 %4422  ;;  %11393 = vst [vmem:[#allocation67_spill] sm:$0xff] %v9420_v22  ;;  %v9436_v7 = vld [vmem:[#allocation3 + $0x2e0] sm:$0xff]  ;;  %v9438_v2 = vld [vmem:[#allocation3 + $0x2e8] sm:$0xff] }
 0x6b9   : > { %4518 = vst.msk [vmem:[#allocation3 + $0x308] sm:$0xff] %vm1665_vm3, %v4423_v39  ;;  %v9160_v39 = vld [vmem:[#allocation3 + $0x70] sm:$0xff]  ;;  %11397 = vst [vmem:[#allocation70_spill] sm:$0xff] %v9436_v7 }
 0x6ba   : > { %v4425_v10 = vpop.permute.xlu0 %4424  ;;  %11398 = vst [vmem:[#allocation16_spill] sm:$0xff] %v9438_v2  ;;  %v9448_v15 = vld [vmem:[#allocation3 + $0x2f0] sm:$0xff] }
 0x6bb   : > { %4519 = vst.msk [vmem:[#allocation3 + $0x310] sm:$0xff] %vm1665_vm3, %v4425_v10  ;;  %v9162_v10 = vld [vmem:[#allocation3 + $0x88] sm:$0xff]  ;;  %11399 = vst [vmem:[#allocation21_spill] sm:$0xff] %v9448_v15 }
 0x6bc   : > { %v4427_v54 = vpop.permute.xlu1 %4426  ;;  %v9450_v59 = vld [vmem:[#allocation3 + $0x2f8] sm:$0xff] }
 0x6bd   : > { %4520 = vst.msk [vmem:[#allocation3 + $0x318] sm:$0xff] %vm1665_vm3, %v4427_v54  ;;  %v9164_v54 = vld [vmem:[#allocation3 + $0x80] sm:$0xff]  ;;  %11400 = vst [vmem:[#allocation30_spill] sm:$0xff] %v9450_v59 }
 0x6be   : > { %v4429_v19 = vpop.permute.xlu0 %4428  ;;  %v9452_v0 = vld [vmem:[#allocation3 + $0x300] sm:$0xff] }
 0x6bf   : > { %4521 = vst.msk [vmem:[#allocation3 + $0x320] sm:$0xff] %vm1665_vm3, %v4429_v19  ;;  %v9260_v19 = vld [vmem:[#allocation3 + $0x188] sm:$0xff]  ;;  %11401 = vst [vmem:[#allocation31_spill] sm:$0xff] %v9452_v0 }
 0x6c0   : > { %v4431_v24 = vpop.permute.xlu1 %4430  ;;  %11353 = vst [vmem:[#allocation38_spill] sm:$0xff] %v9260_v19  ;;  %v9336_v19 = vld [vmem:[#allocation3 + $0x210] sm:$0xff]  ;;  %v9454_v52 = vld [vmem:[#allocation3 + $0x308] sm:$0xff] }
 0x6c1   : > { %4522 = vst.msk [vmem:[#allocation3 + $0x328] sm:$0xff] %vm1665_vm3, %v4431_v24  ;;  %v9258_v24 = vld [vmem:[#allocation3 + $0x170] sm:$0xff]  ;;  %11371 = vst [vmem:[#allocation26_spill] sm:$0xff] %v9336_v19  ;;  %v9422_v19 = vld [vmem:[#allocation3 + $0x2c8] sm:$0xff] }
 0x6c2   : > { %v4433_v6 = vpop.permute.xlu0 %4432  ;;  %11352 = vst [vmem:[#allocation56_spill] sm:$0xff] %v9258_v24  ;;  %v9342_v24 = vld [vmem:[#allocation3 + $0x228] sm:$0xff]  ;;  %11394 = vst [vmem:[#allocation61_spill] sm:$0xff] %v9422_v19 }
 0x6c3   : > { %4523 = vst.msk [vmem:[#allocation3 + $0x330] sm:$0xff] %vm1665_vm3, %v4433_v6  ;;  %v9256_v6 = vld [vmem:[#allocation3 + $0x178] sm:$0xff]  ;;  %11374 = vst [vmem:[#allocation37_spill] sm:$0xff] %v9342_v24  ;;  %v9416_v24 = vld [vmem:[#allocation3 + $0x2b0] sm:$0xff] }
 0x6c4   : > { %v4435_v12 = vpop.permute.xlu1 %4434  ;;  %11351 = vst [vmem:[#allocation34_spill] sm:$0xff] %v9256_v6  ;;  %v9340_v6 = vld [vmem:[#allocation3 + $0x220] sm:$0xff]  ;;  %11391 = vst [vmem:[#allocation23_spill] sm:$0xff] %v9416_v24  ;;  %v9466_v42 = vld [vmem:[#allocation3 + $0x318] sm:$0xff] }
 0x6c5   : > { %4524 = vst.msk [vmem:[#allocation3 + $0x338] sm:$0xff] %vm1665_vm3, %v4435_v12  ;;  %v9246_v12 = vld [vmem:[#allocation3 + $0x160] sm:$0xff]  ;;  %11373 = vst [vmem:[#allocation17_spill] sm:$0xff] %v9340_v6  ;;  %v9418_v6 = vld [vmem:[#allocation3 + $0x2b8] sm:$0xff] }
 0x6c6   : > { %v4437_v30 = vpop.permute.xlu0 %4436  ;;  %11350 = vst [vmem:[#allocation51_spill] sm:$0xff] %v9246_v12  ;;  %v9322_v12 = vld [vmem:[#allocation3 + $0x1f0] sm:$0xff]  ;;  %11392 = vst [vmem:[#allocation43_spill] sm:$0xff] %v9418_v6 }
 0x6c7   : > { %4525 = vst.msk [vmem:[#allocation3 + $0x340] sm:$0xff] %vm1665_vm3, %v4437_v30  ;;  %v9174_v30 = vld [vmem:[#allocation3 + $0xd8] sm:$0xff]  ;;  %11368 = vst [vmem:[#allocation24_spill] sm:$0xff] %v9322_v12  ;;  %v9406_v12 = vld [vmem:[#allocation3 + $0x2a8] sm:$0xff] }
 0x6c8   : > { %v4439_v57 = vpop.permute.xlu1 %4438  ;;  %11390 = vst [vmem:[#allocation14_spill] sm:$0xff] %v9406_v12  ;;  %11402 = vst [vmem:[#allocation40_spill] sm:$0xff] %v9454_v52 }
 0x6c9   : > { %4526 = vst.msk [vmem:[#allocation3 + $0x348] sm:$0xff] %vm1665_vm3, %v4439_v57  ;;  %v9176_v57 = vld [vmem:[#allocation3 + $0xd0] sm:$0xff]  ;;  %11404 = vst [vmem:[#allocation4_spill] sm:$0xff] %v9466_v42 }
 0x6ca   : > { %v4441_v63 = vpop.permute.xlu0 %4440  ;;  %v9480_v12 = vld [vmem:[#allocation3 + $0x330] sm:$0xff] }
 0x6cb   : > { %4527 = vst.msk [vmem:[#allocation3 + $0x350] sm:$0xff] %vm1665_vm3, %v4441_v63  ;;  %v9178_v63 = vld [vmem:[#allocation3 + $0xe0] sm:$0xff]  ;;  %11407 = vst [vmem:[#allocation27_spill] sm:$0xff] %v9480_v12 }
 0x6cc   : > { %v4443_v45 = vpop.permute.xlu1 %4442 }
 0x6cd   : > { %4528 = vst.msk [vmem:[#allocation3 + $0x358] sm:$0xff] %vm1665_vm3, %v4443_v45  ;;  %v9180_v45 = vld [vmem:[#allocation3 + $0xe8] sm:$0xff] }
 0x6ce   : > { %v4445_v62 = vpop.permute.xlu0 %4444 }
 0x6cf   : > { %4529 = vst.msk [vmem:[#allocation3 + $0x360] sm:$0xff] %vm1665_vm3, %v4445_v62  ;;  %v9182_v62 = vld [vmem:[#allocation3 + $0x90] sm:$0xff] }
 0x6d0   : > { %v4447_v20 = vpop.permute.xlu1 %4446  ;;  %v9494_v22 = vld [vmem:[#allocation3 + $0x348] sm:$0xff] }
 0x6d1   : > { %4530 = vst.msk [vmem:[#allocation3 + $0x368] sm:$0xff] %vm1665_vm3, %v4447_v20  ;;  %v9244_v20 = vld [vmem:[#allocation3 + $0x168] sm:$0xff]  ;;  %11410 = vst [vmem:[#allocation71_spill] sm:$0xff] %v9494_v22 }
 0x6d2   : > { %v4449_v49 = vpop.permute.xlu0 %4448  ;;  %11349 = vst [vmem:[#allocation39_spill] sm:$0xff] %v9244_v20  ;;  %v9320_v20 = vld [vmem:[#allocation3 + $0x1f8] sm:$0xff] }
 0x6d3   : > { %4531 = vst.msk [vmem:[#allocation3 + $0x370] sm:$0xff] %vm1665_vm3, %v4449_v49  ;;  %v9242_v49 = vld [vmem:[#allocation3 + $0x150] sm:$0xff]  ;;  %11367 = vst [vmem:[#allocation53_spill] sm:$0xff] %v9320_v20  ;;  %v9404_v20 = vld [vmem:[#allocation3 + $0x2a0] sm:$0xff] }
 0x6d4   : > { %v4451_v26 = vpop.permute.xlu1 %4450  ;;  %11348 = vst [vmem:[#allocation65_spill] sm:$0xff] %v9242_v49  ;;  %v9326_v49 = vld [vmem:[#allocation3 + $0x208] sm:$0xff]  ;;  %11389 = vst [vmem:[#allocation6_spill] sm:$0xff] %v9404_v20  ;;  %v9482_v20 = vld [vmem:[#allocation3 + $0x338] sm:$0xff] }
 0x6d5   : > { %4532 = vst.msk [vmem:[#allocation3 + $0x378] sm:$0xff] %vm1665_vm3, %v4451_v26  ;;  %v9240_v26 = vld [vmem:[#allocation3 + $0x158] sm:$0xff]  ;;  %11370 = vst [vmem:[#allocation19_spill] sm:$0xff] %v9326_v49  ;;  %v9400_v49 = vld [vmem:[#allocation3 + $0x290] sm:$0xff] }
 0x6d6   : > { %v4453_v23 = vpop.permute.xlu0 %4452  ;;  %11347 = vst [vmem:[#allocation44_spill] sm:$0xff] %v9240_v26  ;;  %v9324_v26 = vld [vmem:[#allocation3 + $0x200] sm:$0xff]  ;;  %11387 = vst [vmem:[#allocation35_spill] sm:$0xff] %v9400_v49  ;;  %v9498_v19 = vld [vmem:[#allocation3 + $0x358] sm:$0xff] }
 0x6d7   : > { %4533 = vst.msk [vmem:[#allocation3 + $0x380] sm:$0xff] %vm1665_vm3, %v4453_v23  ;;  %v9230_v23 = vld [vmem:[#allocation3 + $0x140] sm:$0xff]  ;;  %11369 = vst [vmem:[#allocation36_spill] sm:$0xff] %v9324_v26  ;;  %v9402_v26 = vld [vmem:[#allocation3 + $0x298] sm:$0xff] }
 0x6d8   : > { %v4455_v47 = vpop.permute.xlu1 %4454  ;;  %11346 = vst [vmem:[#allocation32_spill] sm:$0xff] %v9230_v23  ;;  %v9308_v23 = vld [vmem:[#allocation3 + $0x1e8] sm:$0xff]  ;;  %11388 = vst [vmem:[#allocation52_spill] sm:$0xff] %v9402_v26  ;;  %v9484_v26 = vld [vmem:[#allocation3 + $0x340] sm:$0xff] }
 0x6d9   : > { %4534 = vst.msk [vmem:[#allocation3 + $0x388] sm:$0xff] %vm1665_vm3, %v4455_v47  ;;  %v9192_v47 = vld [vmem:[#allocation3 + $0xf8] sm:$0xff]  ;;  %11365 = vst [vmem:[#allocation64_spill] sm:$0xff] %v9308_v23  ;;  %v9384_v23 = vld [vmem:[#allocation3 + $0x270] sm:$0xff] }
 0x6da   : > { %v4457_v8 = vpop.permute.xlu0 %4456  ;;  %11383 = vst [vmem:[#allocation29_spill] sm:$0xff] %v9384_v23  ;;  %v9470_v23 = vld [vmem:[#allocation3 + $0x328] sm:$0xff]  ;;  %11408 = vst [vmem:[#allocation59_spill] sm:$0xff] %v9482_v20  ;;  %v9508_v7 = vld [vmem:[#allocation3 + $0x360] sm:$0xff] }
 0x6db   : > { %4535 = vst.msk [vmem:[#allocation3 + $0x390] sm:$0xff] %vm1665_vm3, %v4457_v8  ;;  %v9194_v8 = vld [vmem:[#allocation3 + $0xf0] sm:$0xff]  ;;  %11406 = vst [vmem:[#allocation11_spill] sm:$0xff] %v9470_v23 }
 0x6dc   : > { %v4459_v29 = vpop.permute.xlu1 %4458  ;;  %11409 = vst [vmem:[#allocation58_spill] sm:$0xff] %v9484_v26  ;;  %11412 = vst [vmem:[#allocation73_spill] sm:$0xff] %v9498_v19  ;;  %v9512_v2 = vld [vmem:[#allocation3 + $0x370] sm:$0xff]  ;;  %v9522_v0 = vld [vmem:[#allocation3 + $0x378] sm:$0xff] }
 0x6dd   : > { %4536 = vst.msk [vmem:[#allocation3 + $0x398] sm:$0xff] %vm1665_vm3, %v4459_v29  ;;  %v9196_v29 = vld [vmem:[#allocation3 + $0x108] sm:$0xff]  ;;  %11413 = vst [vmem:[#allocation74_spill] sm:$0xff] %v9508_v7 }
 0x6de   : > { %v4461_v50 = vpop.permute.xlu0 %4460  ;;  %11415 = vst [vmem:[#allocation76_spill] sm:$0xff] %v9512_v2  ;;  %11416 = vst [vmem:[#allocation77_spill] sm:$0xff] %v9522_v0 }
 0x6df   : > { %4537 = vst.msk [vmem:[#allocation3 + $0x3a0] sm:$0xff] %vm1665_vm3, %v4461_v50  ;;  %v9198_v50 = vld [vmem:[#allocation3 + $0x100] sm:$0xff] }
 0x6e0   : > { %v4463_v56 = vpop.permute.xlu1 %4462  ;;  %v9526_v52 = vld [vmem:[#allocation3 + $0x388] sm:$0xff] }
 0x6e1   : > { %4538 = vst.msk [vmem:[#allocation3 + $0x3a8] sm:$0xff] %vm1665_vm3, %v4463_v56  ;;  %v9228_v56 = vld [vmem:[#allocation3 + $0x148] sm:$0xff]  ;;  %11418 = vst [vmem:[#allocation79_spill] sm:$0xff] %v9526_v52 }
 0x6e2   : > { %v4465_v38 = vpop.permute.xlu0 %4464  ;;  %11345 = vst [vmem:[#allocation50_spill] sm:$0xff] %v9228_v56  ;;  %v9306_v56 = vld [vmem:[#allocation3 + $0x1d0] sm:$0xff] }
 0x6e3   : > { %4539 = vst.msk [vmem:[#allocation3 + $0x3b0] sm:$0xff] %vm1665_vm3, %v4465_v38  ;;  %v9226_v38 = vld [vmem:[#allocation3 + $0x130] sm:$0xff]  ;;  %11364 = vst [vmem:[#allocation63_spill] sm:$0xff] %v9306_v56  ;;  %v9390_v56 = vld [vmem:[#allocation3 + $0x288] sm:$0xff] }
 0x6e4   : > { %v4467_v21 = vpop.permute.xlu1 %4466  ;;  %11344 = vst [vmem:[#allocation54_spill] sm:$0xff] %v9226_v38  ;;  %11386 = vst [vmem:[#allocation66_spill] sm:$0xff] %v9390_v56  ;;  %v9464_v56 = vld [vmem:[#allocation3 + $0x310] sm:$0xff] }
 0x6e5   : > { %4540 = vst.msk [vmem:[#allocation3 + $0x3b8] sm:$0xff] %vm1665_vm3, %v4467_v21  ;;  %v9224_v21 = vld [vmem:[#allocation3 + $0x138] sm:$0xff]  ;;  %11403 = vst [vmem:[#allocation47_spill] sm:$0xff] %v9464_v56 }
 0x6e6   : > { %v4469_v34 = vpop.permute.xlu0 %4468  ;;  %11343 = vst [vmem:[#allocation62_spill] sm:$0xff] %v9224_v21  ;;  %v9310_v21 = vld [vmem:[#allocation3 + $0x1e0] sm:$0xff] }
 0x6e7   : > { %4541 = vst.msk [vmem:[#allocation3 + $0x3c0] sm:$0xff] %vm1665_vm3, %v4469_v34  ;;  %11366 = vst [vmem:[#allocation8_spill] sm:$0xff] %v9310_v21  ;;  %v9386_v21 = vld [vmem:[#allocation3 + $0x278] sm:$0xff]  ;;  %v9496_v34 = vld [vmem:[#allocation3 + $0x350] sm:$0xff] }
 0x6e8   : > { %v4471_v5 = vpop.permute.xlu1 %4470  ;;  %11384 = vst [vmem:[#allocation68_spill] sm:$0xff] %v9386_v21  ;;  %v9468_v21 = vld [vmem:[#allocation3 + $0x320] sm:$0xff]  ;;  %11411 = vst [vmem:[#allocation72_spill] sm:$0xff] %v9496_v34  ;;  %v9550_v26 = vld [vmem:[#allocation3 + $0x3a8] sm:$0xff] }
 0x6e9   : > { %4542 = vst.msk [vmem:[#allocation3 + $0x3c8] sm:$0xff] %vm1665_vm3, %v4471_v5  ;;  %v9208_v5 = vld [vmem:[#allocation3 + $0x118] sm:$0xff]  ;;  %11405 = vst [vmem:[#allocation5_spill] sm:$0xff] %v9468_v21  ;;  %v9536_v21 = vld [vmem:[#allocation3 + $0x390] sm:$0xff] }
 0x6ea   : > { %v4473_v60 = vpop.permute.xlu0 %4472  ;;  %11419 = vst [vmem:[#allocation80_spill] sm:$0xff] %v9536_v21  ;;  %v9540_v23 = vld [vmem:[#allocation3 + $0x3a0] sm:$0xff]  ;;  %11422 = vst [vmem:[#allocation83_spill] sm:$0xff] %v9550_v26  ;;  %v9552_v49 = vld [vmem:[#allocation3 + $0x3b0] sm:$0xff] }
 0x6eb   : > { %4543 = vst.msk [vmem:[#allocation3 + $0x3d0] sm:$0xff] %vm1665_vm3, %v4473_v60  ;;  %v9210_v60 = vld [vmem:[#allocation3 + $0x110] sm:$0xff]  ;;  %11421 = vst [vmem:[#allocation82_spill] sm:$0xff] %v9540_v23 }
 0x6ec   : > { %v4475_v53 = vpop.permute.xlu1 %4474  ;;  %11423 = vst [vmem:[#allocation84_spill] sm:$0xff] %v9552_v49  ;;  %v9554_v22 = vld [vmem:[#allocation3 + $0x3b8] sm:$0xff] }
 0x6ed   : > { %4544 = vst.msk [vmem:[#allocation3 + $0x3d8] sm:$0xff] %vm1665_vm3, %v4475_v53  ;;  %v9212_v53 = vld [vmem:[#allocation3 + $0x128] sm:$0xff]  ;;  %11424 = vst [vmem:[#allocation85_spill] sm:$0xff] %v9554_v22 }
 0x6ee   : > { %v4477_v51 = vpop.permute.xlu0 %4476  ;;  %v9564_v7 = vld [vmem:[#allocation3 + $0x3c0] sm:$0xff] }
 0x6ef   : > { %4545 = vst.msk [vmem:[#allocation3 + $0x3e0] sm:$0xff] %vm1665_vm3, %v4477_v51  ;;  %v9214_v51 = vld [vmem:[#allocation3 + $0x120] sm:$0xff]  ;;  %11425 = vst [vmem:[#allocation86_spill] sm:$0xff] %v9564_v7 }
 0x6f0   : > { %v4479_v41 = vpop.permute.xlu1 %4478  ;;  %v9566_v6 = vld [vmem:[#allocation3 + $0x3c8] sm:$0xff] }
 0x6f1   : > { %4546 = vst.msk [vmem:[#allocation3 + $0x3e8] sm:$0xff] %vm1665_vm3, %v4479_v41  ;;  %v9538_v41 = vld [vmem:[#allocation3 + $0x398] sm:$0xff]  ;;  %11426 = vst [vmem:[#allocation87_spill] sm:$0xff] %v9566_v6 }
 0x6f2   : > { %v4481_v13 = vpop.permute.xlu0 %4480  ;;  %11420 = vst [vmem:[#allocation81_spill] sm:$0xff] %v9538_v41 }
 0x6f3   : > { %4547 = vst.msk [vmem:[#allocation3 + $0x3f0] sm:$0xff] %vm1665_vm3, %v4481_v13  ;;  %v9524_v13 = vld [vmem:[#allocation3 + $0x380] sm:$0xff] }
 0x6f4   : > { %v4483_v36 = vpop.permute.xlu1 %4482  ;;  %11417 = vst [vmem:[#allocation78_spill] sm:$0xff] %v9524_v13  ;;  %v9580_v33 = vld [vmem:[#allocation3 + $0x3d8] sm:$0xff] }
 0x6f5   : > { %4548 = vst.msk [vmem:[#allocation3 + $0x3f8] sm:$0xff] %vm1665_vm3, %v4483_v36  ;;  %v9510_v36 = vld [vmem:[#allocation3 + $0x368] sm:$0xff]  ;;  %11428 = vst [vmem:[#allocation89_spill] sm:$0xff] %v9580_v33 }
 0x6f6   : > { %11414 = vst [vmem:[#allocation75_spill] sm:$0xff] %v9510_v36  ;;  %v9568_v36 = vld [vmem:[#allocation3 + $0x3d0] sm:$0xff]  ;;  %v9582_v52 = vld [vmem:[#allocation3 + $0x3e0] sm:$0xff] }
 0x6f7   : > { %11427 = vst [vmem:[#allocation88_spill] sm:$0xff] %v9568_v36  ;;  %11429 = vst [vmem:[#allocation90_spill] sm:$0xff] %v9582_v52 }
 0x6f8   : > { %v9584_v0 = vld [vmem:[#allocation3 + $0x3e8] sm:$0xff] }
 0x6f9   : > { %11430 = vst [vmem:[#allocation91_spill] sm:$0xff] %v9584_v0 }
 0x6fa   : > { %v9594_v26 = vld [vmem:[#allocation3 + $0x3f0] sm:$0xff] }
 0x6fb   : > { %11431 = vst [vmem:[#allocation92_spill] sm:$0xff] %v9594_v26 }
 0x6fc   : > { %v9596_v23 = vld [vmem:[#allocation3 + $0x3f8] sm:$0xff] }
 0x6fd   : > { %11432 = vst [vmem:[#allocation93_spill] sm:$0xff] %v9596_v23 }
 0x715   : > { %v9106_v11 = vpop.permute.xlu0 %4593 }
 0x716   : > { %v11433_v6 = vsub.f32 %v9094_v4, %v9106_v11  ;;  %v11434_v21 = vsub.f32 %v9096_v14, %v9106_v11  ;;  %v11435_v19 = vsub.f32 %v9100_v27, %v9106_v11  ;;  %v11436_v42 = vsub.f32 %v9098_v3, %v9106_v11 }
 0x717   : > { %v11437_v4 = vsub.f32 %v9102_v37, %v9106_v11  ;;  %v11438_v14 = vsub.f32 %v9104_v1, %v9106_v11  ;;  %v11439_v27 = vsub.f32 %v9110_v44, %v9106_v11 }
 0x728   : > { %v9578_v13 = vpop.permute.xlu1 %4633 }
 0x729   : > { %v4636_v41 = vmul.f32 %v9578_v13, %v11433_v6  ;;  %v4637_v33 = vmul.f32 %v9578_v13, %v11434_v21  ;;  %v4638_v20 = vmul.f32 %v9578_v13, %v11435_v19  ;;  %v9626_v59 = vmul.f32 %v9578_v13, %v11436_v42 }
 0x72a   : > { %v9632_v6 = vmul.f32 %v9578_v13, %v11437_v4  ;;  %v9638_v21 = vmul.f32 %v9578_v13, %v11438_v14  ;;  %v9644_v3 = vmul.f32 %v9578_v13, %v11439_v27  ;;  %v11440_v42 = vsub.f32 %v9108_v17, %v9106_v11 }
 0x72b   : > { %v11441_v19 = vsub.f32 %v9112_v35, %v9106_v11  ;;  %v11442_v4 = vsub.f32 %v9118_v18, %v9106_v11  ;;  %v11443_v14 = vsub.f32 %v9122_v9, %v9106_v11  ;;  %v11444_v27 = vsub.f32 %v9120_v48, %v9106_v11 }
 0x72c   : > { %v9650_v37 = vmul.f32 %v9578_v13, %v11440_v42  ;;  %v11445_v42 = vsub.f32 %v9138_v25, %v9106_v11  ;;  %v4670_v23 = vmul.f32 0.2, %v4638_v20 }
 0x72d   : > { %v9656_v1 = vmul.f32 %v9578_v13, %v11441_v19  ;;  %v9662_v44 = vmul.f32 %v9578_v13, %v11442_v4  ;;  %v9668_v17 = vmul.f32 %v9578_v13, %v11443_v14  ;;  %v9674_v35 = vmul.f32 %v9578_v13, %v11444_v27 }
 0x72e   : > { %v9680_v18 = vmul.f32 %v9578_v13, %v11445_v42  ;;  %v11446_v19 = vsub.f32 %v9140_v16, %v9106_v11  ;;  %v11447_v4 = vsub.f32 %v9160_v39, %v9106_v11  ;;  %v11448_v14 = vsub.f32 %v9142_v58, %v9106_v11 }
 0x72f   : > { %v11449_v27 = vsub.f32 %v9164_v54, %v9106_v11  ;;  %v11450_v42 = vsub.f32 %v9162_v10, %v9106_v11  ;;  %v4675_v26 = vmul.f32 0.2, %v9650_v37  ;;  %v4676_v0 = vmul.f32 0.2, %v9656_v1 }
 0x730   : > { %v9686_v9 = vmul.f32 %v9578_v13, %v11446_v19  ;;  %v9692_v48 = vmul.f32 %v9578_v13, %v11447_v4  ;;  %v9698_v25 = vmul.f32 %v9578_v13, %v11448_v14  ;;  %v11451_v19 = vsub.f32 %v9182_v62, %v9106_v11 }
 0x731   : > { %v9704_v16 = vmul.f32 %v9578_v13, %v11449_v27  ;;  %v9710_v39 = vmul.f32 %v9578_v13, %v11450_v42  ;;  %v11452_v4 = vsub.f32 %v9132_v40, %v9106_v11  ;;  %v11453_v14 = vsub.f32 %v9134_v32, %v9106_v11 }
 0x732   : > { %v9716_v58 = vmul.f32 %v9578_v13, %v11451_v19  ;;  %v11454_v27 = vsub.f32 %v9136_v31, %v9106_v11  ;;  %v11455_v42 = vsub.f32 %v9154_v28, %v9106_v11  ;;  %v11456_v19 = vsub.f32 %v9152_v46, %v9106_v11 }
 0x733   : > { %v9722_v54 = vmul.f32 %v9578_v13, %v11452_v4  ;;  %v9728_v10 = vmul.f32 %v9578_v13, %v11453_v14  ;;  %v11457_v4 = vsub.f32 %v9156_v61, %v9106_v11  ;;  %v11458_v14 = vsub.f32 %v9158_v43, %v9106_v11 }
 0x734   : > { %v9734_v62 = vmul.f32 %v9578_v13, %v11454_v27  ;;  %v9741_v40 = vmul.f32 %v9578_v13, %v11455_v42  ;;  %v9747_v32 = vmul.f32 %v9578_v13, %v11456_v19  ;;  %v11459_v27 = vsub.f32 %v9176_v57, %v9106_v11 }
 0x735   : > { %v9753_v31 = vmul.f32 %v9578_v13, %v11457_v4  ;;  %v9759_v28 = vmul.f32 %v9578_v13, %v11458_v14  ;;  %v11460_v42 = vsub.f32 %v9174_v30, %v9106_v11  ;;  %v11461_v19 = vsub.f32 %v9178_v63, %v9106_v11 }
 0x736   : > { %v9765_v46 = vmul.f32 %v9578_v13, %v11459_v27  ;;  %v11462_v4 = vsub.f32 %v9180_v45, %v9106_v11  ;;  %v11463_v14 = vsub.f32 %v9194_v8, %v9106_v11  ;;  %v4668_v27 = vmul.f32 0.2, %v4636_v41 }
 0x737   : > { %v9771_v61 = vmul.f32 %v9578_v13, %v11460_v42  ;;  %v9777_v43 = vmul.f32 %v9578_v13, %v11461_v19  ;;  %v4669_v42 = vmul.f32 0.2, %v4637_v33  ;;  %v11464_v63 = vsub.f32 %v9192_v47, %v9106_v11 }
 0x738   : > { %v9783_v57 = vmul.f32 %v9578_v13, %v11462_v4  ;;  %v9789_v30 = vmul.f32 %v9578_v13, %v11463_v14  ;;  %v4671_v8 = vmul.f32 0.2, %v9626_v59  ;;  %v4672_v19 = vmul.f32 0.2, %v9632_v6 }
 0x739   : > { %v9800_v45 = vmul.f32 %v9578_v13, %v11464_v63  ;;  %v4673_v4 = vmul.f32 0.2, %v9638_v21  ;;  %v4674_v14 = vmul.f32 0.2, %v9644_v3  ;;  %v4700_v52 = vmax.f32 %v4636_v41, %v4668_v27 }
 0x73a   : > { %v4677_v47 = vmul.f32 0.2, %v9662_v44  ;;  %v4678_v63 = vmul.f32 0.2, %v9668_v17  ;;  %v4679_v36 = vmul.f32 0.2, %v9674_v35  ;;  %v4701_v7 = vmax.f32 %v4637_v33, %v4669_v42 }
 0x73b   : > { %v4680_v22 = vmul.f32 0.2, %v9680_v18  ;;  %v4681_v49 = vmul.f32 0.2, %v9686_v9  ;;  %v4682_v2 = vmul.f32 0.2, %v9692_v48  ;;  %v4702_v34 = vmax.f32 %v4638_v20, %v4670_v23 }
 0x73c   : > { %4732 = vst.msk [vmem:[%s9794_s29] sm:$0xff] %vm1665_vm3, %v4700_v52  ;;  %v4683_v41 = vmul.f32 0.2, %v9698_v25  ;;  %v4684_v27 = vmul.f32 0.2, %v9704_v16  ;;  %v4703_v56 = vmax.f32 %v9626_v59, %v4671_v8  ;;  %4733 = vst.msk [vmem:[%s9794_s29 + $0x8] sm:$0xff] %vm1665_vm3, %v4701_v7  ;;  %v4704_v23 = vmax.f32 %v9632_v6, %v4672_v19 }
 0x73d   : > { %v4685_v12 = vmul.f32 0.2, %v9710_v39  ;;  %v4686_v33 = vmul.f32 0.2, %v9716_v58  ;;  %v4687_v42 = vmul.f32 0.2, %v9722_v54  ;;  %v4705_v8 = vmax.f32 %v9638_v21, %v4673_v4 }
 0x73e   : > { %v4688_v20 = vmul.f32 0.2, %v9728_v10  ;;  %4734 = vst.msk [vmem:[%s9794_s29 + $0x10] sm:$0xff] %vm1665_vm3, %v4702_v34  ;;  %v4689_v52 = vmul.f32 0.2, %v9734_v62  ;;  %4735 = vst.msk [vmem:[%s9794_s29 + $0x18] sm:$0xff] %vm1665_vm3, %v4703_v56  ;;  %v4706_v19 = vmax.f32 %v9644_v3, %v4674_v14  ;;  %v4707_v4 = vmax.f32 %v9650_v37, %v4675_v26 }
 0x73f   : > { %v4690_v15 = vmul.f32 0.2, %v9741_v40  ;;  %v4691_v59 = vmul.f32 0.2, %v9747_v32  ;;  %v4692_v7 = vmul.f32 0.2, %v9753_v31  ;;  %v4708_v3 = vmax.f32 %v9656_v1, %v4676_v0 }
 0x740   : > { %v4693_v55 = vmul.f32 0.2, %v9759_v28  ;;  %v4694_v6 = vmul.f32 0.2, %v9765_v46  ;;  %4736 = vst.msk [vmem:[%s9794_s29 + $0x20] sm:$0xff] %vm1665_vm3, %v4704_v23  ;;  %4737 = vst.msk [vmem:[%s9794_s29 + $0x28] sm:$0xff] %vm1665_vm3, %v4705_v8  ;;  %v4709_v14 = vmax.f32 %v9662_v44, %v4677_v47  ;;  %v4710_v23 = vmax.f32 %v9668_v17, %v4678_v63 }
 0x741   : > { %v4695_v34 = vmul.f32 0.2, %v9771_v61  ;;  %v4696_v24 = vmul.f32 0.2, %v9777_v43  ;;  %v4697_v21 = vmul.f32 0.2, %v9783_v57  ;;  %v4711_v26 = vmax.f32 %v9674_v35, %v4679_v36 }
 0x742   : > { %v4698_v56 = vmul.f32 0.2, %v9789_v30  ;;  %v4699_v38 = vmul.f32 0.2, %v9800_v45  ;;  %4738 = vst.msk [vmem:[%s9794_s29 + $0x30] sm:$0xff] %vm1665_vm3, %v4706_v19  ;;  %v4712_v37 = vmax.f32 %v9680_v18, %v4680_v22  ;;  %v4713_v8 = vmax.f32 %v9686_v9, %v4681_v49  ;;  %4739 = vst.msk [vmem:[%s9794_s29 + $0x38] sm:$0xff] %vm1665_vm3, %v4707_v4 }
 0x743   : > { %v4714_v0 = vmax.f32 %v9692_v48, %v4682_v2  ;;  %v4715_v1 = vmax.f32 %v9698_v25, %v4683_v41  ;;  %v4716_v44 = vmax.f32 %v9704_v16, %v4684_v27  ;;  %v4717_v17 = vmax.f32 %v9710_v39, %v4685_v12  ;;  %4740 = vst.msk [vmem:[%s9794_s29 + $0x40] sm:$0xff] %vm1665_vm3, %v4708_v3  ;;  %v11479_v41 = vld [vmem:[#allocation65_spill] sm:$0xff]  ;;  %v11485_v19 = vld [vmem:[#allocation39_spill] sm:$0xff]  ;;  %v11487_v4 = vld [vmem:[#allocation56_spill] sm:$0xff] }
 0x744   : > { %4741 = vst.msk [vmem:[%s9794_s29 + $0x48] sm:$0xff] %vm1665_vm3, %v4709_v14  ;;  %v4718_v22 = vmax.f32 %v9716_v58, %v4686_v33  ;;  %v4719_v49 = vmax.f32 %v9722_v54, %v4687_v42  ;;  %v4720_v2 = vmax.f32 %v9728_v10, %v4688_v20  ;;  %v4721_v36 = vmax.f32 %v9734_v62, %v4689_v52  ;;  %v11481_v42 = vld [vmem:[#allocation44_spill] sm:$0xff]  ;;  %v11489_v14 = vld [vmem:[#allocation34_spill] sm:$0xff] }
 0x745   : > { %4742 = vst.msk [vmem:[%s9794_s29 + $0x50] sm:$0xff] %vm1665_vm3, %v4710_v23  ;;  %4743 = vst.msk [vmem:[%s9794_s29 + $0x58] sm:$0xff] %vm1665_vm3, %v4711_v26  ;;  %v4722_v12 = vmax.f32 %v9741_v40, %v4690_v15  ;;  %v4723_v35 = vmax.f32 %v9747_v32, %v4691_v59  ;;  %v4724_v18 = vmax.f32 %v9753_v31, %v4692_v7  ;;  %v11483_v59 = vld [vmem:[#allocation51_spill] sm:$0xff] }
 0x746   : > { %4744 = vst.msk [vmem:[%s9794_s29 + $0x60] sm:$0xff] %vm1665_vm3, %v4712_v37  ;;  %4745 = vst.msk [vmem:[%s9794_s29 + $0x68] sm:$0xff] %vm1665_vm3, %v4713_v8  ;;  %v4725_v9 = vmax.f32 %v9759_v28, %v4693_v55  ;;  %v4726_v15 = vmax.f32 %v9765_v46, %v4694_v6  ;;  %v4727_v48 = vmax.f32 %v9771_v61, %v4695_v34  ;;  %v11491_v37 = vld [vmem:[#allocation60_spill] sm:$0xff] }
 0x747   : > { %4746 = vst.msk [vmem:[%s9794_s29 + $0x70] sm:$0xff] %vm1665_vm3, %v4714_v0  ;;  %4747 = vst.msk [vmem:[%s9794_s29 + $0x78] sm:$0xff] %vm1665_vm3, %v4715_v1  ;;  %v4728_v25 = vmax.f32 %v9777_v43, %v4696_v24  ;;  %v4729_v55 = vmax.f32 %v9783_v57, %v4697_v21  ;;  %v4730_v16 = vmax.f32 %v9789_v30, %v4698_v56  ;;  %v11493_v1 = vld [vmem:[#allocation38_spill] sm:$0xff] }
 0x748   : > { %4748 = vst.msk [vmem:[%s9794_s29 + $0x80] sm:$0xff] %vm1665_vm3, %v4716_v44  ;;  %4749 = vst.msk [vmem:[%s9794_s29 + $0x88] sm:$0xff] %vm1665_vm3, %v4717_v17  ;;  %v4731_v39 = vmax.f32 %v9800_v45, %v4699_v38  ;;  %v11465_v24 = vsub.f32 %v9198_v50, %v9106_v11  ;;  %v11466_v54 = vsub.f32 %v9196_v29, %v9106_v11  ;;  %v11477_v45 = vld [vmem:[#allocation50_spill] sm:$0xff] }
 0x749   : > { %4750 = vst.msk [vmem:[%s9794_s29 + $0x90] sm:$0xff] %vm1665_vm3, %v4718_v22  ;;  %4751 = vst.msk [vmem:[%s9794_s29 + $0x98] sm:$0xff] %vm1665_vm3, %v4719_v49  ;;  %v11467_v38 = vsub.f32 %v9210_v60, %v9106_v11  ;;  %v11468_v50 = vsub.f32 %v9208_v5, %v9106_v11  ;;  %v11469_v29 = vsub.f32 %v9214_v51, %v9106_v11  ;;  %v11471_v5 = vld [vmem:[#allocation54_spill] sm:$0xff]  ;;  %v11495_v22 = vld [vmem:[#allocation48_spill] sm:$0xff] }
 0x74a   : > { %4752 = vst.msk [vmem:[%s9794_s29 + $0xa0] sm:$0xff] %vm1665_vm3, %v4720_v2  ;;  %4753 = vst.msk [vmem:[%s9794_s29 + $0xa8] sm:$0xff] %vm1665_vm3, %v4721_v36  ;;  %v4828_v58 = vmul.f32 %v11465_v24, %v9578_v13  ;;  %v4829_v10 = vmul.f32 %v11466_v54, %v9578_v13  ;;  %v11470_v31 = vsub.f32 %v9212_v53, %v9106_v11  ;;  %v11473_v51 = vld [vmem:[#allocation62_spill] sm:$0xff]  ;;  %v11475_v53 = vld [vmem:[#allocation32_spill] sm:$0xff] }
 0x74b   : > { %4754 = vst.msk [vmem:[%s9794_s29 + $0xb0] sm:$0xff] %vm1665_vm3, %v4722_v12  ;;  %4755 = vst.msk [vmem:[%s9794_s29 + $0xb8] sm:$0xff] %vm1665_vm3, %v4723_v35  ;;  %v4830_v62 = vmul.f32 %v11467_v38, %v9578_v13  ;;  %v9936_v40 = vmul.f32 %v11468_v50, %v9578_v13  ;;  %v9942_v32 = vmul.f32 %v11469_v29, %v9578_v13  ;;  %v11497_v36 = vld [vmem:[#allocation55_spill] sm:$0xff]  ;;  %v11505_v54 = vld [vmem:[#allocation69_spill] sm:$0xff] }
 0x74c   : > { %4756 = vst.msk [vmem:[%s9794_s29 + $0xc0] sm:$0xff] %vm1665_vm3, %v4724_v18  ;;  %4757 = vst.msk [vmem:[%s9794_s29 + $0xc8] sm:$0xff] %vm1665_vm3, %v4725_v9  ;;  %v9948_v28 = vmul.f32 %v11470_v31, %v9578_v13  ;;  %v11472_v60 = vsub.f32 %v11471_v5, %v9106_v11  ;;  %v11474_v61 = vsub.f32 %v11473_v51, %v9106_v11  ;;  %v11499_v18 = vld [vmem:[#allocation25_spill] sm:$0xff] }
 0x74d   : > { %4758 = vst.msk [vmem:[%s9794_s29 + $0xd0] sm:$0xff] %vm1665_vm3, %v4726_v15  ;;  %4759 = vst.msk [vmem:[%s9794_s29 + $0xd8] sm:$0xff] %vm1665_vm3, %v4727_v48  ;;  %v11476_v57 = vsub.f32 %v11475_v53, %v9106_v11  ;;  %v11478_v47 = vsub.f32 %v11477_v45, %v9106_v11  ;;  %v11480_v27 = vsub.f32 %v11479_v41, %v9106_v11  ;;  %v11501_v48 = vld [vmem:[#allocation13_spill] sm:$0xff]  ;;  %v11511_v53 = vld [vmem:[#allocation63_spill] sm:$0xff] }
 0x74e   : > { %4760 = vst.msk [vmem:[%s9794_s29 + $0xe0] sm:$0xff] %vm1665_vm3, %v4728_v25  ;;  %4761 = vst.msk [vmem:[%s9794_s29 + $0xe8] sm:$0xff] %vm1665_vm3, %v4729_v55  ;;  %v9958_v46 = vmul.f32 %v11472_v60, %v9578_v13  ;;  %v9964_v43 = vmul.f32 %v11474_v61, %v9578_v13  ;;  %v11482_v20 = vsub.f32 %v11481_v42, %v9106_v11  ;;  %v11507_v29 = vld [vmem:[#allocation41_spill] sm:$0xff]  ;;  %v11515_v42 = vld [vmem:[#allocation8_spill] sm:$0xff] }
 0x74f   : > { %4762 = vst.msk [vmem:[%s9794_s29 + $0xf0] sm:$0xff] %vm1665_vm3, %v4730_v16  ;;  %4763 = vst.msk [vmem:[%s9794_s29 + $0xf8] sm:$0xff] %vm1665_vm3, %v4731_v39  ;;  %v9970_v30 = vmul.f32 %v11476_v57, %v9578_v13  ;;  %v9976_v63 = vmul.f32 %v11478_v47, %v9578_v13  ;;  %v9982_v33 = vmul.f32 %v11480_v27, %v9578_v13  ;;  %v11503_v16 = vld [vmem:[#allocation28_spill] sm:$0xff]  ;;  %v11509_v60 = vld [vmem:[#allocation9_spill] sm:$0xff] }
 0x750   : > { %v9988_v52 = vmul.f32 %v11482_v20, %v9578_v13  ;;  %v11484_v7 = vsub.f32 %v11483_v59, %v9106_v11  ;;  %v11486_v34 = vsub.f32 %v11485_v19, %v9106_v11  ;;  %v11488_v56 = vsub.f32 %v11487_v4, %v9106_v11  ;;  %v11513_v47 = vld [vmem:[#allocation18_spill] sm:$0xff]  ;;  %v11519_v4 = vld [vmem:[#allocation24_spill] sm:$0xff] }
 0x751   : > { %v11490_v23 = vsub.f32 %v11489_v14, %v9106_v11  ;;  %v11492_v8 = vsub.f32 %v11491_v37, %v9106_v11  ;;  %v11494_v44 = vsub.f32 %v11493_v1, %v9106_v11  ;;  %v11496_v49 = vsub.f32 %v11495_v22, %v9106_v11  ;;  %v11521_v1 = vld [vmem:[#allocation53_spill] sm:$0xff] }
 0x752   : > { %v9994_v6 = vmul.f32 %v11484_v7, %v9578_v13  ;;  %v10000_v21 = vmul.f32 %v11486_v34, %v9578_v13  ;;  %v10006_v3 = vmul.f32 %v11488_v56, %v9578_v13  ;;  %v11498_v12 = vsub.f32 %v11497_v36, %v9106_v11  ;;  %v11517_v7 = vld [vmem:[#allocation64_spill] sm:$0xff] }
 0x753   : > { %v10012_v26 = vmul.f32 %v11490_v23, %v9578_v13  ;;  %v10018_v0 = vmul.f32 %v11492_v8, %v9578_v13  ;;  %v10024_v17 = vmul.f32 %v11494_v44, %v9578_v13  ;;  %v10030_v2 = vmul.f32 %v11496_v49, %v9578_v13 }
 0x754   : > { %v10036_v35 = vmul.f32 %v11498_v12, %v9578_v13  ;;  %v11500_v9 = vsub.f32 %v11499_v18, %v9106_v11  ;;  %v11502_v25 = vsub.f32 %v11501_v48, %v9106_v11  ;;  %v11504_v39 = vsub.f32 %v11503_v16, %v9106_v11 }
 0x755   : > { %v11506_v38 = vsub.f32 %v11505_v54, %v9106_v11  ;;  %v11508_v31 = vsub.f32 %v11507_v29, %v9106_v11  ;;  %v11510_v51 = vsub.f32 %v11509_v60, %v9106_v11  ;;  %v11512_v57 = vsub.f32 %v11511_v53, %v9106_v11 }
 0x756   : > { %v10042_v15 = vmul.f32 %v11500_v9, %v9578_v13  ;;  %v10048_v55 = vmul.f32 %v11502_v25, %v9578_v13  ;;  %v10054_v24 = vmul.f32 %v11504_v39, %v9578_v13  ;;  %v11514_v41 = vsub.f32 %v11513_v47, %v9106_v11 }
 0x757   : > { %v10060_v50 = vmul.f32 %v11506_v38, %v9578_v13  ;;  %v10066_v5 = vmul.f32 %v11508_v31, %v9578_v13  ;;  %v10072_v61 = vmul.f32 %v11510_v51, %v9578_v13  ;;  %v10078_v45 = vmul.f32 %v11512_v57, %v9578_v13 }
 0x758   : > { %v10084_v27 = vmul.f32 %v11514_v41, %v9578_v13  ;;  %v11516_v20 = vsub.f32 %v11515_v42, %v9106_v11  ;;  %v11518_v19 = vsub.f32 %v11517_v7, %v9106_v11  ;;  %v11520_v56 = vsub.f32 %v11519_v4, %v9106_v11 }
 0x759   : > { %v4860_v23 = vmul.f32 0.2, %v4828_v58  ;;  %v4861_v37 = vmul.f32 0.2, %v4829_v10  ;;  %v4862_v8 = vmul.f32 0.2, %v4830_v62  ;;  %v11522_v44 = vsub.f32 %v11521_v1, %v9106_v11 }
 0x75a   : > { %v10090_v59 = vmul.f32 %v11516_v20, %v9578_v13  ;;  %v10096_v34 = vmul.f32 %v11518_v19, %v9578_v13  ;;  %v10102_v14 = vmul.f32 %v11520_v56, %v9578_v13  ;;  %v4863_v49 = vmul.f32 0.2, %v9936_v40 }
 0x75b   : > { %v10108_v22 = vmul.f32 %v11522_v44, %v9578_v13  ;;  %v4864_v36 = vmul.f32 0.2, %v9942_v32  ;;  %v4865_v12 = vmul.f32 0.2, %v9948_v28  ;;  %v4866_v18 = vmul.f32 0.2, %v9958_v46 }
 0x75c   : > { %v4867_v9 = vmul.f32 0.2, %v9964_v43  ;;  %v4868_v48 = vmul.f32 0.2, %v9970_v30  ;;  %v4892_v25 = vmax.f32 %v4828_v58, %v4860_v23  ;;  %v4869_v16 = vmul.f32 0.2, %v9976_v63 }
 0x75d   : > { %v4870_v39 = vmul.f32 0.2, %v9982_v33  ;;  %v4871_v54 = vmul.f32 0.2, %v9988_v52  ;;  %v4893_v38 = vmax.f32 %v4829_v10, %v4861_v37  ;;  %v4872_v29 = vmul.f32 0.2, %v9994_v6 }
 0x75e   : > { %v4873_v31 = vmul.f32 0.2, %v10000_v21  ;;  %v4874_v60 = vmul.f32 0.2, %v10006_v3  ;;  %v4894_v51 = vmax.f32 %v4830_v62, %v4862_v8  ;;  %5461 = vst.msk [vmem:[%s9794_s29 + $0x100] sm:$0xff] %vm1665_vm3, %v4892_v25  ;;  %v4895_v47 = vmax.f32 %v9936_v40, %v4863_v49 }
 0x75f   : > { %v4875_v58 = vmul.f32 0.2, %v10012_v26  ;;  %v4876_v53 = vmul.f32 0.2, %v10018_v0  ;;  %v4877_v57 = vmul.f32 0.2, %v10024_v17  ;;  %v4896_v42 = vmax.f32 %v9942_v32, %v4864_v36 }
 0x760   : > { %5462 = vst.msk [vmem:[%s9794_s29 + $0x108] sm:$0xff] %vm1665_vm3, %v4893_v38  ;;  %v4878_v10 = vmul.f32 0.2, %v10030_v2  ;;  %v4879_v41 = vmul.f32 0.2, %v10036_v35  ;;  %5463 = vst.msk [vmem:[%s9794_s29 + $0x110] sm:$0xff] %vm1665_vm3, %v4894_v51  ;;  %v4897_v19 = vmax.f32 %v9948_v28, %v4865_v12  ;;  %v4898_v23 = vmax.f32 %v9958_v46, %v4866_v18 }
 0x761   : > { %v4880_v62 = vmul.f32 0.2, %v10042_v15  ;;  %v4881_v20 = vmul.f32 0.2, %v10048_v55  ;;  %v4882_v7 = vmul.f32 0.2, %v10054_v24  ;;  %v4899_v1 = vmax.f32 %v9964_v43, %v4867_v9 }
 0x762   : > { %v4883_v40 = vmul.f32 0.2, %v10060_v50  ;;  %5464 = vst.msk [vmem:[%s9794_s29 + $0x118] sm:$0xff] %vm1665_vm3, %v4895_v47  ;;  %v4884_v4 = vmul.f32 0.2, %v10066_v5  ;;  %5465 = vst.msk [vmem:[%s9794_s29 + $0x120] sm:$0xff] %vm1665_vm3, %v4896_v42  ;;  %v4900_v46 = vmax.f32 %v9970_v30, %v4868_v48  ;;  %v4901_v36 = vmax.f32 %v9976_v63, %v4869_v16 }
 0x763   : > { %v4885_v56 = vmul.f32 0.2, %v10072_v61  ;;  %v4886_v32 = vmul.f32 0.2, %v10078_v45  ;;  %v4887_v37 = vmul.f32 0.2, %v10084_v27  ;;  %v4902_v12 = vmax.f32 %v9982_v33, %v4870_v39 }
 0x764   : > { %v4888_v8 = vmul.f32 0.2, %v10090_v59  ;;  %v4889_v28 = vmul.f32 0.2, %v10096_v34  ;;  %5466 = vst.msk [vmem:[%s9794_s29 + $0x128] sm:$0xff] %vm1665_vm3, %v4897_v19  ;;  %5467 = vst.msk [vmem:[%s9794_s29 + $0x130] sm:$0xff] %vm1665_vm3, %v4898_v23  ;;  %v4903_v43 = vmax.f32 %v9988_v52, %v4871_v54  ;;  %v4904_v18 = vmax.f32 %v9994_v6, %v4872_v29 }
 0x765   : > { %v4890_v44 = vmul.f32 0.2, %v10102_v14  ;;  %v4891_v49 = vmul.f32 0.2, %v10108_v22  ;;  %v4905_v9 = vmax.f32 %v10000_v21, %v4873_v31  ;;  %5468 = vst.msk [vmem:[%s9794_s29 + $0x138] sm:$0xff] %vm1665_vm3, %v4899_v1  ;;  %v4906_v30 = vmax.f32 %v10006_v3, %v4874_v60  ;;  %5469 = vst.msk [vmem:[%s9794_s29 + $0x140] sm:$0xff] %vm1665_vm3, %v4900_v46 }
 0x766   : > { %v4907_v63 = vmax.f32 %v10012_v26, %v4875_v58  ;;  %v4908_v48 = vmax.f32 %v10018_v0, %v4876_v53  ;;  %v4909_v33 = vmax.f32 %v10024_v17, %v4877_v57  ;;  %5470 = vst.msk [vmem:[%s9794_s29 + $0x148] sm:$0xff] %vm1665_vm3, %v4901_v36  ;;  %v4910_v52 = vmax.f32 %v10030_v2, %v4878_v10  ;;  %v11529_v39 = vld [vmem:[#allocation7_spill] sm:$0xff]  ;;  %v11531_v29 = vld [vmem:[#allocation17_spill] sm:$0xff]  ;;  %v11535_v57 = vld [vmem:[#allocation12_spill] sm:$0xff] }
 0x767   : > { %v4911_v6 = vmax.f32 %v10036_v35, %v4879_v41  ;;  %v4912_v21 = vmax.f32 %v10042_v15, %v4880_v62  ;;  %v4913_v3 = vmax.f32 %v10048_v55, %v4881_v20  ;;  %5471 = vst.msk [vmem:[%s9794_s29 + $0x150] sm:$0xff] %vm1665_vm3, %v4902_v12  ;;  %5472 = vst.msk [vmem:[%s9794_s29 + $0x158] sm:$0xff] %vm1665_vm3, %v4903_v43  ;;  %v11533_v51 = vld [vmem:[#allocation37_spill] sm:$0xff]  ;;  %v11539_v20 = vld [vmem:[#allocation42_spill] sm:$0xff] }
 0x768   : > { %5473 = vst.msk [vmem:[%s9794_s29 + $0x160] sm:$0xff] %vm1665_vm3, %v4904_v18  ;;  %5474 = vst.msk [vmem:[%s9794_s29 + $0x168] sm:$0xff] %vm1665_vm3, %v4905_v9  ;;  %v4914_v26 = vmax.f32 %v10054_v24, %v4882_v7  ;;  %v4915_v0 = vmax.f32 %v10060_v50, %v4883_v40  ;;  %v4916_v17 = vmax.f32 %v10066_v5, %v4884_v4  ;;  %v11537_v41 = vld [vmem:[#allocation33_spill] sm:$0xff]  ;;  %v11541_v19 = vld [vmem:[#allocation46_spill] sm:$0xff] }
 0x769   : > { %v4917_v2 = vmax.f32 %v10072_v61, %v4885_v56  ;;  %5475 = vst.msk [vmem:[%s9794_s29 + $0x170] sm:$0xff] %vm1665_vm3, %v4906_v30  ;;  %5476 = vst.msk [vmem:[%s9794_s29 + $0x178] sm:$0xff] %vm1665_vm3, %v4907_v63  ;;  %v4918_v35 = vmax.f32 %v10078_v45, %v4886_v32  ;;  %v4919_v15 = vmax.f32 %v10084_v27, %v4887_v37  ;;  %v11523_v61 = vld [vmem:[#allocation36_spill] sm:$0xff]  ;;  %v11543_v32 = vld [vmem:[#allocation22_spill] sm:$0xff] }
 0x76a   : > { %5477 = vst.msk [vmem:[%s9794_s29 + $0x180] sm:$0xff] %vm1665_vm3, %v4908_v48  ;;  %5478 = vst.msk [vmem:[%s9794_s29 + $0x188] sm:$0xff] %vm1665_vm3, %v4909_v33  ;;  %v4920_v55 = vmax.f32 %v10090_v59, %v4888_v8  ;;  %v4921_v24 = vmax.f32 %v10096_v34, %v4889_v28  ;;  %v4922_v50 = vmax.f32 %v10102_v14, %v4890_v44  ;;  %v11525_v59 = vld [vmem:[#allocation19_spill] sm:$0xff]  ;;  %v11547_v44 = vld [vmem:[#allocation45_spill] sm:$0xff] }
 0x76b   : > { %5479 = vst.msk [vmem:[%s9794_s29 + $0x190] sm:$0xff] %vm1665_vm3, %v4910_v52  ;;  %5480 = vst.msk [vmem:[%s9794_s29 + $0x198] sm:$0xff] %vm1665_vm3, %v4911_v6  ;;  %v4923_v5 = vmax.f32 %v10108_v22, %v4891_v49  ;;  %v11524_v45 = vsub.f32 %v11523_v61, %v9106_v11  ;;  %v11526_v34 = vsub.f32 %v11525_v59, %v9106_v11  ;;  %v11527_v22 = vld [vmem:[#allocation26_spill] sm:$0xff]  ;;  %v11545_v8 = vld [vmem:[#allocation15_spill] sm:$0xff] }
 0x76c   : > { %5481 = vst.msk [vmem:[%s9794_s29 + $0x1a0] sm:$0xff] %vm1665_vm3, %v4912_v21  ;;  %5482 = vst.msk [vmem:[%s9794_s29 + $0x1a8] sm:$0xff] %vm1665_vm3, %v4913_v3  ;;  %v11528_v25 = vsub.f32 %v11527_v22, %v9106_v11  ;;  %v11530_v54 = vsub.f32 %v11529_v39, %v9106_v11  ;;  %v11532_v31 = vsub.f32 %v11531_v29, %v9106_v11  ;;  %v11549_v36 = vld [vmem:[#allocation57_spill] sm:$0xff]  ;;  %v11553_v63 = vld [vmem:[#allocation68_spill] sm:$0xff] }
 0x76d   : > { %5483 = vst.msk [vmem:[%s9794_s29 + $0x1b0] sm:$0xff] %vm1665_vm3, %v4914_v26  ;;  %5484 = vst.msk [vmem:[%s9794_s29 + $0x1b8] sm:$0xff] %vm1665_vm3, %v4915_v0  ;;  %v5021_v27 = vmul.f32 %v11524_v45, %v9578_v13  ;;  %v5022_v14 = vmul.f32 %v11526_v34, %v9578_v13  ;;  %v11534_v58 = vsub.f32 %v11533_v51, %v9106_v11  ;;  %v11551_v18 = vld [vmem:[#allocation29_spill] sm:$0xff]  ;;  %v11555_v52 = vld [vmem:[#allocation20_spill] sm:$0xff] }
 0x76e   : > { %5485 = vst.msk [vmem:[%s9794_s29 + $0x1c0] sm:$0xff] %vm1665_vm3, %v4916_v17  ;;  %5486 = vst.msk [vmem:[%s9794_s29 + $0x1c8] sm:$0xff] %vm1665_vm3, %v4917_v2  ;;  %v5023_v16 = vmul.f32 %v11528_v25, %v9578_v13  ;;  %v10244_v38 = vmul.f32 %v11530_v54, %v9578_v13  ;;  %v10250_v60 = vmul.f32 %v11532_v31, %v9578_v13  ;;  %v11557_v3 = vld [vmem:[#allocation66_spill] sm:$0xff]  ;;  %v11559_v17 = vld [vmem:[#allocation35_spill] sm:$0xff] }
 0x76f   : > { %5487 = vst.msk [vmem:[%s9794_s29 + $0x1d0] sm:$0xff] %vm1665_vm3, %v4918_v35  ;;  %5488 = vst.msk [vmem:[%s9794_s29 + $0x1d8] sm:$0xff] %vm1665_vm3, %v4919_v15  ;;  %v10256_v53 = vmul.f32 %v11534_v58, %v9578_v13  ;;  %v11536_v47 = vsub.f32 %v11535_v57, %v9106_v11  ;;  %v11538_v62 = vsub.f32 %v11537_v41, %v9106_v11  ;;  %v11561_v15 = vld [vmem:[#allocation52_spill] sm:$0xff]  ;;  %v11565_v45 = vld [vmem:[#allocation14_spill] sm:$0xff] }
 0x770   : > { %5489 = vst.msk [vmem:[%s9794_s29 + $0x1e0] sm:$0xff] %vm1665_vm3, %v4920_v55  ;;  %5490 = vst.msk [vmem:[%s9794_s29 + $0x1e8] sm:$0xff] %vm1665_vm3, %v4921_v24  ;;  %v11540_v7 = vsub.f32 %v11539_v20, %v9106_v11  ;;  %v11542_v4 = vsub.f32 %v11541_v19, %v9106_v11  ;;  %v11544_v23 = vsub.f32 %v11543_v32, %v9106_v11  ;;  %v11567_v22 = vld [vmem:[#allocation23_spill] sm:$0xff]  ;;  %v11575_v20 = vld [vmem:[#allocation49_spill] sm:$0xff] }
 0x771   : > { %5491 = vst.msk [vmem:[%s9794_s29 + $0x1f0] sm:$0xff] %vm1665_vm3, %v4922_v50  ;;  %5492 = vst.msk [vmem:[%s9794_s29 + $0x1f8] sm:$0xff] %vm1665_vm3, %v4923_v5  ;;  %v10266_v10 = vmul.f32 %v11536_v47, %v9578_v13  ;;  %v10272_v42 = vmul.f32 %v11538_v62, %v9578_v13  ;;  %v11546_v28 = vsub.f32 %v11545_v8, %v9106_v11  ;;  %v11563_v50 = vld [vmem:[#allocation6_spill] sm:$0xff]  ;;  %v11569_v54 = vld [vmem:[#allocation43_spill] sm:$0xff] }
 0x772   : > { %v10278_v40 = vmul.f32 %v11540_v7, %v9578_v13  ;;  %v10284_v56 = vmul.f32 %v11542_v4, %v9578_v13  ;;  %v10290_v37 = vmul.f32 %v11544_v23, %v9578_v13  ;;  %v11548_v49 = vsub.f32 %v11547_v44, %v9106_v11  ;;  %v11571_v51 = vld [vmem:[#allocation67_spill] sm:$0xff]  ;;  %v11573_v47 = vld [vmem:[#allocation61_spill] sm:$0xff]  ;;  %v11577_v4 = vld [vmem:[#allocation10_spill] sm:$0xff] }
 0x773   : > { %v10296_v1 = vmul.f32 %v11546_v28, %v9578_v13  ;;  %v11550_v12 = vsub.f32 %v11549_v36, %v9106_v11  ;;  %v11552_v9 = vsub.f32 %v11551_v18, %v9106_v11  ;;  %v11554_v48 = vsub.f32 %v11553_v63, %v9106_v11  ;;  %v11579_v8 = vld [vmem:[#allocation70_spill] sm:$0xff]  ;;  %v11583_v18 = vld [vmem:[#allocation21_spill] sm:$0xff] }
 0x774   : > { %v10302_v46 = vmul.f32 %v11548_v49, %v9578_v13  ;;  %v11556_v6 = vsub.f32 %v11555_v52, %v9106_v11  ;;  %v11558_v26 = vsub.f32 %v11557_v3, %v9106_v11  ;;  %v11560_v2 = vsub.f32 %v11559_v17, %v9106_v11  ;;  %v11581_v49 = vld [vmem:[#allocation16_spill] sm:$0xff]  ;;  %v11585_v3 = vld [vmem:[#allocation30_spill] sm:$0xff] }
 0x775   : > { %v10308_v43 = vmul.f32 %v11550_v12, %v9578_v13  ;;  %v10314_v30 = vmul.f32 %v11552_v9, %v9578_v13  ;;  %v10320_v33 = vmul.f32 %v11554_v48, %v9578_v13  ;;  %v11562_v55 = vsub.f32 %v11561_v15, %v9106_v11 }
 0x776   : > { %v10326_v21 = vmul.f32 %v11556_v6, %v9578_v13  ;;  %v10332_v0 = vmul.f32 %v11558_v26, %v9578_v13  ;;  %v10338_v35 = vmul.f32 %v11560_v2, %v9578_v13  ;;  %v11564_v5 = vsub.f32 %v11563_v50, %v9106_v11 }
 0x777   : > { %v10344_v24 = vmul.f32 %v11562_v55, %v9578_v13  ;;  %v11566_v59 = vsub.f32 %v11565_v45, %v9106_v11  ;;  %v11568_v25 = vsub.f32 %v11567_v22, %v9106_v11  ;;  %v11570_v29 = vsub.f32 %v11569_v54, %v9106_v11 }
 0x778   : > { %v10350_v61 = vmul.f32 %v11564_v5, %v9578_v13  ;;  %v11572_v58 = vsub.f32 %v11571_v51, %v9106_v11  ;;  %v11574_v41 = vsub.f32 %v11573_v47, %v9106_v11  ;;  %v11576_v7 = vsub.f32 %v11575_v20, %v9106_v11 }
 0x779   : > { %v10356_v34 = vmul.f32 %v11566_v59, %v9578_v13  ;;  %v10362_v39 = vmul.f32 %v11568_v25, %v9578_v13  ;;  %v10368_v31 = vmul.f32 %v11570_v29, %v9578_v13  ;;  %v11578_v32 = vsub.f32 %v11577_v4, %v9106_v11 }
 0x77a   : > { %v10374_v57 = vmul.f32 %v11572_v58, %v9578_v13  ;;  %v10380_v62 = vmul.f32 %v11574_v41, %v9578_v13  ;;  %v10386_v19 = vmul.f32 %v11576_v7, %v9578_v13  ;;  %v11580_v28 = vsub.f32 %v11579_v8, %v9106_v11 }
 0x77b   : > { %v10392_v23 = vmul.f32 %v11578_v32, %v9578_v13  ;;  %v11582_v36 = vsub.f32 %v11581_v49, %v9106_v11  ;;  %v11584_v9 = vsub.f32 %v11583_v18, %v9106_v11  ;;  %v5053_v48 = vmul.f32 0.2, %v5021_v27 }
 0x77c   : > { %v10398_v44 = vmul.f32 %v11580_v28, %v9578_v13  ;;  %v5054_v52 = vmul.f32 0.2, %v5022_v14  ;;  %v5055_v6 = vmul.f32 0.2, %v5023_v16  ;;  %v11586_v26 = vsub.f32 %v11585_v3, %v9106_v11 }
 0x77d   : > { %v10404_v12 = vmul.f32 %v11582_v36, %v9578_v13  ;;  %v10410_v63 = vmul.f32 %v11584_v9, %v9578_v13  ;;  %v5056_v2 = vmul.f32 0.2, %v10244_v38  ;;  %v5057_v15 = vmul.f32 0.2, %v10250_v60 }
 0x77e   : > { %v10416_v17 = vmul.f32 %v11586_v26, %v9578_v13  ;;  %v5058_v55 = vmul.f32 0.2, %v10256_v53  ;;  %v5059_v50 = vmul.f32 0.2, %v10266_v10  ;;  %v5060_v5 = vmul.f32 0.2, %v10272_v42 }
 0x77f   : > { %v5061_v45 = vmul.f32 0.2, %v10278_v40  ;;  %v5085_v59 = vmax.f32 %v5021_v27, %v5053_v48  ;;  %v5062_v22 = vmul.f32 0.2, %v10284_v56  ;;  %v5063_v25 = vmul.f32 0.2, %v10290_v37 }
 0x780   : > { %v5064_v54 = vmul.f32 0.2, %v10296_v1  ;;  %v5086_v29 = vmax.f32 %v5022_v14, %v5054_v52  ;;  %v5065_v51 = vmul.f32 0.2, %v10302_v46  ;;  %v5066_v58 = vmul.f32 0.2, %v10308_v43 }
 0x781   : > { %v5067_v47 = vmul.f32 0.2, %v10314_v30  ;;  %v5087_v41 = vmax.f32 %v5023_v16, %v5055_v6  ;;  %5493 = vst.msk [vmem:[%s9794_s29 + $0x200] sm:$0xff] %vm1665_vm3, %v5085_v59  ;;  %v5068_v27 = vmul.f32 0.2, %v10320_v33  ;;  %v5088_v4 = vmax.f32 %v10244_v38, %v5056_v2 }
 0x782   : > { %v5069_v20 = vmul.f32 0.2, %v10326_v21  ;;  %v5070_v7 = vmul.f32 0.2, %v10332_v0  ;;  %5494 = vst.msk [vmem:[%s9794_s29 + $0x208] sm:$0xff] %vm1665_vm3, %v5086_v29  ;;  %v5089_v8 = vmax.f32 %v10250_v60, %v5057_v15  ;;  %v5090_v36 = vmax.f32 %v10256_v53, %v5058_v55 }
 0x783   : > { %v5071_v14 = vmul.f32 0.2, %v10338_v35  ;;  %v5072_v32 = vmul.f32 0.2, %v10344_v24  ;;  %v5073_v16 = vmul.f32 0.2, %v10350_v61  ;;  %v5091_v48 = vmax.f32 %v10266_v10, %v5059_v50 }
 0x784   : > { %5495 = vst.msk [vmem:[%s9794_s29 + $0x210] sm:$0xff] %vm1665_vm3, %v5087_v41  ;;  %v5074_v28 = vmul.f32 0.2, %v10356_v34  ;;  %v5075_v49 = vmul.f32 0.2, %v10362_v39  ;;  %5496 = vst.msk [vmem:[%s9794_s29 + $0x218] sm:$0xff] %vm1665_vm3, %v5088_v4  ;;  %v5092_v3 = vmax.f32 %v10272_v42, %v5060_v5  ;;  %v5093_v10 = vmax.f32 %v10278_v40, %v5061_v45 }
 0x785   : > { %v5076_v38 = vmul.f32 0.2, %v10368_v31  ;;  %v5077_v18 = vmul.f32 0.2, %v10374_v57  ;;  %v5078_v9 = vmul.f32 0.2, %v10380_v62  ;;  %v5094_v15 = vmax.f32 %v10284_v56, %v5062_v22 }
 0x786   : > { %v5079_v60 = vmul.f32 0.2, %v10386_v19  ;;  %5497 = vst.msk [vmem:[%s9794_s29 + $0x220] sm:$0xff] %vm1665_vm3, %v5089_v8  ;;  %v5080_v52 = vmul.f32 0.2, %v10392_v23  ;;  %5498 = vst.msk [vmem:[%s9794_s29 + $0x228] sm:$0xff] %vm1665_vm3, %v5090_v36  ;;  %v5095_v55 = vmax.f32 %v10290_v37, %v5063_v25  ;;  %v5096_v42 = vmax.f32 %v10296_v1, %v5064_v54 }
 0x787   : > { %v5081_v6 = vmul.f32 0.2, %v10398_v44  ;;  %v5082_v53 = vmul.f32 0.2, %v10404_v12  ;;  %v5083_v26 = vmul.f32 0.2, %v10410_v63  ;;  %v5097_v50 = vmax.f32 %v10302_v46, %v5065_v51 }
 0x788   : > { %v5084_v2 = vmul.f32 0.2, %v10416_v17  ;;  %5499 = vst.msk [vmem:[%s9794_s29 + $0x230] sm:$0xff] %vm1665_vm3, %v5091_v48  ;;  %v5098_v5 = vmax.f32 %v10308_v43, %v5066_v58  ;;  %5500 = vst.msk [vmem:[%s9794_s29 + $0x238] sm:$0xff] %vm1665_vm3, %v5092_v3  ;;  %v5099_v40 = vmax.f32 %v10314_v30, %v5067_v47  ;;  %v5100_v56 = vmax.f32 %v10320_v33, %v5068_v27  ;;  %v11593_v25 = vld [vmem:[#allocation4_spill] sm:$0xff]  ;;  %v11595_v51 = vld [vmem:[#allocation5_spill] sm:$0xff] }
 0x789   : > { %v5101_v45 = vmax.f32 %v10326_v21, %v5069_v20  ;;  %v5102_v37 = vmax.f32 %v10332_v0, %v5070_v7  ;;  %5501 = vst.msk [vmem:[%s9794_s29 + $0x240] sm:$0xff] %vm1665_vm3, %v5093_v10  ;;  %5502 = vst.msk [vmem:[%s9794_s29 + $0x248] sm:$0xff] %vm1665_vm3, %v5094_v15  ;;  %v5103_v1 = vmax.f32 %v10338_v35, %v5071_v14  ;;  %v11597_v41 = vld [vmem:[#allocation11_spill] sm:$0xff] }
 0x78a   : > { %v5104_v46 = vmax.f32 %v10344_v24, %v5072_v32  ;;  %v5105_v43 = vmax.f32 %v10350_v61, %v5073_v16  ;;  %v5106_v30 = vmax.f32 %v10356_v34, %v5074_v28  ;;  %5503 = vst.msk [vmem:[%s9794_s29 + $0x250] sm:$0xff] %vm1665_vm3, %v5095_v55  ;;  %5504 = vst.msk [vmem:[%s9794_s29 + $0x258] sm:$0xff] %vm1665_vm3, %v5096_v42  ;;  %v11599_v7 = vld [vmem:[#allocation27_spill] sm:$0xff]  ;;  %v11603_v28 = vld [vmem:[#allocation58_spill] sm:$0xff] }
 0x78b   : > { %5505 = vst.msk [vmem:[%s9794_s29 + $0x260] sm:$0xff] %vm1665_vm3, %v5097_v50  ;;  %5506 = vst.msk [vmem:[%s9794_s29 + $0x268] sm:$0xff] %vm1665_vm3, %v5098_v5  ;;  %v5107_v33 = vmax.f32 %v10362_v39, %v5075_v49  ;;  %v5108_v21 = vmax.f32 %v10368_v31, %v5076_v38  ;;  %v5109_v0 = vmax.f32 %v10374_v57, %v5077_v18  ;;  %v11601_v32 = vld [vmem:[#allocation59_spill] sm:$0xff]  ;;  %v11615_v50 = vld [vmem:[#allocation76_spill] sm:$0xff] }
 0x78c   : > { %v5110_v35 = vmax.f32 %v10380_v62, %v5078_v9  ;;  %5507 = vst.msk [vmem:[%s9794_s29 + $0x270] sm:$0xff] %vm1665_vm3, %v5099_v40  ;;  %5508 = vst.msk [vmem:[%s9794_s29 + $0x278] sm:$0xff] %vm1665_vm3, %v5100_v56  ;;  %v5111_v24 = vmax.f32 %v10386_v19, %v5079_v60  ;;  %v5112_v61 = vmax.f32 %v10392_v23, %v5080_v52  ;;  %v11587_v62 = vld [vmem:[#allocation31_spill] sm:$0xff]  ;;  %v11607_v60 = vld [vmem:[#allocation72_spill] sm:$0xff] }
 0x78d   : > { %5509 = vst.msk [vmem:[%s9794_s29 + $0x280] sm:$0xff] %vm1665_vm3, %v5101_v45  ;;  %5510 = vst.msk [vmem:[%s9794_s29 + $0x288] sm:$0xff] %vm1665_vm3, %v5102_v37  ;;  %v5113_v34 = vmax.f32 %v10398_v44, %v5081_v6  ;;  %v5114_v39 = vmax.f32 %v10404_v12, %v5082_v53  ;;  %v5115_v31 = vmax.f32 %v10410_v63, %v5083_v26  ;;  %v11589_v44 = vld [vmem:[#allocation40_spill] sm:$0xff]  ;;  %v11605_v36 = vld [vmem:[#allocation71_spill] sm:$0xff] }
 0x78e   : > { %5511 = vst.msk [vmem:[%s9794_s29 + $0x290] sm:$0xff] %vm1665_vm3, %v5103_v1  ;;  %5512 = vst.msk [vmem:[%s9794_s29 + $0x298] sm:$0xff] %vm1665_vm3, %v5104_v46  ;;  %v5116_v57 = vmax.f32 %v10416_v17, %v5084_v2  ;;  %v11588_v19 = vsub.f32 %v11587_v62, %v9106_v11  ;;  %v11590_v12 = vsub.f32 %v11589_v44, %v9106_v11  ;;  %v11591_v17 = vld [vmem:[#allocation47_spill] sm:$0xff]  ;;  %v11609_v6 = vld [vmem:[#allocation73_spill] sm:$0xff] }
 0x78f   : > { %5513 = vst.msk [vmem:[%s9794_s29 + $0x2a0] sm:$0xff] %vm1665_vm3, %v5105_v43  ;;  %5514 = vst.msk [vmem:[%s9794_s29 + $0x2a8] sm:$0xff] %vm1665_vm3, %v5106_v30  ;;  %v11592_v59 = vsub.f32 %v11591_v17, %v9106_v11  ;;  %v11594_v54 = vsub.f32 %v11593_v25, %v9106_v11  ;;  %v11596_v58 = vsub.f32 %v11595_v51, %v9106_v11  ;;  %v11611_v26 = vld [vmem:[#allocation74_spill] sm:$0xff]  ;;  %v11613_v15 = vld [vmem:[#allocation75_spill] sm:$0xff] }
 0x790   : > { %5515 = vst.msk [vmem:[%s9794_s29 + $0x2b0] sm:$0xff] %vm1665_vm3, %v5107_v33  ;;  %5516 = vst.msk [vmem:[%s9794_s29 + $0x2b8] sm:$0xff] %vm1665_vm3, %v5108_v21  ;;  %v5214_v23 = vmul.f32 %v11588_v19, %v9578_v13  ;;  %v5215_v63 = vmul.f32 %v11590_v12, %v9578_v13  ;;  %v11598_v27 = vsub.f32 %v11597_v41, %v9106_v11  ;;  %v11617_v56 = vld [vmem:[#allocation77_spill] sm:$0xff]  ;;  %v11619_v1 = vld [vmem:[#allocation78_spill] sm:$0xff] }
 0x791   : > { %5517 = vst.msk [vmem:[%s9794_s29 + $0x2c0] sm:$0xff] %vm1665_vm3, %v5109_v0  ;;  %5518 = vst.msk [vmem:[%s9794_s29 + $0x2c8] sm:$0xff] %vm1665_vm3, %v5110_v35  ;;  %v5216_v22 = vmul.f32 %v11592_v59, %v9578_v13  ;;  %v10552_v29 = vmul.f32 %v11594_v54, %v9578_v13  ;;  %v10558_v47 = vmul.f32 %v11596_v58, %v9578_v13  ;;  %v11621_v30 = vld [vmem:[#allocation79_spill] sm:$0xff]  ;;  %v11623_v0 = vld [vmem:[#allocation80_spill] sm:$0xff] }
 0x792   : > { %5519 = vst.msk [vmem:[%s9794_s29 + $0x2d0] sm:$0xff] %vm1665_vm3, %v5111_v24  ;;  %5520 = vst.msk [vmem:[%s9794_s29 + $0x2d8] sm:$0xff] %vm1665_vm3, %v5112_v61  ;;  %v10564_v20 = vmul.f32 %v11598_v27, %v9578_v13  ;;  %v11600_v4 = vsub.f32 %v11599_v7, %v9106_v11  ;;  %v11602_v16 = vsub.f32 %v11601_v32, %v9106_v11  ;;  %v11625_v61 = vld [vmem:[#allocation81_spill] sm:$0xff]  ;;  %v11629_v19 = vld [vmem:[#allocation83_spill] sm:$0xff] }
 0x793   : > { %5521 = vst.msk [vmem:[%s9794_s29 + $0x2e0] sm:$0xff] %vm1665_vm3, %v5113_v34  ;;  %5522 = vst.msk [vmem:[%s9794_s29 + $0x2e8] sm:$0xff] %vm1665_vm3, %v5114_v39  ;;  %v11604_v49 = vsub.f32 %v11603_v28, %v9106_v11  ;;  %v11606_v18 = vsub.f32 %v11605_v36, %v9106_v11  ;;  %v11608_v48 = vsub.f32 %v11607_v60, %v9106_v11  ;;  %v11631_v17 = vld [vmem:[#allocation84_spill] sm:$0xff]  ;;  %v11633_v54 = vld [vmem:[#allocation85_spill] sm:$0xff] }
 0x794   : > { %5523 = vst.msk [vmem:[%s9794_s29 + $0x2f0] sm:$0xff] %vm1665_vm3, %v5115_v31  ;;  %5524 = vst.msk [vmem:[%s9794_s29 + $0x2f8] sm:$0xff] %vm1665_vm3, %v5116_v57  ;;  %v10574_v14 = vmul.f32 %v11600_v4, %v9578_v13  ;;  %v10580_v8 = vmul.f32 %v11602_v16, %v9578_v13  ;;  %v11610_v53 = vsub.f32 %v11609_v6, %v9106_v11  ;;  %v11627_v31 = vld [vmem:[#allocation82_spill] sm:$0xff]  ;;  %v11637_v4 = vld [vmem:[#allocation87_spill] sm:$0xff] }
 0x795   : > { %v10586_v38 = vmul.f32 %v11604_v49, %v9578_v13  ;;  %v10592_v9 = vmul.f32 %v11606_v18, %v9578_v13  ;;  %v10598_v52 = vmul.f32 %v11608_v48, %v9578_v13  ;;  %v11612_v2 = vsub.f32 %v11611_v26, %v9106_v11  ;;  %v11635_v41 = vld [vmem:[#allocation86_spill] sm:$0xff]  ;;  %v11639_v28 = vld [vmem:[#allocation88_spill] sm:$0xff]  ;;  %v11641_v18 = vld [vmem:[#allocation89_spill] sm:$0xff] }
 0x796   : > { %v10604_v3 = vmul.f32 %v11610_v53, %v9578_v13  ;;  %v11614_v55 = vsub.f32 %v11613_v15, %v9106_v11  ;;  %v11616_v5 = vsub.f32 %v11615_v50, %v9106_v11  ;;  %v11618_v45 = vsub.f32 %v11617_v56, %v9106_v11  ;;  %v11643_v6 = vld [vmem:[#allocation90_spill] sm:$0xff]  ;;  %v11647_v50 = vld [vmem:[#allocation92_spill] sm:$0xff] }
 0x797   : > { %v10610_v10 = vmul.f32 %v11612_v2, %v9578_v13  ;;  %v11620_v46 = vsub.f32 %v11619_v1, %v9106_v11  ;;  %v11622_v33 = vsub.f32 %v11621_v30, %v9106_v11  ;;  %v11624_v35 = vsub.f32 %v11623_v0, %v9106_v11  ;;  %v11645_v2 = vld [vmem:[#allocation91_spill] sm:$0xff]  ;;  %v11649_v30 = vld [vmem:[#allocation93_spill] sm:$0xff] }
 0x798   : > { %v10616_v42 = vmul.f32 %v11614_v55, %v9578_v13  ;;  %v10622_v40 = vmul.f32 %v11616_v5, %v9578_v13  ;;  %v10628_v37 = vmul.f32 %v11618_v45, %v9578_v13  ;;  %v11626_v34 = vsub.f32 %v11625_v61, %v9106_v11 }
 0x799   : > { %v10634_v43 = vmul.f32 %v11620_v46, %v9578_v13  ;;  %v10640_v21 = vmul.f32 %v11622_v33, %v9578_v13  ;;  %v10646_v24 = vmul.f32 %v11624_v35, %v9578_v13  ;;  %v11628_v57 = vsub.f32 %v11627_v31, %v9106_v11 }
 0x79a   : > { %v10652_v39 = vmul.f32 %v11626_v34, %v9578_v13  ;;  %v11630_v44 = vsub.f32 %v11629_v19, %v9106_v11  ;;  %v11632_v59 = vsub.f32 %v11631_v17, %v9106_v11  ;;  %v11634_v51 = vsub.f32 %v11633_v54, %v9106_v11 }
 0x79b   : > { %v10658_v62 = vmul.f32 %v11628_v57, %v9578_v13  ;;  %v11636_v27 = vsub.f32 %v11635_v41, %v9106_v11  ;;  %v11638_v32 = vsub.f32 %v11637_v4, %v9106_v11  ;;  %v11640_v49 = vsub.f32 %v11639_v28, %v9106_v11 }
 0x79c   : > { %v10664_v12 = vmul.f32 %v11630_v44, %v9578_v13  ;;  %v10670_v25 = vmul.f32 %v11632_v59, %v9578_v13  ;;  %v10676_v58 = vmul.f32 %v11634_v51, %v9578_v13  ;;  %v11642_v60 = vsub.f32 %v11641_v18, %v9106_v11 }
 0x79d   : > { %v10682_v7 = vmul.f32 %v11636_v27, %v9578_v13  ;;  %v10688_v16 = vmul.f32 %v11638_v32, %v9578_v13  ;;  %v10694_v36 = vmul.f32 %v11640_v49, %v9578_v13  ;;  %v11644_v53 = vsub.f32 %v11643_v6, %v9106_v11 }
 0x79e   : > { %v10700_v48 = vmul.f32 %v11642_v60, %v9578_v13  ;;  %v11646_v15 = vsub.f32 %v11645_v2, %v9106_v11  ;;  %v11648_v5 = vsub.f32 %v11647_v50, %v9106_v11  ;;  %v5246_v45 = vmul.f32 0.2, %v5214_v23 }
 0x79f   : > { %v10706_v26 = vmul.f32 %v11644_v53, %v9578_v13  ;;  %v5247_v1 = vmul.f32 0.2, %v5215_v63  ;;  %v5248_v46 = vmul.f32 0.2, %v5216_v22  ;;  %v11650_v33 = vsub.f32 %v11649_v30, %v9106_v11 }
 0x7a0   : > { %v10712_v55 = vmul.f32 %v11646_v15, %v9578_v13  ;;  %v10718_v56 = vmul.f32 %v11648_v5, %v9578_v13  ;;  %v5249_v35 = vmul.f32 0.2, %v10552_v29  ;;  %v5250_v61 = vmul.f32 0.2, %v10558_v47 }
 0x7a1   : > { %v10724_v0 = vmul.f32 %v11650_v33, %v9578_v13  ;;  %v5251_v34 = vmul.f32 0.2, %v10564_v20  ;;  %v5252_v31 = vmul.f32 0.2, %v10574_v14  ;;  %v5253_v57 = vmul.f32 0.2, %v10580_v8 }
 0x7a2   : > { %v5254_v19 = vmul.f32 0.2, %v10586_v38  ;;  %v5278_v44 = vmax.f32 %v5214_v23, %v5246_v45  ;;  %v5255_v17 = vmul.f32 0.2, %v10592_v9  ;;  %v5256_v11 = vmul.f32 0.2, %v10598_v52 }
 0x7a3   : > { %v5257_v13 = vmul.f32 0.2, %v10604_v3  ;;  %v5279_v59 = vmax.f32 %v5215_v63, %v5247_v1  ;;  %v5258_v54 = vmul.f32 0.2, %v10610_v10  ;;  %v5259_v51 = vmul.f32 0.2, %v10616_v42 }
 0x7a4   : > { %v5260_v41 = vmul.f32 0.2, %v10622_v40  ;;  %v5280_v27 = vmax.f32 %v5216_v22, %v5248_v46  ;;  %5525 = vst.msk [vmem:[%s9794_s29 + $0x300] sm:$0xff] %vm1665_vm3, %v5278_v44  ;;  %v5261_v23 = vmul.f32 0.2, %v10628_v37  ;;  %v5281_v28 = vmax.f32 %v10552_v29, %v5249_v35 }
 0x7a5   : > { %v5262_v4 = vmul.f32 0.2, %v10634_v43  ;;  %v5263_v32 = vmul.f32 0.2, %v10640_v21  ;;  %5526 = vst.msk [vmem:[%s9794_s29 + $0x308] sm:$0xff] %vm1665_vm3, %v5279_v59  ;;  %v5282_v18 = vmax.f32 %v10558_v47, %v5250_v61  ;;  %v5283_v53 = vmax.f32 %v10564_v20, %v5251_v34 }
 0x7a6   : > { %v5264_v63 = vmul.f32 0.2, %v10646_v24  ;;  %v5265_v49 = vmul.f32 0.2, %v10652_v39  ;;  %v5266_v22 = vmul.f32 0.2, %v10658_v62  ;;  %v5284_v50 = vmax.f32 %v10574_v14, %v5252_v31 }
 0x7a7   : > { %5527 = vst.msk [vmem:[%s9794_s29 + $0x310] sm:$0xff] %vm1665_vm3, %v5280_v27  ;;  %v5267_v60 = vmul.f32 0.2, %v10664_v12  ;;  %v5268_v6 = vmul.f32 0.2, %v10670_v25  ;;  %5528 = vst.msk [vmem:[%s9794_s29 + $0x318] sm:$0xff] %vm1665_vm3, %v5281_v28  ;;  %v5285_v1 = vmax.f32 %v10580_v8, %v5253_v57  ;;  %v5286_v14 = vmax.f32 %v10586_v38, %v5254_v19 }
 0x7a8   : > { %v5269_v29 = vmul.f32 0.2, %v10676_v58  ;;  %v5270_v2 = vmul.f32 0.2, %v10682_v7  ;;  %v5271_v15 = vmul.f32 0.2, %v10688_v16  ;;  %v5287_v33 = vmax.f32 %v10592_v9, %v5255_v17 }
 0x7a9   : > { %v5272_v47 = vmul.f32 0.2, %v10694_v36  ;;  %5529 = vst.msk [vmem:[%s9794_s29 + $0x320] sm:$0xff] %vm1665_vm3, %v5282_v18  ;;  %v5273_v5 = vmul.f32 0.2, %v10700_v48  ;;  %5530 = vst.msk [vmem:[%s9794_s29 + $0x328] sm:$0xff] %vm1665_vm3, %v5283_v53  ;;  %v5288_v35 = vmax.f32 %v10598_v52, %v5256_v11  ;;  %v5289_v8 = vmax.f32 %v10604_v3, %v5257_v13 }
 0x7aa   : > { %v5274_v45 = vmul.f32 0.2, %v10706_v26  ;;  %v5275_v20 = vmul.f32 0.2, %v10712_v55  ;;  %v5276_v46 = vmul.f32 0.2, %v10718_v56  ;;  %v5290_v61 = vmax.f32 %v10610_v10, %v5258_v54 }
 0x7ab   : > { %v5277_v30 = vmul.f32 0.2, %v10724_v0  ;;  %5531 = vst.msk [vmem:[%s9794_s29 + $0x330] sm:$0xff] %vm1665_vm3, %v5284_v50  ;;  %v5291_v34 = vmax.f32 %v10616_v42, %v5259_v51  ;;  %5532 = vst.msk [vmem:[%s9794_s29 + $0x338] sm:$0xff] %vm1665_vm3, %v5285_v1  ;;  %v5292_v38 = vmax.f32 %v10622_v40, %v5260_v41  ;;  %v5293_v9 = vmax.f32 %v10628_v37, %v5261_v23 }
 0x7ac   : > { %v5294_v31 = vmax.f32 %v10634_v43, %v5262_v4  ;;  %v5295_v52 = vmax.f32 %v10640_v21, %v5263_v32  ;;  %5533 = vst.msk [vmem:[%s9794_s29 + $0x340] sm:$0xff] %vm1665_vm3, %v5286_v14  ;;  %5534 = vst.msk [vmem:[%s9794_s29 + $0x348] sm:$0xff] %vm1665_vm3, %v5287_v33  ;;  %v5296_v3 = vmax.f32 %v10646_v24, %v5264_v63 }
 0x7ad   : > { %v5297_v10 = vmax.f32 %v10652_v39, %v5265_v49  ;;  %v5298_v42 = vmax.f32 %v10658_v62, %v5266_v22  ;;  %v5299_v40 = vmax.f32 %v10664_v12, %v5267_v60  ;;  %5535 = vst.msk [vmem:[%s9794_s29 + $0x350] sm:$0xff] %vm1665_vm3, %v5288_v35  ;;  %5536 = vst.msk [vmem:[%s9794_s29 + $0x358] sm:$0xff] %vm1665_vm3, %v5289_v8 }
 0x7ae   : > { %5537 = vst.msk [vmem:[%s9794_s29 + $0x360] sm:$0xff] %vm1665_vm3, %v5290_v61  ;;  %5538 = vst.msk [vmem:[%s9794_s29 + $0x368] sm:$0xff] %vm1665_vm3, %v5291_v34  ;;  %v5300_v37 = vmax.f32 %v10670_v25, %v5268_v6  ;;  %v5301_v43 = vmax.f32 %v10676_v58, %v5269_v29  ;;  %v5302_v21 = vmax.f32 %v10682_v7, %v5270_v2 }
 0x7af   : > { %v5303_v24 = vmax.f32 %v10688_v16, %v5271_v15  ;;  %5539 = vst.msk [vmem:[%s9794_s29 + $0x370] sm:$0xff] %vm1665_vm3, %v5292_v38  ;;  %5540 = vst.msk [vmem:[%s9794_s29 + $0x378] sm:$0xff] %vm1665_vm3, %v5293_v9  ;;  %v5304_v39 = vmax.f32 %v10694_v36, %v5272_v47  ;;  %v5305_v62 = vmax.f32 %v10700_v48, %v5273_v5 }
 0x7b0   : > { %5541 = vst.msk [vmem:[%s9794_s29 + $0x380] sm:$0xff] %vm1665_vm3, %v5294_v31  ;;  %5542 = vst.msk [vmem:[%s9794_s29 + $0x388] sm:$0xff] %vm1665_vm3, %v5295_v52  ;;  %v5306_v12 = vmax.f32 %v10706_v26, %v5274_v45  ;;  %v5307_v25 = vmax.f32 %v10712_v55, %v5275_v20  ;;  %v5308_v58 = vmax.f32 %v10718_v56, %v5276_v46 }
 0x7b1   : > { %5543 = vst.msk [vmem:[%s9794_s29 + $0x390] sm:$0xff] %vm1665_vm3, %v5296_v3  ;;  %5544 = vst.msk [vmem:[%s9794_s29 + $0x398] sm:$0xff] %vm1665_vm3, %v5297_v10  ;;  %v5309_v7 = vmax.f32 %v10724_v0, %v5277_v30 }
 0x7b2   : > { %5545 = vst.msk [vmem:[%s9794_s29 + $0x3a0] sm:$0xff] %vm1665_vm3, %v5298_v42  ;;  %5546 = vst.msk [vmem:[%s9794_s29 + $0x3a8] sm:$0xff] %vm1665_vm3, %v5299_v40 }
 0x7b3   : > { %5547 = vst.msk [vmem:[%s9794_s29 + $0x3b0] sm:$0xff] %vm1665_vm3, %v5300_v37  ;;  %5548 = vst.msk [vmem:[%s9794_s29 + $0x3b8] sm:$0xff] %vm1665_vm3, %v5301_v43 }
 0x7b4   : > { %5549 = vst.msk [vmem:[%s9794_s29 + $0x3c0] sm:$0xff] %vm1665_vm3, %v5302_v21  ;;  %5550 = vst.msk [vmem:[%s9794_s29 + $0x3c8] sm:$0xff] %vm1665_vm3, %v5303_v24 }
 0x7b5   : > { %5551 = vst.msk [vmem:[%s9794_s29 + $0x3d0] sm:$0xff] %vm1665_vm3, %v5304_v39  ;;  %5552 = vst.msk [vmem:[%s9794_s29 + $0x3d8] sm:$0xff] %vm1665_vm3, %v5305_v62 }
 0x7b6   : > { %5553 = vst.msk [vmem:[%s9794_s29 + $0x3e0] sm:$0xff] %vm1665_vm3, %v5306_v12  ;;  %5554 = vst.msk [vmem:[%s9794_s29 + $0x3e8] sm:$0xff] %vm1665_vm3, %v5307_v25 }
 0x7b7   : > { %5555 = vst.msk [vmem:[%s9794_s29 + $0x3f0] sm:$0xff] %vm1665_vm3, %v5308_v58  ;;  %5556 = vst.msk [vmem:[%s9794_s29 + $0x3f8] sm:$0xff] %vm1665_vm3, %v5309_v7 }
 0x7b8 PF: > { %s12_s9 = sadd.s32 1, %s5756_s9  }
 0x7b9   : > { %p9_p4 = scmp.ge.s32.totalorder %s12_s9, 4  }
 0x7bb   :  { %11 = sbr.rel (!%p9_p4) target bundleno = 1 (0x1), region = 66 }

</bundles_post_ra>
